<compile_context>
chip_gen: v7x
topology: tpu7x:2x2x1
jax: 0.10.0
libtpu: 0.0.40
codegen_flags: <defaults>
</compile_context>

<pallas_src>
import jax
import jax.numpy as jnp
from jax.experimental import pallas as pl
from jax.experimental.pallas import tpu as pltpu

# Reduced FilmEfficientNet config (EfficientNet-B0-style block structure).
C_STEM = 16
C_S1 = 16               # stage 1: expand 1, k3, stride 1, 16 -> 16
C_S2_IN = 16            # stage 2: expand 4, k3, stride 2, 16 -> 24
C_S2_EXP = 64
C_S2_OUT = 24
C_LAST = 4 * C_S2_OUT   # 96 (last conv = 4 * last stage channels)
EMB = 32                # embedding_dim
SE1 = C_S1 // 4         # squeeze channels = input_channels // 4
SE2 = C_S2_IN // 4
MAX_B = 8               # samples folded into one grid step
# TODO(synk): on v7x, if N/B collapses to a single grid step, one TensorCore
#             idles; pick B = max(1, N // 2) there instead.


# ----------------------------------------------------------------------------
# Fused kernel (transposed, lane-dense layout: [channels, batch*positions])
# ----------------------------------------------------------------------------
def make_kernel(H1, W1, B):
    M1 = H1 * W1
    R1 = B * M1

    def silu(v):
        return v * jax.nn.sigmoid(v)

    def mxu(a, b):
        # bf16 MXU matmul with f32 accumulation (channel mixing / selection).
        return jnp.dot(a.astype(jnp.bfloat16), b.astype(jnp.bfloat16),
                       preferred_element_type=jnp.float32)

    def dotf(a, b):
        # exact f32 dot for tiny SE / FiLM / pooling matmuls.
        return jnp.dot(a, b, preferred_element_type=jnp.float32)

    def kernel(colsT_ref, g1_ref, be1_ref, g2_ref, be2_ref, gt_ref, bet_ref,
               dw_mask_ref, stem_w_ref, stem_b_ref,
               s1_dw_w_ref, s1_dw_b_ref,
               s1_se_w1_ref, s1_se_b1_ref, s1_se_w2_ref, s1_se_b2_ref,
               s1_proj_w_ref, s1_proj_b_ref,
               s2_exp_w_ref, s2_exp_b_ref,
               s2_dw_w_ref, s2_dw_b_ref,
               s2_se_w1_ref, s2_se_b1_ref, s2_se_w2_ref, s2_se_b2_ref,
               s2_proj_w_ref, s2_proj_b_ref,
               last_w_ref, last_b_ref, top_w_ref,
               selT_ref, pool1_ref, exp1_ref, pool2_ref, exp2_ref,
               out_ref):

        def dw3x3(xT, w_ref):
            # Depthwise 3x3, stride 1, 'same' zero padding.
            # xT: [C, R1] (positions on lanes); w_ref: [C, 9] per-channel taps
            # (BN scale folded).  Taps formed with non-negative lane rolls;
            # dw_mask zeroes wrapped / out-of-image / cross-sample positions.
            acc = xT * w_ref[:, 4:5]                       # centre tap (0, 0)
            t = 0
            for dy in (-1, 0, 1):
                for dx in (-1, 0, 1):
                    off = dy * W1 + dx
                    if off != 0:
                        shift = (-off) % R1                # rolled[:, r] = xT[:, r+off]
                        rolled = pltpu.roll(xT, shift, 1)
                        acc = acc + (rolled * dw_mask_ref[t:t + 1, :]) * w_ref[:, t:t + 1]
                    t += 1
            return acc

        def se(xT, pool, expd, w1, b1, w2, b2):
            # Squeeze-Excitation with per-sample spatial mean (pool / expd are
            # host-built per-sample averaging / broadcast matrices).
            s = dotf(xT, pool)                             # [C, B]
            h = silu(dotf(w1, s) + b1)                     # [SE, B]
            g = jax.nn.sigmoid(dotf(w2, h) + b2)           # [C, B]
            return xT * dotf(g, expd)                      # gate -> [C, R]

        def film(xT, g_ref, b_ref, expd):
            # g_ref holds per-sample (1 + gamma), b_ref holds beta: [C, B].
            return xT * dotf(g_ref[...], expd) + dotf(b_ref[...], expd)

        exp1 = exp1_ref[...]
        exp2 = exp2_ref[...]

        # ---- stem conv 3x3/s2 (host im2col; /255 + BN folded into weight) ----
        x = silu(mxu(stem_w_ref[...], colsT_ref[...]) + stem_b_ref[...])   # [16, R1]

        # ---- stage 1: MBConv(expand=1, k3, s1) + SE + residual, then FiLM ----
        res = x
        y = silu(dw3x3(x, s1_dw_w_ref) + s1_dw_b_ref[...])
        y = se(y, pool1_ref[...], exp1, s1_se_w1_ref[...], s1_se_b1_ref[...],
               s1_se_w2_ref[...], s1_se_b2_ref[...])
        y = mxu(s1_proj_w_ref[...], y) + s1_proj_b_ref[...]                # project, no act
        y = y + res                                                        # residual first,
        x = film(y, g1_ref, be1_ref, exp1)                                 # FiLM second [16, R1]

        # ---- stage 2: MBConv(expand=4, k3, s2) + SE, then FiLM ----
        y = silu(mxu(s2_exp_w_ref[...], x) + s2_exp_b_ref[...])            # [64, R1]
        y = dw3x3(y, s2_dw_w_ref)                                          # stride-1 dw
        y = mxu(y, selT_ref[...])                                          # stride-2 pick -> [64, R2]
        y = silu(y + s2_dw_b_ref[...])
        y = se(y, pool2_ref[...], exp2, s2_se_w1_ref[...], s2_se_b1_ref[...],
               s2_se_w2_ref[...], s2_se_b2_ref[...])
        y = mxu(s2_proj_w_ref[...], y) + s2_proj_b_ref[...]                # [24, R2]
        x = film(y, g2_ref, be2_ref, exp2)

        # ---- last 1x1 conv + BN + SiLU (include_top=False) ----
        x = silu(mxu(last_w_ref[...], x) + last_b_ref[...])                # [96, R2]

        # ---- outer 1x1 conv (no bias) -> embedding, then outer FiLM ----
        x = mxu(top_w_ref[...], x)                                         # [EMB, R2]
        x = film(x, gt_ref, bet_ref, exp2)

        out_ref[...] = x.astype(out_ref.dtype)                             # lane-dense store

    return kernel


# ----------------------------------------------------------------------------
# Host-side (plain XLA) constant construction
# ----------------------------------------------------------------------------
def _stem_im2col(image_nhwc):
    """im2col for the 3x3/s2 stem conv; K padded 27 -> 32 for lane alignment."""
    N, H, W, C = image_nhwc.shape
    xp = jnp.pad(image_nhwc, ((0, 0), (1, 1), (1, 1), (0, 0)))
    Ho = (H + 1) // 2
    Wo = (W + 1) // 2
    taps = []
    for dy in range(3):
        for dx in range(3):
            taps.append(xp[:, dy:dy + 2 * Ho - 1:2, dx:dx + 2 * Wo - 1:2, :])
    cols = jnp.stack(taps, axis=3).reshape(N, Ho * Wo, 9 * C)
    cols = jnp.pad(cols, ((0, 0), (0, 0), (0, 32 - 9 * C)))
    # TODO(synk): for real RT-1 resolutions (224+ px), form the stem taps
    #             in-kernel (rolls + masks) instead of a 9x-expanded HBM cols.
    return cols, Ho, Wo


def _dw_mask(H, W, B):
    """Per-tap 0/1 validity for the flattened (batch-tiled) position axis."""
    m = jnp.arange(H * W)
    h, w = m // W, m % W
    rows = []
    for dy in (-1, 0, 1):
        for dx in (-1, 0, 1):
            rows.append((h + dy >= 0) & (h + dy < H) & (w + dx >= 0) & (w + dx < W))
    mask = jnp.stack(rows, 0).astype(jnp.float32)           # [9, H*W]
    return jnp.tile(mask, (1, B))                            # [9, B*H*W]


def _stride2_selT(H, W, B):
    """Block-diagonal 0/1 matrix selecting even (h, w) positions (stride 2)."""
    Ho, Wo = H // 2, W // 2
    r_out = jnp.arange(Ho * Wo)
    src = (2 * (r_out // Wo)) * W + 2 * (r_out % Wo)
    sel = (jnp.arange(H * W)[:, None] == src[None, :]).astype(jnp.float32)  # [M1, M2]
    eye = jnp.eye(B, dtype=jnp.float32)
    big = jnp.einsum('bc,mo->bmco', eye, sel).reshape(B * H * W, B * Ho * Wo)
    return big.astype(jnp.bfloat16)                          # 0/1 exact in bf16


def _pool_expand(M, B):
    """Per-sample spatial-mean (pool) and per-sample broadcast (expand) mats."""
    r = jnp.arange(B * M)
    expand = (r[None, :] // M == jnp.arange(B)[:, None]).astype(jnp.float32)  # [B, B*M]
    pool = expand.T / float(M)                                                # [B*M, B]
    return pool, expand


# ----------------------------------------------------------------------------
# Parameters (kernel layout: weights transposed [Cout, Cin], biases [C, 1];
# eval-mode BatchNorm folded; channel-mixing weights pre-cast to bf16)
# ----------------------------------------------------------------------------
def init_params(key):
    ks = iter(jax.random.split(key, 24))

    def kaiming(shape, fan_out):
        return jax.random.normal(next(ks), shape, jnp.float32) * jnp.sqrt(2.0 / fan_out)

    def bn_fold(C, eps=1e-5):
        gamma = jnp.ones((C,), jnp.float32)
        beta = jnp.zeros((C,), jnp.float32)
        mean = jnp.zeros((C,), jnp.float32)
        var = jnp.ones((C,), jnp.float32)
        scale = gamma / jnp.sqrt(var + eps)
        bias = (beta - mean * scale).reshape(C, 1)
        return scale, bias

    def film_w(C):
        wm = jax.random.normal(next(ks), (EMB, C), jnp.float32) * 0.02
        wa = jax.random.normal(next(ks), (EMB, C), jnp.float32) * 0.02
        return wm, wa

    p = {}
    # stem 3x3/s2 conv (kept f32: the runtime /255 factor is folded in later)
    s, b = bn_fold(C_STEM)
    w = kaiming((3, 3, 3, C_STEM), C_STEM * 9).reshape(27, C_STEM)
    p['stem_w'] = (jnp.pad(w, ((0, 5), (0, 0))) * s[None, :]).T            # [16, 32]
    p['stem_b'] = b
    # stage 1 (expand 1, stride 1)
    s, b = bn_fold(C_S1)
    p['s1_dw_w'] = (kaiming((3, 3, C_S1), 9).reshape(9, C_S1) * s[None, :]).T  # [16, 9]
    p['s1_dw_b'] = b
    p['s1_se_w1'] = kaiming((SE1, C_S1), SE1)
    p['s1_se_b1'] = jnp.zeros((SE1, 1), jnp.float32)
    p['s1_se_w2'] = kaiming((C_S1, SE1), C_S1)
    p['s1_se_b2'] = jnp.zeros((C_S1, 1), jnp.float32)
    s, b = bn_fold(C_S1)
    p['s1_proj_w'] = (kaiming((C_S1, C_S1), C_S1) * s[:, None]).astype(jnp.bfloat16)
    p['s1_proj_b'] = b
    # stage 2 (expand 4, stride 2)
    s, b = bn_fold(C_S2_EXP)
    p['s2_exp_w'] = (kaiming((C_S2_EXP, C_S2_IN), C_S2_EXP) * s[:, None]).astype(jnp.bfloat16)
    p['s2_exp_b'] = b
    s, b = bn_fold(C_S2_EXP)
    p['s2_dw_w'] = (kaiming((3, 3, C_S2_EXP), 9).reshape(9, C_S2_EXP) * s[None, :]).T
    p['s2_dw_b'] = b
    p['s2_se_w1'] = kaiming((SE2, C_S2_EXP), SE2)
    p['s2_se_b1'] = jnp.zeros((SE2, 1), jnp.float32)
    p['s2_se_w2'] = kaiming((C_S2_EXP, SE2), C_S2_EXP)
    p['s2_se_b2'] = jnp.zeros((C_S2_EXP, 1), jnp.float32)
    s, b = bn_fold(C_S2_OUT)
    p['s2_proj_w'] = (kaiming((C_S2_OUT, C_S2_EXP), C_S2_OUT) * s[:, None]).astype(jnp.bfloat16)
    p['s2_proj_b'] = b
    # last 1x1 conv + BN
    s, b = bn_fold(C_LAST)
    p['last_w'] = (kaiming((C_LAST, C_S2_OUT), C_LAST) * s[:, None]).astype(jnp.bfloat16)
    p['last_b'] = b
    # outer 1x1 conv (bias=False)
    p['top_w'] = kaiming((EMB, C_LAST), EMB).astype(jnp.bfloat16)
    # FiLM projections (applied on the host; see forward())
    p['s1_film'] = film_w(C_S1)
    p['s2_film'] = film_w(C_S2_OUT)
    p['top_film'] = film_w(EMB)
    return p


# ----------------------------------------------------------------------------
# Forward
# ----------------------------------------------------------------------------
@jax.jit
def film_efficientnet_forward(image, context, params):
    """image: NHWC [N,H,W,3] or NCHW [N,3,H,W]; context: [N, EMB].
    Returns NCHW features [N, EMB, H//4, W//4] (matches the PyTorch layout)."""
    if image.ndim == 3:
        image = image[None]
    if image.shape[-1] != 3:                       # NCHW -> NHWC
        image = jnp.transpose(image, (0, 2, 3, 1))
    N = image.shape[0]

    # /255 normalisation (PyTorch uses the batch-global max) folded into the
    # stem conv weight (the conv is linear and BN is already folded).
    inv = jnp.where(jnp.max(image) >= 1.0, 1.0 / 255.0, 1.0)

    # Fold B samples into each grid step (bigger blocks -> better MXU/lane use).
    B = min(MAX_B, N)
    NB = -(-N // B)
    Npad = NB * B
    if Npad != N:
        image = jnp.pad(image, ((0, Npad - N), (0, 0), (0, 0), (0, 0)))
        context = jnp.pad(context, ((0, Npad - N), (0, 0)))

    cols, H1, W1 = _stem_im2col(image)             # [Npad, M1, 32]
    M1 = H1 * W1
    H2, W2 = H1 // 2, W1 // 2
    M2 = H2 * W2
    R1, R2 = B * M1, B * M2

    # Transposed, lane-dense activation layout: positions on lanes.
    colsT = cols.reshape(NB, B, M1, 32).transpose(0, 3, 1, 2)
    colsT = colsT.reshape(NB, 32, R1).astype(jnp.bfloat16)

    # FiLM (1+gamma)/beta for all stages in one batched host GEMM each.
    def film_blocks(wm, wa, C):
        g = 1.0 + context @ wm                                 # [Npad, C]
        b = context @ wa
        g = g.reshape(NB, B, C).transpose(0, 2, 1)             # [NB, C, B]
        b = b.reshape(NB, B, C).transpose(0, 2, 1)
        return g, b

    g1, be1 = film_blocks(*params['s1_film'], C_S1)
    g2, be2 = film_blocks(*params['s2_film'], C_S2_OUT)
    gt, bet = film_blocks(*params['top_film'], EMB)

    # Grid-invariant constants (hoisted out of the kernel).
    dw_mask = _dw_mask(H1, W1, B)
    selT = _stride2_selT(H1, W1, B)
    pool1, exp1 = _pool_expand(M1, B)
    pool2, exp2 = _pool_expand(M2, B)
    stem_w = (params['stem_w'] * inv).astype(jnp.bfloat16)

    per_block = [colsT, g1, be1, g2, be2, gt, bet]
    weights = [dw_mask, stem_w, params['stem_b'],
               params['s1_dw_w'], params['s1_dw_b'],
               params['s1_se_w1'], params['s1_se_b1'],
               params['s1_se_w2'], params['s1_se_b2'],
               params['s1_proj_w'], params['s1_proj_b'],
               params['s2_exp_w'], params['s2_exp_b'],
               params['s2_dw_w'], params['s2_dw_b'],
               params['s2_se_w1'], params['s2_se_b1'],
               params['s2_se_w2'], params['s2_se_b2'],
               params['s2_proj_w'], params['s2_proj_b'],
               params['last_w'], params['last_b'], params['top_w'],
               selT, pool1, exp1, pool2, exp2]

    per_block_specs = [
        pl.BlockSpec((None,) + a.shape[1:], lambda n: (n, 0, 0)) for a in per_block
    ]
    # TODO(synk): mark these grid-invariant inputs pipeline_mode=pl.Buffered(1)
    #             to skip pointless double-buffering of constant blocks.
    weight_specs = [
        pl.BlockSpec(w.shape, lambda n, nd=w.ndim: (0,) * nd) for w in weights
    ]

    out = pl.pallas_call(
        make_kernel(H1, W1, B),
        out_shape=jax.ShapeDtypeStruct((NB, EMB, R2), jnp.float32),
        grid=(NB,),                                  # batch blocks, parallel
        in_specs=per_block_specs + weight_specs,
        out_specs=pl.BlockSpec((None, EMB, R2), lambda n: (n, 0, 0)),
        compiler_params=pltpu.CompilerParams(
            dimension_semantics=("parallel",)),
    )(*per_block, *weights)

    # Lane-dense (NB, EMB, B*M2) slab -> NCHW [N, EMB, H//4, W//4].
    out = out.reshape(NB, EMB, B, M2).transpose(0, 2, 1, 3)
    out = out.reshape(Npad, EMB, H2, W2)[:N]
    return out


if __name__ == "__main__":
    key = jax.random.PRNGKey(0)
    k_img, k_ctx, k_par = jax.random.split(key, 3)

    # small deterministic inputs: batch=2, 32x32 RGB image (0..255 range),
    # context embedding of size EMB=32.
    image = jax.random.uniform(k_img, (2, 32, 32, 3), jnp.float32) * 255.0
    context = jax.random.normal(k_ctx, (2, EMB), jnp.float32)
    params = init_params(k_par)

    out = film_efficientnet_forward(image, context, params)
    out = jax.block_until_ready(out)

    assert out.shape == (2, EMB, 8, 8), out.shape
    assert bool(jnp.all(jnp.isfinite(out)))
    print("KERNEL_OK")
</pallas_src>

<mosaic_0001>
module attributes {stable_mosaic.version = 11 : i64} {
  func.func @kernel(%arg0: i32, %arg1: memref<1x32x512xbf16, #tpu.memory_space<vmem>>, %arg2: memref<1x16x2xf32, #tpu.memory_space<vmem>>, %arg3: memref<1x16x2xf32, #tpu.memory_space<vmem>>, %arg4: memref<1x24x2xf32, #tpu.memory_space<vmem>>, %arg5: memref<1x24x2xf32, #tpu.memory_space<vmem>>, %arg6: memref<1x32x2xf32, #tpu.memory_space<vmem>>, %arg7: memref<1x32x2xf32, #tpu.memory_space<vmem>>, %arg8: memref<9x512xf32, #tpu.memory_space<vmem>>, %arg9: memref<16x32xbf16, #tpu.memory_space<vmem>>, %arg10: memref<16x1xf32, #tpu.memory_space<vmem>>, %arg11: memref<16x9xf32, #tpu.memory_space<vmem>>, %arg12: memref<16x1xf32, #tpu.memory_space<vmem>>, %arg13: memref<4x16xf32, #tpu.memory_space<vmem>>, %arg14: memref<4x1xf32, #tpu.memory_space<vmem>>, %arg15: memref<16x4xf32, #tpu.memory_space<vmem>>, %arg16: memref<16x1xf32, #tpu.memory_space<vmem>>, %arg17: memref<16x16xbf16, #tpu.memory_space<vmem>>, %arg18: memref<16x1xf32, #tpu.memory_space<vmem>>, %arg19: memref<64x16xbf16, #tpu.memory_space<vmem>>, %arg20: memref<64x1xf32, #tpu.memory_space<vmem>>, %arg21: memref<64x9xf32, #tpu.memory_space<vmem>>, %arg22: memref<64x1xf32, #tpu.memory_space<vmem>>, %arg23: memref<4x64xf32, #tpu.memory_space<vmem>>, %arg24: memref<4x1xf32, #tpu.memory_space<vmem>>, %arg25: memref<64x4xf32, #tpu.memory_space<vmem>>, %arg26: memref<64x1xf32, #tpu.memory_space<vmem>>, %arg27: memref<24x64xbf16, #tpu.memory_space<vmem>>, %arg28: memref<24x1xf32, #tpu.memory_space<vmem>>, %arg29: memref<96x24xbf16, #tpu.memory_space<vmem>>, %arg30: memref<96x1xf32, #tpu.memory_space<vmem>>, %arg31: memref<32x96xbf16, #tpu.memory_space<vmem>>, %arg32: memref<512x128xbf16, #tpu.memory_space<vmem>>, %arg33: memref<512x2xf32, #tpu.memory_space<vmem>>, %arg34: memref<2x512xf32, #tpu.memory_space<vmem>>, %arg35: memref<128x2xf32, #tpu.memory_space<vmem>>, %arg36: memref<2x128xf32, #tpu.memory_space<vmem>>, %arg37: memref<1x32x128xf32, #tpu.memory_space<vmem>>) attributes {dimension_semantics = [#tpu.dimension_semantics<parallel>], iteration_bounds = array<i64: 1>, scalar_prefetch = 0 : i64, scratch_operands = 0 : i64, tpu.core_type = #tpu.core_type<tc>, window_params = [{transform_indices = @transform_0, window_bounds = array<i64: 1, 32, 512>}, {transform_indices = @transform_1, window_bounds = array<i64: 1, 16, 2>}, {transform_indices = @transform_2, window_bounds = array<i64: 1, 16, 2>}, {transform_indices = @transform_3, window_bounds = array<i64: 1, 24, 2>}, {transform_indices = @transform_4, window_bounds = array<i64: 1, 24, 2>}, {transform_indices = @transform_5, window_bounds = array<i64: 1, 32, 2>}, {transform_indices = @transform_6, window_bounds = array<i64: 1, 32, 2>}, {pipeline_mode = #tpu.pipeline_mode<synchronous>, transform_indices = @transform_7, window_bounds = array<i64: 9, 512>}, {pipeline_mode = #tpu.pipeline_mode<synchronous>, transform_indices = @transform_8, window_bounds = array<i64: 16, 32>}, {pipeline_mode = #tpu.pipeline_mode<synchronous>, transform_indices = @transform_9, window_bounds = array<i64: 16, 1>}, {pipeline_mode = #tpu.pipeline_mode<synchronous>, transform_indices = @transform_10, window_bounds = array<i64: 16, 9>}, {pipeline_mode = #tpu.pipeline_mode<synchronous>, transform_indices = @transform_11, window_bounds = array<i64: 16, 1>}, {pipeline_mode = #tpu.pipeline_mode<synchronous>, transform_indices = @transform_12, window_bounds = array<i64: 4, 16>}, {pipeline_mode = #tpu.pipeline_mode<synchronous>, transform_indices = @transform_13, window_bounds = array<i64: 4, 1>}, {pipeline_mode = #tpu.pipeline_mode<synchronous>, transform_indices = @transform_14, window_bounds = array<i64: 16, 4>}, {pipeline_mode = #tpu.pipeline_mode<synchronous>, transform_indices = @transform_15, window_bounds = array<i64: 16, 1>}, {pipeline_mode = #tpu.pipeline_mode<synchronous>, transform_indices = @transform_16, window_bounds = array<i64: 16, 16>}, {pipeline_mode = #tpu.pipeline_mode<synchronous>, transform_indices = @transform_17, window_bounds = array<i64: 16, 1>}, {pipeline_mode = #tpu.pipeline_mode<synchronous>, transform_indices = @transform_18, window_bounds = array<i64: 64, 16>}, {pipeline_mode = #tpu.pipeline_mode<synchronous>, transform_indices = @transform_19, window_bounds = array<i64: 64, 1>}, {pipeline_mode = #tpu.pipeline_mode<synchronous>, transform_indices = @transform_20, window_bounds = array<i64: 64, 9>}, {pipeline_mode = #tpu.pipeline_mode<synchronous>, transform_indices = @transform_21, window_bounds = array<i64: 64, 1>}, {pipeline_mode = #tpu.pipeline_mode<synchronous>, transform_indices = @transform_22, window_bounds = array<i64: 4, 64>}, {pipeline_mode = #tpu.pipeline_mode<synchronous>, transform_indices = @transform_23, window_bounds = array<i64: 4, 1>}, {pipeline_mode = #tpu.pipeline_mode<synchronous>, transform_indices = @transform_24, window_bounds = array<i64: 64, 4>}, {pipeline_mode = #tpu.pipeline_mode<synchronous>, transform_indices = @transform_25, window_bounds = array<i64: 64, 1>}, {pipeline_mode = #tpu.pipeline_mode<synchronous>, transform_indices = @transform_26, window_bounds = array<i64: 24, 64>}, {pipeline_mode = #tpu.pipeline_mode<synchronous>, transform_indices = @transform_27, window_bounds = array<i64: 24, 1>}, {pipeline_mode = #tpu.pipeline_mode<synchronous>, transform_indices = @transform_28, window_bounds = array<i64: 96, 24>}, {pipeline_mode = #tpu.pipeline_mode<synchronous>, transform_indices = @transform_29, window_bounds = array<i64: 96, 1>}, {pipeline_mode = #tpu.pipeline_mode<synchronous>, transform_indices = @transform_30, window_bounds = array<i64: 32, 96>}, {pipeline_mode = #tpu.pipeline_mode<synchronous>, transform_indices = @transform_31, window_bounds = array<i64: 512, 128>}, {pipeline_mode = #tpu.pipeline_mode<synchronous>, transform_indices = @transform_32, window_bounds = array<i64: 512, 2>}, {pipeline_mode = #tpu.pipeline_mode<synchronous>, transform_indices = @transform_33, window_bounds = array<i64: 2, 512>}, {pipeline_mode = #tpu.pipeline_mode<synchronous>, transform_indices = @transform_34, window_bounds = array<i64: 128, 2>}, {pipeline_mode = #tpu.pipeline_mode<synchronous>, transform_indices = @transform_35, window_bounds = array<i64: 2, 128>}, {transform_indices = @transform_36, window_bounds = array<i64: 1, 32, 128>}]} {
    %c0 = arith.constant 0 : index
    %c0_0 = arith.constant 0 : index
    %0 = vector.load %arg34[%c0, %c0_0] : memref<2x512xf32, #tpu.memory_space<vmem>>, vector<2x512xf32>
    %c0_1 = arith.constant 0 : index
    %c0_2 = arith.constant 0 : index
    %1 = vector.load %arg36[%c0_1, %c0_2] : memref<2x128xf32, #tpu.memory_space<vmem>>, vector<2x128xf32>
    %c0_3 = arith.constant 0 : index
    %c0_4 = arith.constant 0 : index
    %2 = vector.load %arg9[%c0_3, %c0_4] : memref<16x32xbf16, #tpu.memory_space<vmem>>, vector<16x32xbf16>
    %c0_5 = arith.constant 0 : index
    %c0_6 = arith.constant 0 : index
    %c0_7 = arith.constant 0 : index
    %3 = vector.load %arg1[%c0_5, %c0_6, %c0_7] : memref<1x32x512xbf16, #tpu.memory_space<vmem>>, vector<1x32x512xbf16>
    %4 = vector.shape_cast %3 : vector<1x32x512xbf16> to vector<32x512xbf16>
    %cst = arith.constant dense<0.000000e+00> : vector<16x512xf32>
    %5 = tpu.matmul %2, %4, %cst {dimension_numbers = #tpu.dot_dimension_numbers<[1], [0], [0], [1], [0, 0, 1, 1], [], []>} : vector<16x32xbf16>, vector<32x512xbf16>, vector<16x512xf32> -> vector<16x512xf32>
    %c0_8 = arith.constant 0 : index
    %c0_9 = arith.constant 0 : index
    %6 = vector.load %arg10[%c0_8, %c0_9] : memref<16x1xf32, #tpu.memory_space<vmem>>, vector<16x1xf32>
    %7 = vector.broadcast %6 : vector<16x1xf32> to vector<16x512xf32>
    %8 = arith.addf %5, %7 : vector<16x512xf32>
    %9 = arith.negf %8 : vector<16x512xf32>
    %10 = math.exp %9 : vector<16x512xf32>
    %cst_10 = arith.constant 1.000000e+00 : f32
    %11 = vector.broadcast %cst_10 : f32 to vector<16x512xf32>
    %12 = arith.addf %11, %10 : vector<16x512xf32>
    %13 = arith.divf %11, %12 : vector<16x512xf32>
    %14 = arith.mulf %8, %13 : vector<16x512xf32>
    %c0_11 = arith.constant 0 : index
    %c4 = arith.constant 4 : index
    %15 = vector.load %arg11[%c0_11, %c4] : memref<16x9xf32, #tpu.memory_space<vmem>>, vector<16x1xf32>
    %16 = vector.broadcast %15 : vector<16x1xf32> to vector<16x512xf32>
    %17 = arith.mulf %14, %16 : vector<16x512xf32>
    %c17_i32 = arith.constant 17 : i32
    %18 = tpu.dynamic_rotate %14 by %c17_i32 dim 1 : vector<16x512xf32>, i32 -> vector<16x512xf32>
    %c0_12 = arith.constant 0 : index
    %c0_13 = arith.constant 0 : index
    %19 = vector.load %arg8[%c0_12, %c0_13] : memref<9x512xf32, #tpu.memory_space<vmem>>, vector<1x512xf32>
    %20 = vector.broadcast %19 : vector<1x512xf32> to vector<16x512xf32>
    %21 = arith.mulf %18, %20 : vector<16x512xf32>
    %c0_14 = arith.constant 0 : index
    %c0_15 = arith.constant 0 : index
    %22 = vector.load %arg11[%c0_14, %c0_15] : memref<16x9xf32, #tpu.memory_space<vmem>>, vector<16x1xf32>
    %23 = vector.broadcast %22 : vector<16x1xf32> to vector<16x512xf32>
    %24 = arith.mulf %21, %23 : vector<16x512xf32>
    %25 = arith.addf %17, %24 : vector<16x512xf32>
    %c16_i32 = arith.constant 16 : i32
    %26 = tpu.dynamic_rotate %14 by %c16_i32 dim 1 : vector<16x512xf32>, i32 -> vector<16x512xf32>
    %c1 = arith.constant 1 : index
    %c0_16 = arith.constant 0 : index
    %27 = vector.load %arg8[%c1, %c0_16] : memref<9x512xf32, #tpu.memory_space<vmem>>, vector<1x512xf32>
    %28 = vector.broadcast %27 : vector<1x512xf32> to vector<16x512xf32>
    %29 = arith.mulf %26, %28 : vector<16x512xf32>
    %c0_17 = arith.constant 0 : index
    %c1_18 = arith.constant 1 : index
    %30 = vector.load %arg11[%c0_17, %c1_18] : memref<16x9xf32, #tpu.memory_space<vmem>>, vector<16x1xf32>
    %31 = vector.broadcast %30 : vector<16x1xf32> to vector<16x512xf32>
    %32 = arith.mulf %29, %31 : vector<16x512xf32>
    %33 = arith.addf %25, %32 : vector<16x512xf32>
    %c15_i32 = arith.constant 15 : i32
    %34 = tpu.dynamic_rotate %14 by %c15_i32 dim 1 : vector<16x512xf32>, i32 -> vector<16x512xf32>
    %c2 = arith.constant 2 : index
    %c0_19 = arith.constant 0 : index
    %35 = vector.load %arg8[%c2, %c0_19] : memref<9x512xf32, #tpu.memory_space<vmem>>, vector<1x512xf32>
    %36 = vector.broadcast %35 : vector<1x512xf32> to vector<16x512xf32>
    %37 = arith.mulf %34, %36 : vector<16x512xf32>
    %c0_20 = arith.constant 0 : index
    %c2_21 = arith.constant 2 : index
    %38 = vector.load %arg11[%c0_20, %c2_21] : memref<16x9xf32, #tpu.memory_space<vmem>>, vector<16x1xf32>
    %39 = vector.broadcast %38 : vector<16x1xf32> to vector<16x512xf32>
    %40 = arith.mulf %37, %39 : vector<16x512xf32>
    %41 = arith.addf %33, %40 : vector<16x512xf32>
    %c1_i32 = arith.constant 1 : i32
    %42 = tpu.dynamic_rotate %14 by %c1_i32 dim 1 : vector<16x512xf32>, i32 -> vector<16x512xf32>
    %c3 = arith.constant 3 : index
    %c0_22 = arith.constant 0 : index
    %43 = vector.load %arg8[%c3, %c0_22] : memref<9x512xf32, #tpu.memory_space<vmem>>, vector<1x512xf32>
    %44 = vector.broadcast %43 : vector<1x512xf32> to vector<16x512xf32>
    %45 = arith.mulf %42, %44 : vector<16x512xf32>
    %c0_23 = arith.constant 0 : index
    %c3_24 = arith.constant 3 : index
    %46 = vector.load %arg11[%c0_23, %c3_24] : memref<16x9xf32, #tpu.memory_space<vmem>>, vector<16x1xf32>
    %47 = vector.broadcast %46 : vector<16x1xf32> to vector<16x512xf32>
    %48 = arith.mulf %45, %47 : vector<16x512xf32>
    %49 = arith.addf %41, %48 : vector<16x512xf32>
    %c511_i32 = arith.constant 511 : i32
    %50 = tpu.dynamic_rotate %14 by %c511_i32 dim 1 : vector<16x512xf32>, i32 -> vector<16x512xf32>
    %c5 = arith.constant 5 : index
    %c0_25 = arith.constant 0 : index
    %51 = vector.load %arg8[%c5, %c0_25] : memref<9x512xf32, #tpu.memory_space<vmem>>, vector<1x512xf32>
    %52 = vector.broadcast %51 : vector<1x512xf32> to vector<16x512xf32>
    %53 = arith.mulf %50, %52 : vector<16x512xf32>
    %c0_26 = arith.constant 0 : index
    %c5_27 = arith.constant 5 : index
    %54 = vector.load %arg11[%c0_26, %c5_27] : memref<16x9xf32, #tpu.memory_space<vmem>>, vector<16x1xf32>
    %55 = vector.broadcast %54 : vector<16x1xf32> to vector<16x512xf32>
    %56 = arith.mulf %53, %55 : vector<16x512xf32>
    %57 = arith.addf %49, %56 : vector<16x512xf32>
    %c497_i32 = arith.constant 497 : i32
    %58 = tpu.dynamic_rotate %14 by %c497_i32 dim 1 : vector<16x512xf32>, i32 -> vector<16x512xf32>
    %c6 = arith.constant 6 : index
    %c0_28 = arith.constant 0 : index
    %59 = vector.load %arg8[%c6, %c0_28] : memref<9x512xf32, #tpu.memory_space<vmem>>, vector<1x512xf32>
    %60 = vector.broadcast %59 : vector<1x512xf32> to vector<16x512xf32>
    %61 = arith.mulf %58, %60 : vector<16x512xf32>
    %c0_29 = arith.constant 0 : index
    %c6_30 = arith.constant 6 : index
    %62 = vector.load %arg11[%c0_29, %c6_30] : memref<16x9xf32, #tpu.memory_space<vmem>>, vector<16x1xf32>
    %63 = vector.broadcast %62 : vector<16x1xf32> to vector<16x512xf32>
    %64 = arith.mulf %61, %63 : vector<16x512xf32>
    %65 = arith.addf %57, %64 : vector<16x512xf32>
    %c496_i32 = arith.constant 496 : i32
    %66 = tpu.dynamic_rotate %14 by %c496_i32 dim 1 : vector<16x512xf32>, i32 -> vector<16x512xf32>
    %c7 = arith.constant 7 : index
    %c0_31 = arith.constant 0 : index
    %67 = vector.load %arg8[%c7, %c0_31] : memref<9x512xf32, #tpu.memory_space<vmem>>, vector<1x512xf32>
    %68 = vector.broadcast %67 : vector<1x512xf32> to vector<16x512xf32>
    %69 = arith.mulf %66, %68 : vector<16x512xf32>
    %c0_32 = arith.constant 0 : index
    %c7_33 = arith.constant 7 : index
    %70 = vector.load %arg11[%c0_32, %c7_33] : memref<16x9xf32, #tpu.memory_space<vmem>>, vector<16x1xf32>
    %71 = vector.broadcast %70 : vector<16x1xf32> to vector<16x512xf32>
    %72 = arith.mulf %69, %71 : vector<16x512xf32>
    %73 = arith.addf %65, %72 : vector<16x512xf32>
    %c495_i32 = arith.constant 495 : i32
    %74 = tpu.dynamic_rotate %14 by %c495_i32 dim 1 : vector<16x512xf32>, i32 -> vector<16x512xf32>
    %c8 = arith.constant 8 : index
    %c0_34 = arith.constant 0 : index
    %75 = vector.load %arg8[%c8, %c0_34] : memref<9x512xf32, #tpu.memory_space<vmem>>, vector<1x512xf32>
    %76 = vector.broadcast %75 : vector<1x512xf32> to vector<16x512xf32>
    %77 = arith.mulf %74, %76 : vector<16x512xf32>
    %c0_35 = arith.constant 0 : index
    %c8_36 = arith.constant 8 : index
    %78 = vector.load %arg11[%c0_35, %c8_36] : memref<16x9xf32, #tpu.memory_space<vmem>>, vector<16x1xf32>
    %79 = vector.broadcast %78 : vector<16x1xf32> to vector<16x512xf32>
    %80 = arith.mulf %77, %79 : vector<16x512xf32>
    %81 = arith.addf %73, %80 : vector<16x512xf32>
    %c0_37 = arith.constant 0 : index
    %c0_38 = arith.constant 0 : index
    %82 = vector.load %arg12[%c0_37, %c0_38] : memref<16x1xf32, #tpu.memory_space<vmem>>, vector<16x1xf32>
    %83 = vector.broadcast %82 : vector<16x1xf32> to vector<16x512xf32>
    %84 = arith.addf %81, %83 : vector<16x512xf32>
    %85 = arith.negf %84 : vector<16x512xf32>
    %86 = math.exp %85 : vector<16x512xf32>
    %cst_39 = arith.constant 1.000000e+00 : f32
    %87 = vector.broadcast %cst_39 : f32 to vector<16x512xf32>
    %88 = arith.addf %87, %86 : vector<16x512xf32>
    %89 = arith.divf %87, %88 : vector<16x512xf32>
    %90 = arith.mulf %84, %89 : vector<16x512xf32>
    %c0_40 = arith.constant 0 : index
    %c0_41 = arith.constant 0 : index
    %91 = vector.load %arg33[%c0_40, %c0_41] : memref<512x2xf32, #tpu.memory_space<vmem>>, vector<512x2xf32>
    %c0_42 = arith.constant 0 : index
    %c0_43 = arith.constant 0 : index
    %92 = vector.load %arg13[%c0_42, %c0_43] : memref<4x16xf32, #tpu.memory_space<vmem>>, vector<4x16xf32>
    %c0_44 = arith.constant 0 : index
    %c0_45 = arith.constant 0 : index
    %93 = vector.load %arg14[%c0_44, %c0_45] : memref<4x1xf32, #tpu.memory_space<vmem>>, vector<4x1xf32>
    %c0_46 = arith.constant 0 : index
    %c0_47 = arith.constant 0 : index
    %94 = vector.load %arg15[%c0_46, %c0_47] : memref<16x4xf32, #tpu.memory_space<vmem>>, vector<16x4xf32>
    %c0_48 = arith.constant 0 : index
    %c0_49 = arith.constant 0 : index
    %95 = vector.load %arg16[%c0_48, %c0_49] : memref<16x1xf32, #tpu.memory_space<vmem>>, vector<16x1xf32>
    %cst_50 = arith.constant dense<0.000000e+00> : vector<16x2xf32>
    %96 = tpu.matmul %90, %91, %cst_50 {dimension_numbers = #tpu.dot_dimension_numbers<[1], [0], [0], [1], [0, 0, 1, 1], [], []>} : vector<16x512xf32>, vector<512x2xf32>, vector<16x2xf32> -> vector<16x2xf32>
    %cst_51 = arith.constant dense<0.000000e+00> : vector<4x2xf32>
    %97 = tpu.matmul %92, %96, %cst_51 {dimension_numbers = #tpu.dot_dimension_numbers<[1], [0], [0], [1], [0, 0, 1, 1], [], []>} : vector<4x16xf32>, vector<16x2xf32>, vector<4x2xf32> -> vector<4x2xf32>
    %98 = vector.broadcast %93 : vector<4x1xf32> to vector<4x2xf32>
    %99 = arith.addf %97, %98 : vector<4x2xf32>
    %100 = arith.negf %99 : vector<4x2xf32>
    %101 = math.exp %100 : vector<4x2xf32>
    %cst_52 = arith.constant 1.000000e+00 : f32
    %102 = vector.broadcast %cst_52 : f32 to vector<4x2xf32>
    %103 = arith.addf %102, %101 : vector<4x2xf32>
    %104 = arith.divf %102, %103 : vector<4x2xf32>
    %105 = arith.mulf %99, %104 : vector<4x2xf32>
    %cst_53 = arith.constant dense<0.000000e+00> : vector<16x2xf32>
    %106 = tpu.matmul %94, %105, %cst_53 {dimension_numbers = #tpu.dot_dimension_numbers<[1], [0], [0], [1], [0, 0, 1, 1], [], []>} : vector<16x4xf32>, vector<4x2xf32>, vector<16x2xf32> -> vector<16x2xf32>
    %107 = vector.broadcast %95 : vector<16x1xf32> to vector<16x2xf32>
    %108 = arith.addf %106, %107 : vector<16x2xf32>
    %109 = arith.negf %108 : vector<16x2xf32>
    %110 = math.exp %109 : vector<16x2xf32>
    %cst_54 = arith.constant 1.000000e+00 : f32
    %111 = vector.broadcast %cst_54 : f32 to vector<16x2xf32>
    %112 = arith.addf %111, %110 : vector<16x2xf32>
    %113 = arith.divf %111, %112 : vector<16x2xf32>
    %cst_55 = arith.constant dense<0.000000e+00> : vector<16x512xf32>
    %114 = tpu.matmul %113, %0, %cst_55 {dimension_numbers = #tpu.dot_dimension_numbers<[1], [0], [0], [1], [0, 0, 1, 1], [], []>} : vector<16x2xf32>, vector<2x512xf32>, vector<16x512xf32> -> vector<16x512xf32>
    %115 = arith.mulf %90, %114 : vector<16x512xf32>
    %c0_56 = arith.constant 0 : index
    %c0_57 = arith.constant 0 : index
    %116 = vector.load %arg17[%c0_56, %c0_57] : memref<16x16xbf16, #tpu.memory_space<vmem>>, vector<16x16xbf16>
    %117 = arith.truncf %115 : vector<16x512xf32> to vector<16x512xbf16>
    %cst_58 = arith.constant dense<0.000000e+00> : vector<16x512xf32>
    %118 = tpu.matmul %116, %117, %cst_58 {dimension_numbers = #tpu.dot_dimension_numbers<[1], [0], [0], [1], [0, 0, 1, 1], [], []>} : vector<16x16xbf16>, vector<16x512xbf16>, vector<16x512xf32> -> vector<16x512xf32>
    %c0_59 = arith.constant 0 : index
    %c0_60 = arith.constant 0 : index
    %119 = vector.load %arg18[%c0_59, %c0_60] : memref<16x1xf32, #tpu.memory_space<vmem>>, vector<16x1xf32>
    %120 = vector.broadcast %119 : vector<16x1xf32> to vector<16x512xf32>
    %121 = arith.addf %118, %120 : vector<16x512xf32>
    %122 = arith.addf %121, %14 : vector<16x512xf32>
    %c0_61 = arith.constant 0 : index
    %c0_62 = arith.constant 0 : index
    %c0_63 = arith.constant 0 : index
    %123 = vector.load %arg2[%c0_61, %c0_62, %c0_63] : memref<1x16x2xf32, #tpu.memory_space<vmem>>, vector<1x16x2xf32>
    %124 = vector.shape_cast %123 : vector<1x16x2xf32> to vector<16x2xf32>
    %cst_64 = arith.constant dense<0.000000e+00> : vector<16x512xf32>
    %125 = tpu.matmul %124, %0, %cst_64 {dimension_numbers = #tpu.dot_dimension_numbers<[1], [0], [0], [1], [0, 0, 1, 1], [], []>} : vector<16x2xf32>, vector<2x512xf32>, vector<16x512xf32> -> vector<16x512xf32>
    %126 = arith.mulf %122, %125 : vector<16x512xf32>
    %c0_65 = arith.constant 0 : index
    %c0_66 = arith.constant 0 : index
    %c0_67 = arith.constant 0 : index
    %127 = vector.load %arg3[%c0_65, %c0_66, %c0_67] : memref<1x16x2xf32, #tpu.memory_space<vmem>>, vector<1x16x2xf32>
    %128 = vector.shape_cast %127 : vector<1x16x2xf32> to vector<16x2xf32>
    %cst_68 = arith.constant dense<0.000000e+00> : vector<16x512xf32>
    %129 = tpu.matmul %128, %0, %cst_68 {dimension_numbers = #tpu.dot_dimension_numbers<[1], [0], [0], [1], [0, 0, 1, 1], [], []>} : vector<16x2xf32>, vector<2x512xf32>, vector<16x512xf32> -> vector<16x512xf32>
    %130 = arith.addf %126, %129 : vector<16x512xf32>
    %c0_69 = arith.constant 0 : index
    %c0_70 = arith.constant 0 : index
    %131 = vector.load %arg19[%c0_69, %c0_70] : memref<64x16xbf16, #tpu.memory_space<vmem>>, vector<64x16xbf16>
    %132 = arith.truncf %130 : vector<16x512xf32> to vector<16x512xbf16>
    %cst_71 = arith.constant dense<0.000000e+00> : vector<64x512xf32>
    %133 = tpu.matmul %131, %132, %cst_71 {dimension_numbers = #tpu.dot_dimension_numbers<[1], [0], [0], [1], [0, 0, 1, 1], [], []>} : vector<64x16xbf16>, vector<16x512xbf16>, vector<64x512xf32> -> vector<64x512xf32>
    %c0_72 = arith.constant 0 : index
    %c0_73 = arith.constant 0 : index
    %134 = vector.load %arg20[%c0_72, %c0_73] : memref<64x1xf32, #tpu.memory_space<vmem>>, vector<64x1xf32>
    %135 = vector.broadcast %134 : vector<64x1xf32> to vector<64x512xf32>
    %136 = arith.addf %133, %135 : vector<64x512xf32>
    %137 = arith.negf %136 : vector<64x512xf32>
    %138 = math.exp %137 : vector<64x512xf32>
    %cst_74 = arith.constant 1.000000e+00 : f32
    %139 = vector.broadcast %cst_74 : f32 to vector<64x512xf32>
    %140 = arith.addf %139, %138 : vector<64x512xf32>
    %141 = arith.divf %139, %140 : vector<64x512xf32>
    %142 = arith.mulf %136, %141 : vector<64x512xf32>
    %c0_75 = arith.constant 0 : index
    %c4_76 = arith.constant 4 : index
    %143 = vector.load %arg21[%c0_75, %c4_76] : memref<64x9xf32, #tpu.memory_space<vmem>>, vector<64x1xf32>
    %144 = vector.broadcast %143 : vector<64x1xf32> to vector<64x512xf32>
    %145 = arith.mulf %142, %144 : vector<64x512xf32>
    %c17_i32_77 = arith.constant 17 : i32
    %146 = tpu.dynamic_rotate %142 by %c17_i32_77 dim 1 : vector<64x512xf32>, i32 -> vector<64x512xf32>
    %c0_78 = arith.constant 0 : index
    %c0_79 = arith.constant 0 : index
    %147 = vector.load %arg8[%c0_78, %c0_79] : memref<9x512xf32, #tpu.memory_space<vmem>>, vector<1x512xf32>
    %148 = vector.broadcast %147 : vector<1x512xf32> to vector<64x512xf32>
    %149 = arith.mulf %146, %148 : vector<64x512xf32>
    %c0_80 = arith.constant 0 : index
    %c0_81 = arith.constant 0 : index
    %150 = vector.load %arg21[%c0_80, %c0_81] : memref<64x9xf32, #tpu.memory_space<vmem>>, vector<64x1xf32>
    %151 = vector.broadcast %150 : vector<64x1xf32> to vector<64x512xf32>
    %152 = arith.mulf %149, %151 : vector<64x512xf32>
    %153 = arith.addf %145, %152 : vector<64x512xf32>
    %c16_i32_82 = arith.constant 16 : i32
    %154 = tpu.dynamic_rotate %142 by %c16_i32_82 dim 1 : vector<64x512xf32>, i32 -> vector<64x512xf32>
    %c1_83 = arith.constant 1 : index
    %c0_84 = arith.constant 0 : index
    %155 = vector.load %arg8[%c1_83, %c0_84] : memref<9x512xf32, #tpu.memory_space<vmem>>, vector<1x512xf32>
    %156 = vector.broadcast %155 : vector<1x512xf32> to vector<64x512xf32>
    %157 = arith.mulf %154, %156 : vector<64x512xf32>
    %c0_85 = arith.constant 0 : index
    %c1_86 = arith.constant 1 : index
    %158 = vector.load %arg21[%c0_85, %c1_86] : memref<64x9xf32, #tpu.memory_space<vmem>>, vector<64x1xf32>
    %159 = vector.broadcast %158 : vector<64x1xf32> to vector<64x512xf32>
    %160 = arith.mulf %157, %159 : vector<64x512xf32>
    %161 = arith.addf %153, %160 : vector<64x512xf32>
    %c15_i32_87 = arith.constant 15 : i32
    %162 = tpu.dynamic_rotate %142 by %c15_i32_87 dim 1 : vector<64x512xf32>, i32 -> vector<64x512xf32>
    %c2_88 = arith.constant 2 : index
    %c0_89 = arith.constant 0 : index
    %163 = vector.load %arg8[%c2_88, %c0_89] : memref<9x512xf32, #tpu.memory_space<vmem>>, vector<1x512xf32>
    %164 = vector.broadcast %163 : vector<1x512xf32> to vector<64x512xf32>
    %165 = arith.mulf %162, %164 : vector<64x512xf32>
    %c0_90 = arith.constant 0 : index
    %c2_91 = arith.constant 2 : index
    %166 = vector.load %arg21[%c0_90, %c2_91] : memref<64x9xf32, #tpu.memory_space<vmem>>, vector<64x1xf32>
    %167 = vector.broadcast %166 : vector<64x1xf32> to vector<64x512xf32>
    %168 = arith.mulf %165, %167 : vector<64x512xf32>
    %169 = arith.addf %161, %168 : vector<64x512xf32>
    %c1_i32_92 = arith.constant 1 : i32
    %170 = tpu.dynamic_rotate %142 by %c1_i32_92 dim 1 : vector<64x512xf32>, i32 -> vector<64x512xf32>
    %c3_93 = arith.constant 3 : index
    %c0_94 = arith.constant 0 : index
    %171 = vector.load %arg8[%c3_93, %c0_94] : memref<9x512xf32, #tpu.memory_space<vmem>>, vector<1x512xf32>
    %172 = vector.broadcast %171 : vector<1x512xf32> to vector<64x512xf32>
    %173 = arith.mulf %170, %172 : vector<64x512xf32>
    %c0_95 = arith.constant 0 : index
    %c3_96 = arith.constant 3 : index
    %174 = vector.load %arg21[%c0_95, %c3_96] : memref<64x9xf32, #tpu.memory_space<vmem>>, vector<64x1xf32>
    %175 = vector.broadcast %174 : vector<64x1xf32> to vector<64x512xf32>
    %176 = arith.mulf %173, %175 : vector<64x512xf32>
    %177 = arith.addf %169, %176 : vector<64x512xf32>
    %c511_i32_97 = arith.constant 511 : i32
    %178 = tpu.dynamic_rotate %142 by %c511_i32_97 dim 1 : vector<64x512xf32>, i32 -> vector<64x512xf32>
    %c5_98 = arith.constant 5 : index
    %c0_99 = arith.constant 0 : index
    %179 = vector.load %arg8[%c5_98, %c0_99] : memref<9x512xf32, #tpu.memory_space<vmem>>, vector<1x512xf32>
    %180 = vector.broadcast %179 : vector<1x512xf32> to vector<64x512xf32>
    %181 = arith.mulf %178, %180 : vector<64x512xf32>
    %c0_100 = arith.constant 0 : index
    %c5_101 = arith.constant 5 : index
    %182 = vector.load %arg21[%c0_100, %c5_101] : memref<64x9xf32, #tpu.memory_space<vmem>>, vector<64x1xf32>
    %183 = vector.broadcast %182 : vector<64x1xf32> to vector<64x512xf32>
    %184 = arith.mulf %181, %183 : vector<64x512xf32>
    %185 = arith.addf %177, %184 : vector<64x512xf32>
    %c497_i32_102 = arith.constant 497 : i32
    %186 = tpu.dynamic_rotate %142 by %c497_i32_102 dim 1 : vector<64x512xf32>, i32 -> vector<64x512xf32>
    %c6_103 = arith.constant 6 : index
    %c0_104 = arith.constant 0 : index
    %187 = vector.load %arg8[%c6_103, %c0_104] : memref<9x512xf32, #tpu.memory_space<vmem>>, vector<1x512xf32>
    %188 = vector.broadcast %187 : vector<1x512xf32> to vector<64x512xf32>
    %189 = arith.mulf %186, %188 : vector<64x512xf32>
    %c0_105 = arith.constant 0 : index
    %c6_106 = arith.constant 6 : index
    %190 = vector.load %arg21[%c0_105, %c6_106] : memref<64x9xf32, #tpu.memory_space<vmem>>, vector<64x1xf32>
    %191 = vector.broadcast %190 : vector<64x1xf32> to vector<64x512xf32>
    %192 = arith.mulf %189, %191 : vector<64x512xf32>
    %193 = arith.addf %185, %192 : vector<64x512xf32>
    %c496_i32_107 = arith.constant 496 : i32
    %194 = tpu.dynamic_rotate %142 by %c496_i32_107 dim 1 : vector<64x512xf32>, i32 -> vector<64x512xf32>
    %c7_108 = arith.constant 7 : index
    %c0_109 = arith.constant 0 : index
    %195 = vector.load %arg8[%c7_108, %c0_109] : memref<9x512xf32, #tpu.memory_space<vmem>>, vector<1x512xf32>
    %196 = vector.broadcast %195 : vector<1x512xf32> to vector<64x512xf32>
    %197 = arith.mulf %194, %196 : vector<64x512xf32>
    %c0_110 = arith.constant 0 : index
    %c7_111 = arith.constant 7 : index
    %198 = vector.load %arg21[%c0_110, %c7_111] : memref<64x9xf32, #tpu.memory_space<vmem>>, vector<64x1xf32>
    %199 = vector.broadcast %198 : vector<64x1xf32> to vector<64x512xf32>
    %200 = arith.mulf %197, %199 : vector<64x512xf32>
    %201 = arith.addf %193, %200 : vector<64x512xf32>
    %c495_i32_112 = arith.constant 495 : i32
    %202 = tpu.dynamic_rotate %142 by %c495_i32_112 dim 1 : vector<64x512xf32>, i32 -> vector<64x512xf32>
    %c8_113 = arith.constant 8 : index
    %c0_114 = arith.constant 0 : index
    %203 = vector.load %arg8[%c8_113, %c0_114] : memref<9x512xf32, #tpu.memory_space<vmem>>, vector<1x512xf32>
    %204 = vector.broadcast %203 : vector<1x512xf32> to vector<64x512xf32>
    %205 = arith.mulf %202, %204 : vector<64x512xf32>
    %c0_115 = arith.constant 0 : index
    %c8_116 = arith.constant 8 : index
    %206 = vector.load %arg21[%c0_115, %c8_116] : memref<64x9xf32, #tpu.memory_space<vmem>>, vector<64x1xf32>
    %207 = vector.broadcast %206 : vector<64x1xf32> to vector<64x512xf32>
    %208 = arith.mulf %205, %207 : vector<64x512xf32>
    %209 = arith.addf %201, %208 : vector<64x512xf32>
    %c0_117 = arith.constant 0 : index
    %c0_118 = arith.constant 0 : index
    %210 = vector.load %arg32[%c0_117, %c0_118] : memref<512x128xbf16, #tpu.memory_space<vmem>>, vector<512x128xbf16>
    %211 = arith.truncf %209 : vector<64x512xf32> to vector<64x512xbf16>
    %cst_119 = arith.constant dense<0.000000e+00> : vector<64x128xf32>
    %212 = tpu.matmul %211, %210, %cst_119 {dimension_numbers = #tpu.dot_dimension_numbers<[1], [0], [0], [1], [0, 0, 1, 1], [], []>} : vector<64x512xbf16>, vector<512x128xbf16>, vector<64x128xf32> -> vector<64x128xf32>
    %c0_120 = arith.constant 0 : index
    %c0_121 = arith.constant 0 : index
    %213 = vector.load %arg22[%c0_120, %c0_121] : memref<64x1xf32, #tpu.memory_space<vmem>>, vector<64x1xf32>
    %214 = vector.broadcast %213 : vector<64x1xf32> to vector<64x128xf32>
    %215 = arith.addf %212, %214 : vector<64x128xf32>
    %216 = arith.negf %215 : vector<64x128xf32>
    %217 = math.exp %216 : vector<64x128xf32>
    %cst_122 = arith.constant 1.000000e+00 : f32
    %218 = vector.broadcast %cst_122 : f32 to vector<64x128xf32>
    %219 = arith.addf %218, %217 : vector<64x128xf32>
    %220 = arith.divf %218, %219 : vector<64x128xf32>
    %221 = arith.mulf %215, %220 : vector<64x128xf32>
    %c0_123 = arith.constant 0 : index
    %c0_124 = arith.constant 0 : index
    %222 = vector.load %arg35[%c0_123, %c0_124] : memref<128x2xf32, #tpu.memory_space<vmem>>, vector<128x2xf32>
    %c0_125 = arith.constant 0 : index
    %c0_126 = arith.constant 0 : index
    %223 = vector.load %arg23[%c0_125, %c0_126] : memref<4x64xf32, #tpu.memory_space<vmem>>, vector<4x64xf32>
    %c0_127 = arith.constant 0 : index
    %c0_128 = arith.constant 0 : index
    %224 = vector.load %arg24[%c0_127, %c0_128] : memref<4x1xf32, #tpu.memory_space<vmem>>, vector<4x1xf32>
    %c0_129 = arith.constant 0 : index
    %c0_130 = arith.constant 0 : index
    %225 = vector.load %arg25[%c0_129, %c0_130] : memref<64x4xf32, #tpu.memory_space<vmem>>, vector<64x4xf32>
    %c0_131 = arith.constant 0 : index
    %c0_132 = arith.constant 0 : index
    %226 = vector.load %arg26[%c0_131, %c0_132] : memref<64x1xf32, #tpu.memory_space<vmem>>, vector<64x1xf32>
    %cst_133 = arith.constant dense<0.000000e+00> : vector<64x2xf32>
    %227 = tpu.matmul %221, %222, %cst_133 {dimension_numbers = #tpu.dot_dimension_numbers<[1], [0], [0], [1], [0, 0, 1, 1], [], []>} : vector<64x128xf32>, vector<128x2xf32>, vector<64x2xf32> -> vector<64x2xf32>
    %cst_134 = arith.constant dense<0.000000e+00> : vector<4x2xf32>
    %228 = tpu.matmul %223, %227, %cst_134 {dimension_numbers = #tpu.dot_dimension_numbers<[1], [0], [0], [1], [0, 0, 1, 1], [], []>} : vector<4x64xf32>, vector<64x2xf32>, vector<4x2xf32> -> vector<4x2xf32>
    %229 = vector.broadcast %224 : vector<4x1xf32> to vector<4x2xf32>
    %230 = arith.addf %228, %229 : vector<4x2xf32>
    %231 = arith.negf %230 : vector<4x2xf32>
    %232 = math.exp %231 : vector<4x2xf32>
    %cst_135 = arith.constant 1.000000e+00 : f32
    %233 = vector.broadcast %cst_135 : f32 to vector<4x2xf32>
    %234 = arith.addf %233, %232 : vector<4x2xf32>
    %235 = arith.divf %233, %234 : vector<4x2xf32>
    %236 = arith.mulf %230, %235 : vector<4x2xf32>
    %cst_136 = arith.constant dense<0.000000e+00> : vector<64x2xf32>
    %237 = tpu.matmul %225, %236, %cst_136 {dimension_numbers = #tpu.dot_dimension_numbers<[1], [0], [0], [1], [0, 0, 1, 1], [], []>} : vector<64x4xf32>, vector<4x2xf32>, vector<64x2xf32> -> vector<64x2xf32>
    %238 = vector.broadcast %226 : vector<64x1xf32> to vector<64x2xf32>
    %239 = arith.addf %237, %238 : vector<64x2xf32>
    %240 = arith.negf %239 : vector<64x2xf32>
    %241 = math.exp %240 : vector<64x2xf32>
    %cst_137 = arith.constant 1.000000e+00 : f32
    %242 = vector.broadcast %cst_137 : f32 to vector<64x2xf32>
    %243 = arith.addf %242, %241 : vector<64x2xf32>
    %244 = arith.divf %242, %243 : vector<64x2xf32>
    %cst_138 = arith.constant dense<0.000000e+00> : vector<64x128xf32>
    %245 = tpu.matmul %244, %1, %cst_138 {dimension_numbers = #tpu.dot_dimension_numbers<[1], [0], [0], [1], [0, 0, 1, 1], [], []>} : vector<64x2xf32>, vector<2x128xf32>, vector<64x128xf32> -> vector<64x128xf32>
    %246 = arith.mulf %221, %245 : vector<64x128xf32>
    %c0_139 = arith.constant 0 : index
    %c0_140 = arith.constant 0 : index
    %247 = vector.load %arg27[%c0_139, %c0_140] : memref<24x64xbf16, #tpu.memory_space<vmem>>, vector<24x64xbf16>
    %248 = arith.truncf %246 : vector<64x128xf32> to vector<64x128xbf16>
    %cst_141 = arith.constant dense<0.000000e+00> : vector<24x128xf32>
    %249 = tpu.matmul %247, %248, %cst_141 {dimension_numbers = #tpu.dot_dimension_numbers<[1], [0], [0], [1], [0, 0, 1, 1], [], []>} : vector<24x64xbf16>, vector<64x128xbf16>, vector<24x128xf32> -> vector<24x128xf32>
    %c0_142 = arith.constant 0 : index
    %c0_143 = arith.constant 0 : index
    %250 = vector.load %arg28[%c0_142, %c0_143] : memref<24x1xf32, #tpu.memory_space<vmem>>, vector<24x1xf32>
    %251 = vector.broadcast %250 : vector<24x1xf32> to vector<24x128xf32>
    %252 = arith.addf %249, %251 : vector<24x128xf32>
    %c0_144 = arith.constant 0 : index
    %c0_145 = arith.constant 0 : index
    %c0_146 = arith.constant 0 : index
    %253 = vector.load %arg4[%c0_144, %c0_145, %c0_146] : memref<1x24x2xf32, #tpu.memory_space<vmem>>, vector<1x24x2xf32>
    %254 = vector.shape_cast %253 : vector<1x24x2xf32> to vector<24x2xf32>
    %cst_147 = arith.constant dense<0.000000e+00> : vector<24x128xf32>
    %255 = tpu.matmul %254, %1, %cst_147 {dimension_numbers = #tpu.dot_dimension_numbers<[1], [0], [0], [1], [0, 0, 1, 1], [], []>} : vector<24x2xf32>, vector<2x128xf32>, vector<24x128xf32> -> vector<24x128xf32>
    %256 = arith.mulf %252, %255 : vector<24x128xf32>
    %c0_148 = arith.constant 0 : index
    %c0_149 = arith.constant 0 : index
    %c0_150 = arith.constant 0 : index
    %257 = vector.load %arg5[%c0_148, %c0_149, %c0_150] : memref<1x24x2xf32, #tpu.memory_space<vmem>>, vector<1x24x2xf32>
    %258 = vector.shape_cast %257 : vector<1x24x2xf32> to vector<24x2xf32>
    %cst_151 = arith.constant dense<0.000000e+00> : vector<24x128xf32>
    %259 = tpu.matmul %258, %1, %cst_151 {dimension_numbers = #tpu.dot_dimension_numbers<[1], [0], [0], [1], [0, 0, 1, 1], [], []>} : vector<24x2xf32>, vector<2x128xf32>, vector<24x128xf32> -> vector<24x128xf32>
    %260 = arith.addf %256, %259 : vector<24x128xf32>
    %c0_152 = arith.constant 0 : index
    %c0_153 = arith.constant 0 : index
    %261 = vector.load %arg29[%c0_152, %c0_153] : memref<96x24xbf16, #tpu.memory_space<vmem>>, vector<96x24xbf16>
    %262 = arith.truncf %260 : vector<24x128xf32> to vector<24x128xbf16>
    %cst_154 = arith.constant dense<0.000000e+00> : vector<96x128xf32>
    %263 = tpu.matmul %261, %262, %cst_154 {dimension_numbers = #tpu.dot_dimension_numbers<[1], [0], [0], [1], [0, 0, 1, 1], [], []>} : vector<96x24xbf16>, vector<24x128xbf16>, vector<96x128xf32> -> vector<96x128xf32>
    %c0_155 = arith.constant 0 : index
    %c0_156 = arith.constant 0 : index
    %264 = vector.load %arg30[%c0_155, %c0_156] : memref<96x1xf32, #tpu.memory_space<vmem>>, vector<96x1xf32>
    %265 = vector.broadcast %264 : vector<96x1xf32> to vector<96x128xf32>
    %266 = arith.addf %263, %265 : vector<96x128xf32>
    %267 = arith.negf %266 : vector<96x128xf32>
    %268 = math.exp %267 : vector<96x128xf32>
    %cst_157 = arith.constant 1.000000e+00 : f32
    %269 = vector.broadcast %cst_157 : f32 to vector<96x128xf32>
    %270 = arith.addf %269, %268 : vector<96x128xf32>
    %271 = arith.divf %269, %270 : vector<96x128xf32>
    %272 = arith.mulf %266, %271 : vector<96x128xf32>
    %c0_158 = arith.constant 0 : index
    %c0_159 = arith.constant 0 : index
    %273 = vector.load %arg31[%c0_158, %c0_159] : memref<32x96xbf16, #tpu.memory_space<vmem>>, vector<32x96xbf16>
    %274 = arith.truncf %272 : vector<96x128xf32> to vector<96x128xbf16>
    %cst_160 = arith.constant dense<0.000000e+00> : vector<32x128xf32>
    %275 = tpu.matmul %273, %274, %cst_160 {dimension_numbers = #tpu.dot_dimension_numbers<[1], [0], [0], [1], [0, 0, 1, 1], [], []>} : vector<32x96xbf16>, vector<96x128xbf16>, vector<32x128xf32> -> vector<32x128xf32>
    %c0_161 = arith.constant 0 : index
    %c0_162 = arith.constant 0 : index
    %c0_163 = arith.constant 0 : index
    %276 = vector.load %arg6[%c0_161, %c0_162, %c0_163] : memref<1x32x2xf32, #tpu.memory_space<vmem>>, vector<1x32x2xf32>
    %277 = vector.shape_cast %276 : vector<1x32x2xf32> to vector<32x2xf32>
    %cst_164 = arith.constant dense<0.000000e+00> : vector<32x128xf32>
    %278 = tpu.matmul %277, %1, %cst_164 {dimension_numbers = #tpu.dot_dimension_numbers<[1], [0], [0], [1], [0, 0, 1, 1], [], []>} : vector<32x2xf32>, vector<2x128xf32>, vector<32x128xf32> -> vector<32x128xf32>
    %279 = arith.mulf %275, %278 : vector<32x128xf32>
    %c0_165 = arith.constant 0 : index
    %c0_166 = arith.constant 0 : index
    %c0_167 = arith.constant 0 : index
    %280 = vector.load %arg7[%c0_165, %c0_166, %c0_167] : memref<1x32x2xf32, #tpu.memory_space<vmem>>, vector<1x32x2xf32>
    %281 = vector.shape_cast %280 : vector<1x32x2xf32> to vector<32x2xf32>
    %cst_168 = arith.constant dense<0.000000e+00> : vector<32x128xf32>
    %282 = tpu.matmul %281, %1, %cst_168 {dimension_numbers = #tpu.dot_dimension_numbers<[1], [0], [0], [1], [0, 0, 1, 1], [], []>} : vector<32x2xf32>, vector<2x128xf32>, vector<32x128xf32> -> vector<32x128xf32>
    %283 = arith.addf %279, %282 : vector<32x128xf32>
    %c0_169 = arith.constant 0 : index
    %c0_170 = arith.constant 0 : index
    %c0_171 = arith.constant 0 : index
    %284 = vector.load %arg37[%c0_169, %c0_170, %c0_171] : memref<1x32x128xf32, #tpu.memory_space<vmem>>, vector<1x32x128xf32>
    %285 = vector.shape_cast %284 : vector<1x32x128xf32> to vector<32x128xf32>
    %286 = vector.shape_cast %283 : vector<32x128xf32> to vector<1x32x128xf32>
    tpu.vector_store %arg37[%c0_169, %c0_170, %c0_171], %286 {strides = array<i32>} : memref<1x32x128xf32, #tpu.memory_space<vmem>>, vector<1x32x128xf32>,
    return
  }
  func.func @transform_0(%arg0: i32) -> (i32, i32, i32) {
    %c0_i32 = arith.constant 0 : i32
    %c0_i32_0 = arith.constant 0 : i32
    %c0_i32_1 = arith.constant 0 : i32
    return %arg0, %c0_i32, %c0_i32_0 : i32, i32, i32
  }
  func.func @transform_1(%arg0: i32) -> (i32, i32, i32) {
    %c0_i32 = arith.constant 0 : i32
    %c0_i32_0 = arith.constant 0 : i32
    %c0_i32_1 = arith.constant 0 : i32
    return %arg0, %c0_i32, %c0_i32_0 : i32, i32, i32
  }
  func.func @transform_2(%arg0: i32) -> (i32, i32, i32) {
    %c0_i32 = arith.constant 0 : i32
    %c0_i32_0 = arith.constant 0 : i32
    %c0_i32_1 = arith.constant 0 : i32
    return %arg0, %c0_i32, %c0_i32_0 : i32, i32, i32
  }
  func.func @transform_3(%arg0: i32) -> (i32, i32, i32) {
    %c0_i32 = arith.constant 0 : i32
    %c0_i32_0 = arith.constant 0 : i32
    %c0_i32_1 = arith.constant 0 : i32
    return %arg0, %c0_i32, %c0_i32_0 : i32, i32, i32
  }
  func.func @transform_4(%arg0: i32) -> (i32, i32, i32) {
    %c0_i32 = arith.constant 0 : i32
    %c0_i32_0 = arith.constant 0 : i32
    %c0_i32_1 = arith.constant 0 : i32
    return %arg0, %c0_i32, %c0_i32_0 : i32, i32, i32
  }
  func.func @transform_5(%arg0: i32) -> (i32, i32, i32) {
    %c0_i32 = arith.constant 0 : i32
    %c0_i32_0 = arith.constant 0 : i32
    %c0_i32_1 = arith.constant 0 : i32
    return %arg0, %c0_i32, %c0_i32_0 : i32, i32, i32
  }
  func.func @transform_6(%arg0: i32) -> (i32, i32, i32) {
    %c0_i32 = arith.constant 0 : i32
    %c0_i32_0 = arith.constant 0 : i32
    %c0_i32_1 = arith.constant 0 : i32
    return %arg0, %c0_i32, %c0_i32_0 : i32, i32, i32
  }
  func.func @transform_7(%arg0: i32) -> (i32, i32) {
    %c0_i32 = arith.constant 0 : i32
    %c0_i32_0 = arith.constant 0 : i32
    %c0_i32_1 = arith.constant 0 : i32
    return %c0_i32, %c0_i32_0 : i32, i32
  }
  func.func @transform_8(%arg0: i32) -> (i32, i32) {
    %c0_i32 = arith.constant 0 : i32
    %c0_i32_0 = arith.constant 0 : i32
    %c0_i32_1 = arith.constant 0 : i32
    return %c0_i32, %c0_i32_0 : i32, i32
  }
  func.func @transform_9(%arg0: i32) -> (i32, i32) {
    %c0_i32 = arith.constant 0 : i32
    %c0_i32_0 = arith.constant 0 : i32
    %c0_i32_1 = arith.constant 0 : i32
    return %c0_i32, %c0_i32_0 : i32, i32
  }
  func.func @transform_10(%arg0: i32) -> (i32, i32) {
    %c0_i32 = arith.constant 0 : i32
    %c0_i32_0 = arith.constant 0 : i32
    %c0_i32_1 = arith.constant 0 : i32
    return %c0_i32, %c0_i32_0 : i32, i32
  }
  func.func @transform_11(%arg0: i32) -> (i32, i32) {
    %c0_i32 = arith.constant 0 : i32
    %c0_i32_0 = arith.constant 0 : i32
    %c0_i32_1 = arith.constant 0 : i32
    return %c0_i32, %c0_i32_0 : i32, i32
  }
  func.func @transform_12(%arg0: i32) -> (i32, i32) {
    %c0_i32 = arith.constant 0 : i32
    %c0_i32_0 = arith.constant 0 : i32
    %c0_i32_1 = arith.constant 0 : i32
    return %c0_i32, %c0_i32_0 : i32, i32
  }
  func.func @transform_13(%arg0: i32) -> (i32, i32) {
    %c0_i32 = arith.constant 0 : i32
    %c0_i32_0 = arith.constant 0 : i32
    %c0_i32_1 = arith.constant 0 : i32
    return %c0_i32, %c0_i32_0 : i32, i32
  }
  func.func @transform_14(%arg0: i32) -> (i32, i32) {
    %c0_i32 = arith.constant 0 : i32
    %c0_i32_0 = arith.constant 0 : i32
    %c0_i32_1 = arith.constant 0 : i32
    return %c0_i32, %c0_i32_0 : i32, i32
  }
  func.func @transform_15(%arg0: i32) -> (i32, i32) {
    %c0_i32 = arith.constant 0 : i32
    %c0_i32_0 = arith.constant 0 : i32
    %c0_i32_1 = arith.constant 0 : i32
    return %c0_i32, %c0_i32_0 : i32, i32
  }
  func.func @transform_16(%arg0: i32) -> (i32, i32) {
    %c0_i32 = arith.constant 0 : i32
    %c0_i32_0 = arith.constant 0 : i32
    %c0_i32_1 = arith.constant 0 : i32
    return %c0_i32, %c0_i32_0 : i32, i32
  }
  func.func @transform_17(%arg0: i32) -> (i32, i32) {
    %c0_i32 = arith.constant 0 : i32
    %c0_i32_0 = arith.constant 0 : i32
    %c0_i32_1 = arith.constant 0 : i32
    return %c0_i32, %c0_i32_0 : i32, i32
  }
  func.func @transform_18(%arg0: i32) -> (i32, i32) {
    %c0_i32 = arith.constant 0 : i32
    %c0_i32_0 = arith.constant 0 : i32
    %c0_i32_1 = arith.constant 0 : i32
    return %c0_i32, %c0_i32_0 : i32, i32
  }
  func.func @transform_19(%arg0: i32) -> (i32, i32) {
    %c0_i32 = arith.constant 0 : i32
    %c0_i32_0 = arith.constant 0 : i32
    %c0_i32_1 = arith.constant 0 : i32
    return %c0_i32, %c0_i32_0 : i32, i32
  }
  func.func @transform_20(%arg0: i32) -> (i32, i32) {
    %c0_i32 = arith.constant 0 : i32
    %c0_i32_0 = arith.constant 0 : i32
    %c0_i32_1 = arith.constant 0 : i32
    return %c0_i32, %c0_i32_0 : i32, i32
  }
  func.func @transform_21(%arg0: i32) -> (i32, i32) {
    %c0_i32 = arith.constant 0 : i32
    %c0_i32_0 = arith.constant 0 : i32
    %c0_i32_1 = arith.constant 0 : i32
    return %c0_i32, %c0_i32_0 : i32, i32
  }
  func.func @transform_22(%arg0: i32) -> (i32, i32) {
    %c0_i32 = arith.constant 0 : i32
    %c0_i32_0 = arith.constant 0 : i32
    %c0_i32_1 = arith.constant 0 : i32
    return %c0_i32, %c0_i32_0 : i32, i32
  }
  func.func @transform_23(%arg0: i32) -> (i32, i32) {
    %c0_i32 = arith.constant 0 : i32
    %c0_i32_0 = arith.constant 0 : i32
    %c0_i32_1 = arith.constant 0 : i32
    return %c0_i32, %c0_i32_0 : i32, i32
  }
  func.func @transform_24(%arg0: i32) -> (i32, i32) {
    %c0_i32 = arith.constant 0 : i32
    %c0_i32_0 = arith.constant 0 : i32
    %c0_i32_1 = arith.constant 0 : i32
    return %c0_i32, %c0_i32_0 : i32, i32
  }
  func.func @transform_25(%arg0: i32) -> (i32, i32) {
    %c0_i32 = arith.constant 0 : i32
    %c0_i32_0 = arith.constant 0 : i32
    %c0_i32_1 = arith.constant 0 : i32
    return %c0_i32, %c0_i32_0 : i32, i32
  }
  func.func @transform_26(%arg0: i32) -> (i32, i32) {
    %c0_i32 = arith.constant 0 : i32
    %c0_i32_0 = arith.constant 0 : i32
    %c0_i32_1 = arith.constant 0 : i32
    return %c0_i32, %c0_i32_0 : i32, i32
  }
  func.func @transform_27(%arg0: i32) -> (i32, i32) {
    %c0_i32 = arith.constant 0 : i32
    %c0_i32_0 = arith.constant 0 : i32
    %c0_i32_1 = arith.constant 0 : i32
    return %c0_i32, %c0_i32_0 : i32, i32
  }
  func.func @transform_28(%arg0: i32) -> (i32, i32) {
    %c0_i32 = arith.constant 0 : i32
    %c0_i32_0 = arith.constant 0 : i32
    %c0_i32_1 = arith.constant 0 : i32
    return %c0_i32, %c0_i32_0 : i32, i32
  }
  func.func @transform_29(%arg0: i32) -> (i32, i32) {
    %c0_i32 = arith.constant 0 : i32
    %c0_i32_0 = arith.constant 0 : i32
    %c0_i32_1 = arith.constant 0 : i32
    return %c0_i32, %c0_i32_0 : i32, i32
  }
  func.func @transform_30(%arg0: i32) -> (i32, i32) {
    %c0_i32 = arith.constant 0 : i32
    %c0_i32_0 = arith.constant 0 : i32
    %c0_i32_1 = arith.constant 0 : i32
    return %c0_i32, %c0_i32_0 : i32, i32
  }
  func.func @transform_31(%arg0: i32) -> (i32, i32) {
    %c0_i32 = arith.constant 0 : i32
    %c0_i32_0 = arith.constant 0 : i32
    %c0_i32_1 = arith.constant 0 : i32
    return %c0_i32, %c0_i32_0 : i32, i32
  }
  func.func @transform_32(%arg0: i32) -> (i32, i32) {
    %c0_i32 = arith.constant 0 : i32
    %c0_i32_0 = arith.constant 0 : i32
    %c0_i32_1 = arith.constant 0 : i32
    return %c0_i32, %c0_i32_0 : i32, i32
  }
  func.func @transform_33(%arg0: i32) -> (i32, i32) {
    %c0_i32 = arith.constant 0 : i32
    %c0_i32_0 = arith.constant 0 : i32
    %c0_i32_1 = arith.constant 0 : i32
    return %c0_i32, %c0_i32_0 : i32, i32
  }
  func.func @transform_34(%arg0: i32) -> (i32, i32) {
    %c0_i32 = arith.constant 0 : i32
    %c0_i32_0 = arith.constant 0 : i32
    %c0_i32_1 = arith.constant 0 : i32
    return %c0_i32, %c0_i32_0 : i32, i32
  }
  func.func @transform_35(%arg0: i32) -> (i32, i32) {
    %c0_i32 = arith.constant 0 : i32
    %c0_i32_0 = arith.constant 0 : i32
    %c0_i32_1 = arith.constant 0 : i32
    return %c0_i32, %c0_i32_0 : i32, i32
  }
  func.func @transform_36(%arg0: i32) -> (i32, i32, i32) {
    %c0_i32 = arith.constant 0 : i32
    %c0_i32_0 = arith.constant 0 : i32
    %c0_i32_1 = arith.constant 0 : i32
    return %arg0, %c0_i32, %c0_i32_0 : i32, i32, i32
  }
}

</mosaic_0001>

<bundles_post_ra>
// kernel: film_efficientnet_forward.1
= control target key start
LH: loop header
LB: loop body
LE: loop exit
PB: predicated region body
PF: predicated region fallthrough
CT: control target
= control target key end

     0   :  { %v12638_v0 = vmov 0   ;;  %v12642_v1 = vmov 2   ;;  %v12646_v2 = vmov 4   ;;  %s7790_s6 = smov 10   ;;  %s7791_s10 = smov 8   ;;  %vm220_vm0 = vcmask 261120   ;;  %s12629_s0 = inlined_call_operand.smem [shape: u32[37], index: -1, kind: input, shape index: {}] }
   0x1   :  { %s1_s5 = sld [smem:[%s12629_s0]]   ;;  %256 = vmatprep.mubr.bf16.mxu0 %v12638_v0  ;;  %299 = vmatprep.mubr.bf16.mxu1 %v12638_v0  ;;  %v12644_v13 = vmov 1   ;;  %v12636_v15 = vmov 5   ;;  %v12640_v16 = vmov 3   ;;  %v12632_v17 = vmov 7   ;;  %s7797_s14 = smov 9  }
   0x2   :  { %7345 = vset.pattern.permute.xlu0 %v12642_v1  ;;  %7341 = vset.pattern.permute.xlu1 %v12646_v2  ;;  %s7855_s9 = sld [smem:[%s12629_s0 + %s7790_s6]]   ;;  %v12634_v18 = vmov 6   ;;  %v12630_v19 = vmov 8   ;;  %s7799_s18 = smov 11   ;;  %vm7813_vm9 = vmmov 0   ;;  %vm1328_vm10 = vcmask 130048  }
   0x3   :  { %s6479_s13 = sld [smem:[%s12629_s0 + %s7791_s10]]   ;;  %s7800_s22 = smov 17   ;;  %vm1419_vm11 = vcmask 31744   ;;  %vm1426_vm12 = vcmask 1043456   ;;  %vm1542_vm13 = vcmask 1041408   ;;  %vm1535_vm14 = vcmask 15360  }
   0x4   :  { %s6480_s17 = sld [smem:[%s12629_s0 + %s7797_s14]]   ;;  %s7801_s23 = smov 16   ;;  %vm5157_vm15 = vcmask 523264  }
   0x5   :  { %s7885_s21 = sld [smem:[%s12629_s0 + %s7799_s18]]   ;;  %s7802_s24 = smov 1  }
   0x6   :  { %s7803_s25 = smov 15   ;;  %s7804_s26 = smov 113  }
   0x7   :  { %v7406_v3 = vld [vmem:[%s1_s5 + $0x4] ss:$16 sps:$4 sm:$0xff]   ;;  %v7408_v4 = vld [vmem:[%s1_s5 + $0xc] ss:$16 sps:$4 sm:$0xff]   ;;  %v7410_v5 = vld [vmem:[%s1_s5] ss:$16 sps:$4 sm:$0xff]   ;;  %s8192_s14 = sld [smem:[%s12629_s0 + %s7803_s25]]  }
   0x8   :  { %224 = vmatprep.subr.bf16.mxu0 %v7406_v3  ;;  %v7411_v6 = vld [vmem:[%s1_s5 + $0x8] ss:$16 sps:$4 sm:$0xff]   ;;  %267 = vmatprep.subr.bf16.mxu1 %v7408_v4  ;;  %v7412_v7 = vld [vmem:[%s1_s5 + $0x24] ss:$16 sps:$4 sm:$0xff]   ;;  %v7414_v8 = vld [vmem:[%s1_s5 + $0x2c] ss:$16 sps:$4 sm:$0xff]   ;;  %s8843_s19 = sld [smem:[%s12629_s0 + %s7801_s23]]  }
   0x9   :  { %225 = vmatpush1.bf16.msra.mxu0 %v7410_v5  ;;  %268 = vmatpush1.bf16.msra.mxu1 %v7411_v6  ;;  %v7416_v9 = vld [vmem:[%s1_s5 + $0x20] ss:$16 sps:$4 sm:$0xff]   ;;  %v7417_v10 = vld [vmem:[%s1_s5 + $0x28] ss:$16 sps:$4 sm:$0xff]   ;;  %s7805_s27 = smov 127   ;;  %s7806_s28 = smov 111  }
   0xa   :  { %226 = vmatprep.subr.bf16.mxu0 %v7412_v7  ;;  %269 = vmatprep.subr.bf16.mxu1 %v7414_v8  ;;  %v366_v11 = vld [vmem:[%s7855_s9] sm:$0xff]  ;;  %v367_v14 = vld [vmem:[%s7855_s9 + $0x8] sm:$0xff]  ;;  %s7807_s29 = smov 112   ;;  %s7808_s30 = smov 32  }
   0xb   :  { %v7418_v12 = vld [vmem:[%s6479_s13] sm:$0xff]   ;;  %604 = vperm.xlu0 %7345, %v366_v11   ;;  %370 = vperm.xlu1 %7341, %v366_v11   ;;  %v164_v21 = vld [vmem:[%s6480_s17 + $0x8] sm:$0xff]  ;;  %s7983_s3 = sld [smem:[%s12629_s0 + %s7808_s30]]   ;;  %s7809_s4 = smov 13  }
   0xc   :  { %v163_v20 = vld [vmem:[%s6480_s17] sm:$0xff]  ;;  %s6484_s7 = sld [smem:[%s12629_s0 + %s7809_s4]]   ;;  %s7810_s8 = smov 7  }
   0xd   :  { %227 = vmatpush1.bf16.msra.mxu0 %v7416_v9  ;;  %270 = vmatpush1.bf16.msra.mxu1 %v7417_v10  ;;  %v1027_v22 = vld [vmem:[%s7885_s21] sm:$0xff]  ;;  %s8184_s11 = sld [smem:[%s12629_s0 + %s7810_s8]]   ;;  %s7811_s18 = smov 19  }
   0xe   :  { %s8246_s17 = sld [smem:[%s12629_s0 + %s7800_s22]]   ;;  %s7815_s30 = smov 12  }
   0xf   :  { %7346 = vset.pattern.permute.xlu0 %v12644_v13  ;;  %7342 = vset.pattern.permute.xlu1 %v12638_v0  ;;  %s7816_s4 = smov 14   ;;  %s7817_s8 = smov 33  }
  0x10   :  { %6517 = vmatmul.mubr.msk.bf16.vlgmr.msra.gmra.mrb[0].mxu0 %vm220_vm0, %v7418_v12  ;;  %6518 = vmatmul.mubr.msk.bf16.vlgmr.msra.gmra.mrb[0].mxu1 %vm220_vm0, %v7418_v12  ;;  %s7819_s12 = smov 20   ;;  %s7824_s16 = smov 23   ;;  %vm5991_vm0 = vcmask 195584  }
  0x11   :  { %524 = vperm.xlu0 %7346, %v366_v11   ;;  %444 = vperm.xlu1 %7342, %v366_v11   ;;  %s8795_s15 = sld [smem:[%s12629_s0 + %s7819_s12]]   ;;  %s7823_s12 = smov 21  }
  0x12   :  { %s7825_s20 = smov 25   ;;  %s7826_s2 = smov 27  }
  0x13   :  { %v6530_v13 = vld [vmem:[%s8184_s11 + $0x5] ss:$8 sm:$0xf]  ;;  %s11289_s1 = sld [smem:[%s12629_s0 + %s7825_s20]]   ;;  %s7827_s6 = smov 29  }
  0x14   :  { %s11378_s5 = sld [smem:[%s12629_s0 + %s7826_s2]]   ;;  %s7830_s10 = smov 24  }
  0x15   :  { %528 = vperm.xlu0 %7346, %v367_v14   ;;  %7343 = vset.pattern.permute.xlu1 %v12646_v2  ;;  %s11437_s9 = sld [smem:[%s12629_s0 + %s7827_s6]]  }
  0x16   :  { %375 = vperm.xlu1 %7343, %v367_v14   ;;  %s6495_s13 = sld [smem:[%s12629_s0 + %s7830_s10]]  }
  0x19   :  { %7349 = vset.pattern.permute.xlu0 %v12636_v15 }
  0x1a   :  { %764 = vperm.xlu0 %7349, %v366_v11   ;;  %7344 = vset.pattern.permute.xlu1 %v12638_v0 }
  0x1b   :  { %448 = vperm.xlu1 %7344, %v367_v14  }
  0x1e   :  { %7350 = vset.pattern.permute.xlu0 %v12640_v16 }
  0x1f   :  { %688 = vperm.xlu0 %7350, %v367_v14   ;;  %7347 = vset.pattern.permute.xlu1 %v12640_v16 }
  0x20   :  { %684 = vperm.xlu1 %7347, %v366_v11  }
  0x23   :  { %7353 = vset.pattern.permute.xlu0 %v12632_v17 }
  0x24   :  { %924 = vperm.xlu0 %7353, %v366_v11   ;;  %7348 = vset.pattern.permute.xlu1 %v12642_v1 }
  0x25   :  { %608 = vperm.xlu1 %7348, %v367_v14  }
  0x28   :  { %7354 = vset.pattern.permute.xlu0 %v12634_v18 }
  0x29   :  { %848 = vperm.xlu0 %7354, %v367_v14   ;;  %7351 = vset.pattern.permute.xlu1 %v12634_v18 }
  0x2a   :  { %844 = vperm.xlu1 %7351, %v366_v11  }
  0x2d   :  { %7357 = vset.pattern.permute.xlu0 %v12630_v19 }
  0x2e   :  { %1008 = vperm.xlu0 %7357, %v367_v14   ;;  %7352 = vset.pattern.permute.xlu1 %v12636_v15 }
  0x2f   :  { %768 = vperm.xlu1 %7352, %v367_v14  }
  0x32   :  { %7358 = vset.pattern.permute.xlu0 %v12638_v0 }
  0x33   :  { %167 = vperm.xlu0 %7358, %v163_v20   ;;  %7355 = vset.pattern.permute.xlu1 %v12630_v19  ;;  %v6527_v19 = vld [vmem:[%s8184_s11 + $0x1] ss:$8 sm:$0xf] }
  0x34   :  { %1004 = vperm.xlu1 %7355, %v366_v11  }
  0x37   :  { %172 = vperm.xlu0 %7358, %v164_v21  }
  0x38   :  { %7356 = vset.pattern.permute.xlu1 %v12632_v17 }
  0x39   :  { %928 = vperm.xlu1 %7356, %v367_v14  }
  0x3d   :  { %7359 = vset.pattern.permute.xlu1 %v12638_v0 }
  0x3e   :  { %1031 = vperm.xlu1 %7359, %v1027_v22  }
  0x8a   :  { %v7888_v23 = vpop.permute.xlu0 %604  ;;  %v7987_v22 = vpop.permute.xlu1 %370 }
  0x90   :  { %v7890_v24 = vpop.permute.xlu0 %524 }
  0x94   :  { %v7892_v25 = vpop.permute.xlu0 %528 }
  0x95   :  { %13043 = vst [vmem:[#allocation2_spill] sm:$0xff] %v7892_v25 }
  0x99   :  { %v7894_v26 = vpop.permute.xlu0 %764 }
  0x9e   :  { %v7896_v27 = vpop.permute.xlu0 %688 }
  0x9f   :  { %13044 = vst [vmem:[#allocation3_spill] sm:$0xff] %v7896_v27 }
  0xa3   :  { %v7898_v28 = vpop.permute.xlu0 %924 }
  0xa4   :  { %13045 = vst [vmem:[#allocation4_spill] sm:$0xff] %v7898_v28 }
  0xa8   :  { %v7900_v29 = vpop.permute.xlu0 %848 }
  0xa9   :  { %13046 = vst [vmem:[#allocation5_spill] sm:$0xff] %v7900_v29 }
  0xad   :  { %v7902_v30 = vpop.permute.xlu0 %1008 }
  0xae   :  { %13047 = vst [vmem:[#allocation6_spill] sm:$0xff] %v7902_v30 }
  0xb2   :  { %v168_v31 = vpop.permute.xlu0 %167 }
  0xb6   :  { %v173_v60 = vpop.permute.xlu0 %172 }
  0xe3   :  { %v258_v32 = vpop.f32.mrb[0].mxu0  ;;  %v301_v33 = vpop.f32.mrb[0].mxu1 }
  0xe4   :  { %v259_v34 = vadd.f32 %v258_v32, %v168_v31  ;;  %v302_v35 = vadd.f32 %v301_v33, %v168_v31  ;;  %v260_v36 = vpop.f32.mrb[1].mxu0  ;;  %v303_v37 = vpop.f32.mrb[1].mxu1  ;;  %v1120_v32 = vld [vmem:[%s7983_s3 + $0x88] sm:$0xff] }
  0xe5   :  { %v262_v38 = vpop.f32.mrb[2].mxu0  ;;  %v305_v39 = vpop.f32.mrb[2].mxu1  ;;  %v261_v48 = vadd.f32 %v260_v36, %v168_v31  ;;  %v304_v50 = vadd.f32 %v303_v37, %v168_v31  ;;  %v1119_v31 = vld [vmem:[%s7983_s3 + $0x80] sm:$0xff]  ;;  %v1104_v36 = vld [vmem:[%s7983_s3 + $0x8] sm:$0xff] }
  0xe6   :  { %v6519_v40 = vmul.f32 -1.442695, %v259_v34  ;;  %v6521_v41 = vmul.f32 -1.442695, %v302_v35  ;;  %v7904_v42 = vpop.f32.mrb[3].mxu0  ;;  %v7906_v43 = vpop.f32.mrb[3].mxu1  ;;  %v7934_v61 = vadd.f32 %v305_v39, %v173_v60  ;;  %v7945_v5 = vadd.f32 %v262_v38, %v173_v60 }
  0xe7   :  { %v6520_v49 = vmul.f32 -1.442695, %v261_v48  ;;  %v6522_v52 = vmul.f32 -1.442695, %v304_v50  ;;  %v7961_v8 = vadd.f32 %v7904_v42, %v173_v60  ;;  %v7969_v11 = vadd.f32 %v7906_v43, %v173_v60  ;;  %v7997_v38 = vpop.permute.xlu1 %444  ;;  %v1151_v42 = vld [vmem:[%s7983_s3 + $0x180] sm:$0xff] }
  0xe8   :  { %7467 = vpow2.f32 %v6519_v40  ;;  %v6525_v63 = vmul.f32 -1.442695, %v7934_v61  ;;  %v6523_v7 = vmul.f32 -1.442695, %v7945_v5  ;;  %v1121_v40 = vld [vmem:[%s7983_s3 + $0x90] sm:$0xff] }
  0xe9   :  { %7469 = vpow2.f32 %v6521_v41  ;;  %v6524_v10 = vmul.f32 -1.442695, %v7961_v8  ;;  %v6526_v14 = vmul.f32 -1.442695, %v7969_v11  ;;  %v1122_v41 = vld [vmem:[%s7983_s3 + $0x98] sm:$0xff] }
  0xea   :  { %v7180_v43 = vpack.c.bf16 %v1122_v41, %v1121_v40  ;;  %v1110_v40 = vld [vmem:[%s7983_s3 + $0x38] sm:$0xff] }
  0xf2   :  { %v7468_v44 = vpop.eup %7467 }
  0xf3   :  { %v7470_v45 = vpop.eup %7469  ;;  %v334_v46 = vadd.f32 1.0, %v7468_v44  ;;  %v1152_v44 = vld [vmem:[%s7983_s3 + $0x188] sm:$0xff] }
  0xf4   :  { %v336_v47 = vadd.f32 1.0, %v7470_v45  ;;  %v1105_v45 = vld [vmem:[%s7983_s3 + $0x10] sm:$0xff] }
  0xf5   :  { %7471 = vrcp.f32 %v334_v46  ;;  %v1106_v46 = vld [vmem:[%s7983_s3 + $0x18] sm:$0xff] }
  0xf6   :  { %7473 = vrcp.f32 %v336_v47 }
  0xf7   :  { %7475 = vpow2.f32 %v6520_v49  ;;  %v7182_v49 = vpack.c.bf16 %v1106_v46, %v1105_v45  ;;  %v1127_v45 = vld [vmem:[%s7983_s3 + $0xc0] sm:$0xff]  ;;  %v1128_v46 = vld [vmem:[%s7983_s3 + $0xc8] sm:$0xff] }
  0xf8   :  { %7477 = vpow2.f32 %v6522_v52 }
  0xff   :  { %v7472_v51 = vpop.eup %7471 }
 0x100   :  { %v7474_v53 = vpop.eup %7473  ;;  %v7908_v54 = vmul.f32 %v7472_v51, %v259_v34  ;;  %v7176_v34 = vpack.c.bf16 %v1120_v32, %v1119_v31  ;;  %v1136_v51 = vld [vmem:[%s7983_s3 + $0x108] sm:$0xff] }
 0x101   :  { %v7910_v55 = vmul.f32 %v7474_v53, %v302_v35  ;;  %v7476_v56 = vpop.eup %7475  ;;  %v1103_v35 = vld [vmem:[%s7983_s3] sm:$0xff] }
 0x102   :  { %13048 = vst [vmem:[#allocation7_spill] sm:$0xff] %v7908_v54  ;;  %386 = vrot.lane.b32.xlu1 %v7908_v54, %s7800_s22  ;;  %v335_v57 = vadd.f32 1.0, %v7476_v56  ;;  %v7478_v58 = vpop.eup %7477  ;;  %v7178_v39 = vpack.c.bf16 %v1104_v36, %v1103_v35  ;;  %7177 = vmatprep.subr.bf16.mxu0 %v7176_v34  ;;  %v1126_v34 = vld [vmem:[%s7983_s3 + $0xb8] sm:$0xff]  ;;  %v1155_v35 = vld [vmem:[%s7983_s3 + $0x1a0] sm:$0xff] }
 0x103   :  { %13049 = vst [vmem:[#allocation8_spill] sm:$0xff] %v7910_v55  ;;  %475 = vrot.lane.b32.xlu0 %v7910_v55, %s7801_s23  ;;  %v337_v59 = vadd.f32 1.0, %v7478_v58  ;;  %v1124_v58 = vld [vmem:[%s7983_s3 + $0xa8] sm:$0xff] }
 0x104   :  { %7479 = vrcp.f32 %v335_v57  ;;  %7179 = vmatpush3.bf16.msra.mxu0 %v7178_v39  ;;  %v1123_v57 = vld [vmem:[%s7983_s3 + $0xa0] sm:$0xff]  ;;  %v1109_v39 = vld [vmem:[%s7983_s3 + $0x30] sm:$0xff] }
 0x105   :  { %7481 = vrcp.f32 %v337_v59  ;;  %7181 = vmatprep.subr.bf16.mxu0 %v7180_v43  ;;  %v1153_v59 = vld [vmem:[%s7983_s3 + $0x190] sm:$0xff]  ;;  %v7184_v60 = vpack.c.bf16 %v1124_v58, %v1123_v57  ;;  %v7190_v41 = vpack.c.bf16 %v1110_v40, %v1109_v39  ;;  %v1140_v43 = vld [vmem:[%s7983_s3 + $0x128] sm:$0xff]  ;;  %v1131_v39 = vld [vmem:[%s7983_s3 + $0xe0] sm:$0xff] }
 0x106   :  { %394 = vrot.lane.b32.xlu1 %v7910_v55, %s7800_s22  ;;  %7483 = vpow2.f32 %v6525_v63  ;;  %v1107_v63 = vld [vmem:[%s7983_s3 + $0x20] sm:$0xff]  ;;  %v1132_v40 = vld [vmem:[%s7983_s3 + $0xe8] sm:$0xff] }
 0x107   :  { %627 = vrot.lane.b32.xlu0 %v7908_v54, %s7802_s24  ;;  %7485 = vpow2.f32 %v6523_v7  ;;  %v1137_v7 = vld [vmem:[%s7983_s3 + $0x110] sm:$0xff] }
 0x108   :  { %7487 = vpow2.f32 %v6524_v10  ;;  %7183 = vmatpush3.bf16.msra.mxu0 %v7182_v49  ;;  %v1158_v49 = vld [vmem:[%s7983_s3 + $0x1b8] sm:$0xff] }
 0x109   :  { %7185 = vmatprep.subr.bf16.mxu0 %v7184_v60  ;;  %v1142_v60 = vld [vmem:[%s7983_s3 + $0x138] sm:$0xff] }
 0x10a   :  { %467 = vrot.lane.b32.xlu1 %v7908_v54, %s7801_s23 }
 0x10b   :  { %635 = vrot.lane.b32.xlu0 %v7910_v55, %s7802_s24 }
 0x10e   :  { %547 = vrot.lane.b32.xlu1 %v7908_v54, %s7803_s25  ;;  %v7480_v62 = vpop.eup %7479 }
 0x10f   :  { %787 = vrot.lane.b32.xlu0 %v7908_v54, %s7804_s26  ;;  %v7943_v3 = vmul.f32 %v7480_v62, %v261_v48  ;;  %v7482_v4 = vpop.eup %7481  ;;  %v7208_v48 = vpack.c.bf16 %v1152_v44, %v1151_v42  ;;  %v1154_v62 = vld [vmem:[%s7983_s3 + $0x198] sm:$0xff]  ;;  %v1139_v42 = vld [vmem:[%s7983_s3 + $0x120] sm:$0xff] }
 0x110   :  { %v7951_v6 = vmul.f32 %v7482_v4, %v304_v50  ;;  %v7484_v9 = vpop.eup %7483  ;;  %v1135_v50 = vld [vmem:[%s7983_s3 + $0x100] sm:$0xff]  ;;  %v1108_v4 = vld [vmem:[%s7983_s3 + $0x28] sm:$0xff]  ;;  %v7218_v44 = vpack.c.bf16 %v1140_v43, %v1139_v42  ;;  %v7200_v42 = vpack.c.bf16 %v1132_v40, %v1131_v39  ;;  %v1162_v43 = vld [vmem:[%s7983_s3 + $0x1d8] sm:$0xff] }
 0x111   :  { %13050 = vst [vmem:[#allocation9_spill] sm:$0xff] %v7943_v3  ;;  %v340_v12 = vadd.f32 1.0, %v7484_v9  ;;  %v7486_v20 = vpop.eup %7485  ;;  %v7210_v56 = vpack.c.bf16 %v1136_v51, %v1135_v50  ;;  %7209 = vmatprep.subr.bf16.mxu1 %v7208_v48  ;;  %v1138_v9 = vld [vmem:[%s7983_s3 + $0x118] sm:$0xff]  ;;  %v7192_v48 = vpack.c.bf16 %v1128_v46, %v1127_v45  ;;  %v1111_v50 = vld [vmem:[%s7983_s3 + $0x40] sm:$0xff]  ;;  %v1112_v51 = vld [vmem:[%s7983_s3 + $0x48] sm:$0xff] }
 0x112   :  { %555 = vrot.lane.b32.xlu1 %v7910_v55, %s7803_s25  ;;  %13051 = vst [vmem:[#allocation10_spill] sm:$0xff] %v7951_v6  ;;  %v338_v21 = vadd.f32 1.0, %v7486_v20  ;;  %v7488_v33 = vpop.eup %7487  ;;  %v7214_v20 = vpack.c.bf16 %v1138_v9, %v1137_v7  ;;  %v7194_v58 = vpack.c.bf16 %v1112_v51, %v1111_v50  ;;  %v1116_v45 = vld [vmem:[%s7983_s3 + $0x68] sm:$0xff]  ;;  %v1133_v50 = vld [vmem:[%s7983_s3 + $0xf0] sm:$0xff]  ;;  %v1134_v51 = vld [vmem:[%s7983_s3 + $0xf8] sm:$0xff] }
 0x113   :  { %795 = vrot.lane.b32.xlu0 %v7910_v55, %s7804_s26  ;;  %7489 = vrcp.f32 %v340_v12  ;;  %v339_v47 = vadd.f32 1.0, %v7488_v33  ;;  %7211 = vmatpush3.bf16.msra.mxu1 %v7210_v56  ;;  %v8026_v12 = vpop.permute.xlu1 %375  ;;  %v1125_v33 = vld [vmem:[%s7983_s3 + $0xb0] sm:$0xff] }
 0x114   :  { %7491 = vpow2.f32 %v6526_v14  ;;  %13053 = vst [vmem:[#allocation12_spill] sm:$0xff] %v8026_v12  ;;  %v7186_v14 = vpack.c.bf16 %v1108_v4, %v1107_v63  ;;  %v7188_v36 = vpack.c.bf16 %v1126_v34, %v1125_v33  ;;  %v1129_v63 = vld [vmem:[%s7983_s3 + $0xd0] sm:$0xff]  ;;  %v1130_v4 = vld [vmem:[%s7983_s3 + $0xd8] sm:$0xff] }
 0x115   :  { %7493 = vrcp.f32 %v338_v21  ;;  %v7196_v9 = vpack.c.bf16 %v1130_v4, %v1129_v63 }
 0x116   :  { %707 = vrot.lane.b32.xlu1 %v7908_v54, %s7805_s27  ;;  %7495 = vrcp.f32 %v339_v47  ;;  %7187 = vmatpush3.bf16.msra.mxu0 %v7186_v14  ;;  %v1157_v47 = vld [vmem:[%s7983_s3 + $0x1b0] sm:$0xff] }
 0x117   :  { %947 = vrot.lane.b32.xlu0 %v7908_v54, %s7806_s28  ;;  %v8035_v32 = vpop.permute.xlu1 %448  ;;  %7189 = vmatprep.subr.bf16.mxu0 %v7188_v36  ;;  %v7220_v57 = vpack.c.bf16 %v1158_v49, %v1157_v47  ;;  %v1113_v14 = vld [vmem:[%s7983_s3 + $0x50] sm:$0xff]  ;;  %v1146_v49 = vld [vmem:[%s7983_s3 + $0x158] sm:$0xff] }
 0x118   :  { %13055 = vst [vmem:[#allocation14_spill] sm:$0xff] %v8035_v32 }
 0x11a   :  { %715 = vrot.lane.b32.xlu1 %v7910_v55, %s7805_s27  ;;  %7191 = vmatpush3.bf16.msra.mxu0 %v7190_v41 }
 0x11b   :  { %955 = vrot.lane.b32.xlu0 %v7910_v55, %s7806_s28  ;;  %v8057_v56 = vpop.permute.xlu1 %684  ;;  %7193 = vmatprep.subr.bf16.mxu0 %v7192_v48  ;;  %v1145_v48 = vld [vmem:[%s7983_s3 + $0x150] sm:$0xff] }
 0x11d   :  { %v7490_v37 = vpop.eup %7489 }
 0x11e   :  { %867 = vrot.lane.b32.xlu1 %v7908_v54, %s7807_s29  ;;  %v7492_v52 = vpop.eup %7491  ;;  %v8012_v53 = vmul.f32 %v7490_v37, %v7934_v61  ;;  %v7212_v61 = vpack.c.bf16 %v1154_v62, %v1153_v59  ;;  %v1156_v37 = vld [vmem:[%s7983_s3 + $0x1a8] sm:$0xff]  ;;  %v1141_v59 = vld [vmem:[%s7983_s3 + $0x130] sm:$0xff]  ;;  %7195 = vmatpush3.bf16.msra.mxu0 %v7194_v58 }
 0x11f   :  { %390 = vrot.lane.b32.xlu0 %v7943_v3, %s7800_s22  ;;  %v341_v10 = vadd.f32 1.0, %v7492_v52  ;;  %v7494_v21 = vpop.eup %7493  ;;  %v7222_v62 = vpack.c.bf16 %v1142_v60, %v1141_v59  ;;  %7197 = vmatprep.subr.bf16.mxu0 %v7196_v9  ;;  %v1164_v58 = vld [vmem:[%s7983_s3 + $0x1e8] sm:$0xff]  ;;  %v1117_v59 = vld [vmem:[%s7983_s3 + $0x70] sm:$0xff]  ;;  %v1118_v60 = vld [vmem:[%s7983_s3 + $0x78] sm:$0xff] }
 0x120   :  { %13052 = vst [vmem:[#allocation11_spill] sm:$0xff] %v8012_v53  ;;  %7213 = vmatprep.subr.bf16.mxu1 %v7212_v61  ;;  %v8033_v31 = vmul.f32 %v7494_v21, %v7945_v5  ;;  %v7216_v5 = vpack.c.bf16 %v1156_v37, %v1155_v35  ;;  %v7496_v52 = vpop.eup %7495  ;;  %v1159_v61 = vld [vmem:[%s7983_s3 + $0x1c0] sm:$0xff]  ;;  %v8078_v37 = vpop.permute.xlu1 %608  ;;  %v7206_v4 = vpack.c.bf16 %v1118_v60, %v1117_v59  ;;  %v1148_v9 = vld [vmem:[%s7983_s3 + $0x168] sm:$0xff] }
 0x121   :  { %7215 = vmatpush3.bf16.msra.mxu1 %v7214_v20  ;;  %7497 = vrcp.f32 %v341_v10  ;;  %v8067_v7 = vmul.f32 %v7496_v52, %v7961_v8  ;;  %v1160_v10 = vld [vmem:[%s7983_s3 + $0x1c8] sm:$0xff]  ;;  %v1114_v20 = vld [vmem:[%s7983_s3 + $0x58] sm:$0xff]  ;;  %v1143_v35 = vld [vmem:[%s7983_s3 + $0x140] sm:$0xff]  ;;  %13057 = vst [vmem:[#allocation16_spill] sm:$0xff] %v8078_v37 }
 0x122   :  { %875 = vrot.lane.b32.xlu1 %v7910_v55, %s7807_s29  ;;  %13054 = vst [vmem:[#allocation13_spill] sm:$0xff] %v8033_v31  ;;  %7217 = vmatprep.subr.bf16.mxu1 %v7216_v5  ;;  %v7224_v33 = vpack.c.bf16 %v1160_v10, %v1159_v61  ;;  %v7198_v34 = vpack.c.bf16 %v1114_v20, %v1113_v14  ;;  %v1144_v8 = vld [vmem:[%s7983_s3 + $0x148] sm:$0xff]  ;;  %v1161_v5 = vld [vmem:[%s7983_s3 + $0x1d0] sm:$0xff]  ;;  %v1163_v52 = vld [vmem:[%s7983_s3 + $0x1e0] sm:$0xff] }
 0x123   :  { %398 = vrot.lane.b32.xlu0 %v7951_v6, %s7800_s22  ;;  %13056 = vst [vmem:[#allocation15_spill] sm:$0xff] %v8067_v7  ;;  %v7226_v36 = vpack.c.bf16 %v1144_v8, %v1143_v35  ;;  %v7228_v46 = vpack.c.bf16 %v1162_v43, %v1161_v5  ;;  %v7232_v63 = vpack.c.bf16 %v1164_v58, %v1163_v52  ;;  %v1147_v61 = vld [vmem:[%s7983_s3 + $0x160] sm:$0xff]  ;;  %v1165_v14 = vld [vmem:[%s7983_s3 + $0x1f0] sm:$0xff]  ;;  %v1166_v20 = vld [vmem:[%s7983_s3 + $0x1f8] sm:$0xff] }
 0x124   :  { %7199 = vmatpush3.bf16.msra.mxu0 %v7198_v34  ;;  %v7234_v10 = vpack.c.bf16 %v1148_v9, %v1147_v61  ;;  %v1150_v34 = vld [vmem:[%s7983_s3 + $0x178] sm:$0xff]  ;;  %v1028_v59 = vld [vmem:[%s7885_s21 + $0x8] sm:$0xff]  ;;  %s8300_s21 = sld [smem:[%s12629_s0 + %s7811_s18]]  }
 0x125   :  { %7219 = vmatpush3.bf16.msra.mxu1 %v7218_v44  ;;  %v1115_v44 = vld [vmem:[%s7983_s3 + $0x60] sm:$0xff]  ;;  %7201 = vmatprep.subr.bf16.mxu0 %v7200_v42 }
 0x126   :  { %471 = vrot.lane.b32.xlu1 %v7943_v3, %s7801_s23  ;;  %7221 = vmatprep.subr.bf16.mxu1 %v7220_v57  ;;  %v7202_v47 = vpack.c.bf16 %v1116_v45, %v1115_v44  ;;  %v7204_v57 = vpack.c.bf16 %v1134_v51, %v1133_v50  ;;  %v1168_v42 = vld [vmem:[%s6484_s7] sm:$0xf]  ;;  %v402_v50 = vlaneseq  ;;  %v6531_v37 = vld [vmem:[%s8184_s11 + $0x6] ss:$8 sm:$0xf]  ;;  %s6485_s7 = sld [smem:[%s12629_s0 + %s7816_s4]]   ;;  %s7821_s4 = smov 18  }
 0x127   :  { %551 = vrot.lane.b32.xlu0 %v7943_v3, %s7803_s25 }
 0x128   :  { %7203 = vmatpush3.bf16.msra.mxu0 %v7202_v47  ;;  %v8203_v60 = vand.u32 127, %v402_v50 }
 0x129   :  { %7223 = vmatpush3.bf16.msra.mxu1 %v7222_v62  ;;  %v8103_v62 = vpop.permute.xlu1 %844  ;;  %7205 = vmatprep.subr.bf16.mxu0 %v7204_v57  ;;  %v8196_v57 = vshrl.u32 %v402_v50, 7  ;;  %v1171_v50 = vld [vmem:[%s8192_s14] sm:$0xff] }
 0x12a   :  { %479 = vrot.lane.b32.xlu1 %v7951_v6, %s7801_s23  ;;  %7225 = vmatprep.subr.bf16.mxu1 %v7224_v33  ;;  %13059 = vst [vmem:[#allocation18_spill] sm:$0xff] %v8103_v62  ;;  %v1149_v33 = vld [vmem:[%s7983_s3 + $0x170] sm:$0xff]  ;;  %vm404_vm1 = vcmp.lt.s32.totalorder %v8203_v60, 17  ;;  %vm483_vm2 = vcmp.lt.s32.totalorder %v8203_v60, 16  ;;  %vm563_vm3 = vcmp.lt.s32.totalorder %v8203_v60, 15  ;;  %vm643_vm4 = vcmp.lt.s32.totalorder %v8203_v60, 1  ;;  %s6483_s3 = sld [smem:[%s12629_s0 + %s7815_s30]]  }
 0x12b   :  { %559 = vrot.lane.b32.xlu0 %v7951_v6, %s7803_s25  ;;  %v7498_v21 = vpop.eup %7497  ;;  %v7238_v35 = vpack.c.bf16 %v1150_v34, %v1149_v33  ;;  %13064 = vst [vmem:[#allocation23_spill] sm:$0xff] %v8196_v57  ;;  %v8211_v61 = vsub.s32 2, %v8196_v57  ;;  %v6528_v33 = vld [vmem:[%s8184_s11 + $0x2] ss:$8 sm:$0xf]  ;;  %v8229_v34 = vmul.f32 %v7987_v22, %v7943_v3  ;;  %vm723_vm5 = vcmp.lt.s32.totalorder %v8203_v60, 127 }
 0x12c   :  { %v8084_v41 = vmul.f32 %v7498_v21, %v7969_v11  ;;  %v7230_v11 = vpack.c.bf16 %v1146_v49, %v1145_v48  ;;  %7207 = vmatpush3.bf16.msra.mxu0 %v7206_v4  ;;  %v7236_v21 = vpack.c.bf16 %v1166_v20, %v1165_v14  ;;  %v8208_v4 = vsub.s32 1, %v8196_v57  ;;  %s7820_s30 = smov 2  }
 0x12d   :  { %7227 = vmatpush3.bf16.msra.mxu1 %v7226_v36  ;;  %v8117_v8 = vpop.permute.xlu1 %768  ;;  %v8217_v14 = vsub.s32 0, %v8196_v57  ;;  %v8220_v20 = vsub.s32 3, %v8196_v57  ;;  %v8268_v1 = vrot.slane %v6528_v33, %v8211_v61  ;;  %vm803_vm6 = vcmp.lt.s32.totalorder %v8203_v60, 113 }
 0x12e   :  { %631 = vrot.lane.b32.xlu1 %v7943_v3, %s7802_s24  ;;  %13058 = vst [vmem:[#allocation17_spill] sm:$0xff] %v8084_v41  ;;  %7229 = vmatprep.subr.bf16.mxu1 %v7228_v46  ;;  %13060 = vst [vmem:[#allocation19_spill] sm:$0xff] %v8117_v8  ;;  %v8265_v16 = vrot.slane %v6528_v33, %v8208_v4  ;;  %v8310_v8 = vrot.slane %v6530_v13, %v8208_v4  ;;  %vm883_vm7 = vcmp.lt.s32.totalorder %v8203_v60, 112 }
 0x12f   :  { %711 = vrot.lane.b32.xlu0 %v7943_v3, %s7805_s27  ;;  %13072 = vst [vmem:[#allocation31_spill] sm:$0xff] %v8268_v1  ;;  %v8286_v57 = vrot.slane %v6528_v33, %v8217_v14  ;;  %v8289_v30 = vrot.slane %v6528_v33, %v8220_v20  ;;  %v8307_v33 = vrot.slane %v6530_v13, %v8217_v14  ;;  %vm963_vm8 = vcmp.lt.s32.totalorder %v8203_v60, 111 }
 0x130   :  { %13071 = vst [vmem:[#allocation30_spill] sm:$0xff] %v8265_v16  ;;  %13080 = vst [vmem:[#allocation39_spill] sm:$0xff] %v8310_v8 }
 0x131   :  { %7231 = vmatpush3.bf16.msra.mxu1 %v7230_v11  ;;  %v8125_v36 = vpop.permute.xlu1 %1004  ;;  %13075 = vst [vmem:[#allocation34_spill] sm:$0xff] %v8286_v57  ;;  %13076 = vst [vmem:[#allocation35_spill] sm:$0xff] %v8289_v30 }
 0x132   :  { %639 = vrot.lane.b32.xlu1 %v7951_v6, %s7802_s24  ;;  %7233 = vmatprep.subr.bf16.mxu1 %v7232_v63  ;;  %13061 = vst [vmem:[#allocation20_spill] sm:$0xff] %v8125_v36  ;;  %13079 = vst [vmem:[#allocation38_spill] sm:$0xff] %v8307_v33 }
 0x133   :  { %719 = vrot.lane.b32.xlu0 %v7951_v6, %s7805_s27 }
 0x135   :  { %7235 = vmatpush3.bf16.msra.mxu1 %v7234_v10  ;;  %v8133_v39 = vpop.permute.xlu1 %928  ;;  %v413_v10 = vld [vmem:[%s8184_s11] ss:$8 sm:$0xf] }
 0x136   :  { %791 = vrot.lane.b32.xlu1 %v7943_v3, %s7804_s26  ;;  %7237 = vmatprep.subr.bf16.mxu1 %v7236_v21  ;;  %13062 = vst [vmem:[#allocation21_spill] sm:$0xff] %v8133_v39  ;;  %v8224_v21 = vmul.f32 %v7987_v22, %v7908_v54  ;;  %v8252_v17 = vrot.slane %v413_v10, %v8211_v61  ;;  %v1172_v54 = vld [vmem:[%s8192_s14 + $0x8] sm:$0xff]  ;;  %s7831_s14 = smov 35  }
 0x137   :  { %871 = vrot.lane.b32.xlu0 %v7943_v3, %s7807_s29  ;;  %v8259_v15 = vrot.slane %v413_v10, %v8217_v14  ;;  %v8262_v0 = vrot.slane %v413_v10, %v8220_v20  ;;  %v8292_v39 = vrot.slane %v6527_v19, %v8217_v14  ;;  %s6506_s18 = sld [smem:[%s12629_s0 + %s7831_s14]]  }
 0x138   :  { %13068 = vst [vmem:[#allocation27_spill] sm:$0xff] %v8252_v17 }
 0x139   :  { %7239 = vmatpush3.bf16.msra.mxu1 %v7238_v35  ;;  %v8144_v40 = vpop.permute.xlu1 %1031  ;;  %v8233_v35 = vmul.f32 %v7987_v22, %v7910_v55  ;;  %13069 = vst [vmem:[#allocation28_spill] sm:$0xff] %v8259_v15  ;;  %13070 = vst [vmem:[#allocation29_spill] sm:$0xff] %v8262_v0  ;;  %v6529_v55 = vld [vmem:[%s8184_s11 + $0x3] ss:$8 sm:$0xf] }
 0x13a   :  { %799 = vrot.lane.b32.xlu1 %v7951_v6, %s7804_s26  ;;  %13063 = vst [vmem:[#allocation22_spill] sm:$0xff] %v8144_v40  ;;  %13077 = vst [vmem:[#allocation36_spill] sm:$0xff] %v8292_v39  ;;  %v8333_v12 = vrot.slane %v6529_v55, %v8217_v14 }
 0x13b   :  { %879 = vrot.lane.b32.xlu0 %v7951_v6, %s7807_s29 }
 0x13c   :  { %13085 = vst [vmem:[#allocation44_spill] sm:$0xff] %v8333_v12 }
 0x13e   :  { %951 = vrot.lane.b32.xlu1 %v7943_v3, %s7806_s28  ;;  %v8281_v3 = vrot.slane %v6527_v19, %v8211_v61 }
 0x13f   :  { %477 = vrot.lane.b32.xlu0 %v8012_v53, %s7801_s23 }
 0x140   :  { %13074 = vst [vmem:[#allocation33_spill] sm:$0xff] %v8281_v3 }
 0x142   :  { %959 = vrot.lane.b32.xlu1 %v7951_v6, %s7806_s28 }
 0x143   :  { %637 = vrot.lane.b32.xlu0 %v8012_v53, %s7802_s24 }
 0x146   :  { %388 = vrot.lane.b32.xlu1 %v8033_v31, %s7800_s22 }
 0x147   :  { %789 = vrot.lane.b32.xlu0 %v8033_v31, %s7804_s26 }
 0x14a   :  { %396 = vrot.lane.b32.xlu1 %v8012_v53, %s7800_s22 }
 0x14b   :  { %797 = vrot.lane.b32.xlu0 %v8012_v53, %s7804_s26 }
 0x14e   :  { %469 = vrot.lane.b32.xlu1 %v8033_v31, %s7801_s23 }
 0x14f   :  { %392 = vrot.lane.b32.xlu0 %v8067_v7, %s7800_s22 }
 0x152   :  { %549 = vrot.lane.b32.xlu1 %v8033_v31, %s7803_s25 }
 0x153   :  { %400 = vrot.lane.b32.xlu0 %v8084_v41, %s7800_s22 }
 0x156   :  { %557 = vrot.lane.b32.xlu1 %v8012_v53, %s7803_s25 }
 0x157   :  { %553 = vrot.lane.b32.xlu0 %v8067_v7, %s7803_s25 }
 0x15a   :  { %629 = vrot.lane.b32.xlu1 %v8033_v31, %s7802_s24 }
 0x15b   :  { %561 = vrot.lane.b32.xlu0 %v8084_v41, %s7803_s25 }
 0x15e   :  { %709 = vrot.lane.b32.xlu1 %v8033_v31, %s7805_s27 }
 0x15f   :  { %713 = vrot.lane.b32.xlu0 %v8067_v7, %s7805_s27 }
 0x162   :  { %717 = vrot.lane.b32.xlu1 %v8012_v53, %s7805_s27 }
 0x163   :  { %721 = vrot.lane.b32.xlu0 %v8084_v41, %s7805_s27 }
 0x166   :  { %869 = vrot.lane.b32.xlu1 %v8033_v31, %s7807_s29 }
 0x167   :  { %873 = vrot.lane.b32.xlu0 %v8067_v7, %s7807_s29 }
 0x16a   :  { %877 = vrot.lane.b32.xlu1 %v8012_v53, %s7807_s29 }
 0x16b   :  { %881 = vrot.lane.b32.xlu0 %v8084_v41, %s7807_s29 }
 0x16e   :  { %949 = vrot.lane.b32.xlu1 %v8033_v31, %s7806_s28  ;;  %v8336_v31 = vrot.slane %v6529_v55, %v8220_v20 }
 0x16f   :  { %953 = vrot.lane.b32.xlu0 %v8067_v7, %s7806_s28 }
 0x170   :  { %13086 = vst [vmem:[#allocation45_spill] sm:$0xff] %v8336_v31 }
 0x172   :  { %957 = vrot.lane.b32.xlu1 %v8012_v53, %s7806_s28 }
 0x173   :  { %961 = vrot.lane.b32.xlu0 %v8084_v41, %s7806_s28 }
 0x174   :  { %v8152_v5 = vpop.permute.xlu1 %386 }
 0x175   :  { %v8154_v43 = vpop.permute.xlu0 %475 }
 0x176   :  { %473 = vrot.lane.b32.xlu1 %v8067_v7, %s7801_s23 }
 0x177   :  { %1325 = vperm.xlu0 %7358, %v1168_v42   ;;  %v8237_v42 = vmul.f32 %v7987_v22, %v7951_v6 }
 0x178   :  { %v8158_v44 = vpop.permute.xlu1 %394 }
 0x179   :  { %v8160_v45 = vpop.permute.xlu0 %627 }
 0x17a   :  { %481 = vrot.lane.b32.xlu1 %v8084_v41, %s7801_s23 }
 0x17b   :  { %7360 = vset.pattern.permute.xlu0 %v12646_v2 }
 0x17c   :  { %v8165_v46 = vpop.permute.xlu1 %467 }
 0x17d   :  { %v8167_v47 = vpop.permute.xlu0 %635 }
 0x17e   :  { %633 = vrot.lane.b32.xlu1 %v8067_v7, %s7802_s24 }
 0x180   :  { %v8171_v48 = vpop.permute.xlu1 %547 }
 0x181   :  { %v8173_v49 = vpop.permute.xlu0 %787 }
 0x182   :  { %641 = vrot.lane.b32.xlu1 %v8084_v41, %s7802_s24 }
 0x184   :  { %v8177_v11 = vpop.permute.xlu1 %555 }
 0x185   :  { %v8179_v51 = vpop.permute.xlu0 %795 }
 0x186   :  { %793 = vrot.lane.b32.xlu1 %v8067_v7, %s7804_s26  ;;  %v8318_v7 = vrot.slane %v6529_v55, %v8211_v61 }
 0x188   :  { %v8194_v52 = vpop.permute.xlu1 %707  ;;  %13082 = vst [vmem:[#allocation41_spill] sm:$0xff] %v8318_v7 }
 0x189   :  { %v8198_v58 = vpop.permute.xlu0 %947 }
 0x18a   :  { %13065 = vst [vmem:[#allocation24_spill] sm:$0xff] %v8198_v58  ;;  %801 = vrot.lane.b32.xlu1 %v8084_v41, %s7804_s26  ;;  %v8315_v41 = vrot.slane %v6529_v55, %v8208_v4  ;;  %v6533_v58 = vld [vmem:[%s8184_s11 + $0x20] ss:$8 sm:$0xf] }
 0x18b   :  { %v8389_v62 = vrot.slane %v6533_v58, %v8208_v4 }
 0x18c   :  { %v8205_v63 = vpop.permute.xlu1 %715  ;;  %13081 = vst [vmem:[#allocation40_spill] sm:$0xff] %v8315_v41 }
 0x18d   :  { %v8213_v9 = vpop.permute.xlu0 %955  ;;  %13096 = vst [vmem:[#allocation55_spill] sm:$0xff] %v8389_v62 }
 0x18e   :  { %13066 = vst [vmem:[#allocation25_spill] sm:$0xff] %v8213_v9  ;;  %1036 = vperm.xlu1 %7359, %v1028_v59   ;;  %v8249_v59 = vrot.slane %v413_v10, %v8208_v4  ;;  %v8278_v10 = vrot.slane %v6527_v19, %v8208_v4 }
 0x190   :  { %13067 = vst [vmem:[#allocation26_spill] sm:$0xff] %v8249_v59  ;;  %v8256_v22 = vpop.permute.xlu1 %867  ;;  %13073 = vst [vmem:[#allocation32_spill] sm:$0xff] %v8278_v10 }
 0x191   :  { %v391_v18 = vpop.permute.xlu0 %390 }
 0x192   :  { %v407_v2 = vsel %vm404_vm1, %v391_v18, %v8158_v44  ;;  %v409_v6 = vsel %vm404_vm1, %v8152_v5, %v391_v18  ;;  %1411 = vperm.xlu1 %7359, %v1171_v50   ;;  %v8295_v18 = vrot.slane %v6527_v19, %v8220_v20  ;;  %v6532_v19 = vld [vmem:[%s8184_s11 + $0x7] ss:$8 sm:$0xf]  ;;  %s6504_s11 = sld [smem:[%s12629_s0 + %s7817_s8]]   ;;  %s7822_s8 = smov 31  }
 0x193   :  { %v436_v50 = vmul.f32 %v8249_v59, %v409_v6  ;;  %v437_v29 = vmul.f32 %v8252_v17, %v407_v2  ;;  %v8321_v2 = vrot.slane %v6530_v13, %v8211_v61  ;;  %v8324_v6 = vrot.slane %v6530_v13, %v8220_v20  ;;  %v1720_v13 = vld [vmem:[%s8246_s17 + $0x8] sm:$0xff] }
 0x194   :  { %13078 = vst [vmem:[#allocation37_spill] sm:$0xff] %v8295_v18  ;;  %v8304_v27 = vpop.permute.xlu1 %875  ;;  %v8342_v17 = vrot.slane %v6532_v19, %v8217_v14  ;;  %v8356_v40 = vrot.slane %v6532_v19, %v8211_v61  ;;  %v8359_v36 = vrot.slane %v6532_v19, %v8220_v20 }
 0x195   :  { %v399_v25 = vpop.permute.xlu0 %398  ;;  %13083 = vst [vmem:[#allocation42_spill] sm:$0xff] %v8321_v2  ;;  %13084 = vst [vmem:[#allocation43_spill] sm:$0xff] %v8324_v6  ;;  %v452_v55 = vmul.f32 %v7997_v38, %v436_v50 }
 0x196   :  { %v405_v32 = vsel %vm404_vm1, %v8158_v44, %v399_v25  ;;  %v411_v53 = vsel %vm404_vm1, %v399_v25, %v8152_v5  ;;  %1416 = vperm.xlu1 %7359, %v1172_v54   ;;  %13087 = vst [vmem:[#allocation46_spill] sm:$0xff] %v8342_v17  ;;  %v8345_v44 = vrot.slane %v6532_v19, %v8208_v4  ;;  %13091 = vst [vmem:[#allocation50_spill] sm:$0xff] %v8356_v40 }
 0x197   :  { %v8348_v25 = vrot.slane %v6531_v37, %v8217_v14  ;;  %v8351_v54 = vrot.slane %v6531_v37, %v8208_v4  ;;  %v453_v5 = vmul.f32 %v7997_v38, %v437_v29  ;;  %13092 = vst [vmem:[#allocation51_spill] sm:$0xff] %v8359_v36  ;;  %v435_v9 = vmul.f32 %v8259_v15, %v411_v53 }
 0x198   :  { %13088 = vst [vmem:[#allocation47_spill] sm:$0xff] %v8345_v44  ;;  %v472_v59 = vpop.permute.xlu1 %471  ;;  %v438_v28 = vmul.f32 %v8262_v0, %v405_v32  ;;  %v2186_v0 = vld [vmem:[%s8300_s21 + $0x8] sm:$0xff]  ;;  %v8380_v15 = vrot.slane %v6531_v37, %v8211_v61  ;;  %v8383_v36 = vrot.slane %v6531_v37, %v8220_v20 }
 0x199   :  { %13089 = vst [vmem:[#allocation48_spill] sm:$0xff] %v8348_v25  ;;  %13090 = vst [vmem:[#allocation49_spill] sm:$0xff] %v8351_v54  ;;  %v552_v44 = vpop.permute.xlu0 %551  ;;  %v486_v50 = vsel %vm483_vm2, %v472_v59, %v8154_v43  ;;  %v488_v29 = vsel %vm483_vm2, %v8165_v46, %v472_v59  ;;  %v8386_v59 = vrot.slane %v6533_v58, %v8217_v14 }
 0x19a   :  { %v566_v40 = vsel %vm563_vm3, %v552_v44, %v8177_v11  ;;  %v568_v19 = vsel %vm563_vm3, %v8171_v48, %v552_v44  ;;  %v516_v53 = vmul.f32 %v8278_v10, %v488_v29  ;;  %v517_v32 = vmul.f32 %v8281_v3, %v486_v50  ;;  %1728 = vperm.xlu1 %7359, %v1720_v13  }
 0x19b   :  { %13093 = vst [vmem:[#allocation52_spill] sm:$0xff] %v8380_v15  ;;  %13094 = vst [vmem:[#allocation53_spill] sm:$0xff] %v8383_v36  ;;  %v596_v44 = vmul.f32 %v8265_v16, %v568_v19  ;;  %v597_v29 = vmul.f32 %v8268_v1, %v566_v40  ;;  %v460_v10 = vadd.f32 %v452_v55, %v8229_v34 }
 0x19c   :  { %13095 = vst [vmem:[#allocation54_spill] sm:$0xff] %v8386_v59  ;;  %v532_v50 = vmul.f32 %v7890_v24, %v516_v53  ;;  %v533_v13 = vmul.f32 %v7890_v24, %v517_v32  ;;  %v480_v3 = vpop.permute.xlu1 %479  ;;  %v461_v37 = vadd.f32 %v453_v5, %v8233_v35  ;;  %v451_v40 = vmul.f32 %v7997_v38, %v435_v9  ;;  %v2188_v9 = vld [vmem:[%s8300_s21 + $0x18] sm:$0xff] }
 0x19d   :  { %v560_v36 = vpop.permute.xlu0 %559  ;;  %v484_v4 = vsel %vm483_vm2, %v8154_v43, %v480_v3  ;;  %v490_v14 = vsel %vm483_vm2, %v480_v3, %v8165_v46  ;;  %v454_v19 = vmul.f32 %v7997_v38, %v438_v28  ;;  %v612_v28 = vmul.f32 %v7888_v23, %v596_v44 }
 0x19e   :  { %v564_v34 = vsel %vm563_vm3, %v8177_v11, %v560_v36  ;;  %v570_v35 = vsel %vm563_vm3, %v560_v36, %v8171_v48  ;;  %2200 = vperm.xlu1 %7359, %v2186_v0   ;;  %v540_v43 = vadd.f32 %v532_v50, %v460_v10  ;;  %v541_v55 = vadd.f32 %v533_v13, %v461_v37  ;;  %v2190_v37 = vld [vmem:[%s8300_s21 + $0x28] sm:$0xff] }
 0x19f   :  { %v515_v3 = vmul.f32 %v8292_v39, %v490_v14  ;;  %v518_v46 = vmul.f32 %v8295_v18, %v484_v4  ;;  %v613_v38 = vmul.f32 %v7888_v23, %v597_v29  ;;  %v8419_v11 = vrot.slane %v6533_v58, %v8211_v61 }
 0x1a0   :  { %v632_v5 = vpop.permute.xlu1 %631  ;;  %v8422_v0 = vrot.slane %v6533_v58, %v8220_v20  ;;  %v595_v36 = vmul.f32 %v8286_v57, %v570_v35  ;;  %v598_v48 = vmul.f32 %v8289_v30, %v564_v34  ;;  %v462_v29 = vadd.f32 %v454_v19, %v8237_v42 }
 0x1a1   :  { %13097 = vst [vmem:[#allocation56_spill] sm:$0xff] %v8419_v11  ;;  %v531_v10 = vmul.f32 %v7890_v24, %v515_v3  ;;  %v534_v53 = vmul.f32 %v7890_v24, %v518_v46  ;;  %v712_v32 = vpop.permute.xlu0 %711  ;;  %v646_v58 = vsel %vm643_vm4, %v632_v5, %v8167_v47  ;;  %v648_v20 = vsel %vm643_vm4, %v8160_v45, %v632_v5 }
 0x1a2   :  { %13098 = vst [vmem:[#allocation57_spill] sm:$0xff] %v8422_v0  ;;  %v726_v44 = vsel %vm723_vm5, %v712_v32, %v8205_v63  ;;  %v728_v61 = vsel %vm723_vm5, %v8194_v52, %v712_v32  ;;  %2210 = vperm.xlu1 %7359, %v2188_v9   ;;  %v459_v24 = vadd.f32 %v451_v40, %v8224_v21 }
 0x1a3   :  { %v620_v50 = vadd.f32 %v612_v28, %v540_v43  ;;  %v621_v13 = vadd.f32 %v613_v38, %v541_v55  ;;  %v755_v4 = vmul.f32 %v8307_v33, %v728_v61  ;;  %v756_v14 = vmul.f32 %v8310_v8, %v726_v44 }
 0x1a4   :  { %v676_v34 = vmul.f32 %v8315_v41, %v648_v20  ;;  %v677_v35 = vmul.f32 %v8318_v7, %v646_v58  ;;  %v640_v3 = vpop.permute.xlu1 %639  ;;  %v611_v46 = vmul.f32 %v7888_v23, %v595_v36  ;;  %v614_v9 = vmul.f32 %v7888_v23, %v598_v48  ;;  %v2192_v48 = vld [vmem:[%s8300_s21 + $0x38] sm:$0xff] }
 0x1a5   :  { %v539_v21 = vadd.f32 %v531_v10, %v459_v24  ;;  %v542_v40 = vadd.f32 %v534_v53, %v462_v29  ;;  %v720_v42 = vpop.permute.xlu0 %719  ;;  %v644_v5 = vsel %vm643_vm4, %v8167_v47, %v640_v3  ;;  %v650_v36 = vsel %vm643_vm4, %v640_v3, %v8160_v45 }
 0x1a6   :  { %v692_v19 = vmul.f32 %v8057_v56, %v676_v34  ;;  %v693_v43 = vmul.f32 %v8057_v56, %v677_v35  ;;  %v724_v55 = vsel %vm723_vm5, %v8205_v63, %v720_v42  ;;  %v730_v28 = vsel %vm723_vm5, %v720_v42, %v8194_v52  ;;  %2220 = vperm.xlu1 %7359, %v2190_v37  }
 0x1a7   :  { %v757_v23 = vmul.f32 %v8321_v2, %v724_v55  ;;  %v758_v38 = vmul.f32 %v8324_v6, %v730_v28  ;;  %v771_v63 = vmul.f32 %v7894_v26, %v755_v4  ;;  %v772_v10 = vmul.f32 %v7894_v26, %v756_v14 }
 0x1a8   :  { %v675_v52 = vmul.f32 %v8333_v12, %v650_v36  ;;  %v678_v53 = vmul.f32 %v8336_v31, %v644_v5  ;;  %v792_v32 = vpop.permute.xlu1 %791  ;;  %v622_v61 = vadd.f32 %v614_v9, %v542_v40  ;;  %v619_v20 = vadd.f32 %v611_v46, %v539_v21  ;;  %v13101_v5 = vld [vmem:[#allocation47_spill] sm:$0xff] }
 0x1a9   :  { %v773_v44 = vmul.f32 %v7894_v26, %v757_v23  ;;  %v872_v58 = vpop.permute.xlu0 %871  ;;  %v806_v47 = vsel %vm803_vm6, %v792_v32, %v8179_v51  ;;  %v808_v45 = vsel %vm803_vm6, %v8173_v49, %v792_v32  ;;  %v700_v4 = vadd.f32 %v692_v19, %v620_v50  ;;  %v13099_v19 = vld [vmem:[#allocation18_spill] sm:$0xff] }
 0x1aa   :  { %v691_v24 = vmul.f32 %v8057_v56, %v675_v52  ;;  %v694_v29 = vmul.f32 %v8057_v56, %v678_v53  ;;  %v888_v37 = vsel %vm883_vm7, %v8256_v22, %v872_v58  ;;  %2230 = vperm.xlu1 %7359, %v2192_v48   ;;  %v701_v14 = vadd.f32 %v693_v43, %v621_v13  ;;  %v13103_v32 = vld [vmem:[#allocation50_spill] sm:$0xff] }
 0x1ab   :  { %v774_v34 = vmul.f32 %v7894_v26, %v758_v38  ;;  %v886_v35 = vsel %vm883_vm7, %v872_v58, %v8304_v27  ;;  %v915_v46 = vmul.f32 %v8342_v17, %v888_v37  ;;  %v835_v9 = vmul.f32 %v8348_v25, %v808_v45 }
 0x1ac   :  { %v699_v3 = vadd.f32 %v691_v24, %v619_v20  ;;  %v836_v56 = vmul.f32 %v8351_v54, %v806_v47  ;;  %v800_v21 = vpop.permute.xlu1 %799  ;;  %v781_v40 = vadd.f32 %v773_v44, %v701_v14  ;;  %v702_v42 = vadd.f32 %v694_v29, %v622_v61  ;;  %v13104_v61 = vld [vmem:[#allocation53_spill] sm:$0xff]  ;;  %v13106_v24 = vld [vmem:[#allocation24_spill] sm:$0xff]  ;;  %v13107_v29 = vld [vmem:[#allocation51_spill] sm:$0xff] }
 0x1ad   :  { %v880_v55 = vpop.permute.xlu0 %879  ;;  %v804_v50 = vsel %vm803_vm6, %v8179_v51, %v800_v21  ;;  %v810_v26 = vsel %vm803_vm6, %v800_v21, %v8173_v49  ;;  %v851_v43 = vmul.f32 %v13099_v19, %v835_v9  ;;  %v13100_v38 = vmov 4   ;;  %v13105_v20 = vld [vmem:[#allocation25_spill] sm:$0xff] }
 0x1ae   :  { %v779_v13 = vadd.f32 %v771_v63, %v699_v3  ;;  %v852_v28 = vmul.f32 %v13099_v19, %v836_v56  ;;  %v884_v23 = vsel %vm883_vm7, %v8304_v27, %v880_v55  ;;  %7361 = vset.pattern.permute.xlu1 %v13100_v38  ;;  %v916_v36 = vmul.f32 %v13101_v5, %v886_v35  ;;  %v13102_v63 = vld [vmem:[#allocation4_spill] sm:$0xff] }
 0x1af   :  { %v780_v48 = vadd.f32 %v772_v10, %v700_v4  ;;  %v890_v51 = vsel %vm883_vm7, %v880_v55, %v8256_v22  ;;  %v837_v49 = vmul.f32 %v8380_v15, %v804_v50  ;;  %v931_v52 = vmul.f32 %v13102_v63, %v915_v46  ;;  %v13120_v38 = vld [vmem:[#allocation12_spill] sm:$0xff] }
 0x1b0   :  { %v859_v53 = vadd.f32 %v851_v43, %v779_v13  ;;  %v917_v44 = vmul.f32 %v13103_v32, %v884_v23  ;;  %v838_v58 = vmul.f32 %v13104_v61, %v810_v26  ;;  %v952_v47 = vpop.permute.xlu1 %951  ;;  %v918_v37 = vmul.f32 %v13107_v29, %v890_v51  ;;  %v13108_v26 = vld [vmem:[#allocation20_spill] sm:$0xff] }
 0x1b1   :  { %v860_v27 = vadd.f32 %v852_v28, %v780_v48  ;;  %v853_v45 = vmul.f32 %v13099_v19, %v837_v49  ;;  %v966_v10 = vsel %vm963_vm8, %v952_v47, %v13105_v20  ;;  %v968_v22 = vsel %vm963_vm8, %v13106_v24, %v952_v47  ;;  %v8519_v35 = vpop.permute.xlu0 %477  ;;  %v13109_v47 = vld [vmem:[#allocation22_spill] sm:$0xff] }
 0x1b2   :  { %v782_v4 = vadd.f32 %v774_v34, %v702_v42  ;;  %v854_v14 = vmul.f32 %v13099_v19, %v838_v58  ;;  %v995_v3 = vmul.f32 %v8386_v59, %v968_v22  ;;  %v932_v46 = vmul.f32 %v13102_v63, %v916_v36 }
 0x1b3   :  { %v861_v9 = vadd.f32 %v853_v45, %v781_v40  ;;  %v996_v56 = vmul.f32 %v8389_v62, %v966_v10  ;;  %v933_v21 = vmul.f32 %v13102_v63, %v917_v44  ;;  %v939_v50 = vadd.f32 %v931_v52, %v859_v53 }
 0x1b4   :  { %v862_v55 = vadd.f32 %v854_v14, %v782_v4  ;;  %v1011_v13 = vmul.f32 %v13108_v26, %v995_v3  ;;  %v960_v43 = vpop.permute.xlu1 %959  ;;  %v940_v40 = vadd.f32 %v932_v46, %v860_v27  ;;  %v934_v28 = vmul.f32 %v13102_v63, %v918_v37 }
 0x1b5   :  { %v1012_v34 = vmul.f32 %v13108_v26, %v996_v56  ;;  %v964_v42 = vsel %vm963_vm8, %v13105_v20, %v960_v43  ;;  %v970_v19 = vsel %vm963_vm8, %v960_v43, %v13106_v24  ;;  %v941_v51 = vadd.f32 %v933_v21, %v861_v9  ;;  %v8536_v52 = vpop.permute.xlu0 %637 }
 0x1b6   :  { %v1019_v23 = vadd.f32 %v1011_v13, %v939_v50  ;;  %v997_v36 = vmul.f32 %v8419_v11, %v964_v42  ;;  %v998_v48 = vmul.f32 %v8422_v0, %v970_v19  ;;  %v942_v20 = vadd.f32 %v934_v28, %v862_v55 }
 0x1b7   :  { %v1020_v49 = vadd.f32 %v1012_v34, %v940_v40 }
 0x1b8   :  { %v1013_v53 = vmul.f32 %v13108_v26, %v997_v36  ;;  %v1014_v44 = vmul.f32 %v13108_v26, %v998_v48  ;;  %v389_v58 = vpop.permute.xlu1 %388  ;;  %v1039_v45 = vadd.f32 %v13109_v47, %v1019_v23 }
 0x1b9   :  { %v1040_v27 = vadd.f32 %v13109_v47, %v1020_v49  ;;  %v8544_v3 = vpop.permute.xlu0 %789 }
 0x1ba   :  { %v1021_v63 = vadd.f32 %v1013_v53, %v941_v51  ;;  %v6534_v10 = vmul.f32 -1.442695, %v1039_v45  ;;  %v1022_v24 = vadd.f32 %v1014_v44, %v942_v20 }
 0x1bb   :  { %v6535_v22 = vmul.f32 -1.442695, %v1040_v27 }
 0x1bc   :  { %v397_v37 = vpop.permute.xlu1 %396  ;;  %7499 = vpow2.f32 %v6534_v10  ;;  %v1042_v4 = vadd.f32 %v13109_v47, %v1022_v24  ;;  %v1041_v14 = vadd.f32 %v13109_v47, %v1021_v63 }
 0x1bd   :  { %7501 = vpow2.f32 %v6535_v22  ;;  %v8548_v21 = vpop.permute.xlu0 %797 }
 0x1be   :  { %v6537_v46 = vmul.f32 -1.442695, %v1042_v4  ;;  %v6536_v9 = vmul.f32 -1.442695, %v1041_v14 }
 0x1c0   :  { %v8546_v56 = vpop.permute.xlu1 %469  ;;  %7503 = vpow2.f32 %v6537_v46 }
 0x1c1   :  { %7505 = vpow2.f32 %v6536_v9  ;;  %v393_v19 = vpop.permute.xlu0 %392 }
 0x1c4   :  { %v550_v55 = vpop.permute.xlu1 %549 }
 0x1c5   :  { %v401_v48 = vpop.permute.xlu0 %400 }
 0x1c6   :  { %v7500_v50 = vpop.eup %7499 }
 0x1c7   :  { %v7502_v26 = vpop.eup %7501  ;;  %v1071_v34 = vadd.f32 1.0, %v7500_v50 }
 0x1c8   :  { %v8550_v13 = vpop.permute.xlu1 %557  ;;  %v1072_v43 = vadd.f32 1.0, %v7502_v26 }
 0x1c9   :  { %v554_v20 = vpop.permute.xlu0 %553 }
 0x1ca   :  { %v7504_v42 = vpop.eup %7503  ;;  %7507 = vrcp.f32 %v1072_v43  ;;  %v410_v43 = vsel %vm404_vm1, %v389_v58, %v393_v19 }
 0x1cb   :  { %v7506_v40 = vpop.eup %7505  ;;  %7509 = vrcp.f32 %v1071_v34  ;;  %v1074_v23 = vadd.f32 1.0, %v7504_v42  ;;  %v406_v42 = vsel %vm404_vm1, %v397_v37, %v401_v48 }
 0x1cc   :  { %v8552_v28 = vpop.permute.xlu1 %629  ;;  %v1073_v36 = vadd.f32 1.0, %v7506_v40  ;;  %v13115_v40 = vld [vmem:[#allocation26_spill] sm:$0xff] }
 0x1cd   :  { %7511 = vrcp.f32 %v1074_v23  ;;  %v440_v23 = vmul.f32 %v13115_v40, %v410_v43 }
 0x1ce   :  { %7513 = vrcp.f32 %v1073_v36  ;;  %v13116_v36 = vld [vmem:[#allocation27_spill] sm:$0xff] }
 0x1d0   :  { %v8554_v51 = vpop.permute.xlu1 %709 }
 0x1d4   :  { %v7508_v49 = vpop.eup %7507  ;;  %v8556_v53 = vpop.permute.xlu1 %717 }
 0x1d5   :  { %v8558_v44 = vmul.f32 %v7508_v49, %v1040_v27  ;;  %v7510_v47 = vpop.eup %7509  ;;  %v562_v27 = vpop.permute.xlu0 %561 }
 0x1d6   :  { %v8561_v63 = vmul.f32 %v7510_v47, %v1039_v45  ;;  %v13117_v47 = vld [vmem:[#allocation28_spill] sm:$0xff] }
 0x1d7   :  { %13110 = vst [vmem:[#allocation18_spill] sm:$0xff] %v8558_v44  ;;  %1237 = vmatprep.mubr.f32.mxu0 %v8558_v44  ;;  %v7512_v10 = vpop.eup %7511  ;;  %v13118_v44 = vld [vmem:[#allocation29_spill] sm:$0xff] }
 0x1d8   :  { %13111 = vst [vmem:[#allocation4_spill] sm:$0xff] %v8561_v63  ;;  %v8563_v24 = vpop.permute.xlu1 %869  ;;  %v7514_v22 = vpop.eup %7513  ;;  %1238 = vmatmul.mubr.f32.vlgmr.msra.gmra.mrb[4].mxu0 %v8561_v63  ;;  %v8566_v46 = vmul.f32 %v7512_v10, %v1042_v4  ;;  %v408_v4 = vsel %vm404_vm1, %v393_v19, %v397_v37  ;;  %v13119_v63 = vld [vmem:[#allocation13_spill] sm:$0xff]  ;;  %v13121_v19 = vld [vmem:[#allocation11_spill] sm:$0xff]  ;;  %v569_v37 = vsel %vm563_vm3, %v550_v55, %v554_v20 }
 0x1d9   :  { %v8568_v9 = vmul.f32 %v7514_v22, %v1041_v14  ;;  %v714_v45 = vpop.permute.xlu0 %713  ;;  %v412_v14 = vsel %vm404_vm1, %v401_v48, %v389_v58  ;;  %v441_v49 = vmul.f32 %v13116_v36, %v408_v4  ;;  %v382_v11 = vmul.f32 %v13120_v38, %v13119_v63  ;;  %v13122_v58 = vld [vmem:[#allocation14_spill] sm:$0xff] }
 0x1da   :  { %13112 = vst [vmem:[#allocation25_spill] sm:$0xff] %v8566_v46  ;;  %1312 = vmatprep.mubr.f32.mxu1 %v8566_v46  ;;  %v439_v10 = vmul.f32 %v13117_v47, %v412_v14  ;;  %v384_v62 = vmul.f32 %v13120_v38, %v13121_v19  ;;  %v456_v0 = vmul.f32 %v13122_v58, %v440_v23  ;;  %v13124_v19 = vld [vmem:[#allocation17_spill] sm:$0xff] }
 0x1db   :  { %13113 = vst [vmem:[#allocation24_spill] sm:$0xff] %v8568_v9  ;;  %1313 = vmatmul.mubr.f32.vlgmr.msra.gmra.mrb[4].mxu1 %v8568_v9  ;;  %v442_v9 = vmul.f32 %v13118_v44, %v406_v42  ;;  %v567_v48 = vsel %vm563_vm3, %v554_v20, %v8550_v13  ;;  %v457_v43 = vmul.f32 %v13122_v58, %v441_v49 }
 0x1dc   :  { %v8572_v50 = vpop.permute.xlu1 %877  ;;  %v455_v4 = vmul.f32 %v13122_v58, %v439_v10  ;;  %v571_v14 = vsel %vm563_vm3, %v562_v27, %v550_v55  ;;  %v13123_v55 = vld [vmem:[#allocation15_spill] sm:$0xff]  ;;  %v600_v40 = vmul.f32 %v8265_v16, %v569_v37  ;;  %v601_v47 = vmul.f32 %v8268_v1, %v567_v48  ;;  %v13126_v48 = vld [vmem:[#allocation33_spill] sm:$0xff] }
 0x1dd   :  { %v722_v22 = vpop.permute.xlu0 %721  ;;  %v458_v23 = vmul.f32 %v13122_v58, %v442_v9  ;;  %v383_v10 = vmul.f32 %v13120_v38, %v13123_v55  ;;  %v599_v63 = vmul.f32 %v8286_v57, %v571_v14  ;;  %v729_v37 = vsel %vm723_vm5, %v8554_v51, %v714_v45  ;;  %v13127_v55 = vld [vmem:[#allocation2_spill] sm:$0xff] }
 0x1df   :  { %v464_v59 = vadd.f32 %v456_v0, %v383_v10 }
 0x1e0   :  { %v8574_v26 = vpop.permute.xlu1 %949 }
 0x1e1   :  { %v874_v9 = vpop.permute.xlu0 %873 }
 0x1e4   :  { %v8578_v34 = vpop.permute.xlu1 %957 }
 0x1e5   :  { %13114 = vst [vmem:[#allocation20_spill] sm:$0xff] %v8578_v34 }
 0x1e8   :  { %v474_v46 = vpop.permute.xlu1 %473 }
 0x1e9   :  { %v489_v42 = vsel %vm483_vm2, %v8546_v56, %v474_v46  ;;  %v487_v36 = vsel %vm483_vm2, %v474_v46, %v8519_v35  ;;  %v385_v46 = vmul.f32 %v13120_v38, %v13124_v19  ;;  %v463_v38 = vadd.f32 %v455_v4, %v382_v11 }
 0x1ea   :  { %v521_v1 = vmul.f32 %v13126_v48, %v487_v36 }
 0x1eb   :  { %v466_v19 = vadd.f32 %v458_v23, %v385_v46 }
 0x1ec   :  { %v482_v44 = vpop.permute.xlu1 %481  ;;  %v537_v4 = vmul.f32 %v13127_v55, %v521_v1 }
 0x1ed   :  { %v485_v20 = vsel %vm483_vm2, %v8519_v35, %v482_v44  ;;  %v491_v49 = vsel %vm483_vm2, %v482_v44, %v8546_v56  ;;  %v565_v35 = vsel %vm563_vm3, %v8550_v13, %v562_v27  ;;  %v13125_v56 = vld [vmem:[#allocation32_spill] sm:$0xff] }
 0x1ee   :  { %v519_v58 = vmul.f32 %v8292_v39, %v491_v49  ;;  %v520_v44 = vmul.f32 %v13125_v56, %v489_v42  ;;  %v522_v49 = vmul.f32 %v8295_v18, %v485_v20  ;;  %v465_v39 = vadd.f32 %v457_v43, %v384_v62  ;;  %v13128_v13 = vld [vmem:[#allocation16_spill] sm:$0xff]  ;;  %v882_v43 = vpop.permute.xlu0 %881 }
 0x1ef   :  { %v616_v27 = vmul.f32 %v13128_v13, %v600_v40  ;;  %v617_v14 = vmul.f32 %v13128_v13, %v601_v47  ;;  %v602_v0 = vmul.f32 %v8289_v30, %v565_v35  ;;  %v615_v36 = vmul.f32 %v13128_v13, %v599_v63  ;;  %v13129_v35 = vld [vmem:[#allocation19_spill] sm:$0xff] }
 0x1f0   :  { %v634_v16 = vpop.permute.xlu1 %633  ;;  %v535_v34 = vmul.f32 %v13127_v55, %v519_v58  ;;  %v759_v20 = vmul.f32 %v8307_v33, %v729_v37  ;;  %v536_v62 = vmul.f32 %v13127_v55, %v520_v44  ;;  %v731_v40 = vsel %vm723_vm5, %v722_v22, %v8554_v51 }
 0x1f1   :  { %v649_v42 = vsel %vm643_vm4, %v8552_v28, %v634_v16  ;;  %v647_v11 = vsel %vm643_vm4, %v634_v16, %v8536_v52  ;;  %v727_v47 = vsel %vm723_vm5, %v714_v45, %v8556_v53  ;;  %v538_v63 = vmul.f32 %v13127_v55, %v522_v49 }
 0x1f2   :  { %v543_v10 = vadd.f32 %v535_v34, %v463_v38  ;;  %v680_v58 = vmul.f32 %v8315_v41, %v649_v42  ;;  %v618_v46 = vmul.f32 %v13128_v13, %v602_v0  ;;  %v681_v45 = vmul.f32 %v8318_v7, %v647_v11  ;;  %v13130_v13 = vld [vmem:[#allocation3_spill] sm:$0xff] }
 0x1f3   :  { %v775_v34 = vmul.f32 %v13129_v35, %v759_v20  ;;  %v725_v44 = vsel %vm723_vm5, %v8556_v53, %v722_v22  ;;  %v544_v37 = vadd.f32 %v536_v62, %v464_v59  ;;  %v762_v49 = vmul.f32 %v8324_v6, %v731_v40  ;;  %v954_v22 = vpop.permute.xlu0 %953 }
 0x1f4   :  { %v642_v23 = vpop.permute.xlu1 %641  ;;  %v546_v38 = vadd.f32 %v538_v63, %v466_v19  ;;  %v696_v11 = vmul.f32 %v13130_v13, %v680_v58  ;;  %v761_v59 = vmul.f32 %v8321_v2, %v725_v44  ;;  %v697_v19 = vmul.f32 %v13130_v13, %v681_v45 }
 0x1f5   :  { %v645_v16 = vsel %vm643_vm4, %v8536_v52, %v642_v23  ;;  %v651_v51 = vsel %vm643_vm4, %v642_v23, %v8552_v28  ;;  %v760_v52 = vmul.f32 %v8310_v8, %v727_v47  ;;  %v545_v28 = vadd.f32 %v537_v4, %v465_v39 }
 0x1f6   :  { %v679_v1 = vmul.f32 %v8333_v12, %v651_v51  ;;  %v682_v55 = vmul.f32 %v8336_v31, %v645_v16  ;;  %v623_v23 = vadd.f32 %v615_v36, %v543_v10  ;;  %v889_v39 = vsel %vm883_vm7, %v8563_v24, %v874_v9 }
 0x1f7   :  { %v891_v36 = vsel %vm883_vm7, %v882_v43, %v8563_v24  ;;  %v887_v40 = vsel %vm883_vm7, %v874_v9, %v8572_v50  ;;  %v624_v47 = vadd.f32 %v616_v27, %v544_v37  ;;  %v625_v63 = vadd.f32 %v617_v14, %v545_v28  ;;  %v962_v28 = vpop.permute.xlu0 %961 }
 0x1f8   :  { %v695_v0 = vmul.f32 %v13130_v13, %v679_v1  ;;  %v794_v42 = vpop.permute.xlu1 %793  ;;  %v698_v62 = vmul.f32 %v13130_v13, %v682_v55  ;;  %v626_v10 = vadd.f32 %v618_v46, %v546_v38  ;;  %v885_v45 = vsel %vm883_vm7, %v8572_v50, %v882_v43  ;;  %v13131_v38 = vld [vmem:[#allocation5_spill] sm:$0xff] }
 0x1f9   :  { %v807_v20 = vsel %vm803_vm6, %v794_v42, %v8548_v21  ;;  %v809_v53 = vsel %vm803_vm6, %v8544_v3, %v794_v42  ;;  %v704_v1 = vadd.f32 %v696_v11, %v624_v47  ;;  %v705_v27 = vadd.f32 %v697_v19, %v625_v63 }
 0x1fa   :  { %v703_v4 = vadd.f32 %v695_v0, %v623_v23  ;;  %v839_v58 = vmul.f32 %v8348_v25, %v809_v53  ;;  %v840_v16 = vmul.f32 %v8351_v54, %v807_v20  ;;  %v706_v14 = vadd.f32 %v698_v62, %v626_v10 }
 0x1fb   :  { %v778_v44 = vmul.f32 %v13129_v35, %v762_v49  ;;  %v776_v37 = vmul.f32 %v13129_v35, %v760_v52  ;;  %v777_v50 = vmul.f32 %v13129_v35, %v761_v59  ;;  %v919_v42 = vmul.f32 %v8342_v17, %v889_v39  ;;  %v13132_v59 = vld [vmem:[#allocation20_spill] sm:$0xff] }
 0x1fc   :  { %v802_v51 = vpop.permute.xlu1 %801  ;;  %v783_v43 = vadd.f32 %v775_v34, %v703_v4  ;;  %v856_v13 = vmul.f32 %v13131_v38, %v840_v16  ;;  %v922_v11 = vmul.f32 %v13107_v29, %v891_v36  ;;  %v920_v49 = vmul.f32 %v13101_v5, %v887_v40  ;;  %v13133_v4 = vld [vmem:[#allocation21_spill] sm:$0xff]  ;;  %v13134_v16 = vld [vmem:[#allocation54_spill] sm:$0xff] }
 0x1fd   :  { %v805_v24 = vsel %vm803_vm6, %v8548_v21, %v802_v51  ;;  %v811_v9 = vsel %vm803_vm6, %v802_v51, %v8544_v3  ;;  %v855_v21 = vmul.f32 %v13131_v38, %v839_v58  ;;  %v921_v52 = vmul.f32 %v13103_v32, %v885_v45  ;;  %v13135_v45 = vld [vmem:[#allocation57_spill] sm:$0xff] }
 0x1fe   :  { %v841_v46 = vmul.f32 %v8380_v15, %v805_v24  ;;  %v842_v55 = vmul.f32 %v13104_v61, %v811_v9  ;;  %v784_v23 = vadd.f32 %v776_v37, %v704_v1  ;;  %v785_v35 = vadd.f32 %v777_v50, %v705_v27  ;;  %v13136_v24 = vld [vmem:[#allocation55_spill] sm:$0xff]  ;;  %v13137_v27 = vld [vmem:[#allocation56_spill] sm:$0xff]  ;;  %v13138_v37 = vld [vmem:[#allocation6_spill] sm:$0xff] }
 0x1ff   :  { %v786_v34 = vadd.f32 %v778_v44, %v706_v14  ;;  %v969_v20 = vsel %vm963_vm8, %v8574_v26, %v954_v22  ;;  %v971_v53 = vsel %vm963_vm8, %v962_v28, %v8574_v26  ;;  %v965_v39 = vsel %vm963_vm8, %v13132_v59, %v962_v28 }
 0x200   :  { %v857_v3 = vmul.f32 %v13131_v38, %v841_v46  ;;  %v858_v0 = vmul.f32 %v13131_v38, %v842_v55  ;;  %v967_v19 = vsel %vm963_vm8, %v954_v22, %v13132_v59  ;;  %v863_v62 = vadd.f32 %v855_v21, %v783_v43 }
 0x201   :  { %v864_v36 = vadd.f32 %v856_v13, %v784_v23  ;;  %v935_v63 = vmul.f32 %v13133_v4, %v919_v42  ;;  %v938_v10 = vmul.f32 %v13133_v4, %v922_v11  ;;  %v936_v58 = vmul.f32 %v13133_v4, %v920_v49 }
 0x202   :  { %v865_v40 = vadd.f32 %v857_v3, %v785_v35  ;;  %v866_v47 = vadd.f32 %v858_v0, %v786_v34  ;;  %v937_v26 = vmul.f32 %v13133_v4, %v921_v52  ;;  %v999_v51 = vmul.f32 %v13134_v16, %v969_v20 }
 0x203   :  { %v1002_v1 = vmul.f32 %v13135_v45, %v971_v53  ;;  %v1000_v9 = vmul.f32 %v13136_v24, %v967_v19  ;;  %v1001_v22 = vmul.f32 %v13137_v27, %v965_v39  ;;  %v944_v14 = vadd.f32 %v936_v58, %v864_v36 }
 0x204   :  { %v946_v46 = vadd.f32 %v938_v10, %v866_v47  ;;  %v943_v55 = vadd.f32 %v935_v63, %v863_v62  ;;  %v945_v44 = vadd.f32 %v937_v26, %v865_v40  ;;  %v1015_v50 = vmul.f32 %v13138_v37, %v999_v51 }
 0x205   :  { %v1018_v43 = vmul.f32 %v13138_v37, %v1002_v1  ;;  %v1016_v28 = vmul.f32 %v13138_v37, %v1000_v9  ;;  %v1017_v38 = vmul.f32 %v13138_v37, %v1001_v22 }
 0x206   :  { %v1023_v3 = vadd.f32 %v1015_v50, %v943_v55 }
 0x207   :  { %v1024_v21 = vadd.f32 %v1016_v28, %v944_v14  ;;  %v1026_v13 = vadd.f32 %v1018_v43, %v946_v46  ;;  %v1025_v0 = vadd.f32 %v1017_v38, %v945_v44  ;;  %v12711_v14 = vmov 0.0|0.0  }
 0x208   :  { %7240 = vmatprep.subr.bf16.mxu0 %v12711_v14  ;;  %v12713_v46 = vmov 0.0  }
 0x20d   :  { %v1037_v42 = vpop.permute.xlu1 %1036 }
 0x20e   :  { %v1044_v11 = vadd.f32 %v1037_v42, %v1024_v21  ;;  %v1046_v49 = vadd.f32 %v1037_v42, %v1026_v13  ;;  %v1043_v52 = vadd.f32 %v1037_v42, %v1023_v3  ;;  %v1045_v23 = vadd.f32 %v1037_v42, %v1025_v0 }
 0x210   :  { %v6539_v35 = vmul.f32 -1.442695, %v1044_v11  ;;  %v6541_v34 = vmul.f32 -1.442695, %v1046_v49  ;;  %v6538_v20 = vmul.f32 -1.442695, %v1043_v52 }
 0x211   :  { %v6540_v53 = vmul.f32 -1.442695, %v1045_v23 }
 0x212   :  { %7515 = vpow2.f32 %v6539_v35  ;;  %v1169_v35 = vld [vmem:[%s6485_s7] sm:$0xff] }
 0x213   :  { %7517 = vpow2.f32 %v6541_v34  ;;  %v1326_v34 = vpop.permute.xlu0 %1325 }
 0x214   :  { %7519 = vpow2.f32 %v6538_v20 }
 0x215   :  { %7521 = vpow2.f32 %v6540_v53 }
 0x21c   :  { %v7516_v59 = vpop.eup %7515 }
 0x21d   :  { %v7518_v39 = vpop.eup %7517  ;;  %v1076_v19 = vadd.f32 1.0, %v7516_v59 }
 0x21e   :  { %v7520_v62 = vpop.eup %7519  ;;  %v1078_v36 = vadd.f32 1.0, %v7518_v39 }
 0x21f   :  { %v7522_v40 = vpop.eup %7521  ;;  %7523 = vrcp.f32 %v1076_v19  ;;  %v1075_v47 = vadd.f32 1.0, %v7520_v62 }
 0x220   :  { %7525 = vrcp.f32 %v1078_v36  ;;  %v1077_v4 = vadd.f32 1.0, %v7522_v40 }
 0x221   :  { %7527 = vrcp.f32 %v1075_v47  ;;  %v1170_v47 = vld [vmem:[%s6485_s7 + $0x8] sm:$0xff]  ;;  %s9039_s7 = sld [smem:[%s12629_s0 + %s7821_s4]]   ;;  %s7834_s4 = smov 3  }
 0x222   :  { %7529 = vrcp.f32 %v1077_v4  ;;  %v7818_v4 = vmov 1983009808  }
 0x229   :  { %v7524_v63 = vpop.eup %7523 }
 0x22a   :  { %v7526_v10 = vpop.eup %7525  ;;  %v8740_v58 = vmul.f32 %v7524_v63, %v1044_v11  ;;  %v1520_v63 = vunpack.c.l.s4 %v7818_v4 }
 0x22b   :  { %v7528_v26 = vpop.eup %7527  ;;  %v8742_v51 = vmul.f32 %v7526_v10, %v1046_v49 }
 0x22c   :  { %v7530_v1 = vpop.eup %7529  ;;  %1242 = vmatprep.mubr.f32.mxu0 %v8740_v58  ;;  %v8745_v9 = vmul.f32 %v7528_v26, %v1043_v52  ;;  %v1521_v10 = vunpack.c.0.s8 %v1520_v63  ;;  %v151_v26 = vld [vmem:[%s6504_s11] sm:$0xff]  ;;  %v13143_v63 = vmov 0   ;;  %s9437_s11 = sld [smem:[%s12629_s0 + %s7822_s8]]   ;;  %s7835_s8 = smov 28  }
 0x22d   :  { %1317 = vmatprep.mubr.f32.mxu1 %v8742_v51  ;;  %v8748_v22 = vmul.f32 %v7530_v1, %v1045_v23  ;;  %v1167_v23 = vld [vmem:[%s6483_s3] sm:$0xf]  ;;  %v13139_v1 = vld [vmem:[#allocation23_spill] sm:$0xff]  ;;  %s6473_s3 = sld [smem:[%s12629_s0 + %s7820_s30]]   ;;  %s7833_s30 = smov 4  }
 0x22e   :  { %1243 = vmatmul.mubr.f32.gmra.mrb[6].mxu0 %v8745_v9 }
 0x22f   :  { %1318 = vmatmul.mubr.f32.gmra.mrb[6].mxu1 %v8748_v22  ;;  %6995 = vmatprep.mubr.msk.f32.mxu0 %vm7813_vm9, %v12713_v46 }
 0x230   :  { %7000 = vmatprep.mubr.msk.f32.mxu1 %vm1419_vm11, %v1169_v35 }
 0x232   :  { %v7425_v6 = vld [vmem:[%s9437_s11 + $0xc0] sm:$0xff]   ;;  %v7429_v30 = vld [vmem:[%s9437_s11 + $0xc8] sm:$0xff]   ;;  %v7438_v7 = vld [vmem:[%s9437_s11 + $0x98] sm:$0xff]  }
 0x233   :  { %v7426_v54 = vld [vmem:[%s9437_s11 + $0x80] sm:$0xff]   ;;  %v7430_v8 = vld [vmem:[%s9437_s11 + $0x88] sm:$0xff]  }
 0x234   :  { %v7427_v2 = vld [vmem:[%s9437_s11 + $0x40] sm:$0xff]  }
 0x235   :  { %v7442_v48 = vld [vmem:[%s9437_s11 + $0xa0] sm:$0xff]  }
 0x2ab   :  { %v6770_v55 = vpop.f32.mrb[4].mxu0 }
 0x2ac   :  { %v6771_v44 = vpop.f32.mrb[5].mxu0 }
 0x2ad   :  { %v6772_v37 = vadd.f32 %v6771_v44, %v6770_v55  ;;  %v1524_v55 = vsub.s32 %v1521_v10, %v13139_v1  ;;  %v1518_v44 = vcombine.high %v151_v26, %v151_v26  ;;  %v8835_v10 = vld [vmem:[%s8795_s15 + $0x8] sm:$0xff]  ;;  %v8860_v1 = vld [vmem:[%s8795_s15 + $0x20] sm:$0xff] }
 0x2ae   :  { %v6808_v50 = vpop.f32.mrb[4].mxu1  ;;  %2650 = vperm.xlu1 %7361, %v8835_v10  }
 0x2af   :  { %v6809_v43 = vpop.f32.mrb[5].mxu1 }
 0x2b0   :  { %v6810_v28 = vadd.f32 %v6809_v43, %v6808_v50  ;;  %v8774_v50 = vrot.slane %v1518_v44, %v1524_v55  ;;  %v13146_v44 = vmov 6  }
 0x2b2   :  { %v1315_v38 = vadd.f32 %v6810_v28, %v6772_v37  ;;  %v8772_v37 = vrot.slane %v151_v26, %v1524_v55  ;;  %v8782_v28 = vcombine.high %v8774_v50, %v8774_v50  ;;  %7362 = vset.pattern.permute.xlu1 %v13143_v63  ;;  %v13144_v26 = vmov 5  }
 0x2b3   :  { %v13145_v55 = vmov 4  }
 0x2b4   :  { %v8778_v43 = vcombine.high %v8772_v37, %v8772_v37 }
 0x301   :  { %v6773_v21 = vpop.f32.mrb[6].mxu0 }
 0x302   :  { %v6811_v13 = vpop.f32.mrb[6].mxu1  ;;  %v6774_v3 = vpop.f32.mrb[7].mxu0 }
 0x303   :  { %v6775_v0 = vadd.f32 %v6774_v3, %v6773_v21  ;;  %v6812_v42 = vpop.f32.mrb[7].mxu1  ;;  %v8802_v21 = vld [vmem:[%s8795_s15 + $0x10] sm:$0xff]  ;;  %v8810_v3 = vld [vmem:[%s8795_s15 + $0x38] sm:$0xff] }
 0x304   :  { %v6813_v11 = vadd.f32 %v6812_v42, %v6811_v13  ;;  %v8806_v13 = vld [vmem:[%s8795_s15 + $0x28] sm:$0xff]  ;;  %v13140_v42 = vmov 1  }
 0x306   :  { %v1320_v49 = vadd.f32 %v6813_v11, %v6775_v0  ;;  %v8814_v0 = vld [vmem:[%s8795_s15 + $0x18] sm:$0xff]  ;;  %v13141_v11 = vmov 2  }
 0x308   :  { %v7241_v52 = vpack.c.bf16 %v1320_v49, %v1315_v38  ;;  %v8798_v38 = vld [vmem:[%s8795_s15] sm:$0xff]  ;;  %v13142_v49 = vmov 3  }
 0x309   :  { %2645 = vperm.xlu0 %7360, %v8798_v38   ;;  %2844 = vperm.xlu1 %7362, %v8798_v38  }
 0x30a   :  { %7242 = vmatpush3.bf16.msra.mxu0 %v7241_v52  ;;  %v1412_v52 = vpop.permute.xlu1 %1411 }
 0x30b   :  { %6549 = vmatprep.subr.msk.mxu0 %vm1542_vm13, %v8778_v43 }
 0x30d   :  { %6996 = vmatmul.mubr.msk.f32.vlgmr.msra.gmra.mrb[8].mxu0 %vm1328_vm10, %v1167_v23  ;;  %2655 = vperm.xlu0 %7360, %v8802_v21  }
 0x30e   :  { %1615 = vmatprep.mubr.f32.mxu0 %v12713_v46  ;;  %6550 = vmatpush1.msk.msra.mxu0 %vm1542_vm13, %v8772_v37  ;;  %v1417_v23 = vpop.permute.xlu1 %1416 }
 0x30f   :  { %7363 = vset.pattern.permute.xlu1 %v13140_v42 }
 0x310   :  { %3068 = vperm.xlu1 %7363, %v8798_v38  }
 0x311   :  { %2670 = vperm.xlu0 %7360, %v8806_v13  }
 0x314   :  { %3072 = vperm.xlu1 %7363, %v8835_v10  }
 0x315   :  { %2680 = vperm.xlu0 %7360, %v8810_v3  }
 0x318   :  { %7364 = vset.pattern.permute.xlu1 %v13141_v11 }
 0x319   :  { %7385 = vset.pattern.permute.xlu0 %v13140_v42  ;;  %3296 = vperm.xlu1 %7364, %v8835_v10  }
 0x31a   :  { %3080 = vperm.xlu0 %7385, %v8814_v0  }
 0x31d   :  { %7365 = vset.pattern.permute.xlu1 %v13142_v49 }
 0x31e   :  { %3088 = vperm.xlu0 %7385, %v8806_v13   ;;  %3516 = vperm.xlu1 %7365, %v8798_v38  }
 0x322   :  { %3096 = vperm.xlu0 %7385, %v8810_v3   ;;  %7366 = vset.pattern.permute.xlu1 %v13145_v55 }
 0x323   :  { %2660 = vperm.xlu1 %7366, %v8814_v0  }
 0x326   :  { %7389 = vset.pattern.permute.xlu0 %v13141_v11 }
 0x327   :  { %3292 = vperm.xlu0 %7389, %v8798_v38   ;;  %7367 = vset.pattern.permute.xlu1 %v13143_v63 }
 0x328   :  { %2852 = vperm.xlu1 %7367, %v8802_v21  }
 0x32b   :  { %3304 = vperm.xlu0 %7389, %v8814_v0  }
 0x32c   :  { %7368 = vset.pattern.permute.xlu1 %v13144_v26 }
 0x32d   :  { %3744 = vperm.xlu1 %7368, %v8835_v10  }
 0x32f   :  { %3312 = vperm.xlu0 %7389, %v8806_v13  }
 0x331   :  { %7369 = vset.pattern.permute.xlu1 %v13140_v42 }
 0x332   :  { %3076 = vperm.xlu1 %7369, %v8802_v21  }
 0x333   :  { %3320 = vperm.xlu0 %7389, %v8810_v3  }
 0x336   :  { %7370 = vset.pattern.permute.xlu1 %v13146_v44 }
 0x337   :  { %7392 = vset.pattern.permute.xlu0 %v13142_v49  ;;  %3968 = vperm.xlu1 %7370, %v8835_v10  }
 0x338   :  { %3520 = vperm.xlu0 %7392, %v8835_v10  }
 0x33b   :  { %7371 = vset.pattern.permute.xlu1 %v13141_v11 }
 0x33c   :  { %3528 = vperm.xlu0 %7392, %v8814_v0   ;;  %3300 = vperm.xlu1 %7371, %v8802_v21  }
 0x340   :  { %3536 = vperm.xlu0 %7392, %v8806_v13  }
 0x344   :  { %3544 = vperm.xlu0 %7392, %v8810_v3  }
 0x348   :  { %7395 = vset.pattern.permute.xlu0 %v13144_v26 }
 0x349   :  { %3740 = vperm.xlu0 %7395, %v8798_v38  }
 0x34d   :  { %3748 = vperm.xlu0 %7395, %v8802_v21  }
 0x351   :  { %3756 = vperm.xlu0 %7395, %v8860_v1  }
 0x355   :  { %3768 = vperm.xlu0 %7395, %v8810_v3  }
 0x359   :  { %7398 = vset.pattern.permute.xlu0 %v13146_v44 }
 0x35a   :  { %3964 = vperm.xlu0 %7398, %v8798_v38  }
 0x35e   :  { %3972 = vperm.xlu0 %7398, %v8802_v21  }
 0x362   :  { %3980 = vperm.xlu0 %7398, %v8860_v1  }
 0x3e0   :  { %v1398_v20 = vpop.f32.mrb[8].mxu0 }
 0x3e1   :  { %v1399_v53 = vadd.f32 %v1398_v20, %v1326_v34  ;;  %v6997_v59 = vpop.f32.mrb[9].mxu0 }
 0x3e3   :  { %v6543_v39 = vmul.f32 -1.442695, %v1399_v53 }
 0x3e5   :  { %7531 = vpow2.f32 %v6543_v39 }
 0x3ef   :  { %v7532_v19 = vpop.eup %7531 }
 0x3f0   :  { %v1405_v62 = vadd.f32 1.0, %v7532_v19 }
 0x3f2   :  { %7533 = vrcp.f32 %v1405_v62 }
 0x3fc   :  { %v7534_v36 = vpop.eup %7533 }
 0x3fd   :  { %v1408_v40 = vmul.f32 %v7534_v36, %v1399_v53 }
 0x3ff   :  { %6998 = vmatprep.subr.msk.mxu1 %vm1426_vm12, %v1408_v40 }
 0x400   :  { %6999 = vmatpush3.msk.msra.mxu1 %vm1426_vm12, %v1408_v40 }
 0x401   :  { %7001 = vmatmul.mubr.msk.f32.vlgmr.msra.gmra.mrb[8].mxu1 %vm1419_vm11, %v1170_v47  ;;  %6553 = vmatprep.subr.msk.mxu1 %vm1542_vm13, %v8782_v28 }
 0x402   :  { %1692 = vmatprep.mubr.f32.mxu1 %v12713_v46  ;;  %6554 = vmatpush1.msk.msra.mxu1 %vm1542_vm13, %v8774_v50 }
 0x4d4   :  { %v7002_v35 = vpop.f32.mrb[8].mxu1 }
 0x4d5   :  { %v1502_v34 = vadd.f32 %v7002_v35, %v1417_v23  ;;  %v1496_v20 = vpop.f32.mrb[9].mxu1  ;;  %v13147_v23 = vmov 7   ;;  %v13148_v35 = vmov 8  }
 0x4d6   :  { %v1497_v53 = vadd.f32 %v1496_v20, %v1412_v52  ;;  %v8876_v52 = vld [vmem:[%s8795_s15 + $0x30] sm:$0xff]  ;;  %7372 = vset.pattern.permute.xlu1 %v13147_v23  ;;  %v2189_v20 = vld [vmem:[%s8300_s21 + $0x20] sm:$0xff]  ;;  %s11250_s15 = sld [smem:[%s12629_s0 + %s7823_s12]]   ;;  %s7838_s12 = smov 5  }
 0x4d7   :  { %v6548_v59 = vmul.f32 -1.442695, %v1502_v34  ;;  %3988 = vperm.xlu0 %7398, %v8876_v52   ;;  %4192 = vperm.xlu1 %7372, %v8835_v10   ;;  %v2187_v34 = vld [vmem:[%s8300_s21 + $0x10] sm:$0xff] }
 0x4d8   :  { %v6547_v39 = vmul.f32 -1.442695, %v1497_v53  ;;  %v2191_v53 = vld [vmem:[%s8300_s21 + $0x30] sm:$0xff] }
 0x4d9   :  { %7535 = vpow2.f32 %v6548_v59 }
 0x4da   :  { %7537 = vpow2.f32 %v6547_v39 }
 0x4db   :  { %7399 = vset.pattern.permute.xlu0 %v13147_v23  ;;  %7373 = vset.pattern.permute.xlu1 %v13142_v49 }
 0x4dc   :  { %4188 = vperm.xlu0 %7399, %v8798_v38   ;;  %3524 = vperm.xlu1 %7373, %v8802_v21  }
 0x4e0   :  { %4196 = vperm.xlu0 %7399, %v8802_v21   ;;  %7374 = vset.pattern.permute.xlu1 %v13148_v35 }
 0x4e1   :  { %4416 = vperm.xlu1 %7374, %v8835_v10  }
 0x4e3   :  { %v7536_v19 = vpop.eup %7535 }
 0x4e4   :  { %v7538_v62 = vpop.eup %7537  ;;  %v1512_v40 = vadd.f32 1.0, %v7536_v19  ;;  %4204 = vperm.xlu0 %7399, %v8860_v1  }
 0x4e5   :  { %v1511_v36 = vadd.f32 1.0, %v7538_v62  ;;  %7375 = vset.pattern.permute.xlu1 %v13145_v55 }
 0x4e6   :  { %2665 = vperm.xlu1 %7375, %v8860_v1  }
 0x4e7   :  { %7539 = vrcp.f32 %v1511_v36 }
 0x4e8   :  { %7541 = vrcp.f32 %v1512_v40  ;;  %4216 = vperm.xlu0 %7399, %v8810_v3  }
 0x4ea   :  { %7376 = vset.pattern.permute.xlu1 %v13143_v63 }
 0x4eb   :  { %2860 = vperm.xlu1 %7376, %v8860_v1  }
 0x4ec   :  { %7402 = vset.pattern.permute.xlu0 %v13148_v35 }
 0x4ed   :  { %4412 = vperm.xlu0 %7402, %v8798_v38   ;;  %v1719_v38 = vld [vmem:[%s8246_s17] sm:$0xff]  ;;  %s6494_s17 = sld [smem:[%s12629_s0 + %s7824_s16]]   ;;  %s7839_s16 = smov 36  }
 0x4ef   :  { %2864 = vperm.xlu1 %7376, %v8806_v13  }
 0x4f1   :  { %v7540_v47 = vpop.eup %7539  ;;  %4420 = vperm.xlu0 %7402, %v8802_v21   ;;  %v2185_v21 = vld [vmem:[%s8300_s21] sm:$0xff]  ;;  %s6472_s21 = sld [smem:[%s12629_s0 + %s7802_s24]]  }
 0x4f2   :  { %6551 = vmatmul.mubr.msk.f32.vlgmr.msra.gmra.mrb[10].mxu0 %vm1535_vm14, %v7540_v47  ;;  %6555 = vmatmul.mubr.msk.f32.vlgmr.msra.gmra.mrb[10].mxu1 %vm1535_vm14, %v7540_v47  ;;  %v7542_v4 = vpop.eup %7541  ;;  %v13149_v47 = vld [vmem:[#allocation4_spill] sm:$0xff] }
 0x4f3   :  { %1621 = vmatprep.mubr.f32.mxu0 %v12713_v46  ;;  %1698 = vmatprep.mubr.f32.mxu1 %v12713_v46 }
 0x4f4   :  { %7377 = vset.pattern.permute.xlu1 %v13144_v26 }
 0x4f5   :  { %4428 = vperm.xlu0 %7402, %v8860_v1   ;;  %3752 = vperm.xlu1 %7377, %v8814_v0  }
 0x4f6   :  { %6552 = vmatmul.mubr.msk.f32.gmra.mrb[12].mxu0 %vm1535_vm14, %v7542_v4  ;;  %6556 = vmatmul.mubr.msk.f32.gmra.mrb[12].mxu1 %vm1535_vm14, %v7542_v4 }
 0x4f7   :  { %1771 = vmatprep.mubr.bf16.mxu0 %v13143_v63  ;;  %1814 = vmatprep.mubr.bf16.mxu1 %v13143_v63 }
 0x4f9   :  { %4436 = vperm.xlu0 %7402, %v8876_v52   ;;  %7378 = vset.pattern.permute.xlu1 %v13140_v42 }
 0x4fa   :  { %3084 = vperm.xlu1 %7378, %v8860_v1  }
 0x4fd   :  { %7403 = vset.pattern.permute.xlu0 %v13143_v63 }
 0x4fe   :  { %1723 = vperm.xlu0 %7403, %v1719_v38   ;;  %7379 = vset.pattern.permute.xlu1 %v13146_v44 }
 0x4ff   :  { %3976 = vperm.xlu1 %7379, %v8814_v0  }
 0x502   :  { %2195 = vperm.xlu0 %7403, %v2185_v21  }
 0x503   :  { %7380 = vset.pattern.permute.xlu1 %v13141_v11 }
 0x504   :  { %3308 = vperm.xlu1 %7380, %v8860_v1  }
 0x506   :  { %2205 = vperm.xlu0 %7403, %v2187_v34  }
 0x508   :  { %7381 = vset.pattern.permute.xlu1 %v13147_v23 }
 0x509   :  { %4200 = vperm.xlu1 %7381, %v8814_v0  }
 0x50a   :  { %2215 = vperm.xlu0 %7403, %v2189_v20  }
 0x50d   :  { %7382 = vset.pattern.permute.xlu1 %v13142_v49 }
 0x50e   :  { %2225 = vperm.xlu0 %7403, %v2191_v53   ;;  %3532 = vperm.xlu1 %7382, %v8860_v1   ;;  %v13152_v53 = vld [vmem:[#allocation25_spill] sm:$0xff] }
 0x512   :  { %2848 = vperm.xlu0 %7403, %v8835_v10   ;;  %7383 = vset.pattern.permute.xlu1 %v13148_v35  ;;  %v13150_v10 = vld [vmem:[#allocation24_spill] sm:$0xff] }
 0x513   :  { %4424 = vperm.xlu1 %7383, %v8814_v0  }
 0x516   :  { %2856 = vperm.xlu0 %7403, %v8814_v0  }
 0x517   :  { %7384 = vset.pattern.permute.xlu1 %v13145_v55  ;;  %v13151_v55 = vld [vmem:[#allocation18_spill] sm:$0xff] }
 0x518   :  { %2675 = vperm.xlu1 %7384, %v8876_v52  }
 0x51c   :  { %7386 = vset.pattern.permute.xlu1 %v13143_v63 }
 0x51d   :  { %2868 = vperm.xlu1 %7386, %v8876_v52  }
 0x521   :  { %2872 = vperm.xlu1 %7386, %v8810_v3  }
 0x525   :  { %7387 = vset.pattern.permute.xlu1 %v13144_v26 }
 0x526   :  { %3760 = vperm.xlu1 %7387, %v8806_v13  }
 0x52a   :  { %7388 = vset.pattern.permute.xlu1 %v13140_v42 }
 0x52b   :  { %3092 = vperm.xlu1 %7388, %v8876_v52  }
 0x52f   :  { %7390 = vset.pattern.permute.xlu1 %v13146_v44 }
 0x530   :  { %3984 = vperm.xlu1 %7390, %v8806_v13  }
 0x534   :  { %7391 = vset.pattern.permute.xlu1 %v13141_v11 }
 0x535   :  { %3316 = vperm.xlu1 %7391, %v8876_v52  }
 0x539   :  { %7393 = vset.pattern.permute.xlu1 %v13147_v23 }
 0x53a   :  { %4208 = vperm.xlu1 %7393, %v8806_v13  }
 0x53e   :  { %7394 = vset.pattern.permute.xlu1 %v13142_v49 }
 0x53f   :  { %3540 = vperm.xlu1 %7394, %v8876_v52  }
 0x543   :  { %7396 = vset.pattern.permute.xlu1 %v13148_v35 }
 0x544   :  { %4432 = vperm.xlu1 %7396, %v8806_v13  }
 0x548   :  { %7397 = vset.pattern.permute.xlu1 %v13144_v26 }
 0x549   :  { %3764 = vperm.xlu1 %7397, %v8876_v52  }
 0x54d   :  { %7400 = vset.pattern.permute.xlu1 %v13146_v44 }
 0x54e   :  { %3992 = vperm.xlu1 %7400, %v8810_v3  }
 0x552   :  { %7401 = vset.pattern.permute.xlu1 %v13147_v23 }
 0x553   :  { %4212 = vperm.xlu1 %7401, %v8876_v52  }
 0x557   :  { %7404 = vset.pattern.permute.xlu1 %v13148_v35 }
 0x558   :  { %4440 = vperm.xlu1 %7404, %v8810_v3  }
 0x55c   :  { %7405 = vset.pattern.permute.xlu1 %v13143_v63 }
 0x5c5   :  { %v1617_v59 = vpop.f32.mrb[10].mxu0  ;;  %v1694_v39 = vpop.f32.mrb[10].mxu1 }
 0x5c6   :  { %v1619_v19 = vpop.f32.mrb[11].mxu0  ;;  %v1696_v62 = vpop.f32.mrb[11].mxu1  ;;  %v1705_v4 = vmul.f32 %v1617_v59, %v13149_v47  ;;  %v1707_v38 = vmul.f32 %v1694_v39, %v13150_v10 }
 0x5c7   :  { %v1706_v20 = vmul.f32 %v1619_v19, %v13151_v55  ;;  %v1708_v14 = vmul.f32 %v1696_v62, %v13152_v53 }
 0x5c9   :  { %v1623_v36 = vpop.f32.mrb[12].mxu0  ;;  %v1700_v40 = vpop.f32.mrb[12].mxu1 }
 0x5ca   :  { %v1709_v1 = vmul.f32 %v1623_v36, %v8745_v9  ;;  %v1711_v21 = vmul.f32 %v1700_v40, %v8748_v22  ;;  %v1625_v0 = vpop.f32.mrb[13].mxu0  ;;  %v1702_v34 = vpop.f32.mrb[13].mxu1  ;;  %v7420_v22 = vld [vmem:[%s8843_s19] sm:$0xff]   ;;  %s7832_s19 = smov 26  }
 0x5cb   :  { %v1710_v46 = vmul.f32 %v1625_v0, %v8740_v58  ;;  %v1712_v45 = vmul.f32 %v1702_v34, %v8742_v51  ;;  %v1833_v58 = vld [vmem:[%s6472_s21] sm:$0xff]  ;;  %v1834_v51 = vld [vmem:[%s6472_s21 + $0x8] sm:$0xff]  ;;  %s12489_s21 = sld [smem:[%s12629_s0 + %s7832_s19]]  }
 0x5cc   :  { %v1715_v59 = vpack.c.bf16 %v1709_v1, %v1705_v4  ;;  %v1717_v39 = vpack.c.bf16 %v1711_v21, %v1707_v38 }
 0x5cd   :  { %v1716_v9 = vpack.c.bf16 %v1710_v46, %v1706_v20  ;;  %v1718_v36 = vpack.c.bf16 %v1712_v45, %v1708_v14  ;;  %v13153_v45 = vmov 0.0   ;;  %v2003_v14 = vld [vmem:[%s6473_s3] sm:$0xff]  ;;  %v2004_v46 = vld [vmem:[%s6473_s3 + $0x8] sm:$0xff]  ;;  %s6475_s3 = sld [smem:[%s12629_s0 + %s7833_s30]]  }
 0x5cf   :  { %1739 = vmatprep.subr.bf16.mxu0 %v1716_v9  ;;  %1782 = vmatprep.subr.bf16.mxu1 %v1718_v36 }
 0x5d0   :  { %1740 = vmatpush1.bf16.msra.mxu0 %v1715_v59  ;;  %1783 = vmatpush1.bf16.msra.mxu1 %v1717_v39 }
 0x5d1   :  { %6560 = vmatprep.subr.msk.mxu0 %vm1542_vm13, %v8778_v43  ;;  %6564 = vmatprep.subr.msk.mxu1 %vm1542_vm13, %v8782_v28 }
 0x5d3   :  { %6558 = vmatmul.mubr.msk.bf16.vlgmr.msra.gmra.mrb[16].mxu0 %vm1328_vm10, %v7420_v22  ;;  %6559 = vmatmul.mubr.msk.bf16.vlgmr.msra.gmra.mrb[16].mxu1 %vm1328_vm10, %v7420_v22 }
 0x5d4   :  { %6561 = vmatpush1.msk.msra.mxu0 %vm1542_vm13, %v8772_v37  ;;  %1905 = vmatprep.mubr.f32.mxu0 %v13153_v45 }
 0x5d5   :  { %6565 = vmatpush1.msk.msra.mxu1 %vm1542_vm13, %v8774_v50  ;;  %1982 = vmatprep.mubr.f32.mxu1 %v13153_v45 }
 0x5d6   :  { %6568 = vmatprep.subr.msk.mxu0 %vm1542_vm13, %v8778_v43  ;;  %6572 = vmatprep.subr.msk.mxu1 %vm1542_vm13, %v8782_v28 }
 0x5db   :  { %6562 = vmatmul.mubr.msk.f32.vlgmr.msra.gmra.mrb[14].mxu0 %vm1535_vm14, %v1833_v58  ;;  %6566 = vmatmul.mubr.msk.f32.vlgmr.msra.gmra.mrb[14].mxu1 %vm1535_vm14, %v1833_v58 }
 0x5dc   :  { %1911 = vmatprep.mubr.f32.mxu0 %v13153_v45  ;;  %1988 = vmatprep.mubr.f32.mxu1 %v13153_v45 }
 0x5dd   :  { %6569 = vmatpush1.msk.msra.mxu0 %vm1542_vm13, %v8772_v37  ;;  %6573 = vmatpush1.msk.msra.mxu1 %vm1542_vm13, %v8774_v50  ;;  %v8992_v37 = vpop.permute.xlu0 %2645 }
 0x5df   :  { %6563 = vmatmul.mubr.msk.f32.gmra.mrb[20].mxu0 %vm1535_vm14, %v1834_v51  ;;  %6567 = vmatmul.mubr.msk.f32.gmra.mrb[20].mxu1 %vm1535_vm14, %v1834_v51 }
 0x5e0   :  { %2075 = vmatprep.mubr.f32.mxu0 %v13153_v45  ;;  %2152 = vmatprep.mubr.f32.mxu1 %v13153_v45 }
 0x5e1   :  { %v8997_v50 = vpop.permute.xlu0 %2655 }
 0x5e2   :  { %13154 = vst [vmem:[#allocation22_spill] sm:$0xff] %v8997_v50 }
 0x5e3   :  { %6570 = vmatmul.mubr.msk.f32.vlgmr.msra.gmra.mrb[22].mxu0 %vm1535_vm14, %v2003_v14  ;;  %6574 = vmatmul.mubr.msk.f32.vlgmr.msra.gmra.mrb[22].mxu1 %vm1535_vm14, %v2003_v14 }
 0x5e4   :  { %2081 = vmatprep.mubr.f32.mxu0 %v13153_v45  ;;  %2158 = vmatprep.mubr.f32.mxu1 %v13153_v45 }
 0x5e5   :  { %v9001_v43 = vpop.permute.xlu0 %2670 }
 0x5e6   :  { %13155 = vst [vmem:[#allocation12_spill] sm:$0xff] %v9001_v43 }
 0x5e7   :  { %6571 = vmatmul.mubr.msk.f32.gmra.mrb[24].mxu0 %vm1535_vm14, %v2004_v46  ;;  %6575 = vmatmul.mubr.msk.f32.gmra.mrb[24].mxu1 %vm1535_vm14, %v2004_v46 }
 0x5e8   :  { %2297 = vmatprep.mubr.bf16.mxu0 %v13143_v63  ;;  %2370 = vmatprep.mubr.bf16.mxu1 %v13143_v63 }
 0x5e9   :  { %v9005_v28 = vpop.permute.xlu0 %2680 }
 0x5ea   :  { %13156 = vst [vmem:[#allocation14_spill] sm:$0xff] %v9005_v28 }
 0x5ed   :  { %v9009_v42 = vpop.permute.xlu0 %3080 }
 0x5ee   :  { %13157 = vst [vmem:[#allocation2_spill] sm:$0xff] %v9009_v42 }
 0x5f1   :  { %v9014_v11 = vpop.permute.xlu0 %3088 }
 0x5f2   :  { %13158 = vst [vmem:[#allocation16_spill] sm:$0xff] %v9014_v11 }
 0x5f5   :  { %v9019_v13 = vpop.permute.xlu0 %3096 }
 0x5f6   :  { %13159 = vst [vmem:[#allocation19_spill] sm:$0xff] %v9019_v13 }
 0x5f9   :  { %v9022_v49 = vpop.permute.xlu0 %3292 }
 0x5fd   :  { %v9024_v26 = vpop.permute.xlu0 %3304 }
 0x5fe   :  { %13160 = vst [vmem:[#allocation3_spill] sm:$0xff] %v9024_v26 }
 0x601   :  { %v9026_v44 = vpop.permute.xlu0 %3312 }
 0x602   :  { %13161 = vst [vmem:[#allocation5_spill] sm:$0xff] %v9026_v44 }
 0x605   :  { %v9028_v19 = vpop.permute.xlu0 %3320 }
 0x606   :  { %13162 = vst [vmem:[#allocation20_spill] sm:$0xff] %v9028_v19 }
 0x609   :  { %v9030_v23 = vpop.permute.xlu0 %3520 }
 0x60a   :  { %13163 = vst [vmem:[#allocation21_spill] sm:$0xff] %v9030_v23 }
 0x60d   :  { %v9032_v62 = vpop.permute.xlu0 %3528 }
 0x60e   :  { %13164 = vst [vmem:[#allocation6_spill] sm:$0xff] %v9032_v62  ;;  %v13183_v62 = vld [vmem:[#allocation9_spill] sm:$0xff] }
 0x611   :  { %v9034_v52 = vpop.permute.xlu0 %3536 }
 0x612   :  { %13165 = vst [vmem:[#allocation23_spill] sm:$0xff] %v9034_v52  ;;  %v1729_v52 = vpop.permute.xlu1 %1728 }
 0x615   :  { %v9041_v3 = vpop.permute.xlu0 %3544 }
 0x616   :  { %13166 = vst [vmem:[#allocation4_spill] sm:$0xff] %v9041_v3 }
 0x619   :  { %v9043_v35 = vpop.permute.xlu0 %3740 }
 0x61d   :  { %v9045_v40 = vpop.permute.xlu0 %3748 }
 0x61e   :  { %13167 = vst [vmem:[#allocation24_spill] sm:$0xff] %v9045_v40  ;;  %v13186_v40 = vld [vmem:[#allocation11_spill] sm:$0xff] }
 0x621   :  { %v9047_v47 = vpop.permute.xlu0 %3756 }
 0x622   :  { %13168 = vst [vmem:[#allocation18_spill] sm:$0xff] %v9047_v47 }
 0x625   :  { %v9049_v4 = vpop.permute.xlu0 %3768 }
 0x626   :  { %13169 = vst [vmem:[#allocation25_spill] sm:$0xff] %v9049_v4 }
 0x629   :  { %v9051_v10 = vpop.permute.xlu0 %3964 }
 0x62d   :  { %v9053_v38 = vpop.permute.xlu0 %3972 }
 0x62e   :  { %13170 = vst [vmem:[#allocation58_spill] sm:$0xff] %v9053_v38 }
 0x631   :  { %v9055_v1 = vpop.permute.xlu0 %3980 }
 0x632   :  { %13171 = vst [vmem:[#allocation59_spill] sm:$0xff] %v9055_v1  ;;  %v13182_v1 = vld [vmem:[#allocation8_spill] sm:$0xff] }
 0x635   :  { %v9057_v21 = vpop.permute.xlu0 %3988 }
 0x636   :  { %13172 = vst [vmem:[#allocation60_spill] sm:$0xff] %v9057_v21 }
 0x639   :  { %v9059_v0 = vpop.permute.xlu0 %4188 }
 0x63a   :  { %13173 = vst [vmem:[#allocation61_spill] sm:$0xff] %v9059_v0 }
 0x63d   :  { %v9061_v34 = vpop.permute.xlu0 %4196 }
 0x63e   :  { %13174 = vst [vmem:[#allocation62_spill] sm:$0xff] %v9061_v34  ;;  %v13184_v34 = vld [vmem:[#allocation10_spill] sm:$0xff] }
 0x641   :  { %v9063_v55 = vpop.permute.xlu0 %4204 }
 0x642   :  { %13175 = vst [vmem:[#allocation63_spill] sm:$0xff] %v9063_v55  ;;  %v13181_v55 = vld [vmem:[#allocation7_spill] sm:$0xff] }
 0x645   :  { %v9065_v20 = vpop.permute.xlu0 %4216 }
 0x646   :  { %13176 = vst [vmem:[#allocation64_spill] sm:$0xff] %v9065_v20 }
 0x649   :  { %v9067_v53 = vpop.permute.xlu0 %4412 }
 0x64a   :  { %13177 = vst [vmem:[#allocation65_spill] sm:$0xff] %v9067_v53 }
 0x64d   :  { %v9069_v59 = vpop.permute.xlu0 %4420 }
 0x64e   :  { %13178 = vst [vmem:[#allocation66_spill] sm:$0xff] %v9069_v59 }
 0x651   :  { %v9071_v39 = vpop.permute.xlu0 %4428 }
 0x652   :  { %13179 = vst [vmem:[#allocation67_spill] sm:$0xff] %v9071_v39 }
 0x655   :  { %v9073_v9 = vpop.permute.xlu0 %4436 }
 0x656   :  { %13180 = vst [vmem:[#allocation68_spill] sm:$0xff] %v9073_v9 }
 0x659   :  { %v1724_v36 = vpop.permute.xlu0 %1723 }
 0x6a6   :  { %v1773_v22 = vpop.f32.mrb[16].mxu0  ;;  %v1816_v58 = vpop.f32.mrb[16].mxu1 }
 0x6a7   :  { %v1775_v51 = vpop.f32.mrb[17].mxu0  ;;  %v1818_v14 = vpop.f32.mrb[17].mxu1  ;;  %v1774_v4 = vadd.f32 %v1773_v22, %v1724_v36  ;;  %v1817_v3 = vadd.f32 %v1816_v58, %v1724_v36 }
 0x6a8   :  { %v1777_v46 = vpop.f32.mrb[18].mxu0  ;;  %v1820_v45 = vpop.f32.mrb[18].mxu1  ;;  %v1776_v20 = vadd.f32 %v1775_v51, %v1724_v36  ;;  %v1819_v13 = vadd.f32 %v1818_v14, %v1724_v36 }
 0x6a9   :  { %v1779_v19 = vpop.f32.mrb[19].mxu0  ;;  %v1822_v21 = vpop.f32.mrb[19].mxu1  ;;  %v1778_v44 = vadd.f32 %v1777_v46, %v1729_v52  ;;  %v1821_v11 = vadd.f32 %v1820_v45, %v1729_v52  ;;  %v1825_v39 = vadd.f32 %v1774_v4, %v13181_v55  ;;  %v1827_v9 = vadd.f32 %v1817_v3, %v13182_v1  ;;  %v13185_v46 = vld [vmem:[#allocation13_spill] sm:$0xff] }
 0x6aa   :  { %v1780_v47 = vadd.f32 %v1779_v19, %v1729_v52  ;;  %v1823_v28 = vadd.f32 %v1822_v21, %v1729_v52  ;;  %v1826_v26 = vadd.f32 %v1776_v20, %v13183_v62  ;;  %v1828_v22 = vadd.f32 %v1819_v13, %v13184_v34  ;;  %v13187_v19 = vld [vmem:[#allocation15_spill] sm:$0xff]  ;;  %v13188_v1 = vld [vmem:[#allocation17_spill] sm:$0xff] }
 0x6ab   :  { %v1829_v45 = vadd.f32 %v1778_v44, %v13185_v46  ;;  %v1831_v4 = vadd.f32 %v1821_v11, %v13186_v40 }
 0x6ac   :  { %v1830_v52 = vadd.f32 %v1780_v47, %v13187_v19  ;;  %v1832_v21 = vadd.f32 %v1823_v28, %v13188_v1  ;;  %v9101_v1 = vpop.permute.xlu1 %2200 }
 0x6ae   :  { %v1907_v43 = vpop.f32.mrb[14].mxu0  ;;  %v1984_v59 = vpop.f32.mrb[14].mxu1 }
 0x6af   :  { %v1995_v58 = vmul.f32 %v1907_v43, %v1825_v39  ;;  %v1997_v42 = vmul.f32 %v1984_v59, %v1827_v9  ;;  %v1909_v38 = vpop.f32.mrb[15].mxu0  ;;  %v1986_v51 = vpop.f32.mrb[15].mxu1 }
 0x6b0   :  { %v1996_v36 = vmul.f32 %v1909_v38, %v1826_v26  ;;  %v1998_v14 = vmul.f32 %v1986_v51, %v1828_v22 }
 0x6b2   :  { %v1913_v55 = vpop.f32.mrb[20].mxu0  ;;  %v1990_v3 = vpop.f32.mrb[20].mxu1 }
 0x6b3   :  { %v1999_v50 = vmul.f32 %v1913_v55, %v1829_v45  ;;  %v2001_v62 = vmul.f32 %v1990_v3, %v1831_v4  ;;  %v1915_v20 = vpop.f32.mrb[21].mxu0  ;;  %v1992_v13 = vpop.f32.mrb[21].mxu1 }
 0x6b4   :  { %v2000_v43 = vmul.f32 %v1915_v20, %v1830_v52  ;;  %v2002_v34 = vmul.f32 %v1992_v13, %v1832_v21  ;;  %v9103_v21 = vpop.permute.xlu1 %2210 }
 0x6b6   :  { %v2077_v59 = vpop.f32.mrb[22].mxu0  ;;  %v2154_v39 = vpop.f32.mrb[22].mxu1 }
 0x6b7   :  { %v2165_v26 = vadd.f32 %v2077_v59, %v1995_v58  ;;  %v2167_v38 = vadd.f32 %v2154_v39, %v1997_v42  ;;  %v2079_v9 = vpop.f32.mrb[23].mxu0  ;;  %v2156_v44 = vpop.f32.mrb[23].mxu1  ;;  %v7421_v42 = vld [vmem:[%s9039_s7] sm:$0xff]  }
 0x6b8   :  { %v2166_v22 = vadd.f32 %v2079_v9, %v1996_v36  ;;  %v2168_v11 = vadd.f32 %v2156_v44, %v1998_v14  ;;  %v7423_v36 = vld [vmem:[%s9039_s7 + $0x10] sm:$0xff]   ;;  %v7424_v14 = vld [vmem:[%s9039_s7 + $0x18] sm:$0xff]  }
 0x6ba   :  { %v2083_v40 = vpop.f32.mrb[24].mxu0  ;;  %v2160_v51 = vpop.f32.mrb[24].mxu1 }
 0x6bb   :  { %v2169_v47 = vadd.f32 %v2083_v40, %v1999_v50  ;;  %v2171_v46 = vadd.f32 %v2160_v51, %v2001_v62  ;;  %v2085_v28 = vpop.f32.mrb[25].mxu0  ;;  %v2162_v45 = vpop.f32.mrb[25].mxu1  ;;  %v7422_v50 = vld [vmem:[%s9039_s7 + $0x8] sm:$0xff]   ;;  %s6474_s7 = sld [smem:[%s12629_s0 + %s7834_s4]]  }
 0x6bc   :  { %v2170_v4 = vadd.f32 %v2085_v28, %v2000_v43  ;;  %v2172_v55 = vadd.f32 %v2162_v45, %v2002_v34  ;;  %v9105_v62 = vpop.permute.xlu1 %2220 }
 0x6bd   :  { %v2181_v3 = vpack.c.bf16 %v2169_v47, %v2165_v26  ;;  %v2183_v19 = vpack.c.bf16 %v2171_v46, %v2167_v38  ;;  %v9139_v46 = vpop.permute.xlu0 %2195 }
 0x6be   :  { %v2182_v52 = vpack.c.bf16 %v2170_v4, %v2166_v22  ;;  %v2184_v58 = vpack.c.bf16 %v2172_v55, %v2168_v11 }
 0x6c0   :  { %2265 = vmatprep.subr.bf16.mxu0 %v2182_v52  ;;  %2338 = vmatprep.subr.bf16.mxu1 %v2184_v58  ;;  %v9107_v20 = vpop.permute.xlu1 %2230 }
 0x6c1   :  { %2266 = vmatpush1.bf16.msra.mxu0 %v2181_v3  ;;  %2339 = vmatpush1.bf16.msra.mxu1 %v2183_v19  ;;  %13189 = vst [vmem:[#allocation7_spill] sm:$0xff] %v9107_v20 }
 0x6c2   :  { %6860 = vmatprep.subr.bf16.mxu1 %v7425_v6  ;;  %6820 = vmatprep.subr.bf16.mxu0 %v7427_v2  ;;  %v7431_v6 = vld [vmem:[%s9437_s11 + $0x48] sm:$0xff]  }
 0x6c3   :  { %v7432_v2 = vld [vmem:[%s9437_s11 + $0x8] sm:$0xff]  }
 0x6c4   :  { %6580 = vmatmul.mubr.msk.bf16.vlgmr.msra.gmra.mrb[28].mxu0 %vm1328_vm10, %v7421_v42  ;;  %6584 = vmatmul.mubr.msk.bf16.vlgmr.msra.gmra.mrb[28].mxu1 %vm1328_vm10, %v7421_v42  ;;  %v9109_v13 = vpop.permute.xlu1 %2650 }
 0x6c5   :  { %2307 = vmatprep.mubr.bf16.mxu0 %v13143_v63  ;;  %2380 = vmatprep.mubr.bf16.mxu1 %v13143_v63 }
 0x6c6   :  { %6861 = vmatpush3.bf16.msra.mxu1 %v7426_v54 }
 0x6c7   :  { %6862 = vmatprep.subr.bf16.mxu1 %v7429_v30  ;;  %v7435_v30 = vld [vmem:[%s9437_s11 + $0x50] sm:$0xff]  }
 0x6c8   :  { %v9111_v43 = vpop.permute.xlu1 %2844 }
 0x6ca   :  { %6863 = vmatpush3.bf16.msra.mxu1 %v7430_v8 }
 0x6cc   :  { %6581 = vmatmul.mubr.msk.bf16.gmra.mrb[32].mxu0 %vm1328_vm10, %v7422_v50  ;;  %6585 = vmatmul.mubr.msk.bf16.gmra.mrb[32].mxu1 %vm1328_vm10, %v7422_v50  ;;  %v9113_v34 = vpop.permute.xlu1 %3068 }
 0x6cd   :  { %2317 = vmatprep.mubr.bf16.mxu0 %v13143_v63  ;;  %2390 = vmatprep.mubr.bf16.mxu1 %v13143_v63 }
 0x6d4   :  { %6582 = vmatmul.mubr.msk.bf16.gmra.mrb[36].mxu0 %vm1328_vm10, %v7423_v36  ;;  %6586 = vmatmul.mubr.msk.bf16.gmra.mrb[36].mxu1 %vm1328_vm10, %v7423_v36 }
 0x6d5   :  { %2327 = vmatprep.mubr.bf16.mxu0 %v13143_v63  ;;  %2400 = vmatprep.mubr.bf16.mxu1 %v13143_v63  ;;  %v9115_v63 = vpop.permute.xlu1 %3072 }
 0x6d6   :  { %13190 = vst [vmem:[#allocation8_spill] sm:$0xff] %v9115_v63 }
 0x6d9   :  { %v9117_v59 = vpop.permute.xlu1 %3296 }
 0x6da   :  { %13191 = vst [vmem:[#allocation9_spill] sm:$0xff] %v9117_v59 }
 0x6dc   :  { %6583 = vmatmul.mubr.msk.bf16.gmra.mrb[40].mxu0 %vm1328_vm10, %v7424_v14  ;;  %6587 = vmatmul.mubr.msk.bf16.gmra.mrb[40].mxu1 %vm1328_vm10, %v7424_v14 }
 0x6dd   :  { %v9119_v39 = vpop.permute.xlu1 %3516 }
 0x6e1   :  { %v9121_v26 = vpop.permute.xlu1 %2660 }
 0x6e2   :  { %13192 = vst [vmem:[#allocation10_spill] sm:$0xff] %v9121_v26 }
 0x6e5   :  { %v9123_v38 = vpop.permute.xlu1 %2852 }
 0x6e6   :  { %13193 = vst [vmem:[#allocation13_spill] sm:$0xff] %v9123_v38 }
 0x6e9   :  { %v9125_v9 = vpop.permute.xlu1 %3744 }
 0x6ea   :  { %13194 = vst [vmem:[#allocation11_spill] sm:$0xff] %v9125_v9 }
 0x6ed   :  { %v9127_v44 = vpop.permute.xlu1 %3076 }
 0x6ee   :  { %13195 = vst [vmem:[#allocation15_spill] sm:$0xff] %v9127_v44 }
 0x6f1   :  { %v9129_v22 = vpop.permute.xlu1 %3968 }
 0x6f2   :  { %13196 = vst [vmem:[#allocation17_spill] sm:$0xff] %v9129_v22 }
 0x6f5   :  { %v9131_v11 = vpop.permute.xlu1 %3300 }
 0x6f6   :  { %13197 = vst [vmem:[#allocation69_spill] sm:$0xff] %v9131_v11 }
 0x6f9   :  { %v9133_v40 = vpop.permute.xlu1 %4192 }
 0x6fa   :  { %13198 = vst [vmem:[#allocation70_spill] sm:$0xff] %v9133_v40 }
 0x6fd   :  { %v9135_v51 = vpop.permute.xlu1 %3524 }
 0x6fe   :  { %13199 = vst [vmem:[#allocation71_spill] sm:$0xff] %v9135_v51 }
 0x701   :  { %v9137_v47 = vpop.permute.xlu1 %4416 }
 0x702   :  { %13200 = vst [vmem:[#allocation72_spill] sm:$0xff] %v9137_v47 }
 0x705   :  { %v9141_v28 = vpop.permute.xlu1 %2665 }
 0x706   :  { %13201 = vst [vmem:[#allocation73_spill] sm:$0xff] %v9141_v28 }
 0x709   :  { %v9149_v38 = vpop.permute.xlu1 %2860 }
 0x70a   :  { %13202 = vst [vmem:[#allocation74_spill] sm:$0xff] %v9149_v38 }
 0x70d   :  { %v9171_v9 = vpop.permute.xlu1 %2864 }
 0x70e   :  { %13203 = vst [vmem:[#allocation75_spill] sm:$0xff] %v9171_v9 }
 0x711   :  { %v9191_v0 = vpop.permute.xlu1 %3752 }
 0x712   :  { %13206 = vst [vmem:[#allocation78_spill] sm:$0xff] %v9191_v0 }
 0x797   :  { %v2299_v45 = vpop.f32.mrb[28].mxu0  ;;  %v2372_v4 = vpop.f32.mrb[28].mxu1 }
 0x798   :  { %v2300_v55 = vadd.f32 %v2299_v45, %v9139_v46  ;;  %v2373_v3 = vadd.f32 %v2372_v4, %v9139_v46  ;;  %v2301_v19 = vpop.f32.mrb[29].mxu0  ;;  %v2374_v52 = vpop.f32.mrb[29].mxu1 }
 0x799   :  { %v2303_v58 = vpop.f32.mrb[30].mxu0  ;;  %v2376_v42 = vpop.f32.mrb[30].mxu1  ;;  %v9156_v45 = vadd.f32 %v2301_v19, %v9139_v46 }
 0x79a   :  { %v6588_v50 = vmul.f32 -1.442695, %v2300_v55  ;;  %v6590_v36 = vmul.f32 -1.442695, %v2373_v3  ;;  %v9145_v14 = vpop.f32.mrb[31].mxu0  ;;  %v9147_v44 = vpop.f32.mrb[31].mxu1 }
 0x79c   :  { %7543 = vpow2.f32 %v6588_v50 }
 0x79d   :  { %7545 = vpow2.f32 %v6590_v36  ;;  %v6589_v36 = vmul.f32 -1.442695, %v9156_v45 }
 0x79f   :  { %v9151_v28 = vpop.f32.mrb[32].mxu0  ;;  %v9153_v51 = vpop.f32.mrb[32].mxu1  ;;  %7547 = vpow2.f32 %v6589_v36 }
 0x7a0   :  { %v9158_v4 = vpop.f32.mrb[33].mxu0  ;;  %v9160_v11 = vpop.f32.mrb[33].mxu1 }
 0x7a1   :  { %v9162_v26 = vpop.f32.mrb[34].mxu0  ;;  %v9164_v20 = vpop.f32.mrb[34].mxu1 }
 0x7a2   :  { %v9166_v47 = vpop.f32.mrb[35].mxu0  ;;  %v9168_v50 = vpop.f32.mrb[35].mxu1 }
 0x7a6   :  { %v7544_v38 = vpop.eup %7543 }
 0x7a7   :  { %v7546_v23 = vpop.eup %7545  ;;  %v2507_v19 = vadd.f32 1.0, %v7544_v38  ;;  %v9173_v40 = vpop.f32.mrb[36].mxu0 }
 0x7a8   :  { %v9175_v59 = vpop.f32.mrb[36].mxu1  ;;  %v2509_v22 = vadd.f32 1.0, %v7546_v23  ;;  %v9177_v27 = vpop.f32.mrb[37].mxu0 }
 0x7a9   :  { %v9179_v53 = vpop.f32.mrb[37].mxu1  ;;  %7549 = vrcp.f32 %v2507_v19  ;;  %v9181_v24 = vpop.f32.mrb[38].mxu0 }
 0x7aa   :  { %13204 = vst [vmem:[#allocation76_spill] sm:$0xff] %v9179_v53  ;;  %v9183_v63 = vpop.f32.mrb[38].mxu1  ;;  %7551 = vrcp.f32 %v2509_v22  ;;  %v9185_v16 = vpop.f32.mrb[39].mxu0 }
 0x7ab   :  { %v9187_v9 = vpop.f32.mrb[39].mxu1  ;;  %v7548_v53 = vpop.eup %7547 }
 0x7af   :  { %v9189_v38 = vpop.f32.mrb[40].mxu0  ;;  %v9193_v23 = vpop.f32.mrb[40].mxu1 }
 0x7b0   :  { %13205 = vst [vmem:[#allocation77_spill] sm:$0xff] %v9189_v38  ;;  %13207 = vst [vmem:[#allocation79_spill] sm:$0xff] %v9193_v23  ;;  %v9195_v36 = vpop.f32.mrb[41].mxu0  ;;  %v9197_v29 = vpop.f32.mrb[41].mxu1 }
 0x7b1   :  { %13208 = vst [vmem:[#allocation80_spill] sm:$0xff] %v9195_v36  ;;  %13209 = vst [vmem:[#allocation81_spill] sm:$0xff] %v9197_v29  ;;  %v9199_v19 = vpop.f32.mrb[42].mxu0  ;;  %v9201_v32 = vpop.f32.mrb[42].mxu1  ;;  %v2377_v36 = vadd.f32 %v2376_v42, %v9101_v1 }
 0x7b2   :  { %13210 = vst [vmem:[#allocation82_spill] sm:$0xff] %v9199_v19  ;;  %13211 = vst [vmem:[#allocation83_spill] sm:$0xff] %v9201_v32  ;;  %v9203_v22 = vpop.f32.mrb[43].mxu0  ;;  %v9205_v17 = vpop.f32.mrb[43].mxu1  ;;  %v2508_v19 = vadd.f32 1.0, %v7548_v53 }
 0x7b3   :  { %13212 = vst [vmem:[#allocation84_spill] sm:$0xff] %v9203_v22  ;;  %v7550_v5 = vpop.eup %7549  ;;  %13213 = vst [vmem:[#allocation85_spill] sm:$0xff] %v9205_v17  ;;  %v9211_v23 = vpop.permute.xlu1 %3084  ;;  %v2304_v22 = vadd.f32 %v2303_v58, %v9101_v1  ;;  %v6594_v32 = vmul.f32 -1.442695, %v2377_v36 }
 0x7b4   :  { %v7552_v61 = vpop.eup %7551  ;;  %v9207_v38 = vmul.f32 %v7550_v5, %v2300_v55  ;;  %13214 = vst [vmem:[#allocation86_spill] sm:$0xff] %v9211_v23  ;;  %7553 = vrcp.f32 %v2508_v19  ;;  %v2375_v5 = vadd.f32 %v2374_v52, %v9139_v46 }
 0x7b5   :  { %v9209_v0 = vmul.f32 %v7552_v61, %v2373_v3  ;;  %v6592_v55 = vmul.f32 -1.442695, %v2304_v22  ;;  %7555 = vpow2.f32 %v6594_v32 }
 0x7b6   :  { %2715 = vrot.lane.b32.xlu0 %v9207_v38, %s7800_s22  ;;  %v6591_v53 = vmul.f32 -1.442695, %v2375_v5 }
 0x7b7   :  { %2747 = vrot.lane.b32.xlu1 %v9209_v0, %s7800_s22  ;;  %v9222_v61 = vpop.permute.xlu1 %3976  ;;  %7557 = vpow2.f32 %v6592_v55 }
 0x7b8   :  { %13215 = vst [vmem:[#allocation87_spill] sm:$0xff] %v9222_v61  ;;  %7559 = vpow2.f32 %v6591_v53 }
 0x7ba   :  { %3163 = vrot.lane.b32.xlu0 %v9207_v38, %s7803_s25 }
 0x7bb   :  { %2939 = vrot.lane.b32.xlu1 %v9207_v38, %s7801_s23  ;;  %v9230_v3 = vpop.permute.xlu1 %3308 }
 0x7bc   :  { %13216 = vst [vmem:[#allocation88_spill] sm:$0xff] %v9230_v3 }
 0x7be   :  { %3387 = vrot.lane.b32.xlu0 %v9207_v38, %s7802_s24  ;;  %v7554_v46 = vpop.eup %7553 }
 0x7bf   :  { %2971 = vrot.lane.b32.xlu1 %v9209_v0, %s7801_s23  ;;  %v9238_v32 = vpop.permute.xlu1 %4200  ;;  %v7556_v52 = vpop.eup %7555  ;;  %v9243_v58 = vmul.f32 %v7554_v46, %v9156_v45 }
 0x7c0   :  { %13217 = vst [vmem:[#allocation89_spill] sm:$0xff] %v9238_v32  ;;  %v2513_v42 = vadd.f32 1.0, %v7556_v52  ;;  %v2379_v52 = vadd.f32 %v9147_v44, %v9101_v1 }
 0x7c1   :  { %v7558_v19 = vpop.eup %7557 }
 0x7c2   :  { %3643 = vrot.lane.b32.xlu0 %v9209_v0, %s7805_s27  ;;  %v7560_v55 = vpop.eup %7559  ;;  %v2511_v23 = vadd.f32 1.0, %v7558_v19  ;;  %7561 = vrcp.f32 %v2513_v42 }
 0x7c3   :  { %3195 = vrot.lane.b32.xlu1 %v9209_v0, %s7803_s25  ;;  %v9249_v53 = vpop.permute.xlu1 %3532  ;;  %v2510_v45 = vadd.f32 1.0, %v7560_v55  ;;  %v6595_v55 = vmul.f32 -1.442695, %v2379_v52 }
 0x7c4   :  { %13218 = vst [vmem:[#allocation90_spill] sm:$0xff] %v9249_v53  ;;  %7563 = vrcp.f32 %v2511_v23  ;;  %v2306_v23 = vadd.f32 %v9145_v14, %v9101_v1 }
 0x7c5   :  { %7565 = vrcp.f32 %v2510_v45 }
 0x7c6   :  { %3867 = vrot.lane.b32.xlu0 %v9209_v0, %s7804_s26  ;;  %7567 = vpow2.f32 %v6595_v55 }
 0x7c7   :  { %3419 = vrot.lane.b32.xlu1 %v9209_v0, %s7802_s24  ;;  %v9257_v46 = vpop.permute.xlu1 %4424 }
 0x7c8   :  { %13219 = vst [vmem:[#allocation91_spill] sm:$0xff] %v9257_v46  ;;  %v6593_v46 = vmul.f32 -1.442695, %v2306_v23 }
 0x7ca   :  { %2731 = vrot.lane.b32.xlu0 %v9243_v58, %s7800_s22  ;;  %7569 = vpow2.f32 %v6593_v46 }
 0x7cb   :  { %3611 = vrot.lane.b32.xlu1 %v9207_v38, %s7805_s27  ;;  %v9267_v19 = vpop.permute.xlu1 %2675 }
 0x7cc   :  { %v7562_v42 = vpop.eup %7561  ;;  %13220 = vst [vmem:[#allocation92_spill] sm:$0xff] %v9267_v19 }
 0x7cd   :  { %v9275_v44 = vmul.f32 %v7562_v42, %v2377_v36 }
 0x7ce   :  { %3179 = vrot.lane.b32.xlu0 %v9243_v58, %s7803_s25  ;;  %v7564_v45 = vpop.eup %7563 }
 0x7cf   :  { %3835 = vrot.lane.b32.xlu1 %v9207_v38, %s7804_s26  ;;  %v9277_v53 = vpop.permute.xlu1 %2868  ;;  %v7566_v3 = vpop.eup %7565  ;;  %v9283_v1 = vmul.f32 %v7564_v45, %v2304_v22 }
 0x7d0   :  { %13221 = vst [vmem:[#allocation93_spill] sm:$0xff] %v9277_v53  ;;  %v9285_v14 = vmul.f32 %v7566_v3, %v2375_v5  ;;  %v7568_v22 = vpop.eup %7567 }
 0x7d1   :  { %v2514_v5 = vadd.f32 1.0, %v7568_v22 }
 0x7d2   :  { %3403 = vrot.lane.b32.xlu0 %v9243_v58, %s7802_s24 }
 0x7d3   :  { %4091 = vrot.lane.b32.xlu1 %v9209_v0, %s7807_s29  ;;  %v9291_v36 = vpop.permute.xlu1 %2872  ;;  %7571 = vrcp.f32 %v2514_v5  ;;  %v9319_v5 = vpop.permute.xlu0 %2205 }
 0x7d4   :  { %13222 = vst [vmem:[#allocation94_spill] sm:$0xff] %v9291_v36  ;;  %v7570_v3 = vpop.eup %7569  ;;  %v2310_v19 = vadd.f32 %v9151_v28, %v9319_v5 }
 0x7d5   :  { %v2512_v55 = vadd.f32 1.0, %v7570_v3 }
 0x7d6   :  { %3627 = vrot.lane.b32.xlu0 %v9243_v58, %s7805_s27 }
 0x7d7   :  { %4059 = vrot.lane.b32.xlu1 %v9207_v38, %s7807_s29  ;;  %v9297_v42 = vpop.permute.xlu1 %3760  ;;  %7573 = vrcp.f32 %v2512_v55 }
 0x7d8   :  { %13223 = vst [vmem:[#allocation95_spill] sm:$0xff] %v9297_v42  ;;  %v6596_v42 = vmul.f32 -1.442695, %v2310_v19 }
 0x7da   :  { %3851 = vrot.lane.b32.xlu0 %v9243_v58, %s7804_s26 }
 0x7db   :  { %4315 = vrot.lane.b32.xlu1 %v9209_v0, %s7806_s28  ;;  %v9303_v46 = vpop.permute.xlu1 %3092 }
 0x7dc   :  { %13224 = vst [vmem:[#allocation96_spill] sm:$0xff] %v9303_v46  ;;  %v2383_v46 = vadd.f32 %v9153_v51, %v9319_v5 }
 0x7dd   :  { %v7572_v22 = vpop.eup %7571 }
 0x7de   :  { %2749 = vrot.lane.b32.xlu0 %v9275_v44, %s7800_s22  ;;  %v9329_v55 = vmul.f32 %v7572_v22, %v2379_v52 }
 0x7df   :  { %4283 = vrot.lane.b32.xlu1 %v9207_v38, %s7806_s28  ;;  %v9313_v45 = vpop.permute.xlu1 %3984 }
 0x7e0   :  { %13225 = vst [vmem:[#allocation97_spill] sm:$0xff] %v9313_v45  ;;  %13227 = vst [vmem:[#allocation99_spill] sm:$0xff] %v9329_v55  ;;  %v6598_v45 = vmul.f32 -1.442695, %v2383_v46 }
 0x7e1   :  { %v7574_v53 = vpop.eup %7573 }
 0x7e2   :  { %2941 = vrot.lane.b32.xlu0 %v9283_v1, %s7801_s23  ;;  %7575 = vpow2.f32 %v6598_v45 }
 0x7e3   :  { %2763 = vrot.lane.b32.xlu1 %v9285_v14, %s7800_s22  ;;  %v9321_v3 = vpop.permute.xlu1 %3316  ;;  %7577 = vpow2.f32 %v6596_v42 }
 0x7e4   :  { %13226 = vst [vmem:[#allocation98_spill] sm:$0xff] %v9321_v3  ;;  %v9339_v3 = vmul.f32 %v7574_v53, %v2306_v23  ;;  %v9359_v23 = vadd.f32 %v9158_v4, %v9319_v5 }
 0x7e6   :  { %3613 = vrot.lane.b32.xlu0 %v9283_v1, %s7805_s27 }
 0x7e7   :  { %2955 = vrot.lane.b32.xlu1 %v9243_v58, %s7801_s23  ;;  %v9337_v51 = vpop.permute.xlu1 %4208 }
 0x7e8   :  { %13228 = vst [vmem:[#allocation100_spill] sm:$0xff] %v9337_v51  ;;  %v6597_v51 = vmul.f32 -1.442695, %v9359_v23 }
 0x7ea   :  { %3837 = vrot.lane.b32.xlu0 %v9283_v1, %s7804_s26 }
 0x7eb   :  { %2987 = vrot.lane.b32.xlu1 %v9285_v14, %s7801_s23  ;;  %v9345_v28 = vpop.permute.xlu1 %3540 }
 0x7ec   :  { %13229 = vst [vmem:[#allocation101_spill] sm:$0xff] %v9345_v28  ;;  %v7576_v52 = vpop.eup %7575  ;;  %v9367_v28 = vpop.permute.xlu0 %2215 }
 0x7ed   :  { %v2517_v42 = vadd.f32 1.0, %v7576_v52  ;;  %v7578_v45 = vpop.eup %7577  ;;  %13232 = vst [vmem:[#allocation104_spill] sm:$0xff] %v9367_v28 }
 0x7ee   :  { %4093 = vrot.lane.b32.xlu0 %v9275_v44, %s7807_s29  ;;  %v2515_v36 = vadd.f32 1.0, %v7578_v45 }
 0x7ef   :  { %3211 = vrot.lane.b32.xlu1 %v9285_v14, %s7803_s25  ;;  %v9355_v53 = vpop.permute.xlu1 %4432  ;;  %7579 = vrcp.f32 %v2517_v42 }
 0x7f0   :  { %13230 = vst [vmem:[#allocation102_spill] sm:$0xff] %v9355_v53  ;;  %7581 = vpow2.f32 %v6597_v51  ;;  %v9380_v52 = vpop.permute.xlu0 %2225 }
 0x7f1   :  { %7583 = vrcp.f32 %v2515_v36  ;;  %13234 = vst [vmem:[#allocation106_spill] sm:$0xff] %v9380_v52  ;;  %v9392_v36 = vadd.f32 %v9162_v26, %v9103_v21 }
 0x7f2   :  { %4061 = vrot.lane.b32.xlu0 %v9283_v1, %s7807_s29 }
 0x7f3   :  { %3435 = vrot.lane.b32.xlu1 %v9285_v14, %s7802_s24  ;;  %v9365_v22 = vpop.permute.xlu1 %3764  ;;  %v6600_v32 = vmul.f32 -1.442695, %v9392_v36 }
 0x7f4   :  { %13231 = vst [vmem:[#allocation103_spill] sm:$0xff] %v9365_v22  ;;  %v9388_v51 = vpop.permute.xlu0 %2848 }
 0x7f5   :  { %13236 = vst [vmem:[#allocation108_spill] sm:$0xff] %v9388_v51  ;;  %7585 = vpow2.f32 %v6600_v32 }
 0x7f6   :  { %4317 = vrot.lane.b32.xlu0 %v9275_v44, %s7806_s28 }
 0x7f7   :  { %3659 = vrot.lane.b32.xlu1 %v9285_v14, %s7805_s27  ;;  %v9378_v4 = vpop.permute.xlu1 %3992 }
 0x7f8   :  { %13233 = vst [vmem:[#allocation105_spill] sm:$0xff] %v9378_v4  ;;  %v9411_v17 = vpop.permute.xlu0 %2856 }
 0x7f9   :  { %v7580_v42 = vpop.eup %7579  ;;  %13239 = vst [vmem:[#allocation111_spill] sm:$0xff] %v9411_v17 }
 0x7fa   :  { %4285 = vrot.lane.b32.xlu0 %v9283_v1, %s7806_s28  ;;  %v7582_v4 = vpop.eup %7581  ;;  %v9398_v22 = vmul.f32 %v7580_v42, %v2383_v46 }
 0x7fb   :  { %3883 = vrot.lane.b32.xlu1 %v9285_v14, %s7804_s26  ;;  %v9386_v45 = vpop.permute.xlu1 %4212  ;;  %v7584_v53 = vpop.eup %7583  ;;  %v2516_v26 = vadd.f32 1.0, %v7582_v4 }
 0x7fc   :  { %13235 = vst [vmem:[#allocation107_spill] sm:$0xff] %v9386_v45  ;;  %13237 = vst [vmem:[#allocation109_spill] sm:$0xff] %v9398_v22  ;;  %v9403_v45 = vadd.f32 %v9164_v20, %v9103_v21  ;;  %v9413_v46 = vmul.f32 %v7584_v53, %v2310_v19  ;;  %v9441_v53 = vadd.f32 %v9166_v47, %v9103_v21 }
 0x7fd   :  { %7587 = vrcp.f32 %v2516_v26  ;;  %v9445_v26 = vadd.f32 %v9168_v50, %v9103_v21 }
 0x7fe   :  { %2765 = vrot.lane.b32.xlu0 %v9329_v55, %s7800_s22  ;;  %13240 = vst [vmem:[#allocation112_spill] sm:$0xff] %v9413_v46  ;;  %v6602_v42 = vmul.f32 -1.442695, %v9403_v45  ;;  %v9456_v52 = vmul.f32 -1.442695, %v9441_v53 }
 0x7ff   :  { %4075 = vrot.lane.b32.xlu1 %v9243_v58, %s7807_s29  ;;  %v9409_v61 = vpop.permute.xlu1 %4440  ;;  %v9459_v21 = vmul.f32 -1.442695, %v9445_v26 }
 0x800   :  { %13238 = vst [vmem:[#allocation110_spill] sm:$0xff] %v9409_v61  ;;  %7589 = vpow2.f32 %v6602_v42  ;;  %v7586_v42 = vpop.eup %7585 }
 0x801   :  { %v2519_v47 = vadd.f32 1.0, %v7586_v42 }
 0x802   :  { %2957 = vrot.lane.b32.xlu0 %v9339_v3, %s7801_s23 }
 0x803   :  { %4107 = vrot.lane.b32.xlu1 %v9285_v14, %s7807_s29  ;;  %7591 = vrcp.f32 %v2519_v47  ;;  %v7433_v47 = vld [vmem:[%s9437_s11 + $0xd0] sm:$0xff]  }
 0x804   :  { %6864 = vmatprep.subr.bf16.mxu1 %v7433_v47  ;;  %v7439_v47 = vld [vmem:[%s9437_s11 + $0x58] sm:$0xff]  }
 0x806   :  { %3213 = vrot.lane.b32.xlu0 %v9329_v55, %s7803_s25 }
 0x807   :  { %4299 = vrot.lane.b32.xlu1 %v9243_v58, %s7806_s28  ;;  %v7588_v17 = vpop.eup %7587 }
 0x808   :  { %v9464_v51 = vmul.f32 %v7588_v17, %v9359_v23  ;;  %v7428_v17 = vld [vmem:[%s9437_s11] sm:$0xff]  }
 0x809   :  { %6821 = vmatpush3.bf16.msra.mxu0 %v7428_v17  ;;  %v7434_v17 = vld [vmem:[%s9437_s11 + $0x90] sm:$0xff]  }
 0x80a   :  { %3437 = vrot.lane.b32.xlu0 %v9329_v55, %s7802_s24  ;;  %v7590_v50 = vpop.eup %7589  ;;  %13241 = vst [vmem:[#allocation113_spill] sm:$0xff] %v9464_v51  ;;  %6822 = vmatprep.subr.bf16.mxu0 %v7431_v6  ;;  %v7437_v6 = vld [vmem:[%s9437_s11 + $0xd8] sm:$0xff]  }
 0x80b   :  { %4331 = vrot.lane.b32.xlu1 %v9285_v14, %s7806_s28  ;;  %v2521_v31 = vadd.f32 1.0, %v7590_v50  ;;  %6865 = vmatpush3.bf16.msra.mxu1 %v7434_v17  ;;  %v7440_v17 = vld [vmem:[%s9437_s11 + $0x18] sm:$0xff]  }
 0x80c   :  { %6866 = vmatprep.subr.bf16.mxu1 %v7437_v6  ;;  %v7443_v6 = vld [vmem:[%s9437_s11 + $0x60] sm:$0xff]  }
 0x80d   :  { %7593 = vrcp.f32 %v2521_v31  ;;  %6823 = vmatpush3.bf16.msra.mxu0 %v7432_v2  ;;  %v7436_v31 = vld [vmem:[%s9437_s11 + $0x10] sm:$0xff]  }
 0x80e   :  { %3885 = vrot.lane.b32.xlu0 %v9329_v55, %s7804_s26  ;;  %6824 = vmatprep.subr.bf16.mxu0 %v7435_v30  ;;  %7595 = vpow2.f32 %v9456_v52  ;;  %v7450_v52 = vld [vmem:[%s9437_s11 + $0xb0] sm:$0xff]  }
 0x80f   :  { %2717 = vrot.lane.b32.xlu1 %v9283_v1, %s7800_s22  ;;  %6867 = vmatpush3.bf16.msra.mxu1 %v7438_v7  ;;  %v7444_v7 = vld [vmem:[%s9437_s11 + $0x20] sm:$0xff]   ;;  %7597 = vpow2.f32 %v9459_v21  ;;  %v7454_v21 = vld [vmem:[%s9437_s11 + $0xb8] sm:$0xff]  }
 0x811   :  { %6825 = vmatpush3.bf16.msra.mxu0 %v7436_v31  ;;  %v7441_v31 = vld [vmem:[%s9437_s11 + $0xe0] sm:$0xff]  }
 0x812   :  { %4077 = vrot.lane.b32.xlu0 %v9339_v3, %s7807_s29  ;;  %6826 = vmatprep.subr.bf16.mxu0 %v7439_v47  ;;  %v7445_v47 = vld [vmem:[%s9437_s11 + $0xe8] sm:$0xff]  }
 0x813   :  { %2973 = vrot.lane.b32.xlu1 %v9275_v44, %s7801_s23  ;;  %6868 = vmatprep.subr.bf16.mxu1 %v7441_v31  ;;  %v7446_v31 = vld [vmem:[%s9437_s11 + $0xa8] sm:$0xff]  }
 0x814   :  { %6869 = vmatpush3.bf16.msra.mxu1 %v7442_v48  ;;  %v7448_v48 = vld [vmem:[%s9437_s11 + $0x28] sm:$0xff]  }
 0x815   :  { %6827 = vmatpush3.bf16.msra.mxu0 %v7440_v17  ;;  %6870 = vmatprep.subr.bf16.mxu1 %v7445_v47  ;;  %v7451_v47 = vld [vmem:[%s9437_s11 + $0x70] sm:$0xff]  }
 0x816   :  { %4109 = vrot.lane.b32.xlu0 %v9329_v55, %s7807_s29  ;;  %6828 = vmatprep.subr.bf16.mxu0 %v7443_v6  ;;  %v7449_v6 = vld [vmem:[%s9437_s11 + $0xf0] sm:$0xff]  }
 0x817   :  { %3165 = vrot.lane.b32.xlu1 %v9283_v1, %s7803_s25 }
 0x818   :  { %6871 = vmatpush3.bf16.msra.mxu1 %v7446_v31  ;;  %v7452_v31 = vld [vmem:[%s9437_s11 + $0x30] sm:$0xff]  }
 0x819   :  { %6829 = vmatpush3.bf16.msra.mxu0 %v7444_v7  ;;  %6872 = vmatprep.subr.bf16.mxu1 %v7449_v6  ;;  %v7455_v6 = vld [vmem:[%s9437_s11 + $0x78] sm:$0xff]  }
 0x81a   :  { %4301 = vrot.lane.b32.xlu0 %v9339_v3, %s7806_s28 }
 0x81b   :  { %3197 = vrot.lane.b32.xlu1 %v9275_v44, %s7803_s25 }
 0x81c   :  { %6873 = vmatpush3.bf16.msra.mxu1 %v7450_v52 }
 0x81e   :  { %4333 = vrot.lane.b32.xlu0 %v9329_v55, %s7806_s28 }
 0x81f   :  { %3389 = vrot.lane.b32.xlu1 %v9283_v1, %s7802_s24 }
 0x822   :  { %2975 = vrot.lane.b32.xlu0 %v9398_v22, %s7801_s23 }
 0x823   :  { %3421 = vrot.lane.b32.xlu1 %v9275_v44, %s7802_s24 }
 0x826   :  { %3167 = vrot.lane.b32.xlu0 %v9413_v46, %s7803_s25 }
 0x827   :  { %3645 = vrot.lane.b32.xlu1 %v9275_v44, %s7805_s27 }
 0x828   :  { %v9420_v20 = vpop.permute.xlu0 %2715 }
 0x829   :  { %v9422_v4 = vpop.permute.xlu1 %2747 }
 0x82a   :  { %3391 = vrot.lane.b32.xlu0 %v9413_v46, %s7802_s24 }
 0x82b   :  { %3869 = vrot.lane.b32.xlu1 %v9275_v44, %s7804_s26 }
 0x82c   :  { %v9428_v32 = vpop.permute.xlu0 %3163 }
 0x82d   :  { %v9430_v19 = vpop.permute.xlu1 %2939 }
 0x82e   :  { %3647 = vrot.lane.b32.xlu0 %v9398_v22, %s7805_s27 }
 0x82f   :  { %2733 = vrot.lane.b32.xlu1 %v9339_v3, %s7800_s22 }
 0x830   :  { %v9449_v61 = vpop.permute.xlu0 %3387 }
 0x831   :  { %v9451_v29 = vpop.permute.xlu1 %2971 }
 0x832   :  { %3871 = vrot.lane.b32.xlu0 %v9398_v22, %s7804_s26 }
 0x833   :  { %2989 = vrot.lane.b32.xlu1 %v9329_v55, %s7801_s23 }
 0x834   :  { %v9466_v15 = vpop.permute.xlu0 %3643 }
 0x835   :  { %13242 = vst [vmem:[#allocation114_spill] sm:$0xff] %v9466_v15  ;;  %v9469_v42 = vpop.permute.xlu1 %3195 }
 0x836   :  { %3183 = vrot.lane.b32.xlu0 %v9464_v51, %s7803_s25 }
 0x837   :  { %3181 = vrot.lane.b32.xlu1 %v9339_v3, %s7803_s25 }
 0x838   :  { %v9478_v23 = vpop.permute.xlu0 %3867 }
 0x839   :  { %13243 = vst [vmem:[#allocation115_spill] sm:$0xff] %v9478_v23  ;;  %v9481_v18 = vpop.permute.xlu1 %3419  ;;  %v7592_v23 = vpop.eup %7591 }
 0x83a   :  { %13244 = vst [vmem:[#allocation116_spill] sm:$0xff] %v9481_v18  ;;  %3407 = vrot.lane.b32.xlu0 %v9464_v51, %s7802_s24  ;;  %v9515_v30 = vmul.f32 %v7592_v23, %v9392_v36  ;;  %v7594_v15 = vpop.eup %7593 }
 0x83b   :  { %3405 = vrot.lane.b32.xlu1 %v9339_v3, %s7802_s24  ;;  %v9530_v36 = vmul.f32 %v7594_v15, %v9403_v45  ;;  %v7447_v15 = vld [vmem:[%s9437_s11 + $0x68] sm:$0xff]   ;;  %v7596_v52 = vpop.eup %7595 }
 0x83c   :  { %v9490_v54 = vpop.permute.xlu0 %2731  ;;  %13246 = vst [vmem:[#allocation118_spill] sm:$0xff] %v9515_v30  ;;  %6830 = vmatprep.subr.bf16.mxu0 %v7447_v15 }
 0x83d   :  { %v9493_v50 = vpop.permute.xlu1 %3611  ;;  %13249 = vst [vmem:[#allocation121_spill] sm:$0xff] %v9530_v36  ;;  %6831 = vmatpush3.bf16.msra.mxu0 %v7448_v48 }
 0x83e   :  { %13245 = vst [vmem:[#allocation117_spill] sm:$0xff] %v9493_v50  ;;  %3631 = vrot.lane.b32.xlu0 %v9464_v51, %s7805_s27  ;;  %6832 = vmatprep.subr.bf16.mxu0 %v7451_v47 }
 0x83f   :  { %3629 = vrot.lane.b32.xlu1 %v9339_v3, %s7805_s27 }
 0x840   :  { %v9502_v8 = vpop.permute.xlu0 %3179 }
 0x841   :  { %v9505_v2 = vpop.permute.xlu1 %3835  ;;  %6833 = vmatpush3.bf16.msra.mxu0 %v7452_v31 }
 0x842   :  { %3855 = vrot.lane.b32.xlu0 %v9464_v51, %s7804_s26  ;;  %6834 = vmatprep.subr.bf16.mxu0 %v7455_v6 }
 0x843   :  { %3661 = vrot.lane.b32.xlu1 %v9329_v55, %s7805_s27 }
 0x844   :  { %v9517_v41 = vpop.permute.xlu0 %3403 }
 0x845   :  { %13247 = vst [vmem:[#allocation119_spill] sm:$0xff] %v9517_v41  ;;  %v9520_v18 = vpop.permute.xlu1 %4091 }
 0x846   :  { %13248 = vst [vmem:[#allocation120_spill] sm:$0xff] %v9520_v18  ;;  %2721 = vrot.lane.b32.xlu0 %v9515_v30, %s7800_s22  ;;  %v9566_v18 = vadd.f32 %v9160_v11, %v9319_v5  ;;  %v2520_v5 = vadd.f32 1.0, %v7596_v52  ;;  %v13258_v52 = vld [vmem:[#allocation28_spill] sm:$0xff] }
 0x847   :  { %3853 = vrot.lane.b32.xlu1 %v9339_v3, %s7804_s26 }
 0x848   :  { %v9532_v23 = vpop.permute.xlu0 %3627  ;;  %v6599_v11 = vmul.f32 -1.442695, %v9566_v18 }
 0x849   :  { %v9535_v17 = vpop.permute.xlu1 %4059 }
 0x84a   :  { %13250 = vst [vmem:[#allocation122_spill] sm:$0xff] %v9535_v17  ;;  %2753 = vrot.lane.b32.xlu0 %v9530_v36, %s7800_s22  ;;  %7599 = vpow2.f32 %v6599_v11 }
 0x84b   :  { %2719 = vrot.lane.b32.xlu1 %v9413_v46, %s7800_s22  ;;  %7601 = vrcp.f32 %v2520_v5  ;;  %v13260_v5 = vld [vmem:[#allocation36_spill] sm:$0xff] }
 0x84c   :  { %v9545_v45 = vpop.permute.xlu0 %3851 }
 0x84d   :  { %v9548_v7 = vpop.permute.xlu1 %4315 }
 0x84e   :  { %13251 = vst [vmem:[#allocation123_spill] sm:$0xff] %v9548_v7  ;;  %2945 = vrot.lane.b32.xlu0 %v9515_v30, %s7801_s23  ;;  %v7453_v7 = vld [vmem:[%s9437_s11 + $0xf8] sm:$0xff]  }
 0x84f   :  { %2751 = vrot.lane.b32.xlu1 %v9398_v22, %s7800_s22  ;;  %6874 = vmatprep.subr.bf16.mxu1 %v7453_v7  ;;  %v7598_v7 = vpop.eup %7597 }
 0x850   :  { %v9558_v15 = vpop.permute.xlu0 %2749  ;;  %6875 = vmatpush3.bf16.msra.mxu1 %v7454_v21  ;;  %v2522_v21 = vadd.f32 1.0, %v7598_v7 }
 0x851   :  { %13252 = vst [vmem:[#allocation124_spill] sm:$0xff] %v9558_v15  ;;  %v9561_v48 = vpop.permute.xlu1 %4283  ;;  %v7456_v15 = vld [vmem:[%s9437_s11 + $0x38] sm:$0xff]  }
 0x852   :  { %13253 = vst [vmem:[#allocation125_spill] sm:$0xff] %v9561_v48  ;;  %3617 = vrot.lane.b32.xlu0 %v9515_v30, %s7805_s27  ;;  %6835 = vmatpush3.bf16.msra.mxu0 %v7456_v15  ;;  %v13255_v48 = vmov 0.0|0.0   ;;  %7603 = vrcp.f32 %v2522_v21  ;;  %v2683_v21 = vmul.f32 %v8992_v37, %v9207_v38 }
 0x853   :  { %2943 = vrot.lane.b32.xlu1 %v9413_v46, %s7801_s23  ;;  %7275 = vmatprep.subr.bf16.mxu1 %v13255_v48 }
 0x854   :  { %v9574_v47 = vpop.permute.xlu0 %2941 }
 0x855   :  { %13254 = vst [vmem:[#allocation126_spill] sm:$0xff] %v9574_v47  ;;  %v9576_v31 = vpop.permute.xlu1 %2763 }
 0x856   :  { %3841 = vrot.lane.b32.xlu0 %v9515_v30, %s7804_s26  ;;  %v2803_v15 = vsel %vm404_vm1, %v9576_v31, %v9420_v20 }
 0x857   :  { %3199 = vrot.lane.b32.xlu1 %v9398_v22, %s7803_s25  ;;  %v2811_v48 = vmul.f32 %v2803_v15, %v13258_v52 }
 0x858   :  { %v9584_v17 = vpop.permute.xlu0 %3613 }
 0x859   :  { %13256 = vst [vmem:[#allocation127_spill] sm:$0xff] %v9584_v17  ;;  %v9586_v47 = vpop.permute.xlu1 %2955  ;;  %v2875_v15 = vmul.f32 %v9111_v43, %v2811_v48  ;;  %v7600_v48 = vpop.eup %7599 }
 0x85a   :  { %4097 = vrot.lane.b32.xlu0 %v9530_v36, %s7807_s29 }
 0x85b   :  { %3423 = vrot.lane.b32.xlu1 %v9398_v22, %s7802_s24 }
 0x85c   :  { %v9596_v6 = vpop.permute.xlu0 %3837 }
 0x85d   :  { %13257 = vst [vmem:[#allocation128_spill] sm:$0xff] %v9596_v6  ;;  %v9599_v17 = vpop.permute.xlu1 %2987 }
 0x85e   :  { %13259 = vst [vmem:[#allocation129_spill] sm:$0xff] %v9599_v17  ;;  %v3027_v11 = vsel %vm483_vm2, %v9599_v17, %v9430_v19  ;;  %4065 = vrot.lane.b32.xlu0 %v9515_v30, %s7807_s29  ;;  %v7602_v17 = vpop.eup %7601 }
 0x85f   :  { %v3035_v7 = vmul.f32 %v3027_v11, %v13260_v5  ;;  %3615 = vrot.lane.b32.xlu1 %v9413_v46, %s7805_s27 }
 0x860   :  { %v9610_v55 = vpop.permute.xlu0 %4093 }
 0x861   :  { %13261 = vst [vmem:[#allocation130_spill] sm:$0xff] %v9610_v55  ;;  %v9613_v6 = vpop.permute.xlu1 %3211  ;;  %v3099_v11 = vmul.f32 %v9113_v34, %v3035_v7  ;;  %v3691_v55 = vsel %vm723_vm5, %v9493_v50, %v9532_v23 }
 0x862   :  { %13262 = vst [vmem:[#allocation131_spill] sm:$0xff] %v9613_v6  ;;  %v3251_v52 = vsel %vm563_vm3, %v9613_v6, %v9428_v32  ;;  %4321 = vrot.lane.b32.xlu0 %v9530_v36, %s7806_s28  ;;  %v2907_v36 = vadd.f32 %v2875_v15, %v2683_v21  ;;  %v3707_v7 = vmul.f32 %v3691_v55, %v8307_v33  ;;  %v2518_v21 = vadd.f32 1.0, %v7600_v48 }
 0x863   :  { %v3259_v5 = vmul.f32 %v3251_v52, %v8286_v57  ;;  %3839 = vrot.lane.b32.xlu1 %v9413_v46, %s7804_s26  ;;  %v3915_v57 = vsel %vm803_vm6, %v9505_v2, %v9545_v45 }
 0x864   :  { %v9631_v6 = vpop.permute.xlu0 %4061  ;;  %v3131_v15 = vadd.f32 %v3099_v11, %v2907_v36  ;;  %v9660_v36 = vadd.f32 %v9173_v40, %v9367_v28  ;;  %v3931_v11 = vmul.f32 %v3915_v57, %v8348_v25  ;;  %7605 = vrcp.f32 %v2518_v21 }
 0x865   :  { %13263 = vst [vmem:[#allocation132_spill] sm:$0xff] %v9631_v6  ;;  %v3323_v41 = vmul.f32 %v9022_v49, %v3259_v5  ;;  %v9634_v38 = vpop.permute.xlu1 %3435  ;;  %v9651_v6 = vmul.f32 %v7602_v17, %v9441_v53  ;;  %v9667_v53 = vadd.f32 %v9175_v59, %v9367_v28  ;;  %v3771_v17 = vmul.f32 %v9043_v35, %v3707_v7 }
 0x866   :  { %13264 = vst [vmem:[#allocation133_spill] sm:$0xff] %v9634_v38  ;;  %v3475_v52 = vsel %vm643_vm4, %v9634_v38, %v9449_v61  ;;  %4289 = vrot.lane.b32.xlu0 %v9515_v30, %s7806_s28  ;;  %v7604_v30 = vpop.eup %7603  ;;  %v3995_v59 = vmul.f32 %v9051_v10, %v3931_v11  ;;  %v9702_v21 = vadd.f32 %v9181_v24, %v9105_v62 }
 0x867   :  { %v3483_v5 = vmul.f32 %v3475_v52, %v8333_v12  ;;  %4095 = vrot.lane.b32.xlu1 %v9398_v22, %s7807_s29  ;;  %13265 = vst [vmem:[#allocation134_spill] sm:$0xff] %v9651_v6  ;;  %v3355_v38 = vadd.f32 %v3323_v41, %v3131_v15  ;;  %v9673_v48 = vmul.f32 %v7604_v30, %v9445_v26  ;;  %v6604_v15 = vmul.f32 -1.442695, %v9660_v36 }
 0x868   :  { %v9653_v50 = vpop.permute.xlu0 %4317  ;;  %13269 = vst [vmem:[#allocation138_spill] sm:$0xff] %v9702_v21  ;;  %v6608_v24 = vmul.f32 -1.442695, %v9702_v21  ;;  %v13275_v21 = vld [vmem:[#allocation26_spill] sm:$0xff] }
 0x869   :  { %13266 = vst [vmem:[#allocation135_spill] sm:$0xff] %v9653_v50  ;;  %v3547_v55 = vmul.f32 %v9119_v39, %v3483_v5  ;;  %v9656_v33 = vpop.permute.xlu1 %3659  ;;  %13267 = vst [vmem:[#allocation136_spill] sm:$0xff] %v9673_v48  ;;  %7607 = vpow2.f32 %v6604_v15  ;;  %v9696_v5 = vadd.f32 %v9177_v27, %v9367_v28 }
 0x86a   :  { %2737 = vrot.lane.b32.xlu0 %v9651_v6, %s7800_s22 }
 0x86b   :  { %v3579_v41 = vadd.f32 %v3547_v55, %v3355_v38  ;;  %4063 = vrot.lane.b32.xlu1 %v9413_v46, %s7807_s29  ;;  %v6606_v38 = vmul.f32 -1.442695, %v9667_v53  ;;  %v6605_v27 = vmul.f32 -1.442695, %v9696_v5 }
 0x86c   :  { %v9675_v40 = vpop.permute.xlu0 %4285 }
 0x86d   :  { %13268 = vst [vmem:[#allocation137_spill] sm:$0xff] %v9675_v40  ;;  %v3803_v57 = vadd.f32 %v3771_v17, %v3579_v41  ;;  %v9677_v52 = vpop.permute.xlu1 %3883  ;;  %7609 = vpow2.f32 %v6606_v38  ;;  %v9710_v41 = vadd.f32 %v9183_v63, %v9105_v62 }
 0x86e   :  { %2769 = vrot.lane.b32.xlu0 %v9673_v48, %s7800_s22  ;;  %v7606_v17 = vpop.eup %7605  ;;  %7611 = vpow2.f32 %v6605_v27 }
 0x86f   :  { %4319 = vrot.lane.b32.xlu1 %v9398_v22, %s7806_s28  ;;  %v9686_v7 = vadd.f32 %v3995_v59, %v3803_v57  ;;  %13270 = vst [vmem:[#allocation139_spill] sm:$0xff] %v9710_v41  ;;  %v9721_v15 = vmul.f32 %v7606_v17, %v9566_v18  ;;  %v6610_v63 = vmul.f32 -1.442695, %v9710_v41  ;;  %7613 = vpow2.f32 %v6608_v24 }
 0x870   :  { %v9688_v26 = vpop.permute.xlu0 %2765  ;;  %v2795_v17 = vsel %vm404_vm1, %v9420_v20, %v9490_v54 }
 0x871   :  { %v9690_v30 = vpop.permute.xlu1 %4075  ;;  %13272 = vst [vmem:[#allocation141_spill] sm:$0xff] %v9721_v15  ;;  %7615 = vpow2.f32 %v6610_v63  ;;  %v3019_v63 = vsel %vm483_vm2, %v9430_v19, %v9586_v47  ;;  %v2812_v25 = vmul.f32 %v2795_v17, %v13275_v21  ;;  %v9768_v17 = vadd.f32 %v9187_v9, %v9105_v62 }
 0x872   :  { %2961 = vrot.lane.b32.xlu0 %v9651_v6, %s7801_s23  ;;  %v3036_v20 = vmul.f32 %v3019_v63, %v13125_v56  ;;  %v3243_v9 = vsel %vm563_vm3, %v9428_v32, %v9502_v8 }
 0x873   :  { %4287 = vrot.lane.b32.xlu1 %v9413_v46, %s7806_s28  ;;  %v7608_v38 = vpop.eup %7607  ;;  %13277 = vst [vmem:[#allocation145_spill] sm:$0xff] %v9768_v17  ;;  %v2876_v63 = vmul.f32 %v9111_v43, %v2812_v25  ;;  %v9800_v17 = vmul.f32 %v9109_v13, %v9283_v1  ;;  %v9820_v1 = vmul.f32 %v9109_v13, %v9339_v3 }
 0x874   :  { %v9704_v55 = vpop.permute.xlu0 %2957  ;;  %v2523_v18 = vadd.f32 1.0, %v7608_v38  ;;  %v9752_v38 = vadd.f32 %v9185_v16, %v9105_v62 }
 0x875   :  { %v9706_v11 = vpop.permute.xlu1 %4107  ;;  %13280 = vst [vmem:[#allocation147_spill] sm:$0xff] %v9800_v17  ;;  %13282 = vst [vmem:[#allocation149_spill] sm:$0xff] %v9820_v1 }
 0x876   :  { %2993 = vrot.lane.b32.xlu0 %v9673_v48, %s7801_s23  ;;  %13274 = vst [vmem:[#allocation143_spill] sm:$0xff] %v9752_v38  ;;  %7617 = vrcp.f32 %v2523_v18  ;;  %v9773_v40 = vmul.f32 -1.442695, %v9752_v38  ;;  %v9789_v38 = vmul.f32 %v8992_v37, %v9285_v14 }
 0x877   :  { %2735 = vrot.lane.b32.xlu1 %v9464_v51, %s7800_s22  ;;  %v7610_v46 = vpop.eup %7609 }
 0x878   :  { %v9718_v57 = vpop.permute.xlu0 %3213  ;;  %v2525_v27 = vadd.f32 1.0, %v7610_v46  ;;  %v2787_v46 = vsel %vm404_vm1, %v9490_v54, %v9422_v4  ;;  %v7612_v16 = vpop.eup %7611  ;;  %13278 = vst [vmem:[#allocation146_spill] sm:$0xff] %v9773_v40  ;;  %v2685_v54 = vmul.f32 %v8992_v37, %v9209_v0  ;;  %v3011_v0 = vsel %vm483_vm2, %v9586_v47, %v9451_v29 }
 0x879   :  { %13271 = vst [vmem:[#allocation140_spill] sm:$0xff] %v9718_v57  ;;  %v9723_v59 = vpop.permute.xlu1 %4299  ;;  %v7614_v18 = vpop.eup %7613  ;;  %v3235_v47 = vsel %vm563_vm3, %v9502_v8, %v9469_v42  ;;  %v13285_v8 = vld [vmem:[#allocation33_spill] sm:$0xff] }
 0x87a   :  { %3217 = vrot.lane.b32.xlu0 %v9673_v48, %s7803_s25  ;;  %7619 = vrcp.f32 %v2525_v27  ;;  %v2684_v27 = vmul.f32 %v8992_v37, %v9243_v58  ;;  %v2524_v58 = vadd.f32 1.0, %v7612_v16  ;;  %v9806_v37 = vmul.f32 %v9109_v13, %v9275_v44  ;;  %v13283_v44 = vld [vmem:[#allocation30_spill] sm:$0xff]  ;;  %v13294_v57 = vld [vmem:[#allocation41_spill] sm:$0xff] }
 0x87b   :  { %2767 = vrot.lane.b32.xlu1 %v9721_v15, %s7800_s22  ;;  %v7616_v25 = vpop.eup %7615  ;;  %v2527_v14 = vadd.f32 1.0, %v7614_v18  ;;  %v13284_v18 = vld [vmem:[#allocation119_spill] sm:$0xff]  ;;  %v3037_v17 = vmul.f32 %v3011_v0, %v13285_v8 }
 0x87c   :  { %v9730_v22 = vpop.permute.xlu0 %3437  ;;  %13281 = vst [vmem:[#allocation148_spill] sm:$0xff] %v9806_v37  ;;  %v2908_v40 = vadd.f32 %v2876_v63, %v2684_v27  ;;  %v3260_v37 = vmul.f32 %v3243_v9, %v13283_v44  ;;  %v3467_v50 = vsel %vm643_vm4, %v9449_v61, %v13284_v18  ;;  %v13287_v27 = vld [vmem:[#allocation114_spill] sm:$0xff]  ;;  %7621 = vrcp.f32 %v2524_v58  ;;  %v13288_v61 = vld [vmem:[#allocation29_spill] sm:$0xff]  ;;  %v13291_v44 = vld [vmem:[#allocation31_spill] sm:$0xff] }
 0x87d   :  { %13273 = vst [vmem:[#allocation142_spill] sm:$0xff] %v9730_v22  ;;  %v9732_v28 = vpop.permute.xlu1 %4331  ;;  %v13279_v22 = vld [vmem:[#allocation27_spill] sm:$0xff]  ;;  %v3683_v63 = vsel %vm723_vm5, %v9532_v23, %v13287_v27  ;;  %7623 = vrcp.f32 %v2527_v14  ;;  %v3261_v21 = vmul.f32 %v3235_v47, %v13291_v44  ;;  %v3101_v14 = vmul.f32 %v9113_v34, %v3037_v17  ;;  %v13296_v47 = vld [vmem:[#allocation37_spill] sm:$0xff] }
 0x87e   :  { %3441 = vrot.lane.b32.xlu0 %v9673_v48, %s7802_s24  ;;  %v2813_v62 = vmul.f32 %v2787_v46, %v13279_v22  ;;  %v3100_v46 = vmul.f32 %v9113_v34, %v3036_v20  ;;  %v2779_v20 = vsel %vm404_vm1, %v9422_v4, %v9576_v31  ;;  %v2529_v4 = vadd.f32 1.0, %v7616_v25  ;;  %v13286_v22 = vld [vmem:[#allocation116_spill] sm:$0xff]  ;;  %v13289_v25 = vld [vmem:[#allocation129_spill] sm:$0xff]  ;;  %v13293_v8 = vld [vmem:[#allocation131_spill] sm:$0xff] }
 0x87f   :  { %2959 = vrot.lane.b32.xlu1 %v9464_v51, %s7801_s23  ;;  %v3459_v3 = vsel %vm643_vm4, %v13284_v18, %v13286_v22  ;;  %v2814_v9 = vmul.f32 %v2779_v20, %v13288_v61  ;;  %v3227_v58 = vsel %vm563_vm3, %v9469_v42, %v13293_v8  ;;  %v13297_v44 = vld [vmem:[#allocation99_spill] sm:$0xff]  ;;  %v13299_v17 = vld [vmem:[#allocation133_spill] sm:$0xff] }
 0x880   :  { %v9742_v24 = vpop.permute.xlu0 %3885  ;;  %v2877_v31 = vmul.f32 %v9111_v43, %v2813_v62  ;;  %v3132_v0 = vadd.f32 %v3100_v46, %v2908_v40  ;;  %v3003_v62 = vsel %vm483_vm2, %v9451_v29, %v13289_v25  ;;  %v7618_v18 = vpop.eup %7617  ;;  %v3324_v46 = vmul.f32 %v9022_v49, %v3260_v37  ;;  %v13295_v25 = vld [vmem:[#allocation39_spill] sm:$0xff] }
 0x881   :  { %v9748_v41 = vpop.permute.xlu1 %2717  ;;  %v3485_v29 = vmul.f32 %v3459_v3, %v13294_v57  ;;  %7625 = vrcp.f32 %v2529_v4  ;;  %v9865_v42 = vmul.f32 %v9109_v13, %v13297_v44  ;;  %v2878_v37 = vmul.f32 %v9111_v43, %v2814_v9  ;;  %v13298_v3 = vld [vmem:[#allocation35_spill] sm:$0xff] }
 0x882   :  { %3889 = vrot.lane.b32.xlu0 %v9673_v48, %s7804_s26  ;;  %v3356_v8 = vadd.f32 %v3324_v46, %v3132_v0  ;;  %v3451_v4 = vsel %vm643_vm4, %v13286_v22, %v13299_v17  ;;  %v3325_v44 = vmul.f32 %v9022_v49, %v3261_v21  ;;  %v3675_v22 = vsel %vm723_vm5, %v13287_v27, %v9656_v33  ;;  %v13309_v17 = vld [vmem:[#allocation49_spill] sm:$0xff] }
 0x883   :  { %2991 = vrot.lane.b32.xlu1 %v9721_v15, %s7801_s23  ;;  %v3549_v0 = vmul.f32 %v9119_v39, %v3485_v29  ;;  %v2910_v27 = vadd.f32 %v2878_v37, %v9789_v38 }
 0x884   :  { %v9764_v19 = vpop.permute.xlu0 %4077  ;;  %v7620_v40 = vpop.eup %7619 }
 0x885   :  { %13276 = vst [vmem:[#allocation144_spill] sm:$0xff] %v9764_v19  ;;  %v9770_v12 = vpop.permute.xlu1 %2973  ;;  %v13292_v19 = vld [vmem:[#allocation40_spill] sm:$0xff]  ;;  %v9881_v13 = vmul.f32 %v7620_v40, %v9667_v53  ;;  %v13304_v40 = vld [vmem:[#allocation117_spill] sm:$0xff] }
 0x886   :  { %4081 = vrot.lane.b32.xlu0 %v9651_v6, %s7807_s29  ;;  %v3484_v23 = vmul.f32 %v3467_v50, %v13292_v19  ;;  %v2909_v50 = vadd.f32 %v2877_v31, %v2685_v54  ;;  %v3038_v19 = vmul.f32 %v3003_v62, %v13296_v47  ;;  %v9878_v31 = vmul.f32 %v7618_v18, %v9660_v36  ;;  %v13302_v36 = vld [vmem:[#allocation115_spill] sm:$0xff]  ;;  %v13303_v18 = vld [vmem:[#allocation45_spill] sm:$0xff] }
 0x887   :  { %3215 = vrot.lane.b32.xlu1 %v9721_v15, %s7803_s25  ;;  %13301 = vst [vmem:[#allocation114_spill] sm:$0xff] %v9881_v13  ;;  %v3907_v53 = vsel %vm803_vm6, %v9545_v45, %v13302_v36 }
 0x888   :  { %v9802_v32 = vpop.permute.xlu0 %4109  ;;  %13300 = vst [vmem:[#allocation116_spill] sm:$0xff] %v9878_v31  ;;  %v3548_v43 = vmul.f32 %v9119_v39, %v3484_v23  ;;  %v3102_v21 = vmul.f32 %v9113_v34, %v3038_v19  ;;  %v3486_v23 = vmul.f32 %v3451_v4, %v13303_v18  ;;  %v3899_v34 = vsel %vm803_vm6, %v13302_v36, %v9677_v52  ;;  %v13306_v19 = vld [vmem:[#allocation42_spill] sm:$0xff] }
 0x889   :  { %v9816_v16 = vpop.permute.xlu1 %3165  ;;  %v3932_v4 = vmul.f32 %v3907_v53, %v13309_v17  ;;  %v13315_v53 = vld [vmem:[#allocation46_spill] sm:$0xff] }
 0x88a   :  { %4113 = vrot.lane.b32.xlu0 %v9673_v48, %s7807_s29  ;;  %v3580_v46 = vadd.f32 %v3548_v43, %v3356_v8 }
 0x88b   :  { %3439 = vrot.lane.b32.xlu1 %v9721_v15, %s7802_s24 }
 0x88c   :  { %v9846_v1 = vpop.permute.xlu0 %4301 }
 0x88d   :  { %13290 = vst [vmem:[#allocation119_spill] sm:$0xff] %v9846_v1  ;;  %v9854_v20 = vpop.permute.xlu1 %3197  ;;  %v3708_v1 = vmul.f32 %v3683_v63, %v13295_v25  ;;  %v3262_v63 = vmul.f32 %v3227_v58, %v13298_v3  ;;  %v3133_v58 = vadd.f32 %v3101_v14, %v2909_v50  ;;  %v3709_v14 = vmul.f32 %v3675_v22, %v13306_v19  ;;  %v13307_v50 = vld [vmem:[#allocation122_spill] sm:$0xff]  ;;  %v13310_v22 = vld [vmem:[#allocation43_spill] sm:$0xff] }
 0x88e   :  { %4305 = vrot.lane.b32.xlu0 %v9651_v6, %s7806_s28  ;;  %v4139_v38 = vsel %vm883_vm7, %v13307_v50, %v9690_v30  ;;  %v13313_v6 = vld [vmem:[#allocation52_spill] sm:$0xff]  ;;  %v13319_v25 = vld [vmem:[#allocation50_spill] sm:$0xff] }
 0x88f   :  { %3663 = vrot.lane.b32.xlu1 %v9721_v15, %s7805_s27  ;;  %v3772_v62 = vmul.f32 %v9043_v35, %v3708_v1  ;;  %v3699_v1 = vsel %vm723_vm5, %v9656_v33, %v13304_v40  ;;  %v3326_v29 = vmul.f32 %v9022_v49, %v3262_v63  ;;  %v3923_v33 = vsel %vm803_vm6, %v9677_v52, %v9505_v2  ;;  %v13308_v49 = vld [vmem:[#allocation124_spill] sm:$0xff]  ;;  %v7622_v63 = vpop.eup %7621 }
 0x890   :  { %v9875_v54 = vpop.permute.xlu0 %4333  ;;  %v2780_v37 = vsel %vm404_vm1, %v13308_v49, %v9688_v26  ;;  %v3357_v43 = vadd.f32 %v3325_v44, %v3133_v58  ;;  %v3710_v36 = vmul.f32 %v3699_v1, %v13310_v22  ;;  %v13311_v40 = vld [vmem:[#allocation120_spill] sm:$0xff]  ;;  %v9938_v52 = vpop.eup %7623  ;;  %v3933_v19 = vmul.f32 %v3899_v34, %v13313_v6  ;;  %v13314_v58 = vld [vmem:[#allocation53_spill] sm:$0xff] }
 0x891   :  { %v9885_v9 = vpop.permute.xlu1 %3389  ;;  %v4131_v2 = vsel %vm883_vm7, %v9690_v30, %v13311_v40  ;;  %13312 = vst [vmem:[#allocation131_spill] sm:$0xff] %v9938_v52  ;;  %v4123_v44 = vsel %vm883_vm7, %v13311_v40, %v9706_v11  ;;  %v3934_v30 = vmul.f32 %v3923_v33, %v13314_v58  ;;  %v4155_v1 = vmul.f32 %v4139_v38, %v13315_v53  ;;  %v13318_v40 = vld [vmem:[#allocation47_spill] sm:$0xff] }
 0x892   :  { %4337 = vrot.lane.b32.xlu0 %v9673_v48, %s7806_s28  ;;  %v3550_v48 = vmul.f32 %v9119_v39, %v3486_v23  ;;  %v2818_v17 = vmul.f32 %v2780_v37, %v13288_v61  ;;  %v4147_v39 = vsel %vm883_vm7, %v9706_v11, %v13307_v50  ;;  %v9957_v23 = vpop.eup %7625  ;;  %v3773_v34 = vmul.f32 %v9043_v35, %v3709_v14  ;;  %v13321_v50 = vld [vmem:[#allocation126_spill] sm:$0xff] }
 0x893   :  { %3887 = vrot.lane.b32.xlu1 %v9721_v15, %s7804_s26  ;;  %13317 = vst [vmem:[#allocation133_spill] sm:$0xff] %v9957_v23  ;;  %v4156_v52 = vmul.f32 %v4131_v2, %v13318_v40  ;;  %v3804_v33 = vadd.f32 %v3772_v62, %v3580_v46  ;;  %v3996_v38 = vmul.f32 %v9051_v10, %v3932_v4  ;;  %v13323_v4 = vld [vmem:[#allocation108_spill] sm:$0xff] }
 0x894   :  { %v9913_v45 = vpop.permute.xlu0 %2975  ;;  %v3581_v37 = vadd.f32 %v3549_v0, %v3357_v43  ;;  %v3774_v61 = vmul.f32 %v9043_v35, %v3710_v36  ;;  %v4157_v6 = vmul.f32 %v4123_v44, %v13319_v25  ;;  %v3020_v62 = vsel %vm483_vm2, %v13321_v50, %v9704_v55  ;;  %v13322_v0 = vld [vmem:[#allocation61_spill] sm:$0xff] }
 0x895   :  { %13305 = vst [vmem:[#allocation129_spill] sm:$0xff] %v9913_v45  ;;  %v9928_v8 = vpop.permute.xlu1 %3421  ;;  %v3134_v45 = vadd.f32 %v3102_v21, %v2910_v27  ;;  %v3998_v35 = vmul.f32 %v9051_v10, %v3934_v30  ;;  %v4219_v46 = vmul.f32 %v13322_v0, %v4155_v1  ;;  %v2882_v43 = vmul.f32 %v13323_v4, %v2818_v17 }
 0x896   :  { %2979 = vrot.lane.b32.xlu0 %v9881_v13, %s7801_s23  ;;  %v9986_v2 = vmul.f32 %v7622_v63, %v9696_v5  ;;  %v3805_v44 = vadd.f32 %v3773_v34, %v3581_v37  ;;  %v4221_v1 = vmul.f32 %v13322_v0, %v4157_v6  ;;  %v3040_v17 = vmul.f32 %v3020_v62, %v13125_v56  ;;  %v13328_v34 = vld [vmem:[#allocation54_spill] sm:$0xff]  ;;  %v13331_v62 = vld [vmem:[#allocation128_spill] sm:$0xff] }
 0x897   :  { %4079 = vrot.lane.b32.xlu1 %v9464_v51, %s7807_s29  ;;  %v3358_v27 = vadd.f32 %v3326_v29, %v3134_v45  ;;  %v3997_v29 = vmul.f32 %v9051_v10, %v3933_v19  ;;  %v13320_v45 = vld [vmem:[#allocation51_spill] sm:$0xff]  ;;  %v4028_v10 = vadd.f32 %v3996_v38, %v3804_v33  ;;  %v10008_v38 = vadd.f32 %v4219_v46, %v9686_v7  ;;  %v13332_v46 = vld [vmem:[#allocation8_spill] sm:$0xff] }
 0x898   :  { %v9955_v21 = vpop.permute.xlu0 %3167  ;;  %v4158_v14 = vmul.f32 %v4147_v39, %v13320_v45  ;;  %13326 = vst [vmem:[#allocation117_spill] sm:$0xff] %v9986_v2  ;;  %v4220_v39 = vmul.f32 %v13322_v0, %v4156_v52  ;;  %v13327_v52 = vld [vmem:[#allocation123_spill] sm:$0xff]  ;;  %v3924_v7 = vsel %vm803_vm6, %v9742_v24, %v13331_v62 }
 0x899   :  { %13316 = vst [vmem:[#allocation99_spill] sm:$0xff] %v9955_v21  ;;  %v9961_v22 = vpop.permute.xlu1 %3645  ;;  %v3582_v11 = vadd.f32 %v3550_v48, %v3358_v27  ;;  %v13324_v48 = vld [vmem:[#allocation125_spill] sm:$0xff]  ;;  %v2804_v21 = vsel %vm404_vm1, %v9688_v26, %v9748_v41  ;;  %v4029_v5 = vadd.f32 %v3997_v29, %v3805_v44  ;;  %v10011_v26 = vadd.f32 %v2882_v43, %v9865_v42  ;;  %v13330_v29 = vld [vmem:[#allocation28_spill] sm:$0xff] }
 0x89a   :  { %3171 = vrot.lane.b32.xlu0 %v9878_v31, %s7803_s25  ;;  %v4363_v19 = vsel %vm963_vm8, %v13324_v48, %v9723_v59  ;;  %v4222_v63 = vmul.f32 %v13322_v0, %v4158_v14  ;;  %v4347_v37 = vsel %vm963_vm8, %v13327_v52, %v9732_v28  ;;  %v2815_v14 = vmul.f32 %v2804_v21, %v13330_v29  ;;  %v13334_v21 = vld [vmem:[#allocation65_spill] sm:$0xff] }
 0x89b   :  { %4111 = vrot.lane.b32.xlu1 %v9721_v15, %s7807_s29  ;;  %v3806_v30 = vadd.f32 %v3774_v61, %v3582_v11  ;;  %v4355_v61 = vsel %vm963_vm8, %v9723_v59, %v13327_v52  ;;  %v4379_v6 = vmul.f32 %v4363_v19, %v13328_v34  ;;  %v4371_v59 = vsel %vm963_vm8, %v9732_v28, %v13324_v48  ;;  %v13333_v19 = vld [vmem:[#allocation55_spill] sm:$0xff] }
 0x89c   :  { %v9983_v36 = vpop.permute.xlu0 %3391  ;;  %v10030_v0 = vadd.f32 %v4221_v1, %v4029_v5  ;;  %v10033_v43 = vmul.f32 %v13332_v46, %v3040_v17  ;;  %v4380_v44 = vmul.f32 %v4355_v61, %v13333_v19  ;;  %v3012_v28 = vsel %vm483_vm2, %v9704_v55, %v9770_v12  ;;  %v13337_v5 = vld [vmem:[#allocation57_spill] sm:$0xff]  ;;  %v13338_v61 = vld [vmem:[#allocation140_spill] sm:$0xff] }
 0x89d   :  { %13325 = vst [vmem:[#allocation115_spill] sm:$0xff] %v9983_v36  ;;  %v9989_v27 = vpop.permute.xlu1 %3869  ;;  %v4030_v33 = vadd.f32 %v3998_v35, %v3806_v30  ;;  %v10028_v35 = vadd.f32 %v4220_v39, %v4028_v10  ;;  %v10043_v48 = vmul.f32 %v13334_v21, %v4379_v6  ;;  %v13335_v39 = vld [vmem:[#allocation56_spill] sm:$0xff]  ;;  %v13336_v30 = vld [vmem:[#allocation130_spill] sm:$0xff]  ;;  %v4382_v55 = vmul.f32 %v4371_v59, %v13337_v5 }
 0x89e   :  { %3395 = vrot.lane.b32.xlu0 %v9878_v31, %s7802_s24  ;;  %v4381_v10 = vmul.f32 %v4347_v37, %v13335_v39  ;;  %v4124_v1 = vsel %vm883_vm7, %v13336_v30, %v9802_v32  ;;  %v3938_v52 = vmul.f32 %v3924_v7, %v13314_v58  ;;  %v3252_v6 = vsel %vm563_vm3, %v13338_v61, %v9816_v16  ;;  %v13339_v37 = vld [vmem:[#allocation132_spill] sm:$0xff] }
 0x89f   :  { %4303 = vrot.lane.b32.xlu1 %v9464_v51, %s7806_s28  ;;  %v10052_v17 = vadd.f32 %v4222_v63, %v4030_v33  ;;  %v4148_v29 = vsel %vm883_vm7, %v9802_v32, %v13339_v37  ;;  %v13341_v63 = vld [vmem:[#allocation33_spill] sm:$0xff]  ;;  %v13342_v59 = vld [vmem:[#allocation144_spill] sm:$0xff] }
 0x8a0   :  { %v10017_v11 = vpop.permute.xlu0 %3647  ;;  %v3041_v33 = vmul.f32 %v3012_v28, %v13341_v63  ;;  %v4132_v7 = vsel %vm883_vm7, %v13342_v59, %v13336_v30  ;;  %v4140_v58 = vsel %vm883_vm7, %v13339_v37, %v13342_v59  ;;  %v13343_v30 = vld [vmem:[#allocation34_spill] sm:$0xff]  ;;  %v4162_v59 = vmul.f32 %v4148_v29, %v13320_v45 }
 0x8a1   :  { %13329 = vst [vmem:[#allocation122_spill] sm:$0xff] %v10017_v11  ;;  %v2734_v42 = vpop.permute.xlu1 %2733  ;;  %v2879_v11 = vmul.f32 %v13323_v4, %v2815_v14  ;;  %v3263_v37 = vmul.f32 %v3252_v6, %v13343_v30  ;;  %v10106_v29 = vmul.f32 %v13334_v21, %v4382_v55  ;;  %v13345_v6 = vld [vmem:[#allocation17_spill] sm:$0xff]  ;;  %v13348_v30 = vld [vmem:[#allocation27_spill] sm:$0xff] }
 0x8a2   :  { %3651 = vrot.lane.b32.xlu0 %v9881_v13, %s7805_s27  ;;  %v2788_v32 = vsel %vm404_vm1, %v2734_v42, %v13308_v49  ;;  %v2796_v14 = vsel %vm404_vm1, %v9748_v41, %v2734_v42  ;;  %v3228_v49 = vsel %vm563_vm3, %v9854_v20, %v13338_v61  ;;  %v13344_v42 = vld [vmem:[#allocation121_spill] sm:$0xff]  ;;  %v10109_v45 = vmul.f32 %v13345_v6, %v3938_v52  ;;  %v13350_v52 = vld [vmem:[#allocation36_spill] sm:$0xff] }
 0x8a3   :  { %4335 = vrot.lane.b32.xlu1 %v9721_v15, %s7806_s28  ;;  %v4161_v15 = vmul.f32 %v4124_v1, %v13319_v25  ;;  %v10103_v1 = vmul.f32 %v13334_v21, %v4381_v10  ;;  %v10114_v25 = vmul.f32 %v4140_v58, %v13315_v53  ;;  %v2817_v63 = vmul.f32 %v2788_v32, %v13348_v30  ;;  %v13349_v10 = vld [vmem:[#allocation147_spill] sm:$0xff]  ;;  %v13352_v32 = vld [vmem:[#allocation70_spill] sm:$0xff] }
 0x8a4   :  { %v10064_v56 = vpop.permute.xlu0 %3871  ;;  %v2911_v51 = vadd.f32 %v2879_v11, %v13349_v10  ;;  %v3266_v55 = vmul.f32 %v3228_v49, %v13298_v3  ;;  %v3105_v58 = vmul.f32 %v13332_v46, %v3041_v33  ;;  %v13353_v11 = vld [vmem:[#allocation118_spill] sm:$0xff]  ;;  %v13355_v49 = vld [vmem:[#allocation119_spill] sm:$0xff] }
 0x8a5   :  { %13340 = vst [vmem:[#allocation124_spill] sm:$0xff] %v10064_v56  ;;  %v2990_v36 = vpop.permute.xlu1 %2989  ;;  %v10130_v30 = vmul.f32 %v13352_v32, %v4161_v15  ;;  %v13356_v10 = vld [vmem:[#allocation142_spill] sm:$0xff]  ;;  %v2881_v3 = vmul.f32 %v13323_v4, %v2817_v63  ;;  %v13359_v63 = vld [vmem:[#allocation44_spill] sm:$0xff] }
 0x8a6   :  { %v3004_v28 = vsel %vm483_vm2, %v9770_v12, %v2990_v36  ;;  %3875 = vrot.lane.b32.xlu0 %v9881_v13, %s7804_s26  ;;  %v3028_v41 = vsel %vm483_vm2, %v2990_v36, %v13321_v50  ;;  %v10100_v12 = vmul.f32 %v13334_v21, %v4380_v44  ;;  %v13347_v50 = vld [vmem:[#allocation26_spill] sm:$0xff]  ;;  %v10121_v21 = vmul.f32 %v4132_v7, %v13318_v40  ;;  %v13354_v7 = vld [vmem:[#allocation135_spill] sm:$0xff] }
 0x8a7   :  { %2977 = vrot.lane.b32.xlu1 %v13344_v42, %s7801_s23  ;;  %v2816_v36 = vmul.f32 %v2796_v14, %v13347_v50  ;;  %v3042_v44 = vmul.f32 %v3004_v28, %v13296_v47  ;;  %v3039_v23 = vmul.f32 %v3028_v41, %v13350_v52  ;;  %v13351_v14 = vld [vmem:[#allocation9_spill] sm:$0xff]  ;;  %v10133_v28 = vmul.f32 %v13352_v32, %v4162_v59 }
 0x8a8   :  { %v10111_v61 = vpop.permute.xlu0 %3183  ;;  %v3327_v53 = vmul.f32 %v13351_v14, %v3263_v37  ;;  %v10141_v41 = vsel %vm963_vm8, %v13355_v49, %v13354_v7  ;;  %v3476_v33 = vsel %vm643_vm4, %v13356_v10, %v9885_v9  ;;  %v4348_v15 = vsel %vm963_vm8, %v13354_v7, %v9875_v54  ;;  %v13358_v7 = vld [vmem:[#allocation137_spill] sm:$0xff] }
 0x8a9   :  { %13346 = vst [vmem:[#allocation120_spill] sm:$0xff] %v10111_v61  ;;  %v3182_v56 = vpop.permute.xlu1 %3181  ;;  %v2880_v40 = vmul.f32 %v13323_v4, %v2816_v36  ;;  %v3106_v47 = vmul.f32 %v13332_v46, %v3042_v44  ;;  %v3330_v61 = vmul.f32 %v13351_v14, %v3266_v55  ;;  %v13360_v36 = vld [vmem:[#allocation31_spill] sm:$0xff]  ;;  %v3452_v55 = vsel %vm643_vm4, %v9928_v8, %v13356_v10 }
 0x8aa   :  { %4099 = vrot.lane.b32.xlu0 %v9881_v13, %s7807_s29  ;;  %v3236_v37 = vsel %vm563_vm3, %v3182_v56, %v9854_v20  ;;  %v3244_v52 = vsel %vm563_vm3, %v9816_v16, %v3182_v56  ;;  %v10167_v20 = vsel %vm963_vm8, %v13358_v7, %v13355_v49  ;;  %v3487_v56 = vmul.f32 %v3476_v33, %v13359_v63  ;;  %v13361_v49 = vld [vmem:[#allocation30_spill] sm:$0xff] }
 0x8ab   :  { %3169 = vrot.lane.b32.xlu1 %v13353_v11, %s7803_s25  ;;  %v4372_v16 = vsel %vm963_vm8, %v9875_v54, %v13358_v7  ;;  %v3265_v44 = vmul.f32 %v3236_v37, %v13360_v36  ;;  %v3900_v54 = vsel %vm803_vm6, %v9989_v27, %v9742_v24  ;;  %v3264_v33 = vmul.f32 %v3244_v52, %v13361_v49  ;;  %v13364_v7 = vld [vmem:[#allocation148_spill] sm:$0xff] }
 0x8ac   :  { %v10154_v59 = vpop.permute.xlu0 %3407  ;;  %v2913_v63 = vadd.f32 %v2881_v3, %v13364_v7  ;;  %v13367_v3 = vld [vmem:[#allocation21_spill] sm:$0xff]  ;;  %v13370_v7 = vld [vmem:[#allocation39_spill] sm:$0xff] }
 0x8ad   :  { %13357 = vst [vmem:[#allocation126_spill] sm:$0xff] %v10154_v59  ;;  %v3406_v50 = vpop.permute.xlu1 %3405  ;;  %v3103_v59 = vmul.f32 %v13332_v46, %v3039_v23  ;;  %v10187_v46 = vmul.f32 %v4348_v15, %v13335_v39  ;;  %v3138_v15 = vadd.f32 %v3106_v47, %v10011_v26  ;;  %v4386_v47 = vmul.f32 %v4372_v16, %v13337_v5 }
 0x8ae   :  { %v3460_v4 = vsel %vm643_vm4, %v3406_v50, %v9928_v8  ;;  %4067 = vrot.lane.b32.xlu0 %v9878_v31, %s7807_s29  ;;  %v3468_v23 = vsel %vm643_vm4, %v9885_v9, %v3406_v50  ;;  %v13363_v9 = vld [vmem:[#allocation149_spill] sm:$0xff]  ;;  %v13365_v8 = vld [vmem:[#allocation40_spill] sm:$0xff]  ;;  %v13366_v31 = vld [vmem:[#allocation127_spill] sm:$0xff]  ;;  %v3490_v26 = vmul.f32 %v3452_v55, %v13303_v18  ;;  %v3137_v5 = vadd.f32 %v3105_v58, %v2913_v63 }
 0x8af   :  { %3201 = vrot.lane.b32.xlu1 %v13344_v42, %s7803_s25  ;;  %v2912_v50 = vadd.f32 %v2880_v40, %v13363_v9  ;;  %v3489_v39 = vmul.f32 %v3460_v4, %v13294_v57  ;;  %v3135_v13 = vadd.f32 %v3103_v59, %v2911_v51  ;;  %v3488_v10 = vmul.f32 %v3468_v23, %v13365_v8  ;;  %v13368_v59 = vld [vmem:[#allocation52_spill] sm:$0xff]  ;;  %v13369_v9 = vld [vmem:[#allocation38_spill] sm:$0xff]  ;;  %v13372_v63 = vld [vmem:[#allocation43_spill] sm:$0xff] }
 0x8b0   :  { %v10198_v37 = vpop.permute.xlu0 %3631  ;;  %v3551_v40 = vmul.f32 %v13367_v3, %v3487_v56  ;;  %v3329_v51 = vmul.f32 %v13351_v14, %v3265_v44  ;;  %v3937_v4 = vmul.f32 %v3900_v54, %v13368_v59  ;;  %v3328_v23 = vmul.f32 %v13351_v14, %v3264_v33  ;;  %v13371_v58 = vld [vmem:[#allocation42_spill] sm:$0xff]  ;;  %v13373_v33 = vld [vmem:[#allocation11_spill] sm:$0xff] }
 0x8b1   :  { %13362 = vst [vmem:[#allocation61_spill] sm:$0xff] %v10198_v37  ;;  %v3630_v36 = vpop.permute.xlu1 %3629  ;;  %v3362_v56 = vadd.f32 %v3330_v61, %v3138_v15  ;;  %v3136_v16 = vadd.f32 %v10033_v43, %v2912_v50  ;;  %v3553_v55 = vmul.f32 %v13367_v3, %v3489_v39  ;;  %v3359_v18 = vadd.f32 %v3327_v53, %v3135_v13 }
 0x8b2   :  { %v3684_v24 = vsel %vm723_vm5, %v3630_v36, %v9961_v22  ;;  %v3692_v52 = vsel %vm723_vm5, %v13366_v31, %v3630_v36  ;;  %3187 = vrot.lane.b32.xlu0 %v9986_v2, %s7803_s25  ;;  %v3552_v37 = vmul.f32 %v13367_v3, %v3488_v10  ;;  %v3554_v43 = vmul.f32 %v13367_v3, %v3490_v26 }
 0x8b3   :  { %3393 = vrot.lane.b32.xlu1 %v13353_v11, %s7802_s24  ;;  %v3711_v36 = vmul.f32 %v3692_v52, %v13369_v9  ;;  %v3712_v57 = vmul.f32 %v3684_v24, %v13370_v7  ;;  %v3361_v61 = vadd.f32 %v3329_v51, %v3137_v5  ;;  %v4001_v53 = vmul.f32 %v13345_v6, %v3937_v4 }
 0x8b4   :  { %v10223_v8 = vpop.permute.xlu0 %3855  ;;  %v3586_v24 = vadd.f32 %v3554_v43, %v3362_v56  ;;  %v3583_v51 = vadd.f32 %v3551_v40, %v3359_v18  ;;  %v13374_v56 = vld [vmem:[#allocation48_spill] sm:$0xff]  ;;  %v4383_v18 = vmul.f32 %v10167_v20, %v13328_v34  ;;  %v4224_v20 = vmul.f32 %v13352_v32, %v10121_v21 }
 0x8b5   :  { %v3662_v44 = vpop.permute.xlu1 %3661  ;;  %v3775_v50 = vmul.f32 %v13373_v33, %v3711_v36  ;;  %v3585_v10 = vadd.f32 %v3553_v55, %v3361_v61  ;;  %v13375_v55 = vld [vmem:[#allocation49_spill] sm:$0xff] }
 0x8b6   :  { %v3676_v14 = vsel %vm723_vm5, %v9961_v22, %v3662_v44  ;;  %v3700_v54 = vsel %vm723_vm5, %v3662_v44, %v13366_v31  ;;  %3411 = vrot.lane.b32.xlu0 %v9986_v2, %s7802_s24  ;;  %v3360_v22 = vadd.f32 %v3328_v23, %v3136_v16  ;;  %v3776_v31 = vmul.f32 %v13373_v33, %v3712_v57 }
 0x8b7   :  { %v3713_v39 = vmul.f32 %v3676_v14, %v13371_v58  ;;  %v3714_v13 = vmul.f32 %v3700_v54, %v13372_v63  ;;  %3425 = vrot.lane.b32.xlu1 %v13344_v42, %s7802_s24  ;;  %v13434_v58 = vld [vmem:[#allocation113_spill] sm:$0xff] }
 0x8b8   :  { %v10244_v15 = vpop.permute.xlu0 %2721  ;;  %v3584_v26 = vadd.f32 %v3552_v37, %v3360_v22  ;;  %v3807_v37 = vadd.f32 %v3775_v50, %v3583_v51 }
 0x8b9   :  { %v3777_v5 = vmul.f32 %v13373_v33, %v3713_v39  ;;  %v3778_v52 = vmul.f32 %v13373_v33, %v3714_v13  ;;  %v3854_v3 = vpop.permute.xlu1 %3853  ;;  %v4223_v13 = vmul.f32 %v13352_v32, %v10114_v25 }
 0x8ba   :  { %v3908_v4 = vsel %vm803_vm6, %v3854_v3, %v9989_v27  ;;  %v3916_v23 = vsel %vm803_vm6, %v13331_v62, %v3854_v3  ;;  %3635 = vrot.lane.b32.xlu0 %v9986_v2, %s7805_s27  ;;  %v4384_v27 = vmul.f32 %v10141_v41, %v13333_v19  ;;  %v3808_v62 = vadd.f32 %v3776_v31, %v3584_v26  ;;  %v13376_v41 = vld [vmem:[#allocation72_spill] sm:$0xff] }
 0x8bb   :  { %v3809_v57 = vadd.f32 %v3777_v5, %v3585_v10  ;;  %v3810_v36 = vadd.f32 %v3778_v52, %v3586_v24  ;;  %v3935_v16 = vmul.f32 %v3916_v23, %v13374_v56  ;;  %v3936_v44 = vmul.f32 %v3908_v4, %v13375_v55  ;;  %3649 = vrot.lane.b32.xlu1 %v13344_v42, %s7805_s27  ;;  %v13377_v52 = vld [vmem:[#allocation146_spill] sm:$0xff] }
 0x8bc   :  { %v10264_v40 = vpop.permute.xlu0 %2753  ;;  %v4449_v22 = vmul.f32 %v13376_v41, %v10187_v46  ;;  %v4450_v33 = vmul.f32 %v13376_v41, %v4386_v47  ;;  %v4447_v21 = vmul.f32 %v13376_v41, %v4383_v18  ;;  %v4448_v32 = vmul.f32 %v13376_v41, %v4384_v27  ;;  %v13380_v23 = vld [vmem:[#allocation138_spill] sm:$0xff] }
 0x8bd   :  { %v4033_v14 = vadd.f32 %v4001_v53, %v3809_v57  ;;  %v3999_v54 = vmul.f32 %v13345_v6, %v3935_v16  ;;  %v4000_v43 = vmul.f32 %v13345_v6, %v3936_v44  ;;  %v10268_v61 = vpop.permute.xlu1 %2719  ;;  %v4034_v39 = vadd.f32 %v10109_v45, %v3810_v36  ;;  %v13381_v57 = vld [vmem:[#allocation131_spill] sm:$0xff] }
 0x8be   :  { %3859 = vrot.lane.b32.xlu0 %v9986_v2, %s7804_s26  ;;  %v4477_v45 = vadd.f32 %v10103_v1, %v10030_v0  ;;  %v4478_v47 = vadd.f32 %v10106_v29, %v10052_v17  ;;  %7627 = vpow2.f32 %v13377_v52  ;;  %v4475_v0 = vadd.f32 %v10043_v48, %v10008_v38  ;;  %v13379_v29 = vld [vmem:[#allocation134_spill] sm:$0xff] }
 0x8bf   :  { %v4257_v6 = vadd.f32 %v10130_v30, %v4033_v14  ;;  %v4031_v53 = vadd.f32 %v3999_v54, %v3807_v37  ;;  %v4032_v50 = vadd.f32 %v4000_v43, %v3808_v62  ;;  %3873 = vrot.lane.b32.xlu1 %v13344_v42, %s7804_s26  ;;  %v4258_v25 = vadd.f32 %v10133_v28, %v4034_v39  ;;  %v13378_v28 = vld [vmem:[#allocation145_spill] sm:$0xff]  ;;  %v13390_v39 = vld [vmem:[#allocation136_spill] sm:$0xff] }
 0x8c0   :  { %v10288_v46 = vpop.permute.xlu0 %2945  ;;  %v6611_v3 = vmul.f32 -1.442695, %v13378_v28  ;;  %v4476_v1 = vadd.f32 %v10100_v12, %v10028_v35  ;;  %v10306_v36 = vmul.f32 %v13381_v57, %v13380_v23  ;;  %v13384_v35 = vld [vmem:[#allocation139_spill] sm:$0xff]  ;;  %v13385_v12 = vld [vmem:[#allocation133_spill] sm:$0xff] }
 0x8c1   :  { %v4255_v30 = vadd.f32 %v4223_v13, %v4031_v53  ;;  %v10292_v31 = vpop.permute.xlu1 %2751  ;;  %v4482_v10 = vadd.f32 %v4450_v33, %v4258_v25  ;;  %v4481_v24 = vadd.f32 %v4449_v22, %v4257_v6  ;;  %v4256_v5 = vadd.f32 %v4224_v20, %v4032_v50  ;;  %v13392_v33 = vld [vmem:[#allocation104_spill] sm:$0xff] }
 0x8c2   :  { %4083 = vrot.lane.b32.xlu0 %v9986_v2, %s7807_s29  ;;  %13382 = vst [vmem:[#allocation108_spill] sm:$0xff] %v10306_v36  ;;  %7629 = vpow2.f32 %v6611_v3  ;;  %v10318_v18 = vmul.f32 %v13385_v12, %v13384_v35  ;;  %v13393_v6 = vld [vmem:[#allocation76_spill] sm:$0xff] }
 0x8c3   :  { %v4479_v17 = vadd.f32 %v4447_v21, %v4255_v30  ;;  %3185 = vrot.lane.b32.xlu1 %v13379_v29, %s7803_s25  ;;  %v4574_v26 = vpack.c.bf16 %v4482_v10, %v4478_v47  ;;  %v4573_v51 = vpack.c.bf16 %v4481_v24, %v4477_v45  ;;  %v4480_v4 = vadd.f32 %v4448_v32, %v4256_v5  ;;  %v13396_v45 = vld [vmem:[#allocation116_spill] sm:$0xff]  ;;  %v13399_v30 = vld [vmem:[#allocation106_spill] sm:$0xff]  ;;  %v13400_v10 = vld [vmem:[#allocation79_spill] sm:$0xff] }
 0x8c4   :  { %v10308_v16 = vpop.permute.xlu0 %3617  ;;  %13386 = vst [vmem:[#allocation123_spill] sm:$0xff] %v10318_v18  ;;  %v10346_v53 = vadd.f32 %v13393_v6, %v13392_v33  ;;  %v10363_v24 = vadd.f32 %v13400_v10, %v13399_v30  ;;  %v13401_v5 = vld [vmem:[#allocation114_spill] sm:$0xff]  ;;  %v13410_v33 = vld [vmem:[#allocation81_spill] sm:$0xff] }
 0x8c5   :  { %13383 = vst [vmem:[#allocation125_spill] sm:$0xff] %v10308_v16  ;;  %v10310_v38 = vpop.permute.xlu1 %2943  ;;  %4924 = vmatprep.mubr.bf16.mxu1 %v4574_v26  ;;  %v4572_v48 = vpack.c.bf16 %v4480_v4, %v4476_v1  ;;  %v4571_v44 = vpack.c.bf16 %v4479_v17, %v4475_v0  ;;  %v13403_v1 = vld [vmem:[#allocation77_spill] sm:$0xff]  ;;  %v10409_v6 = vadd.f32 %v13410_v33, %v13399_v30 }
 0x8c6   :  { %4925 = vmatmul.mubr.bf16.vlgmr.msra.gmra.mrb[44].mxu1 %v4573_v51  ;;  %2725 = vrot.lane.b32.xlu0 %v10306_v36, %s7800_s22  ;;  %v6607_v21 = vmul.f32 -1.442695, %v10346_v53  ;;  %v10375_v17 = vadd.f32 %v13403_v1, %v13399_v30  ;;  %v6614_v26 = vmul.f32 -1.442695, %v10363_v24  ;;  %v13404_v51 = vld [vmem:[#allocation143_spill] sm:$0xff] }
 0x8c7   :  { %3409 = vrot.lane.b32.xlu1 %v13379_v29, %s7802_s24  ;;  %4859 = vmatprep.mubr.bf16.mxu0 %v4572_v48  ;;  %v6615_v33 = vmul.f32 -1.442695, %v10409_v6 }
 0x8c8   :  { %4860 = vmatmul.mubr.bf16.vlgmr.msra.gmra.mrb[44].mxu0 %v4571_v44  ;;  %v10320_v27 = vpop.permute.xlu0 %3841  ;;  %v7628_v62 = vpop.eup %7627  ;;  %v6612_v44 = vmul.f32 -1.442695, %v10375_v17 }
 0x8c9   :  { %13387 = vst [vmem:[#allocation128_spill] sm:$0xff] %v10320_v27  ;;  %v10322_v37 = vpop.permute.xlu1 %3199  ;;  %v2528_v43 = vadd.f32 1.0, %v7628_v62 }
 0x8ca   :  { %2757 = vrot.lane.b32.xlu0 %v10318_v18, %s7800_s22 }
 0x8cb   :  { %3633 = vrot.lane.b32.xlu1 %v13379_v29, %s7805_s27  ;;  %7631 = vrcp.f32 %v2528_v43 }
 0x8cc   :  { %v10328_v14 = vpop.permute.xlu0 %4097  ;;  %v7630_v13 = vpop.eup %7629 }
 0x8cd   :  { %13388 = vst [vmem:[#allocation8_spill] sm:$0xff] %v10328_v14  ;;  %v10330_v54 = vpop.permute.xlu1 %3423  ;;  %v2530_v22 = vadd.f32 1.0, %v7630_v13  ;;  %v13409_v13 = vld [vmem:[#allocation80_spill] sm:$0xff]  ;;  %v13467_v14 = vld [vmem:[#allocation58_spill] sm:$0xff] }
 0x8ce   :  { %13389 = vst [vmem:[#allocation65_spill] sm:$0xff] %v10330_v54  ;;  %2949 = vrot.lane.b32.xlu0 %v10306_v36, %s7801_s23 }
 0x8cf   :  { %3665 = vrot.lane.b32.xlu1 %v13390_v39, %s7805_s27  ;;  %7633 = vrcp.f32 %v2530_v22  ;;  %v10403_v22 = vadd.f32 %v13409_v13, %v13399_v30  ;;  %v13414_v30 = vld [vmem:[#allocation84_spill] sm:$0xff] }
 0x8d0   :  { %v10336_v20 = vpop.permute.xlu0 %4065  ;;  %7635 = vpow2.f32 %v6607_v21  ;;  %v13412_v21 = vld [vmem:[#allocation82_spill] sm:$0xff] }
 0x8d1   :  { %v10338_v41 = vpop.permute.xlu1 %3615  ;;  %7637 = vpow2.f32 %v6614_v26  ;;  %v13413_v26 = vld [vmem:[#allocation83_spill] sm:$0xff] }
 0x8d2   :  { %13391 = vst [vmem:[#allocation130_spill] sm:$0xff] %v10338_v41  ;;  %3621 = vrot.lane.b32.xlu0 %v10306_v36, %s7805_s27  ;;  %7639 = vpow2.f32 %v6612_v44  ;;  %v6613_v44 = vmul.f32 -1.442695, %v10403_v22 }
 0x8d3   :  { %3857 = vrot.lane.b32.xlu1 %v13379_v29, %s7804_s26 }
 0x8d4   :  { %v10348_v50 = vpop.permute.xlu0 %4321 }
 0x8d5   :  { %13394 = vst [vmem:[#allocation140_spill] sm:$0xff] %v10348_v50  ;;  %v10350_v25 = vpop.permute.xlu1 %3839  ;;  %v7632_v3 = vpop.eup %7631 }
 0x8d6   :  { %13395 = vst [vmem:[#allocation132_spill] sm:$0xff] %v10350_v25  ;;  %3845 = vrot.lane.b32.xlu0 %v10306_v36, %s7804_s26  ;;  %v10383_v4 = vmul.f32 %v7632_v3, %v13404_v51 }
 0x8d7   :  { %2723 = vrot.lane.b32.xlu1 %v13396_v45, %s7800_s22 }
 0x8d8   :  { %v10357_v32 = vpop.permute.xlu0 %4289  ;;  %13405 = vst [vmem:[#allocation147_spill] sm:$0xff] %v10383_v4 }
 0x8d9   :  { %13397 = vst [vmem:[#allocation144_spill] sm:$0xff] %v10357_v32  ;;  %v10359_v47 = vpop.permute.xlu1 %4095  ;;  %v7634_v57 = vpop.eup %7633 }
 0x8da   :  { %13398 = vst [vmem:[#allocation121_spill] sm:$0xff] %v10359_v47  ;;  %4325 = vrot.lane.b32.xlu0 %v10318_v18, %s7806_s28  ;;  %v10395_v35 = vmul.f32 %v7634_v57, %v13378_v28  ;;  %v7636_v43 = vpop.eup %7635  ;;  %v13411_v28 = vld [vmem:[#allocation7_spill] sm:$0xff]  ;;  %v13439_v18 = vld [vmem:[#allocation10_spill] sm:$0xff] }
 0x8db   :  { %2755 = vrot.lane.b32.xlu1 %v13401_v5, %s7800_s22  ;;  %v10415_v10 = vadd.f32 %v13412_v21, %v13411_v28  ;;  %v2526_v1 = vadd.f32 1.0, %v7636_v43  ;;  %v10421_v51 = vadd.f32 %v13413_v26, %v13411_v28  ;;  %v10428_v13 = vadd.f32 %v13414_v30, %v13411_v28  ;;  %v7638_v43 = vpop.eup %7637 }
 0x8dc   :  { %v10369_v52 = vpop.permute.xlu0 %2737  ;;  %13407 = vst [vmem:[#allocation70_spill] sm:$0xff] %v10395_v35  ;;  %v7640_v19 = vpop.eup %7639 }
 0x8dd   :  { %v10371_v0 = vpop.permute.xlu1 %4063  ;;  %v6616_v21 = vmul.f32 -1.442695, %v10415_v10  ;;  %7641 = vrcp.f32 %v2526_v1  ;;  %v6618_v16 = vmul.f32 -1.442695, %v10421_v51  ;;  %v6617_v30 = vmul.f32 -1.442695, %v10428_v13 }
 0x8de   :  { %13402 = vst [vmem:[#allocation17_spill] sm:$0xff] %v10371_v0  ;;  %4293 = vrot.lane.b32.xlu0 %v10306_v36, %s7806_s28  ;;  %7643 = vpow2.f32 %v6613_v44  ;;  %v2531_v44 = vadd.f32 1.0, %v7640_v19 }
 0x8df   :  { %2947 = vrot.lane.b32.xlu1 %v13396_v45, %s7801_s23  ;;  %7645 = vpow2.f32 %v6615_v33 }
 0x8e0   :  { %v10385_v23 = vpop.permute.xlu0 %2769  ;;  %7647 = vpow2.f32 %v6616_v21 }
 0x8e1   :  { %v10387_v48 = vpop.permute.xlu1 %4319  ;;  %7649 = vpow2.f32 %v6618_v16 }
 0x8e2   :  { %13406 = vst [vmem:[#allocation9_spill] sm:$0xff] %v10387_v48  ;;  %2741 = vrot.lane.b32.xlu0 %v10383_v4, %s7800_s22  ;;  %7651 = vpow2.f32 %v6617_v30 }
 0x8e3   :  { %3203 = vrot.lane.b32.xlu1 %v13401_v5, %s7803_s25 }
 0x8e4   :  { %v10397_v12 = vpop.permute.xlu0 %2961 }
 0x8e5   :  { %v10399_v62 = vpop.permute.xlu1 %4287 }
 0x8e6   :  { %13408 = vst [vmem:[#allocation118_spill] sm:$0xff] %v10399_v62  ;;  %2773 = vrot.lane.b32.xlu0 %v10395_v35, %s7800_s22  ;;  %v2533_v62 = vadd.f32 1.0, %v7638_v43  ;;  %v13417_v43 = vld [vmem:[#allocation85_spill] sm:$0xff] }
 0x8e7   :  { %3427 = vrot.lane.b32.xlu1 %v13401_v5, %s7802_s24  ;;  %v7642_v16 = vpop.eup %7641 }
 0x8e8   :  { %v10417_v3 = vpop.permute.xlu0 %2993  ;;  %7653 = vrcp.f32 %v2533_v62  ;;  %v7644_v19 = vpop.eup %7643  ;;  %v10478_v50 = vmul.f32 %v7642_v16, %v10346_v53  ;;  %v13428_v16 = vld [vmem:[#allocation120_spill] sm:$0xff] }
 0x8e9   :  { %v10423_v57 = vpop.permute.xlu1 %2735  ;;  %7655 = vrcp.f32 %v2531_v44  ;;  %v7646_v30 = vpop.eup %7645  ;;  %v2532_v47 = vadd.f32 1.0, %v7644_v19 }
 0x8ea   :  { %2965 = vrot.lane.b32.xlu0 %v10383_v4, %s7801_s23  ;;  %v2534_v34 = vadd.f32 1.0, %v7646_v30  ;;  %13420 = vst [vmem:[#allocation149_spill] sm:$0xff] %v10478_v50 }
 0x8eb   :  { %3619 = vrot.lane.b32.xlu1 %v13396_v45, %s7805_s27 }
 0x8ec   :  { %v10436_v26 = vpop.permute.xlu0 %3217 }
 0x8ed   :  { %13415 = vst [vmem:[#allocation135_spill] sm:$0xff] %v10436_v26  ;;  %v10439_v48 = vpop.permute.xlu1 %2767  ;;  %v10458_v26 = vadd.f32 %v13417_v43, %v13411_v28  ;;  %v7648_v28 = vpop.eup %7647 }
 0x8ee   :  { %2997 = vrot.lane.b32.xlu0 %v10395_v35, %s7801_s23  ;;  %v7650_v43 = vpop.eup %7649 }
 0x8ef   :  { %3843 = vrot.lane.b32.xlu1 %v13396_v45, %s7804_s26  ;;  %13418 = vst [vmem:[#allocation142_spill] sm:$0xff] %v10458_v26  ;;  %v7652_v44 = vpop.eup %7651  ;;  %v2537_v32 = vadd.f32 1.0, %v7650_v43 }
 0x8f0   :  { %v10446_v0 = vpop.permute.xlu0 %3441  ;;  %v2536_v19 = vadd.f32 1.0, %v7652_v44 }
 0x8f1   :  { %13416 = vst [vmem:[#allocation119_spill] sm:$0xff] %v10446_v0  ;;  %v10448_v1 = vpop.permute.xlu1 %2959 }
 0x8f2   :  { %3221 = vrot.lane.b32.xlu0 %v10395_v35, %s7803_s25  ;;  %v7654_v59 = vpop.eup %7653 }
 0x8f3   :  { %4323 = vrot.lane.b32.xlu1 %v13401_v5, %s7806_s28  ;;  %v6619_v5 = vmul.f32 -1.442695, %v10458_v26  ;;  %v2535_v26 = vadd.f32 1.0, %v7648_v28  ;;  %v10487_v30 = vmul.f32 %v7654_v59, %v10363_v24  ;;  %v7656_v53 = vpop.eup %7655  ;;  %v13429_v28 = vld [vmem:[#allocation99_spill] sm:$0xff] }
 0x8f4   :  { %v10454_v33 = vpop.permute.xlu0 %3889 }
 0x8f5   :  { %v10460_v21 = vpop.permute.xlu1 %2991  ;;  %7657 = vpow2.f32 %v6619_v5  ;;  %13421 = vst [vmem:[#allocation148_spill] sm:$0xff] %v10487_v30 }
 0x8f6   :  { %3445 = vrot.lane.b32.xlu0 %v10395_v35, %s7802_s24  ;;  %7659 = vrcp.f32 %v2532_v47  ;;  %v10498_v47 = vmul.f32 %v7656_v53, %v10375_v17  ;;  %v3245_v17 = vsel %vm563_vm3, %v13429_v28, %v13428_v16 }
 0x8f7   :  { %4291 = vrot.lane.b32.xlu1 %v13396_v45, %s7806_s28  ;;  %7661 = vrcp.f32 %v2534_v34  ;;  %v3268_v63 = vmul.f32 %v3245_v17, %v13361_v49  ;;  %v10545_v17 = vmul.f32 %v13439_v18, %v13344_v42  ;;  %v13444_v49 = vld [vmem:[#allocation122_spill] sm:$0xff] }
 0x8f8   :  { %v10466_v62 = vpop.permute.xlu0 %4081  ;;  %7663 = vrcp.f32 %v2535_v26  ;;  %13424 = vst [vmem:[#allocation11_spill] sm:$0xff] %v10498_v47 }
 0x8f9   :  { %v10469_v0 = vpop.permute.xlu1 %3215  ;;  %7665 = vrcp.f32 %v2537_v32 }
 0x8fa   :  { %4117 = vrot.lane.b32.xlu0 %v10395_v35, %s7807_s29  ;;  %7667 = vrcp.f32 %v2536_v19 }
 0x8fb   :  { %2739 = vrot.lane.b32.xlu1 %v9986_v2, %s7800_s22 }
 0x8fc   :  { %v10475_v45 = vpop.permute.xlu0 %4113 }
 0x8fd   :  { %13419 = vst [vmem:[#allocation137_spill] sm:$0xff] %v10475_v45  ;;  %v10480_v36 = vpop.permute.xlu1 %3439 }
 0x8fe   :  { %4309 = vrot.lane.b32.xlu0 %v10383_v4, %s7806_s28  ;;  %v13431_v4 = vld [vmem:[#allocation112_spill] sm:$0xff] }
 0x8ff   :  { %2771 = vrot.lane.b32.xlu1 %v10478_v50, %s7800_s22  ;;  %v7658_v24 = vpop.eup %7657 }
 0x900   :  { %v10489_v35 = vpop.permute.xlu0 %4305  ;;  %v7660_v26 = vpop.eup %7659  ;;  %v2538_v19 = vadd.f32 1.0, %v7658_v24 }
 0x901   :  { %13422 = vst [vmem:[#allocation127_spill] sm:$0xff] %v10489_v35  ;;  %v10491_v5 = vpop.permute.xlu1 %3663  ;;  %v7662_v44 = vpop.eup %7661 }
 0x902   :  { %13423 = vst [vmem:[#allocation21_spill] sm:$0xff] %v10491_v5  ;;  %3207 = vrot.lane.b32.xlu0 %v10487_v30, %s7803_s25  ;;  %v7664_v53 = vpop.eup %7663  ;;  %7669 = vrcp.f32 %v2538_v19  ;;  %v3237_v19 = vsel %vm563_vm3, %v13428_v16, %v10322_v37  ;;  %v13453_v16 = vld [vmem:[#allocation40_spill] sm:$0xff] }
 0x903   :  { %2963 = vrot.lane.b32.xlu1 %v9986_v2, %s7801_s23 }
 0x904   :  { %v10500_v59 = vpop.permute.xlu0 %4337 }
 0x905   :  { %13425 = vst [vmem:[#allocation72_spill] sm:$0xff] %v10500_v59  ;;  %v10502_v34 = vpop.permute.xlu1 %3887  ;;  %v13432_v59 = vld [vmem:[#allocation22_spill] sm:$0xff] }
 0x906   :  { %13426 = vst [vmem:[#allocation146_spill] sm:$0xff] %v10502_v34  ;;  %3399 = vrot.lane.b32.xlu0 %v10498_v47, %s7802_s24  ;;  %v10520_v35 = vmul.f32 %v13432_v59, %v13431_v4  ;;  %v10527_v34 = vmul.f32 %v13432_v59, %v13434_v58  ;;  %v10549_v58 = vmul.f32 %v13439_v18, %v13353_v11 }
 0x907   :  { %2995 = vrot.lane.b32.xlu1 %v10478_v50, %s7801_s23 }
 0x908   :  { %v10508_v32 = vpop.permute.xlu0 %2979  ;;  %13433 = vst [vmem:[#allocation138_spill] sm:$0xff] %v10520_v35  ;;  %v10541_v35 = vmul.f32 %v13439_v18, %v13379_v29  ;;  %v13442_v29 = vld [vmem:[#allocation126_spill] sm:$0xff] }
 0x909   :  { %13427 = vst [vmem:[#allocation145_spill] sm:$0xff] %v10508_v32  ;;  %v10514_v43 = vpop.permute.xlu1 %4079  ;;  %v7666_v32 = vpop.eup %7665 }
 0x90a   :  { %13430 = vst [vmem:[#allocation134_spill] sm:$0xff] %v10514_v43  ;;  %3623 = vrot.lane.b32.xlu0 %v10498_v47, %s7805_s27  ;;  %v13435_v43 = vld [vmem:[#allocation109_spill] sm:$0xff]  ;;  %v7668_v5 = vpop.eup %7667 }
 0x90b   :  { %3219 = vrot.lane.b32.xlu1 %v10478_v50, %s7803_s25  ;;  %v10531_v24 = vmul.f32 %v13432_v59, %v13435_v43  ;;  %v13436_v47 = vld [vmem:[#allocation141_spill] sm:$0xff]  ;;  %v10553_v43 = vmul.f32 %v13439_v18, %v13390_v39  ;;  %v10571_v18 = vmul.f32 %v7662_v44, %v10409_v6  ;;  %v10574_v39 = vmul.f32 %v7664_v53, %v10415_v10 }
 0x90c   :  { %v10535_v45 = vmul.f32 %v13432_v59, %v13436_v47  ;;  %v10537_v4 = vpop.permute.xlu0 %3171  ;;  %v10558_v59 = vmul.f32 %v7660_v26, %v10403_v22  ;;  %v13448_v22 = vld [vmem:[#allocation124_spill] sm:$0xff]  ;;  %v10590_v6 = vmul.f32 %v7668_v5, %v10428_v13  ;;  %v13451_v10 = vld [vmem:[#allocation69_spill] sm:$0xff]  ;;  %v2797_v53 = vsel %vm404_vm1, %v10268_v61, %v10423_v57 }
 0x90d   :  { %13438 = vst [vmem:[#allocation139_spill] sm:$0xff] %v10537_v4  ;;  %v10555_v47 = vpop.permute.xlu1 %4111  ;;  %v13443_v4 = vld [vmem:[#allocation115_spill] sm:$0xff]  ;;  %13446 = vst [vmem:[#allocation104_spill] sm:$0xff] %v10571_v18  ;;  %v3909_v26 = vsel %vm803_vm6, %v10223_v8, %v13448_v22  ;;  %v10593_v44 = vmul.f32 %v13451_v10, %v3268_v63 }
 0x90e   :  { %13437 = vst [vmem:[#allocation131_spill] sm:$0xff] %v10535_v45  ;;  %13440 = vst [vmem:[#allocation133_spill] sm:$0xff] %v10555_v47  ;;  %v3469_v42 = vsel %vm643_vm4, %v13443_v4, %v13442_v29  ;;  %v13445_v45 = vld [vmem:[#allocation61_spill] sm:$0xff]  ;;  %3879 = vrot.lane.b32.xlu0 %v10487_v30, %s7804_s26  ;;  %v10587_v30 = vmul.f32 %v7666_v32, %v10421_v51  ;;  %v3461_v51 = vsel %vm643_vm4, %v13442_v29, %v10330_v54  ;;  %v13455_v32 = vld [vmem:[#allocation31_spill] sm:$0xff] }
 0x90f   :  { %13441 = vst [vmem:[#allocation136_spill] sm:$0xff] %v10558_v59  ;;  %v3685_v11 = vsel %vm723_vm5, %v13445_v45, %v13444_v49  ;;  %13447 = vst [vmem:[#allocation76_spill] sm:$0xff] %v10574_v39  ;;  %3443 = vrot.lane.b32.xlu1 %v10478_v50, %s7802_s24  ;;  %v3492_v22 = vmul.f32 %v3469_v42, %v13453_v16  ;;  %v3693_v63 = vsel %vm723_vm5, %v10338_v41, %v13445_v45 }
 0x910   :  { %13449 = vst [vmem:[#allocation106_spill] sm:$0xff] %v10587_v30  ;;  %13450 = vst [vmem:[#allocation79_spill] sm:$0xff] %v10590_v6  ;;  %v10599_v47 = vpop.permute.xlu0 %3395  ;;  %v3716_v49 = vmul.f32 %v3685_v11, %v13370_v7  ;;  %v3940_v5 = vmul.f32 %v3909_v26, %v13375_v55  ;;  %v2789_v42 = vsel %vm404_vm1, %v10423_v57, %v10292_v31  ;;  %v13456_v26 = vld [vmem:[#allocation26_spill] sm:$0xff]  ;;  %v13457_v6 = vld [vmem:[#allocation41_spill] sm:$0xff] }
 0x911   :  { %13452 = vst [vmem:[#allocation77_spill] sm:$0xff] %v10599_v47  ;;  %v10611_v13 = vpop.permute.xlu1 %4303  ;;  %v3269_v47 = vmul.f32 %v3237_v19, %v13455_v32  ;;  %v3021_v29 = vsel %vm483_vm2, %v10310_v38, %v10448_v1  ;;  %v2790_v45 = vsel %vm404_vm1, %v10369_v52, %v10264_v40  ;;  %v2798_v11 = vsel %vm404_vm1, %v10244_v15, %v10369_v52  ;;  %v13458_v52 = vld [vmem:[#allocation129_spill] sm:$0xff] }
 0x912   :  { %13454 = vst [vmem:[#allocation143_spill] sm:$0xff] %v10611_v13  ;;  %3223 = vrot.lane.b32.xlu0 %v10571_v18, %s7803_s25  ;;  %v2806_v57 = vsel %vm404_vm1, %v10385_v23, %v10244_v15  ;;  %v2820_v19 = vmul.f32 %v2797_v53, %v13456_v26  ;;  %v3493_v55 = vmul.f32 %v3461_v51, %v13457_v6  ;;  %v13460_v53 = vld [vmem:[#allocation71_spill] sm:$0xff]  ;;  %v13463_v6 = vld [vmem:[#allocation32_spill] sm:$0xff] }
 0x913   :  { %3667 = vrot.lane.b32.xlu1 %v10478_v50, %s7805_s27  ;;  %v3715_v7 = vmul.f32 %v3693_v63, %v13369_v9  ;;  %v2782_v16 = vsel %vm404_vm1, %v10264_v40, %v10385_v23  ;;  %v3013_v32 = vsel %vm483_vm2, %v10448_v1, %v13458_v52  ;;  %v10653_v13 = vmul.f32 %v13460_v53, %v3492_v22  ;;  %v13462_v63 = vld [vmem:[#allocation27_spill] sm:$0xff]  ;;  %v13465_v23 = vld [vmem:[#allocation24_spill] sm:$0xff] }
 0x914   :  { %v10650_v15 = vpop.permute.xlu0 %3651  ;;  %v3917_v51 = vsel %vm803_vm6, %v10350_v25, %v10223_v8  ;;  %v2821_v9 = vmul.f32 %v2789_v42, %v13462_v63  ;;  %v3044_v41 = vmul.f32 %v3021_v29, %v13463_v6  ;;  %v10664_v30 = vmul.f32 %v13465_v23, %v3716_v49  ;;  %v13466_v22 = vld [vmem:[#allocation28_spill] sm:$0xff]  ;;  %v13468_v42 = vld [vmem:[#allocation29_spill] sm:$0xff]  ;;  %v10679_v49 = vpop.eup %7669 }
 0x915   :  { %13459 = vst [vmem:[#allocation80_spill] sm:$0xff] %v10650_v15  ;;  %13461 = vst [vmem:[#allocation81_spill] sm:$0xff] %v10653_v13  ;;  %v10661_v40 = vpop.permute.xlu1 %4335  ;;  %v2824_v1 = vmul.f32 %v2798_v11, %v13456_v26  ;;  %v2825_v15 = vmul.f32 %v2790_v45, %v13462_v63  ;;  %v2823_v13 = vmul.f32 %v2806_v57, %v13466_v22  ;;  %v13469_v29 = vld [vmem:[#allocation13_spill] sm:$0xff]  ;;  %v13474_v26 = vld [vmem:[#allocation111_spill] sm:$0xff] }
 0x916   :  { %13464 = vst [vmem:[#allocation7_spill] sm:$0xff] %v10661_v40  ;;  %3415 = vrot.lane.b32.xlu0 %v10558_v59, %s7802_s24  ;;  %v10672_v8 = vmul.f32 %v13467_v14, %v3940_v5  ;;  %v2826_v25 = vmul.f32 %v2782_v16, %v13468_v42  ;;  %v2884_v54 = vmul.f32 %v13469_v29, %v2820_v19  ;;  %v13470_v40 = vld [vmem:[#allocation33_spill] sm:$0xff]  ;;  %13471 = vst [vmem:[#allocation82_spill] sm:$0xff] %v10679_v49 }
 0x917   :  { %v3045_v39 = vmul.f32 %v3013_v32, %v13470_v40  ;;  %3891 = vrot.lane.b32.xlu1 %v10478_v50, %s7804_s26  ;;  %v3333_v45 = vmul.f32 %v13451_v10, %v3269_v47  ;;  %v10683_v11 = vmul.f32 %v13460_v53, %v3493_v55  ;;  %v10686_v57 = vmul.f32 %v13465_v23, %v3715_v7  ;;  %v13473_v47 = vld [vmem:[#allocation15_spill] sm:$0xff] }
 0x918   :  { %v3939_v5 = vmul.f32 %v3917_v51, %v13374_v56  ;;  %v10689_v16 = vpop.permute.xlu0 %3875  ;;  %v3022_v32 = vsel %vm483_vm2, %v10288_v46, %v10397_v12  ;;  %v2885_v19 = vmul.f32 %v13469_v29, %v2821_v9  ;;  %v2805_v55 = vsel %vm404_vm1, %v10439_v48, %v10268_v61 }
 0x919   :  { %13472 = vst [vmem:[#allocation83_spill] sm:$0xff] %v10689_v16  ;;  %v3108_v63 = vmul.f32 %v13473_v47, %v3044_v41  ;;  %v10701_v7 = vpop.permute.xlu1 %2977  ;;  %v2888_v51 = vmul.f32 %v13474_v26, %v2824_v1  ;;  %v2889_v16 = vmul.f32 %v13474_v26, %v2825_v15  ;;  %v2887_v49 = vmul.f32 %v13474_v26, %v2823_v13 }
 0x91a   :  { %v2781_v9 = vsel %vm404_vm1, %v10292_v31, %v10439_v48  ;;  %3671 = vrot.lane.b32.xlu0 %v10571_v18, %s7805_s27  ;;  %v2890_v61 = vmul.f32 %v13474_v26, %v2826_v25  ;;  %v2916_v41 = vadd.f32 %v2884_v54, %v10527_v34  ;;  %v3030_v1 = vsel %vm483_vm2, %v10417_v3, %v10288_v46 }
 0x91b   :  { %v3109_v15 = vmul.f32 %v13473_v47, %v3045_v39  ;;  %4115 = vrot.lane.b32.xlu1 %v10478_v50, %s7807_s29  ;;  %v3048_v13 = vmul.f32 %v3022_v32, %v13463_v6  ;;  %v2819_v31 = vmul.f32 %v2805_v55, %v13466_v22  ;;  %v3005_v25 = vsel %vm483_vm2, %v13458_v52, %v10460_v21  ;;  %v13476_v22 = vld [vmem:[#allocation36_spill] sm:$0xff]  ;;  %v13493_v6 = vld [vmem:[#allocation87_spill] sm:$0xff] }
 0x91c   :  { %v3029_v54 = vsel %vm483_vm2, %v10460_v21, %v10310_v38  ;;  %v10731_v46 = vpop.permute.xlu0 %4099  ;;  %v10734_v48 = vmul.f32 %v13467_v14, %v3939_v5  ;;  %v2917_v34 = vadd.f32 %v2885_v19, %v10531_v24  ;;  %v2822_v39 = vmul.f32 %v2781_v9, %v13468_v42  ;;  %v13478_v19 = vld [vmem:[#allocation2_spill] sm:$0xff] }
 0x91d   :  { %13475 = vst [vmem:[#allocation84_spill] sm:$0xff] %v10731_v46  ;;  %v3140_v26 = vadd.f32 %v3108_v63, %v2916_v41  ;;  %v10738_v32 = vpop.permute.xlu1 %3169  ;;  %v2920_v55 = vadd.f32 %v2888_v51, %v10541_v35  ;;  %v10742_v52 = vadd.f32 %v2889_v16, %v10545_v17  ;;  %v3047_v18 = vmul.f32 %v3030_v1, %v13476_v22  ;;  %v13477_v63 = vld [vmem:[#allocation37_spill] sm:$0xff]  ;;  %v13492_v46 = vld [vmem:[#allocation46_spill] sm:$0xff] }
 0x91e   :  { %v3926_v38 = vsel %vm803_vm6, %v10454_v33, %v10320_v27  ;;  %3863 = vrot.lane.b32.xlu0 %v10558_v59, %s7804_s26  ;;  %v3141_v21 = vadd.f32 %v3109_v15, %v2917_v34  ;;  %v3043_v24 = vmul.f32 %v3029_v54, %v13476_v22  ;;  %v3046_v5 = vmul.f32 %v3005_v25, %v13477_v63  ;;  %v13483_v54 = vld [vmem:[#allocation65_spill] sm:$0xff]  ;;  %v13490_v22 = vld [vmem:[#allocation131_spill] sm:$0xff] }
 0x91f   :  { %v3253_v35 = vsel %vm563_vm3, %v10469_v0, %v13429_v28  ;;  %4307 = vrot.lane.b32.xlu1 %v9986_v2, %s7806_s28  ;;  %v2919_v17 = vadd.f32 %v2887_v49, %v10549_v58  ;;  %v10761_v16 = vadd.f32 %v2890_v61, %v10553_v43  ;;  %v3112_v51 = vmul.f32 %v13478_v19, %v3048_v13  ;;  %v13480_v61 = vld [vmem:[#allocation53_spill] sm:$0xff] }
 0x920   :  { %v2883_v9 = vmul.f32 %v13469_v29, %v2819_v31  ;;  %v10765_v41 = vpop.permute.xlu0 %4067  ;;  %v2886_v1 = vmul.f32 %v13469_v29, %v2822_v39  ;;  %v3364_v15 = vadd.f32 %v10593_v44, %v3140_v26  ;;  %v3229_v28 = vsel %vm563_vm3, %v10322_v37, %v10469_v0  ;;  %v13481_v31 = vld [vmem:[#allocation34_spill] sm:$0xff]  ;;  %v13482_v37 = vld [vmem:[#allocation76_spill] sm:$0xff]  ;;  %v13485_v39 = vld [vmem:[#allocation35_spill] sm:$0xff] }
 0x921   :  { %13479 = vst [vmem:[#allocation85_spill] sm:$0xff] %v10765_v41  ;;  %v3477_v58 = vsel %vm643_vm4, %v10480_v36, %v13443_v4  ;;  %v10777_v43 = vpop.permute.xlu1 %3201  ;;  %v3111_v49 = vmul.f32 %v13478_v19, %v3047_v18  ;;  %v3946_v13 = vmul.f32 %v3926_v38, %v13480_v61  ;;  %v3267_v29 = vmul.f32 %v3253_v35, %v13481_v31  ;;  %v13486_v38 = vld [vmem:[#allocation8_spill] sm:$0xff] }
 0x922   :  { %v4142_v44 = vsel %vm883_vm7, %v10336_v20, %v10466_v62  ;;  %2729 = vrot.lane.b32.xlu0 %v13482_v37, %s7800_s22  ;;  %v3365_v0 = vadd.f32 %v3333_v45, %v3141_v21  ;;  %v3107_v25 = vmul.f32 %v13473_v47, %v3043_v24  ;;  %v3110_v4 = vmul.f32 %v13473_v47, %v3046_v5  ;;  %v13487_v21 = vld [vmem:[#allocation44_spill] sm:$0xff]  ;;  %v13489_v5 = vld [vmem:[#allocation138_spill] sm:$0xff] }
 0x923   :  { %v3453_v18 = vsel %vm643_vm4, %v13483_v54, %v10480_v36  ;;  %4339 = vrot.lane.b32.xlu1 %v10478_v50, %s7806_s28  ;;  %v10796_v34 = vadd.f32 %v3112_v51, %v2920_v55  ;;  %v3270_v26 = vmul.f32 %v3229_v28, %v13485_v39  ;;  %v4134_v45 = vsel %vm883_vm7, %v10466_v62, %v13486_v38  ;;  %v13491_v54 = vld [vmem:[#allocation81_spill] sm:$0xff]  ;;  %v13496_v50 = vld [vmem:[#allocation106_spill] sm:$0xff] }
 0x924   :  { %v3491_v24 = vmul.f32 %v3477_v58, %v13487_v21  ;;  %v10804_v47 = vpop.permute.xlu0 %3187  ;;  %v2915_v35 = vadd.f32 %v2883_v9, %v13489_v5  ;;  %v2918_v36 = vadd.f32 %v2886_v1, %v13490_v22  ;;  %v3588_v42 = vadd.f32 %v13491_v54, %v3364_v15  ;;  %v13495_v58 = vld [vmem:[#allocation45_spill] sm:$0xff]  ;;  %v13497_v1 = vld [vmem:[#allocation47_spill] sm:$0xff]  ;;  %v13501_v54 = vld [vmem:[#allocation130_spill] sm:$0xff] }
 0x925   :  { %13484 = vst [vmem:[#allocation120_spill] sm:$0xff] %v10796_v34  ;;  %13488 = vst [vmem:[#allocation99_spill] sm:$0xff] %v10804_v47  ;;  %v4167_v55 = vmul.f32 %v4142_v44, %v13492_v46  ;;  %v10810_v51 = vpop.permute.xlu1 %3393  ;;  %v10812_v28 = vadd.f32 %v3111_v49, %v2919_v17  ;;  %v10815_v41 = vmul.f32 %v13493_v6, %v3946_v13  ;;  %v13498_v5 = vld [vmem:[#allocation123_spill] sm:$0xff]  ;;  %v13499_v13 = vld [vmem:[#allocation21_spill] sm:$0xff] }
 0x926   :  { %v3331_v62 = vmul.f32 %v13451_v10, %v3267_v29  ;;  %v3494_v59 = vmul.f32 %v3453_v18, %v13495_v58  ;;  %2761 = vrot.lane.b32.xlu0 %v13496_v50, %s7800_s22  ;;  %v3139_v9 = vadd.f32 %v3107_v25, %v2915_v35  ;;  %v3142_v22 = vadd.f32 %v3110_v4, %v2918_v36  ;;  %v13500_v29 = vld [vmem:[#allocation122_spill] sm:$0xff] }
 0x927   :  { %13494 = vst [vmem:[#allocation112_spill] sm:$0xff] %v10815_v41  ;;  %v4168_v15 = vmul.f32 %v4134_v45, %v13497_v1  ;;  %v3589_v44 = vadd.f32 %v10683_v11, %v3365_v0  ;;  %2981 = vrot.lane.b32.xlu1 %v13498_v5, %s7801_s23  ;;  %v3334_v17 = vmul.f32 %v13451_v10, %v3270_v26  ;;  %v13503_v11 = vld [vmem:[#allocation89_spill] sm:$0xff] }
 0x928   :  { %v3555_v49 = vmul.f32 %v13460_v53, %v3491_v24  ;;  %v3677_v18 = vsel %vm723_vm5, %v13500_v29, %v13499_v13  ;;  %v3701_v25 = vsel %vm723_vm5, %v13499_v13, %v13501_v54  ;;  %v10835_v4 = vpop.permute.xlu0 %3411  ;;  %v10838_v0 = vmul.f32 %v13503_v11, %v4167_v55  ;;  %v13505_v45 = vld [vmem:[#allocation137_spill] sm:$0xff]  ;;  %v13506_v29 = vld [vmem:[#allocation146_spill] sm:$0xff]  ;;  %v13507_v55 = vld [vmem:[#allocation124_spill] sm:$0xff] }
 0x929   :  { %13502 = vst [vmem:[#allocation22_spill] sm:$0xff] %v10835_v4  ;;  %v4126_v10 = vsel %vm883_vm7, %v13486_v38, %v13505_v45  ;;  %v4150_v26 = vsel %vm883_vm7, %v13505_v45, %v10336_v20  ;;  %v10848_v24 = vpop.permute.xlu1 %3425  ;;  %v3812_v35 = vadd.f32 %v10664_v30, %v3588_v42  ;;  %v3363_v36 = vadd.f32 %v3331_v62, %v3139_v9  ;;  %v13508_v4 = vld [vmem:[#allocation132_spill] sm:$0xff]  ;;  %v13510_v30 = vld [vmem:[#allocation42_spill] sm:$0xff]  ;;  %v13511_v62 = vld [vmem:[#allocation43_spill] sm:$0xff] }
 0x92a   :  { %13504 = vst [vmem:[#allocation113_spill] sm:$0xff] %v10838_v0  ;;  %v3558_v13 = vmul.f32 %v13460_v53, %v3494_v59  ;;  %v3901_v54 = vsel %vm803_vm6, %v13507_v55, %v13506_v29  ;;  %v3925_v38 = vsel %vm803_vm6, %v13506_v29, %v13508_v4  ;;  %2953 = vrot.lane.b32.xlu0 %v13482_v37, %s7801_s23  ;;  %v13512_v53 = vld [vmem:[#allocation127_spill] sm:$0xff]  ;;  %v13513_v9 = vld [vmem:[#allocation144_spill] sm:$0xff]  ;;  %v13515_v29 = vld [vmem:[#allocation50_spill] sm:$0xff] }
 0x92b   :  { %v10863_v20 = vmul.f32 %v13503_v11, %v4168_v15  ;;  %v3717_v42 = vmul.f32 %v3677_v18, %v13510_v30  ;;  %v3718_v59 = vmul.f32 %v3701_v25, %v13511_v62  ;;  %v4366_v45 = vsel %vm963_vm8, %v13513_v9, %v13512_v53  ;;  %v13514_v55 = vld [vmem:[#allocation108_spill] sm:$0xff]  ;;  %v13516_v0 = vld [vmem:[#allocation51_spill] sm:$0xff] }
 0x92c   :  { %3173 = vrot.lane.b32.xlu1 %v13514_v55, %s7803_s25  ;;  %v3366_v2 = vadd.f32 %v3334_v17, %v3142_v22  ;;  %v3587_v4 = vadd.f32 %v3555_v49, %v3363_v36  ;;  %v4169_v47 = vmul.f32 %v4126_v10, %v13515_v29  ;;  %v4170_v41 = vmul.f32 %v4150_v26, %v13516_v0  ;;  %v10875_v15 = vpop.permute.xlu0 %3635  ;;  %v13519_v25 = vld [vmem:[#allocation52_spill] sm:$0xff]  ;;  %v13521_v49 = vld [vmem:[#allocation54_spill] sm:$0xff] }
 0x92d   :  { %13509 = vst [vmem:[#allocation109_spill] sm:$0xff] %v10863_v20  ;;  %13517 = vst [vmem:[#allocation141_spill] sm:$0xff] %v10875_v15  ;;  %v13518_v20 = vld [vmem:[#allocation140_spill] sm:$0xff]  ;;  %v3941_v56 = vmul.f32 %v3901_v54, %v13519_v25  ;;  %v3942_v27 = vmul.f32 %v3925_v38, %v13480_v61  ;;  %v10883_v6 = vpop.permute.xlu1 %3649  ;;  %v10886_v22 = vadd.f32 %v10672_v8, %v3812_v35  ;;  %v13524_v35 = vld [vmem:[#allocation134_spill] sm:$0xff] }
 0x92e   :  { %v4358_v18 = vsel %vm963_vm8, %v13512_v53, %v13518_v20  ;;  %v3590_v17 = vadd.f32 %v3558_v13, %v3366_v2  ;;  %v4391_v10 = vmul.f32 %v4366_v45, %v13521_v49  ;;  %v13522_v26 = vld [vmem:[#allocation72_spill] sm:$0xff]  ;;  %2985 = vrot.lane.b32.xlu0 %v13496_v50, %s7801_s23  ;;  %v3781_v38 = vmul.f32 %v13465_v23, %v3717_v42  ;;  %v13523_v2 = vld [vmem:[#allocation121_spill] sm:$0xff]  ;;  %v13526_v45 = vld [vmem:[#allocation55_spill] sm:$0xff] }
 0x92f   :  { %13520 = vst [vmem:[#allocation10_spill] sm:$0xff] %v10886_v22  ;;  %v4350_v36 = vsel %vm963_vm8, %v13518_v20, %v13522_v26  ;;  %v4374_v54 = vsel %vm963_vm8, %v13522_v26, %v13513_v9  ;;  %v3782_v8 = vmul.f32 %v13465_v23, %v3718_v59  ;;  %v4133_v13 = vsel %vm883_vm7, %v13524_v35, %v13523_v2  ;;  %v13525_v53 = vld [vmem:[#allocation17_spill] sm:$0xff]  ;;  %v13529_v22 = vld [vmem:[#allocation56_spill] sm:$0xff] }
 0x930   :  { %v4141_v20 = vsel %vm883_vm7, %v13525_v53, %v13524_v35  ;;  %3205 = vrot.lane.b32.xlu1 %v13498_v5, %s7803_s25  ;;  %v3811_v9 = vadd.f32 %v10686_v57, %v3587_v4  ;;  %v4392_v26 = vmul.f32 %v4358_v18, %v13526_v45  ;;  %v13527_v42 = vld [vmem:[#allocation133_spill] sm:$0xff]  ;;  %v10921_v61 = vpop.permute.xlu0 %3859  ;;  %v4005_v35 = vmul.f32 %v13467_v14, %v3941_v56 }
 0x931   :  { %v4125_v23 = vsel %vm883_vm7, %v13523_v2, %v13527_v42  ;;  %v4149_v59 = vsel %vm883_vm7, %v13527_v42, %v13525_v53  ;;  %13528 = vst [vmem:[#allocation126_spill] sm:$0xff] %v10921_v61  ;;  %v4006_v15 = vmul.f32 %v13467_v14, %v3942_v27  ;;  %v4393_v57 = vmul.f32 %v4350_v36, %v13529_v22  ;;  %v13530_v4 = vld [vmem:[#allocation57_spill] sm:$0xff]  ;;  %v10927_v34 = vpop.permute.xlu1 %3873 }
 0x932   :  { %v4394_v18 = vmul.f32 %v4374_v54, %v13530_v4  ;;  %v10930_v62 = vmul.f32 %v13503_v11, %v4169_v47  ;;  %v10933_v2 = vmul.f32 %v13503_v11, %v4170_v41  ;;  %v4163_v53 = vmul.f32 %v4141_v20, %v13492_v46  ;;  %3177 = vrot.lane.b32.xlu0 %v13482_v37, %s7803_s25  ;;  %v13531_v47 = vld [vmem:[#allocation91_spill] sm:$0xff] }
 0x933   :  { %v4164_v42 = vmul.f32 %v4133_v13, %v13497_v1  ;;  %v3813_v56 = vadd.f32 %v3781_v38, %v3589_v44  ;;  %v3814_v27 = vadd.f32 %v3782_v8, %v3590_v17  ;;  %v4165_v14 = vmul.f32 %v4125_v23, %v13515_v29 }
 0x934   :  { %v4166_v36 = vmul.f32 %v4149_v59, %v13516_v0  ;;  %3397 = vrot.lane.b32.xlu1 %v13514_v55, %s7802_s24  ;;  %v10944_v54 = vmul.f32 %v13531_v47, %v4391_v10  ;;  %v10947_v41 = vmul.f32 %v13531_v47, %v4392_v26  ;;  %v3014_v11 = vsel %vm483_vm2, %v10397_v12, %v10701_v7  ;;  %v10953_v44 = vpop.permute.xlu0 %4083  ;;  %v13532_v26 = vld [vmem:[#allocation62_spill] sm:$0xff] }
 0x935   :  { %v10956_v17 = vadd.f32 %v10734_v48, %v3811_v9  ;;  %v10958_v38 = vadd.f32 %v4005_v35, %v3813_v56  ;;  %v10960_v8 = vadd.f32 %v4006_v15, %v3814_v27  ;;  %v10963_v10 = vmul.f32 %v13531_v47, %v4393_v57  ;;  %v3186_v20 = vpop.permute.xlu1 %3185  ;;  %v13533_v15 = vld [vmem:[#allocation135_spill] sm:$0xff] }
 0x936   :  { %v10966_v13 = vmul.f32 %v13531_v47, %v4394_v18  ;;  %v10969_v23 = vmul.f32 %v13532_v26, %v4163_v53  ;;  %v10972_v12 = vmul.f32 %v13532_v26, %v4164_v42  ;;  %v3006_v48 = vsel %vm483_vm2, %v10701_v7, %v10417_v3  ;;  %3433 = vrot.lane.b32.xlu0 %v13496_v50, %s7802_s24  ;;  %v13534_v57 = vld [vmem:[#allocation143_spill] sm:$0xff]  ;;  %v13535_v18 = vld [vmem:[#allocation118_spill] sm:$0xff]  ;;  %v13536_v7 = vld [vmem:[#allocation9_spill] sm:$0xff] }
 0x937   :  { %v3254_v9 = vsel %vm563_vm3, %v13533_v15, %v10738_v32  ;;  %v10985_v59 = vmul.f32 %v13532_v26, %v4165_v14  ;;  %v10988_v35 = vmul.f32 %v13532_v26, %v4166_v36  ;;  %v4365_v53 = vsel %vm963_vm8, %v13535_v18, %v13534_v57  ;;  %v13537_v56 = vld [vmem:[#allocation7_spill] sm:$0xff] }
 0x938   :  { %v3049_v3 = vmul.f32 %v3014_v11, %v13470_v40  ;;  %3429 = vrot.lane.b32.xlu1 %v13498_v5, %s7802_s24  ;;  %v4357_v42 = vsel %vm963_vm8, %v13534_v57, %v13536_v7  ;;  %v4349_v27 = vsel %vm963_vm8, %v13536_v7, %v13537_v56  ;;  %v3230_v14 = vsel %vm563_vm3, %v10777_v43, %v13533_v15  ;;  %v11012_v47 = vpop.permute.xlu0 %2725  ;;  %v13538_v57 = vld [vmem:[#allocation119_spill] sm:$0xff] }
 0x939   :  { %v3238_v36 = vsel %vm563_vm3, %v3186_v20, %v10777_v43  ;;  %v3050_v11 = vmul.f32 %v3006_v48, %v13477_v63  ;;  %v3271_v26 = vmul.f32 %v3254_v9, %v13481_v31  ;;  %v3478_v7 = vsel %vm643_vm4, %v13538_v57, %v10810_v51  ;;  %v3410_v15 = vpop.permute.xlu1 %3409  ;;  %v13540_v63 = vld [vmem:[#allocation30_spill] sm:$0xff] }
 0x93a   :  { %v3246_v0 = vsel %vm563_vm3, %v10738_v32, %v3186_v20  ;;  %v11024_v29 = vmul.f32 %v4365_v53, %v13521_v49  ;;  %v4373_v43 = vsel %vm963_vm8, %v13537_v56, %v13535_v18  ;;  %v3454_v48 = vsel %vm643_vm4, %v10848_v24, %v13538_v57  ;;  %3657 = vrot.lane.b32.xlu0 %v13496_v50, %s7805_s27  ;;  %v13539_v53 = vld [vmem:[#allocation31_spill] sm:$0xff] }
 0x93b   :  { %v3462_v9 = vsel %vm643_vm4, %v3410_v15, %v10848_v24  ;;  %v3113_v32 = vmul.f32 %v13478_v19, %v3049_v3  ;;  %v3274_v20 = vmul.f32 %v3230_v14, %v13485_v39  ;;  %v3273_v49 = vmul.f32 %v3238_v36, %v13539_v53  ;;  %v13541_v36 = vld [vmem:[#allocation3_spill] sm:$0xff] }
 0x93c   :  { %v3470_v18 = vsel %vm643_vm4, %v10810_v51, %v3410_v15  ;;  %3653 = vrot.lane.b32.xlu1 %v13498_v5, %s7805_s27  ;;  %v11048_v56 = vmul.f32 %v4357_v42, %v13526_v45  ;;  %v4389_v24 = vmul.f32 %v4349_v27, %v13529_v22  ;;  %v3495_v57 = vmul.f32 %v3478_v7, %v13487_v21  ;;  %v11053_v31 = vpop.permute.xlu0 %2757  ;;  %v13542_v15 = vld [vmem:[#allocation41_spill] sm:$0xff]  ;;  %v13543_v45 = vld [vmem:[#allocation40_spill] sm:$0xff]  ;;  %v13547_v22 = vld [vmem:[#allocation39_spill] sm:$0xff] }
 0x93d   :  { %v3272_v3 = vmul.f32 %v3246_v0, %v13540_v63  ;;  %v3114_v14 = vmul.f32 %v13478_v19, %v3050_v11  ;;  %v3335_v39 = vmul.f32 %v13541_v36, %v3271_v26  ;;  %v3498_v51 = vmul.f32 %v3454_v48, %v13495_v58  ;;  %v3634_v53 = vpop.permute.xlu1 %3633  ;;  %v13544_v0 = vld [vmem:[#allocation125_spill] sm:$0xff]  ;;  %v13545_v48 = vld [vmem:[#allocation6_spill] sm:$0xff] }
 0x93e   :  { %v3497_v40 = vmul.f32 %v3462_v9, %v13542_v15  ;;  %v4390_v42 = vmul.f32 %v4373_v43, %v13530_v4  ;;  %v3496_v1 = vmul.f32 %v3470_v18, %v13543_v45  ;;  %v3686_v27 = vsel %vm723_vm5, %v3634_v53, %v10883_v6  ;;  %3849 = vrot.lane.b32.xlu0 %v13482_v37, %s7804_s26  ;;  %v13546_v18 = vld [vmem:[#allocation38_spill] sm:$0xff] }
 0x93f   :  { %v3694_v7 = vsel %vm723_vm5, %v13544_v0, %v3634_v53  ;;  %v3145_v19 = vadd.f32 %v3113_v32, %v10742_v52  ;;  %v3338_v11 = vmul.f32 %v13541_v36, %v3274_v20  ;;  %v3902_v26 = vsel %vm803_vm6, %v10927_v34, %v10454_v33 }
 0x940   :  { %v3337_v43 = vmul.f32 %v13541_v36, %v3273_v49  ;;  %3877 = vrot.lane.b32.xlu1 %v13498_v5, %s7804_s26  ;;  %v3559_v9 = vmul.f32 %v13545_v48, %v3495_v57  ;;  %v3336_v53 = vmul.f32 %v13541_v36, %v3272_v3  ;;  %v3719_v4 = vmul.f32 %v3694_v7, %v13546_v18  ;;  %v11082_v32 = vpop.permute.xlu0 %2949 }
 0x941   :  { %v3720_v52 = vmul.f32 %v3686_v27, %v13547_v22  ;;  %v3146_v20 = vadd.f32 %v3114_v14, %v10761_v16  ;;  %v3367_v58 = vadd.f32 %v3335_v39, %v10812_v28  ;;  %v3562_v33 = vmul.f32 %v13545_v48, %v3498_v51  ;;  %v3666_v21 = vpop.permute.xlu1 %3665  ;;  %v13548_v28 = vld [vmem:[#allocation43_spill] sm:$0xff]  ;;  %v13549_v51 = vld [vmem:[#allocation120_spill] sm:$0xff] }
 0x942   :  { %v3561_v49 = vmul.f32 %v13545_v48, %v3497_v40  ;;  %v3945_v15 = vmul.f32 %v3902_v26, %v13519_v25  ;;  %v3560_v57 = vmul.f32 %v13545_v48, %v3496_v1  ;;  %v3678_v3 = vsel %vm723_vm5, %v10883_v6, %v3666_v21  ;;  %4105 = vrot.lane.b32.xlu0 %v13496_v50, %s7807_s29  ;;  %v13550_v6 = vld [vmem:[#allocation78_spill] sm:$0xff]  ;;  %v13605_v25 = vld [vmem:[#allocation80_spill] sm:$0xff] }
 0x943   :  { %v3702_v36 = vsel %vm723_vm5, %v3666_v21, %v13544_v0  ;;  %v3370_v16 = vadd.f32 %v3338_v11, %v3146_v20  ;;  %v3369_v39 = vadd.f32 %v3337_v43, %v3145_v19  ;;  %v3721_v40 = vmul.f32 %v3678_v3, %v13510_v30  ;;  %v13552_v20 = vld [vmem:[#allocation87_spill] sm:$0xff] }
 0x944   :  { %v3722_v14 = vmul.f32 %v3702_v36, %v13548_v28  ;;  %4101 = vrot.lane.b32.xlu1 %v13498_v5, %s7807_s29  ;;  %v3591_v1 = vadd.f32 %v3559_v9, %v3367_v58  ;;  %v3368_v27 = vadd.f32 %v3336_v53, %v13549_v51  ;;  %v3783_v7 = vmul.f32 %v13550_v6, %v3719_v4  ;;  %v11105_v21 = vpop.permute.xlu0 %3621  ;;  %v13553_v9 = vld [vmem:[#allocation128_spill] sm:$0xff]  ;;  %v13606_v28 = vld [vmem:[#allocation141_spill] sm:$0xff] }
 0x945   :  { %v3784_v26 = vmul.f32 %v13550_v6, %v3720_v52  ;;  %13551 = vst [vmem:[#allocation115_spill] sm:$0xff] %v11105_v21  ;;  %v3594_v0 = vadd.f32 %v3562_v33, %v3370_v16  ;;  %v3593_v48 = vadd.f32 %v3561_v49, %v3369_v39  ;;  %v3785_v19 = vmul.f32 %v13550_v6, %v3721_v40  ;;  %v3858_v43 = vpop.permute.xlu1 %3857  ;;  %v13554_v33 = vld [vmem:[#allocation48_spill] sm:$0xff]  ;;  %v13555_v16 = vld [vmem:[#allocation49_spill] sm:$0xff] }
 0x946   :  { %v3786_v11 = vmul.f32 %v13550_v6, %v3722_v14  ;;  %v4009_v3 = vmul.f32 %v13552_v20, %v3945_v15  ;;  %v3592_v36 = vadd.f32 %v3560_v57, %v3368_v27  ;;  %v3910_v58 = vsel %vm803_vm6, %v3858_v43, %v10927_v34  ;;  %4073 = vrot.lane.b32.xlu0 %v13482_v37, %s7807_s29  ;;  %v13556_v15 = vld [vmem:[#allocation66_spill] sm:$0xff] }
 0x947   :  { %v3918_v4 = vsel %vm803_vm6, %v13553_v9, %v3858_v43  ;;  %v3817_v53 = vadd.f32 %v3785_v19, %v3593_v48  ;;  %v3944_v39 = vmul.f32 %v3910_v58, %v13555_v16  ;;  %v4453_v57 = vmul.f32 %v13556_v15, %v4389_v24  ;;  %v13558_v48 = vld [vmem:[#allocation112_spill] sm:$0xff]  ;;  %v13561_v9 = vld [vmem:[#allocation10_spill] sm:$0xff] }
 0x948   :  { %v3818_v52 = vadd.f32 %v3786_v11, %v3594_v0  ;;  %v3943_v49 = vmul.f32 %v3918_v4, %v13554_v33  ;;  %4069 = vrot.lane.b32.xlu1 %v13514_v55, %s7807_s29  ;;  %v4454_v34 = vmul.f32 %v13556_v15, %v4390_v42  ;;  %v3815_v40 = vadd.f32 %v3783_v7, %v3591_v1  ;;  %v11124_v51 = vpop.permute.xlu0 %3845 }
 0x949   :  { %v3816_v14 = vadd.f32 %v3784_v26, %v3592_v36  ;;  %13557 = vst [vmem:[#allocation61_spill] sm:$0xff] %v11124_v51  ;;  %v4008_v6 = vmul.f32 %v13552_v20, %v3944_v39  ;;  %v11128_v0 = vpop.permute.xlu1 %2723  ;;  %v4041_v11 = vadd.f32 %v4009_v3, %v3817_v53  ;;  %v4451_v43 = vmul.f32 %v13556_v15, %v11024_v29  ;;  %v13562_v53 = vld [vmem:[#allocation109_spill] sm:$0xff] }
 0x94a   :  { %v4007_v27 = vmul.f32 %v13552_v20, %v3943_v49  ;;  %v4042_v19 = vadd.f32 %v13558_v48, %v3818_v52  ;;  %v4452_v24 = vmul.f32 %v13556_v15, %v11048_v56  ;;  %4329 = vrot.lane.b32.xlu0 %v13496_v50, %s7806_s28  ;;  %v4262_v42 = vadd.f32 %v10988_v35, %v10960_v8  ;;  %v13559_v20 = vld [vmem:[#allocation147_spill] sm:$0xff]  ;;  %v13563_v52 = vld [vmem:[#allocation113_spill] sm:$0xff]  ;;  %v13569_v48 = vld [vmem:[#allocation70_spill] sm:$0xff] }
 0x94b   :  { %v4261_v1 = vadd.f32 %v10985_v59, %v10958_v38  ;;  %v4040_v26 = vadd.f32 %v4008_v6, %v3816_v14  ;;  %v4265_v29 = vadd.f32 %v10930_v62, %v4041_v11  ;;  %v4260_v4 = vadd.f32 %v10972_v12, %v13561_v9  ;;  %v13564_v49 = vld [vmem:[#allocation79_spill] sm:$0xff]  ;;  %v13593_v51 = vld [vmem:[#allocation117_spill] sm:$0xff] }
 0x94c   :  { %v4039_v7 = vadd.f32 %v4007_v27, %v3815_v40  ;;  %3189 = vrot.lane.b32.xlu1 %v13559_v20, %s7803_s25  ;;  %v4266_v3 = vadd.f32 %v10933_v2, %v4042_v19  ;;  %v11145_v36 = vpop.permute.xlu0 %4325  ;;  %v4486_v56 = vadd.f32 %v4454_v34, %v4262_v42  ;;  %v4259_v8 = vadd.f32 %v10969_v23, %v10956_v17 }
 0x94d   :  { %13560 = vst [vmem:[#allocation69_spill] sm:$0xff] %v11145_v36  ;;  %v4485_v58 = vadd.f32 %v4453_v57, %v4261_v1  ;;  %v11151_v38 = vpop.permute.xlu1 %2755  ;;  %v4489_v35 = vadd.f32 %v10963_v10, %v4265_v29  ;;  %v4264_v2 = vadd.f32 %v13562_v53, %v4040_v26  ;;  %v4484_v39 = vadd.f32 %v4452_v24, %v4260_v4  ;;  %v13565_v57 = vld [vmem:[#allocation142_spill] sm:$0xff]  ;;  %v13577_v4 = vld [vmem:[#allocation148_spill] sm:$0xff] }
 0x94e   :  { %v4490_v59 = vadd.f32 %v10966_v13, %v4266_v3  ;;  %v4263_v62 = vadd.f32 %v13563_v52, %v4039_v7  ;;  %2745 = vrot.lane.b32.xlu0 %v13564_v49, %s7800_s22  ;;  %v4483_v15 = vadd.f32 %v4451_v43, %v4259_v8  ;;  %v13566_v10 = vld [vmem:[#allocation82_spill] sm:$0xff]  ;;  %v3687_v30 = vsel %vm723_vm5, %v13606_v28, %v13605_v25 }
 0x94f   :  { %v4577_v17 = vpack.c.bf16 %v4489_v35, %v4485_v58  ;;  %v4488_v23 = vadd.f32 %v10947_v41, %v4264_v2  ;;  %v11165_v34 = vmul.f32 %v13566_v10, %v13565_v57  ;;  %v4593_v10 = vld [vmem:[%s11250_s15 + $0x30] sm:$0xff]  ;;  %v3724_v36 = vmul.f32 %v3687_v30, %v13547_v22  ;;  %v13619_v22 = vld [vmem:[#allocation85_spill] sm:$0xff] }
 0x950   :  { %3413 = vrot.lane.b32.xlu1 %v13559_v20, %s7802_s24  ;;  %v4578_v12 = vpack.c.bf16 %v4490_v59, %v4486_v56  ;;  %v4487_v13 = vadd.f32 %v10944_v54, %v4263_v62  ;;  %v11167_v40 = vpop.permute.xlu0 %4293  ;;  %v13575_v56 = vld [vmem:[#allocation11_spill] sm:$0xff] }
 0x951   :  { %13567 = vst [vmem:[#allocation129_spill] sm:$0xff] %v11165_v34  ;;  %13568 = vst [vmem:[#allocation71_spill] sm:$0xff] %v11167_v40  ;;  %v11169_v14 = vpop.permute.xlu1 %2947  ;;  %v4576_v27 = vpack.c.bf16 %v4488_v23, %v4484_v39  ;;  %v4591_v23 = vld [vmem:[%s11250_s15 + $0x20] sm:$0xff] }
 0x952   :  { %4932 = vmatprep.mubr.bf16.mxu1 %v4578_v12  ;;  %v4575_v6 = vpack.c.bf16 %v4487_v13, %v4483_v15  ;;  %2777 = vrot.lane.b32.xlu0 %v11165_v34, %s7800_s22  ;;  %v4588_v15 = vld [vmem:[%s11250_s15 + $0x8] sm:$0xff] }
 0x953   :  { %4933 = vmatmul.mubr.bf16.gmra.mrb[48].mxu1 %v4577_v17  ;;  %4867 = vmatprep.mubr.bf16.mxu0 %v4576_v27 }
 0x954   :  { %3637 = vrot.lane.b32.xlu1 %v13559_v20, %s7805_s27  ;;  %4868 = vmatmul.mubr.bf16.gmra.mrb[48].mxu0 %v4575_v6  ;;  %v11175_v54 = vpop.permute.xlu0 %2741 }
 0x955   :  { %v11177_v41 = vpop.permute.xlu1 %3203 }
 0x956   :  { %2969 = vrot.lane.b32.xlu0 %v13564_v49, %s7801_s23 }
 0x958   :  { %3669 = vrot.lane.b32.xlu1 %v13569_v48, %s7805_s27  ;;  %v11183_v19 = vpop.permute.xlu0 %2773 }
 0x959   :  { %v11185_v11 = vpop.permute.xlu1 %3427 }
 0x95a   :  { %3001 = vrot.lane.b32.xlu0 %v11165_v34, %s7801_s23 }
 0x95c   :  { %3861 = vrot.lane.b32.xlu1 %v13559_v20, %s7804_s26  ;;  %v11191_v43 = vpop.permute.xlu0 %2965 }
 0x95d   :  { %v11193_v24 = vpop.permute.xlu1 %3619 }
 0x95e   :  { %3193 = vrot.lane.b32.xlu0 %v13564_v49, %s7803_s25 }
 0x960   :  { %3893 = vrot.lane.b32.xlu1 %v13569_v48, %s7804_s26  ;;  %v11199_v42 = vpop.permute.xlu0 %2997 }
 0x961   :  { %v11201_v1 = vpop.permute.xlu1 %3843 }
 0x962   :  { %13570 = vst [vmem:[#allocation24_spill] sm:$0xff] %v11201_v1  ;;  %3449 = vrot.lane.b32.xlu0 %v11165_v34, %s7802_s24 }
 0x964   :  { %4085 = vrot.lane.b32.xlu1 %v13559_v20, %s7807_s29  ;;  %v11207_v7 = vpop.permute.xlu0 %3221 }
 0x965   :  { %13571 = vst [vmem:[#allocation58_spill] sm:$0xff] %v11207_v7  ;;  %v11209_v26 = vpop.permute.xlu1 %4323  ;;  %v13602_v7 = vld [vmem:[#allocation149_spill] sm:$0xff] }
 0x966   :  { %13572 = vst [vmem:[#allocation13_spill] sm:$0xff] %v11209_v26  ;;  %3641 = vrot.lane.b32.xlu0 %v13564_v49, %s7805_s27  ;;  %v13601_v26 = vld [vmem:[#allocation12_spill] sm:$0xff] }
 0x968   :  { %4341 = vrot.lane.b32.xlu1 %v13569_v48, %s7806_s28  ;;  %v11215_v3 = vpop.permute.xlu0 %3445 }
 0x969   :  { %13573 = vst [vmem:[#allocation15_spill] sm:$0xff] %v11215_v3  ;;  %v11217_v29 = vpop.permute.xlu1 %4291 }
 0x96a   :  { %13574 = vst [vmem:[#allocation111_spill] sm:$0xff] %v11217_v29  ;;  %4297 = vrot.lane.b32.xlu0 %v13482_v37, %s7806_s28  ;;  %v13599_v29 = vld [vmem:[#allocation22_spill] sm:$0xff] }
 0x96c   :  { %2727 = vrot.lane.b32.xlu1 %v13575_v56, %s7800_s22  ;;  %v11223_v58 = vpop.permute.xlu0 %4117 }
 0x96d   :  { %13576 = vst [vmem:[#allocation2_spill] sm:$0xff] %v11223_v58  ;;  %v11225_v9 = vpop.permute.xlu1 %2739 }
 0x96e   :  { %3897 = vrot.lane.b32.xlu0 %v11165_v34, %s7804_s26 }
 0x970   :  { %2759 = vrot.lane.b32.xlu1 %v13577_v4, %s7800_s22  ;;  %v11231_v8 = vpop.permute.xlu0 %4309 }
 0x971   :  { %13578 = vst [vmem:[#allocation65_spill] sm:$0xff] %v11231_v8  ;;  %v11233_v59 = vpop.permute.xlu1 %2771 }
 0x972   :  { %4089 = vrot.lane.b32.xlu0 %v13564_v49, %s7807_s29 }
 0x974   :  { %2951 = vrot.lane.b32.xlu1 %v13575_v56, %s7801_s23  ;;  %v11239_v35 = vpop.permute.xlu0 %3207 }
 0x975   :  { %13579 = vst [vmem:[#allocation8_spill] sm:$0xff] %v11239_v35  ;;  %v11241_v53 = vpop.permute.xlu1 %2963 }
 0x976   :  { %4121 = vrot.lane.b32.xlu0 %v11165_v34, %s7807_s29 }
 0x978   :  { %2983 = vrot.lane.b32.xlu1 %v13577_v4, %s7801_s23  ;;  %v11252_v2 = vpop.permute.xlu0 %3399 }
 0x979   :  { %13580 = vst [vmem:[#allocation138_spill] sm:$0xff] %v11252_v2  ;;  %v11254_v52 = vpop.permute.xlu1 %2995 }
 0x97a   :  { %4313 = vrot.lane.b32.xlu0 %v13564_v49, %s7806_s28 }
 0x97c   :  { %3175 = vrot.lane.b32.xlu1 %v13575_v56, %s7803_s25  ;;  %v11260_v62 = vpop.permute.xlu0 %3623 }
 0x97d   :  { %13581 = vst [vmem:[#allocation131_spill] sm:$0xff] %v11260_v62  ;;  %v11262_v39 = vpop.permute.xlu1 %3219  ;;  %v5040_v62 = vld [vmem:[%s11289_s1 + $0x8] sm:$0xff] }
 0x97e   :  { %4345 = vrot.lane.b32.xlu0 %v11165_v34, %s7806_s28 }
 0x980   :  { %3431 = vrot.lane.b32.xlu1 %v13577_v4, %s7802_s24  ;;  %v11269_v12 = vpop.permute.xlu0 %3879 }
 0x981   :  { %13582 = vst [vmem:[#allocation81_spill] sm:$0xff] %v11269_v12  ;;  %v11271_v17 = vpop.permute.xlu1 %3443 }
 0x982   :  { %4602 = vperm.xlu0 %7403, %v4588_v15   ;;  %v5030_v15 = vld [vmem:[%s6494_s17] sm:$0xf]  ;;  %s6507_s17 = sld [smem:[%s12629_s0 + %s7839_s16]]  }
 0x984   :  { %3655 = vrot.lane.b32.xlu1 %v13577_v4, %s7805_s27  ;;  %v11279_v13 = vpop.permute.xlu0 %3223 }
 0x985   :  { %13583 = vst [vmem:[#allocation123_spill] sm:$0xff] %v11279_v13  ;;  %v11281_v57 = vpop.permute.xlu1 %3667 }
 0x986   :  { %13584 = vst [vmem:[#allocation21_spill] sm:$0xff] %v11281_v57  ;;  %4617 = vperm.xlu0 %7403, %v4591_v23  }
 0x988   :  { %3847 = vrot.lane.b32.xlu1 %v13575_v56, %s7804_s26  ;;  %v11291_v27 = vpop.permute.xlu0 %3415 }
 0x989   :  { %13585 = vst [vmem:[#allocation122_spill] sm:$0xff] %v11291_v27  ;;  %v11293_v6 = vpop.permute.xlu1 %3891  ;;  %v13591_v27 = vld [vmem:[#allocation99_spill] sm:$0xff] }
 0x98a   :  { %13586 = vst [vmem:[#allocation130_spill] sm:$0xff] %v11293_v6  ;;  %4627 = vperm.xlu0 %7403, %v4593_v10   ;;  %v13592_v10 = vld [vmem:[#allocation139_spill] sm:$0xff]  ;;  %v11358_v6 = vmul.f32 %v13601_v26, %v13498_v5 }
 0x98b   :  { %v3247_v13 = vsel %vm563_vm3, %v13592_v10, %v13591_v27  ;;  %v5044_v5 = vld [vmem:[%s11289_s1 + $0x28] sm:$0xff] }
 0x98c   :  { %4103 = vrot.lane.b32.xlu1 %v13577_v4, %s7807_s29  ;;  %v11297_v23 = vpop.permute.xlu0 %3671 }
 0x98d   :  { %13587 = vst [vmem:[#allocation89_spill] sm:$0xff] %v11297_v23  ;;  %v11299_v12 = vpop.permute.xlu1 %4115  ;;  %v5042_v23 = vld [vmem:[%s11289_s1 + $0x18] sm:$0xff] }
 0x98e   :  { %13588 = vst [vmem:[#allocation137_spill] sm:$0xff] %v11299_v12  ;;  %5154 = vperm.xlu0 %7403, %v5030_v15   ;;  %v13594_v15 = vld [vmem:[#allocation73_spill] sm:$0xff] }
 0x98f   :  { %v11317_v21 = vmul.f32 %v13594_v15, %v13593_v51  ;;  %v11335_v51 = vmul.f32 %v13601_v26, %v13514_v55  ;;  %v11354_v55 = vmul.f32 %v13601_v26, %v13559_v20  ;;  %v3023_v20 = vsel %vm483_vm2, %v11169_v14, %v11241_v53 }
 0x990   :  { %4071 = vrot.lane.b32.xlu1 %v13575_v56, %s7807_s29  ;;  %v11304_v2 = vpop.permute.xlu0 %3863  ;;  %v13595_v56 = vld [vmem:[#allocation114_spill] sm:$0xff] }
 0x991   :  { %13589 = vst [vmem:[#allocation146_spill] sm:$0xff] %v11304_v2  ;;  %v11306_v35 = vpop.permute.xlu1 %4307  ;;  %v11321_v58 = vmul.f32 %v13594_v15, %v13595_v56  ;;  %v13597_v2 = vld [vmem:[#allocation116_spill] sm:$0xff]  ;;  %v2799_v56 = vsel %vm404_vm1, %v11128_v0, %v11225_v9 }
 0x992   :  { %13590 = vst [vmem:[#allocation124_spill] sm:$0xff] %v11306_v35  ;;  %5245 = vperm.xlu0 %7403, %v5040_v62   ;;  %v11325_v62 = vmul.f32 %v13594_v15, %v13597_v2  ;;  %v13600_v35 = vld [vmem:[#allocation77_spill] sm:$0xff]  ;;  %v11343_v2 = vmul.f32 %v13594_v15, %v13602_v7  ;;  %v13607_v7 = vld [vmem:[#allocation83_spill] sm:$0xff] }
 0x993   :  { %13596 = vst [vmem:[#allocation132_spill] sm:$0xff] %v11321_v58  ;;  %v3911_v15 = vsel %vm803_vm6, %v10921_v61, %v13607_v7  ;;  %v13612_v7 = vld [vmem:[#allocation26_spill] sm:$0xff]  ;;  %v13632_v61 = vld [vmem:[#allocation47_spill] sm:$0xff] }
 0x994   :  { %4327 = vrot.lane.b32.xlu1 %v13577_v4, %s7806_s28  ;;  %v11327_v3 = vpop.permute.xlu0 %2729  ;;  %v3471_v4 = vsel %vm643_vm4, %v13600_v35, %v13599_v29  ;;  %13603 = vst [vmem:[#allocation144_spill] sm:$0xff] %v11343_v2  ;;  %v2828_v2 = vmul.f32 %v2799_v56, %v13612_v7  ;;  %v3948_v30 = vmul.f32 %v3911_v15, %v13555_v16  ;;  %v13623_v16 = vld [vmem:[#allocation104_spill] sm:$0xff] }
 0x995   :  { %13598 = vst [vmem:[#allocation127_spill] sm:$0xff] %v11327_v3  ;;  %v11345_v12 = vpop.permute.xlu1 %4339  ;;  %v3276_v3 = vmul.f32 %v3247_v13, %v13540_v63  ;;  %v11366_v13 = vmul.f32 %v13601_v26, %v13569_v48  ;;  %v13609_v63 = vld [vmem:[#allocation136_spill] sm:$0xff]  ;;  %v3500_v48 = vmul.f32 %v3471_v4, %v13543_v45  ;;  %v2800_v26 = vsel %vm404_vm1, %v11012_v47, %v11175_v54 }
 0x996   :  { %13604 = vst [vmem:[#allocation108_spill] sm:$0xff] %v11345_v12  ;;  %5255 = vperm.xlu0 %7403, %v5042_v23   ;;  %v13610_v23 = vld [vmem:[#allocation14_spill] sm:$0xff]  ;;  %v2792_v4 = vsel %vm404_vm1, %v11175_v54, %v11053_v31  ;;  %v4143_v54 = vsel %vm883_vm7, %v13619_v22, %v10953_v44  ;;  %v2832_v15 = vmul.f32 %v2800_v26, %v13612_v7 }
 0x997   :  { %13608 = vst [vmem:[#allocation140_spill] sm:$0xff] %v11366_v13  ;;  %v11382_v12 = vmul.f32 %v13610_v23, %v13482_v37  ;;  %v11394_v57 = vmul.f32 %v13610_v23, %v13496_v50  ;;  %v11405_v56 = vmul.f32 %v13610_v23, %v13564_v49  ;;  %v11409_v45 = vmul.f32 %v13610_v23, %v11165_v34  ;;  %v13621_v49 = vld [vmem:[#allocation84_spill] sm:$0xff]  ;;  %v13633_v13 = vld [vmem:[#allocation31_spill] sm:$0xff] }
 0x998   :  { %2743 = vrot.lane.b32.xlu1 %v13609_v63, %s7800_s22  ;;  %v11390_v25 = vpop.permute.xlu0 %2761  ;;  %v4135_v23 = vsel %vm883_vm7, %v10953_v44, %v13621_v49  ;;  %v13624_v44 = vld [vmem:[#allocation90_spill] sm:$0xff]  ;;  %v4171_v8 = vmul.f32 %v4143_v54, %v13492_v46 }
 0x999   :  { %13611 = vst [vmem:[#allocation72_spill] sm:$0xff] %v11382_v12  ;;  %13613 = vst [vmem:[#allocation121_spill] sm:$0xff] %v11390_v25  ;;  %v11401_v12 = vpop.permute.xlu1 %2981  ;;  %v6876_v37 = vpop.f32.mrb[44].mxu1  ;;  %v13620_v25 = vld [vmem:[#allocation32_spill] sm:$0xff]  ;;  %v13627_v49 = vld [vmem:[#allocation18_spill] sm:$0xff] }
 0x99a   :  { %13614 = vst [vmem:[#allocation134_spill] sm:$0xff] %v11394_v57  ;;  %13615 = vst [vmem:[#allocation17_spill] sm:$0xff] %v11401_v12  ;;  %v13618_v57 = vld [vmem:[#allocation88_spill] sm:$0xff]  ;;  %v3052_v12 = vmul.f32 %v3023_v20, %v13620_v25  ;;  %v6877_v33 = vpop.f32.mrb[45].mxu1  ;;  %5265 = vperm.xlu0 %7403, %v5044_v5   ;;  %v5046_v5 = vld [vmem:[%s11289_s1 + $0x38] sm:$0xff]  ;;  %v11449_v40 = vmul.f32 %v13627_v49, %v3724_v36  ;;  %v2807_v36 = vsel %vm404_vm1, %v11233_v59, %v11128_v0 }
 0x99b   :  { %13616 = vst [vmem:[#allocation133_spill] sm:$0xff] %v11405_v56  ;;  %13617 = vst [vmem:[#allocation91_spill] sm:$0xff] %v11409_v45  ;;  %v11412_v50 = vmul.f32 %v13618_v57, %v3276_v3  ;;  %v3239_v3 = vsel %vm563_vm3, %v13591_v27, %v11177_v41  ;;  %v11429_v34 = vadd.f32 %v6877_v33, %v6876_v37  ;;  %v6879_v20 = vpop.f32.mrb[46].mxu1  ;;  %v6836_v45 = vpop.f32.mrb[44].mxu0  ;;  %v13625_v27 = vld [vmem:[#allocation27_spill] sm:$0xff]  ;;  %v13626_v33 = vld [vmem:[#allocation74_spill] sm:$0xff] }
 0x99c   :  { %2775 = vrot.lane.b32.xlu1 %v13623_v16, %s7800_s22  ;;  %v11440_v56 = vmul.f32 %v13624_v44, %v3500_v48  ;;  %v2833_v22 = vmul.f32 %v2792_v4, %v13625_v27  ;;  %v2808_v37 = vsel %vm404_vm1, %v11183_v19, %v11012_v47  ;;  %v2892_v26 = vmul.f32 %v13626_v33, %v2828_v2  ;;  %v6880_v7 = vpop.f32.mrb[47].mxu1  ;;  %v11458_v1 = vpop.permute.xlu0 %2953  ;;  %v5606_v0 = vld [vmem:[%s11378_s5 + $0x8] sm:$0xff]  ;;  %s7828_s22 = smov 34  }
 0x99d   :  { %13622 = vst [vmem:[#allocation62_spill] sm:$0xff] %v11429_v34  ;;  %v6837_v34 = vpop.f32.mrb[45].mxu0  ;;  %13628 = vst [vmem:[#allocation135_spill] sm:$0xff] %v11449_v40  ;;  %v11454_v48 = vadd.f32 %v6880_v7, %v6879_v20  ;;  %v4172_v47 = vmul.f32 %v4135_v23, %v13632_v61  ;;  %v3277_v2 = vmul.f32 %v3239_v3, %v13633_v13  ;;  %v13634_v40 = vld [vmem:[#allocation86_spill] sm:$0xff]  ;;  %v13636_v20 = vld [vmem:[#allocation75_spill] sm:$0xff] }
 0x99e   :  { %v11452_v58 = vadd.f32 %v6837_v34, %v6836_v45  ;;  %v11456_v4 = vpop.permute.xlu1 %3173  ;;  %13631 = vst [vmem:[#allocation9_spill] sm:$0xff] %v11458_v1  ;;  %v3116_v54 = vmul.f32 %v13634_v40, %v3052_v12  ;;  %v6839_v45 = vpop.f32.mrb[46].mxu0  ;;  %5275 = vperm.xlu0 %7403, %v5046_v5   ;;  %v13635_v34 = vld [vmem:[#allocation59_spill] sm:$0xff]  ;;  %v3463_v23 = vsel %vm643_vm4, %v13599_v29, %v11185_v11  ;;  %v13637_v3 = vld [vmem:[#allocation28_spill] sm:$0xff] }
 0x99f   :  { %13630 = vst [vmem:[#allocation118_spill] sm:$0xff] %v11454_v48  ;;  %v11468_v7 = vmul.f32 %v13635_v34, %v3948_v30  ;;  %v2831_v48 = vmul.f32 %v2808_v37, %v13637_v3  ;;  %v6840_v46 = vpop.f32.mrb[47].mxu0  ;;  %v2897_v12 = vmul.f32 %v13636_v20, %v2833_v22  ;;  %v2784_v30 = vsel %vm404_vm1, %v11053_v31, %v11183_v19  ;;  %v13639_v61 = vld [vmem:[#allocation63_spill] sm:$0xff] }
 0x9a0   :  { %13629 = vst [vmem:[#allocation143_spill] sm:$0xff] %v11452_v58  ;;  %v2896_v58 = vmul.f32 %v13636_v20, %v2832_v15  ;;  %2967 = vrot.lane.b32.xlu1 %v13609_v63, %s7801_s23  ;;  %v2924_v15 = vadd.f32 %v2892_v26, %v11317_v21  ;;  %v11485_v5 = vadd.f32 %v6840_v46, %v6839_v45  ;;  %v11501_v46 = vpop.permute.xlu0 %2985  ;;  %v13641_v26 = vld [vmem:[#allocation41_spill] sm:$0xff] }
 0x9a1   :  { %v11488_v29 = vmul.f32 %v13639_v61, %v4171_v8  ;;  %v2791_v37 = vsel %vm404_vm1, %v11225_v9, %v11151_v38  ;;  %v2827_v22 = vmul.f32 %v2807_v36, %v13637_v3  ;;  %v3031_v31 = vsel %vm483_vm2, %v11254_v52, %v11169_v14  ;;  %13640 = vst [vmem:[#allocation119_spill] sm:$0xff] %v11501_v46  ;;  %v13642_v36 = vld [vmem:[#allocation29_spill] sm:$0xff]  ;;  %v13648_v46 = vld [vmem:[#allocation34_spill] sm:$0xff] }
 0x9a2   :  { %13638 = vst [vmem:[#allocation7_spill] sm:$0xff] %v11485_v5  ;;  %v11499_v19 = vpop.permute.xlu1 %3205  ;;  %v11504_v21 = vmul.f32 %v13639_v61, %v4172_v47  ;;  %v11507_v8 = vmul.f32 %v13618_v57, %v3277_v2  ;;  %v3501_v45 = vmul.f32 %v3463_v23, %v13641_v26  ;;  %v3148_v9 = vadd.f32 %v3116_v54, %v2924_v15  ;;  %v13643_v3 = vld [vmem:[#allocation145_spill] sm:$0xff]  ;;  %v5889_v2 = vld [vmem:[%s11437_s9] sm:$0xff] }
 0x9a3   :  { %5615 = vperm.xlu0 %7403, %v5606_v0   ;;  %v2834_v5 = vmul.f32 %v2784_v30, %v13642_v36  ;;  %v2895_v1 = vmul.f32 %v13636_v20, %v2831_v48  ;;  %v3015_v14 = vsel %vm483_vm2, %v11241_v53, %v13643_v3  ;;  %v3255_v47 = vsel %vm563_vm3, %v11262_v39, %v13592_v10  ;;  %v13645_v0 = vld [vmem:[#allocation36_spill] sm:$0xff]  ;;  %v13647_v15 = vld [vmem:[#allocation33_spill] sm:$0xff] }
 0x9a4   :  { %2999 = vrot.lane.b32.xlu1 %v13623_v16, %s7801_s23  ;;  %v11524_v54 = vadd.f32 %v2896_v58, %v11354_v55  ;;  %v11527_v23 = vadd.f32 %v2897_v12, %v11358_v6  ;;  %v2829_v48 = vmul.f32 %v2791_v37, %v13625_v27  ;;  %v3051_v30 = vmul.f32 %v3031_v31, %v13645_v0  ;;  %v11546_v12 = vpop.permute.xlu0 %3177  ;;  %s12531_s23 = sld [smem:[%s12629_s0 + %s7835_s8]]  }
 0x9a5   :  { %v3695_v53 = vsel %vm723_vm5, %v11193_v24, %v13606_v28  ;;  %v3024_v10 = vsel %vm483_vm2, %v11082_v32, %v11191_v43  ;;  %v2891_v58 = vmul.f32 %v13626_v33, %v2827_v22  ;;  %v3479_v6 = vsel %vm643_vm4, %v11271_v17, %v13600_v35  ;;  %13646 = vst [vmem:[#allocation125_spill] sm:$0xff] %v11546_v12 }
 0x9a6   :  { %13644 = vst [vmem:[#allocation3_spill] sm:$0xff] %v11527_v23  ;;  %v11544_v55 = vpop.permute.xlu1 %3397  ;;  %v2783_v28 = vsel %vm404_vm1, %v11151_v38, %v11233_v59  ;;  %v3053_v37 = vmul.f32 %v3015_v14, %v13647_v15  ;;  %v3372_v31 = vadd.f32 %v11412_v50, %v3148_v9  ;;  %v3275_v22 = vmul.f32 %v3255_v47, %v13648_v46  ;;  %v5891_v50 = vld [vmem:[%s11437_s9 + $0x10] sm:$0xff] }
 0x9a7   :  { %5903 = vperm.xlu0 %7403, %v5889_v2   ;;  %v11556_v26 = vmul.f32 %v13624_v44, %v3501_v45  ;;  %v2898_v35 = vmul.f32 %v13636_v20, %v2834_v5  ;;  %v11560_v23 = vadd.f32 %v2895_v1, %v11335_v51  ;;  %v3032_v38 = vsel %vm483_vm2, %v11199_v42, %v11082_v32  ;;  %v13649_v1 = vld [vmem:[#allocation44_spill] sm:$0xff] }
 0x9a8   :  { %3191 = vrot.lane.b32.xlu1 %v13609_v63, %s7803_s25  ;;  %v2893_v59 = vmul.f32 %v13626_v33, %v2829_v48  ;;  %v3007_v45 = vsel %vm483_vm2, %v13643_v3, %v11254_v52  ;;  %v3115_v20 = vmul.f32 %v13634_v40, %v3051_v30  ;;  %v3499_v51 = vmul.f32 %v3479_v6, %v13649_v1  ;;  %v11582_v2 = vpop.permute.xlu0 %3433 }
 0x9a9   :  { %v3723_v5 = vmul.f32 %v3695_v53, %v13546_v18  ;;  %v3056_v32 = vmul.f32 %v3024_v10, %v13620_v25  ;;  %v2830_v9 = vmul.f32 %v2783_v28, %v13642_v36  ;;  %v2923_v14 = vadd.f32 %v2891_v58, %v11325_v62  ;;  %13650 = vst [vmem:[#allocation6_spill] sm:$0xff] %v11582_v2  ;;  %v13651_v53 = vld [vmem:[#allocation140_spill] sm:$0xff]  ;;  %v13652_v62 = vld [vmem:[#allocation126_spill] sm:$0xff]  ;;  %v13657_v2 = vld [vmem:[#allocation35_spill] sm:$0xff] }
 0x9aa   :  { %v11580_v47 = vpop.permute.xlu1 %3429  ;;  %v3117_v48 = vmul.f32 %v13634_v40, %v3053_v37  ;;  %v3596_v52 = vadd.f32 %v11440_v56, %v3372_v31  ;;  %v3231_v3 = vsel %vm563_vm3, %v11177_v41, %v11262_v39  ;;  %v3339_v30 = vmul.f32 %v13618_v57, %v3275_v22  ;;  %v13653_v58 = vld [vmem:[#allocation24_spill] sm:$0xff]  ;;  %v13654_v37 = vld [vmem:[#allocation37_spill] sm:$0xff]  ;;  %v5893_v31 = vld [vmem:[%s11437_s9 + $0x20] sm:$0xff] }
 0x9ab   :  { %5913 = vperm.xlu0 %7403, %v5891_v50   ;;  %v11592_v10 = vadd.f32 %v2898_v35, %v13651_v53  ;;  %v3919_v6 = vsel %vm803_vm6, %v13653_v58, %v13652_v62  ;;  %v3055_v28 = vmul.f32 %v3032_v38, %v13645_v0  ;;  %v3054_v56 = vmul.f32 %v3007_v45, %v13654_v37  ;;  %v13655_v41 = vld [vmem:[#allocation132_spill] sm:$0xff]  ;;  %v13663_v18 = vld [vmem:[#allocation69_spill] sm:$0xff] }
 0x9ac   :  { %3447 = vrot.lane.b32.xlu1 %v13623_v16, %s7802_s24  ;;  %v2925_v39 = vadd.f32 %v2893_v59, %v13655_v41  ;;  %v3147_v22 = vadd.f32 %v3115_v20, %v2923_v14  ;;  %v3455_v35 = vsel %vm643_vm4, %v11185_v11, %v11271_v17  ;;  %v3563_v50 = vmul.f32 %v13624_v44, %v3499_v51  ;;  %v13656_v62 = vld [vmem:[#allocation16_spill] sm:$0xff]  ;;  %v11615_v59 = vpop.permute.xlu0 %3657  ;;  %v13659_v20 = vld [vmem:[#allocation65_spill] sm:$0xff]  ;;  %v13660_v14 = vld [vmem:[#allocation71_spill] sm:$0xff] }
 0x9ad   :  { %v3787_v53 = vmul.f32 %v13627_v49, %v3723_v5  ;;  %v3120_v38 = vmul.f32 %v13656_v62, %v3056_v32  ;;  %v2894_v45 = vmul.f32 %v13626_v33, %v2830_v9  ;;  %v3278_v12 = vmul.f32 %v3231_v3, %v13657_v2  ;;  %13658 = vst [vmem:[#allocation120_spill] sm:$0xff] %v11615_v59  ;;  %v13661_v5 = vld [vmem:[#allocation135_spill] sm:$0xff]  ;;  %v13662_v25 = vld [vmem:[#allocation48_spill] sm:$0xff]  ;;  %v13664_v3 = vld [vmem:[#allocation45_spill] sm:$0xff] }
 0x9ae   :  { %v11613_v0 = vpop.permute.xlu1 %3653  ;;  %v4368_v11 = vsel %vm963_vm8, %v13660_v14, %v13659_v20  ;;  %v3149_v17 = vadd.f32 %v3117_v48, %v2925_v39  ;;  %v3371_v51 = vadd.f32 %v3339_v30, %v3147_v22  ;;  %v3820_v41 = vadd.f32 %v13661_v5, %v3596_v52  ;;  %v5895_v14 = vld [vmem:[%s11437_s9 + $0x30] sm:$0xff]  ;;  %v13668_v22 = vld [vmem:[#allocation54_spill] sm:$0xff] }
 0x9af   :  { %5923 = vperm.xlu0 %7403, %v5893_v31   ;;  %v3947_v32 = vmul.f32 %v3919_v6, %v13662_v25  ;;  %v4360_v33 = vsel %vm963_vm8, %v13659_v20, %v13663_v18  ;;  %v3118_v9 = vmul.f32 %v13634_v40, %v3054_v56  ;;  %v3502_v59 = vmul.f32 %v3455_v35, %v13664_v3  ;;  %v13665_v31 = vld [vmem:[#allocation21_spill] sm:$0xff]  ;;  %v13666_v52 = vld [vmem:[#allocation80_spill] sm:$0xff]  ;;  %v13669_v5 = vld [vmem:[#allocation130_spill] sm:$0xff] }
 0x9b0   :  { %3639 = vrot.lane.b32.xlu1 %v13609_v63, %s7805_s27  ;;  %v3119_v48 = vmul.f32 %v13656_v62, %v3055_v28  ;;  %v3595_v30 = vadd.f32 %v3563_v50, %v3371_v51  ;;  %v3679_v6 = vsel %vm723_vm5, %v13666_v52, %v13665_v31  ;;  %v3703_v39 = vsel %vm723_vm5, %v13665_v31, %v11193_v24  ;;  %v13667_v40 = vld [vmem:[#allocation144_spill] sm:$0xff]  ;;  %v13670_v28 = vld [vmem:[#allocation83_spill] sm:$0xff]  ;;  %v11650_v52 = vpop.permute.xlu0 %3849  ;;  %v13674_v31 = vld [vmem:[#allocation42_spill] sm:$0xff] }
 0x9b1   :  { %v2926_v56 = vadd.f32 %v2894_v45, %v13667_v40  ;;  %v4399_v35 = vmul.f32 %v4368_v11, %v13668_v22  ;;  %v3342_v20 = vmul.f32 %v13618_v57, %v3278_v12  ;;  %v3903_v50 = vsel %vm803_vm6, %v13670_v28, %v13669_v5  ;;  %13672 = vst [vmem:[#allocation87_spill] sm:$0xff] %v11650_v52  ;;  %v13673_v18 = vld [vmem:[#allocation55_spill] sm:$0xff] }
 0x9b2   :  { %v11648_v51 = vpop.permute.xlu1 %3877  ;;  %v4400_v25 = vmul.f32 %v4360_v33, %v13673_v18  ;;  %v3373_v24 = vadd.f32 %v11507_v8, %v3149_v17  ;;  %v3927_v45 = vsel %vm803_vm6, %v13669_v5, %v13653_v58  ;;  %v4044_v57 = vadd.f32 %v11468_v7, %v3820_v41  ;;  %v13675_v28 = vld [vmem:[#allocation43_spill] sm:$0xff]  ;;  %v5897_v33 = vld [vmem:[%s11437_s9 + $0x40] sm:$0xff] }
 0x9b3   :  { %13671 = vst [vmem:[#allocation78_spill] sm:$0xff] %v11648_v51  ;;  %5933 = vperm.xlu0 %7403, %v5895_v14   ;;  %v3150_v12 = vadd.f32 %v3118_v9, %v2926_v56  ;;  %v3566_v11 = vmul.f32 %v13624_v44, %v3502_v59  ;;  %v3725_v40 = vmul.f32 %v3679_v6, %v13674_v31  ;;  %v13676_v14 = vld [vmem:[#allocation52_spill] sm:$0xff]  ;;  %v13677_v44 = vld [vmem:[#allocation102_spill] sm:$0xff]  ;;  %v13679_v9 = vld [vmem:[#allocation53_spill] sm:$0xff] }
 0x9b4   :  { %v3726_v51 = vmul.f32 %v3703_v39, %v13675_v28  ;;  %3895 = vrot.lane.b32.xlu1 %v13623_v16, %s7804_s26  ;;  %v11666_v8 = vadd.f32 %v3120_v38, %v11524_v54  ;;  %v4011_v17 = vmul.f32 %v13635_v34, %v3947_v32  ;;  %v3819_v58 = vadd.f32 %v3787_v53, %v3595_v30  ;;  %v11679_v56 = vpop.permute.xlu0 %4105  ;;  %v13681_v38 = vld [vmem:[#allocation137_spill] sm:$0xff]  ;;  %v13682_v32 = vld [vmem:[#allocation84_spill] sm:$0xff] }
 0x9b5   :  { %v3949_v5 = vmul.f32 %v3903_v50, %v13676_v14  ;;  %v11671_v7 = vadd.f32 %v3119_v48, %v11560_v23  ;;  %v11674_v59 = vmul.f32 %v13677_v44, %v4399_v35  ;;  %v3374_v41 = vadd.f32 %v3342_v20, %v3150_v12  ;;  %13680 = vst [vmem:[#allocation66_spill] sm:$0xff] %v11679_v56  ;;  %v13683_v50 = vld [vmem:[#allocation85_spill] sm:$0xff]  ;;  %v13691_v56 = vld [vmem:[#allocation51_spill] sm:$0xff] }
 0x9b6   :  { %v3950_v6 = vmul.f32 %v3927_v45, %v13679_v9  ;;  %v11677_v39 = vpop.permute.xlu1 %4101  ;;  %v11682_v54 = vmul.f32 %v13677_v44, %v4400_v25  ;;  %v3597_v53 = vadd.f32 %v11556_v26, %v3373_v24  ;;  %v4127_v23 = vsel %vm883_vm7, %v13682_v32, %v13681_v38  ;;  %v5899_v26 = vld [vmem:[%s11437_s9 + $0x50] sm:$0xff]  ;;  %v13684_v45 = vld [vmem:[#allocation17_spill] sm:$0xff] }
 0x9b7   :  { %13678 = vst [vmem:[#allocation128_spill] sm:$0xff] %v11674_v59  ;;  %5943 = vperm.xlu0 %7403, %v5897_v33   ;;  %v11690_v48 = vadd.f32 %v11504_v21, %v4044_v57  ;;  %v3598_v30 = vadd.f32 %v3566_v11, %v3374_v41  ;;  %v3789_v35 = vmul.f32 %v13627_v49, %v3725_v40  ;;  %v13685_v57 = vld [vmem:[#allocation58_spill] sm:$0xff]  ;;  %v13687_v33 = vld [vmem:[#allocation13_spill] sm:$0xff]  ;;  %v13688_v41 = vld [vmem:[#allocation124_spill] sm:$0xff] }
 0x9b8   :  { %v3790_v20 = vmul.f32 %v13627_v49, %v3726_v51  ;;  %v4151_v25 = vsel %vm883_vm7, %v13681_v38, %v13683_v50  ;;  %4087 = vrot.lane.b32.xlu1 %v13609_v63, %s7807_s29  ;;  %v4013_v24 = vmul.f32 %v13635_v34, %v3949_v5  ;;  %v3008_v21 = vsel %vm483_vm2, %v13684_v45, %v11199_v42  ;;  %v13686_v11 = vld [vmem:[#allocation50_spill] sm:$0xff]  ;;  %v13689_v38 = vld [vmem:[#allocation111_spill] sm:$0xff]  ;;  %v11722_v50 = vpop.permute.xlu0 %4073 }
 0x9b9   :  { %v3256_v49 = vsel %vm563_vm3, %v13685_v57, %v11456_v4  ;;  %v4043_v51 = vadd.f32 %v4011_v17, %v3819_v58  ;;  %v4014_v12 = vmul.f32 %v13635_v34, %v3950_v6  ;;  %v4173_v40 = vmul.f32 %v4127_v23, %v13686_v11  ;;  %13690 = vst [vmem:[#allocation112_spill] sm:$0xff] %v11722_v50  ;;  %v13692_v6 = vld [vmem:[#allocation15_spill] sm:$0xff] }
 0x9ba   :  { %v4359_v5 = vsel %vm963_vm8, %v13688_v41, %v13687_v33  ;;  %v4367_v42 = vsel %vm963_vm8, %v13689_v38, %v13688_v41  ;;  %v11720_v32 = vpop.permute.xlu1 %4069  ;;  %v4174_v17 = vmul.f32 %v4151_v25, %v13691_v56  ;;  %v3016_v34 = vsel %vm483_vm2, %v11191_v43, %v13684_v45 }
 0x9bb   :  { %v3232_v58 = vsel %vm563_vm3, %v11499_v19, %v13685_v57  ;;  %v3480_v23 = vsel %vm643_vm4, %v13692_v6, %v11544_v55  ;;  %5953 = vperm.xlu0 %7403, %v5899_v26   ;;  %v3821_v41 = vadd.f32 %v3789_v35, %v3597_v53  ;;  %v3822_v50 = vadd.f32 %v3790_v20, %v3598_v30 }
 0x9bc   :  { %v3058_v25 = vmul.f32 %v3008_v21, %v13654_v37  ;;  %v3279_v52 = vmul.f32 %v3256_v49, %v13648_v46  ;;  %4119 = vrot.lane.b32.xlu1 %v13623_v16, %s7807_s29  ;;  %v4395_v43 = vmul.f32 %v4367_v42, %v13668_v22  ;;  %v4396_v45 = vmul.f32 %v4359_v5, %v13673_v18  ;;  %v11755_v49 = vpop.permute.xlu0 %4329  ;;  %v13699_v22 = vld [vmem:[#allocation121_spill] sm:$0xff] }
 0x9bd   :  { %v3456_v57 = vsel %vm643_vm4, %v11580_v47, %v13692_v6  ;;  %v11748_v26 = vadd.f32 %v11488_v29, %v4043_v51  ;;  %v11750_v53 = vadd.f32 %v4013_v24, %v3821_v41  ;;  %v3057_v30 = vmul.f32 %v3016_v34, %v13647_v15  ;;  %13693 = vst [vmem:[#allocation147_spill] sm:$0xff] %v11755_v49  ;;  %v13694_v51 = vld [vmem:[#allocation5_spill] sm:$0xff]  ;;  %v13697_v41 = vld [vmem:[#allocation23_spill] sm:$0xff] }
 0x9be   :  { %v3282_v35 = vmul.f32 %v3232_v58, %v13657_v2  ;;  %v3503_v20 = vmul.f32 %v3480_v23, %v13649_v1  ;;  %v3190_v21 = vpop.permute.xlu1 %3189  ;;  %v11757_v5 = vadd.f32 %v4014_v12, %v3822_v50  ;;  %v11760_v42 = vmul.f32 %v13639_v61, %v4173_v40  ;;  %v13695_v40 = vld [vmem:[#allocation67_spill] sm:$0xff]  ;;  %v13706_v1 = vld [vmem:[#allocation57_spill] sm:$0xff] }
 0x9bf   :  { %v11763_v6 = vmul.f32 %v13639_v61, %v4174_v17  ;;  %v3248_v29 = vsel %vm563_vm3, %v11456_v4, %v3190_v21  ;;  %v3122_v24 = vmul.f32 %v13656_v62, %v3058_v25  ;;  %v3343_v34 = vmul.f32 %v13694_v51, %v3279_v52  ;;  %v13696_v4 = vld [vmem:[#allocation108_spill] sm:$0xff] }
 0x9c0   :  { %v3506_v58 = vmul.f32 %v3456_v57, %v13664_v3  ;;  %v3240_v12 = vsel %vm563_vm3, %v3190_v21, %v11499_v19  ;;  %4311 = vrot.lane.b32.xlu1 %v13609_v63, %s7806_s28  ;;  %v11777_v61 = vmul.f32 %v13695_v40, %v4395_v43  ;;  %v11780_v50 = vmul.f32 %v13695_v40, %v4396_v45  ;;  %v13698_v43 = vld [vmem:[#allocation30_spill] sm:$0xff]  ;;  %v2746_v21 = vpop.permute.xlu0 %2745 }
 0x9c1   :  { %v4351_v52 = vsel %vm963_vm8, %v13687_v33, %v13696_v4  ;;  %v4375_v17 = vsel %vm963_vm8, %v13696_v4, %v13689_v38  ;;  %v3121_v19 = vmul.f32 %v13656_v62, %v3057_v30  ;;  %v3346_v23 = vmul.f32 %v13694_v51, %v3282_v35  ;;  %v13700_v4 = vld [vmem:[#allocation127_spill] sm:$0xff] }
 0x9c2   :  { %v3567_v25 = vmul.f32 %v13697_v41, %v3503_v20  ;;  %v3280_v57 = vmul.f32 %v3248_v29, %v13698_v43  ;;  %v3414_v45 = vpop.permute.xlu1 %3413  ;;  %v3281_v18 = vmul.f32 %v3240_v12, %v13633_v13  ;;  %v2794_v38 = vsel %vm404_vm1, %v2746_v21, %v13699_v22  ;;  %v13701_v29 = vld [vmem:[#allocation2_spill] sm:$0xff] }
 0x9c3   :  { %v3472_v33 = vsel %vm643_vm4, %v11544_v55, %v3414_v45  ;;  %v2802_v62 = vsel %vm404_vm1, %v13700_v4, %v2746_v21  ;;  %v3154_v30 = vadd.f32 %v3122_v24, %v11592_v10  ;;  %v3375_v35 = vadd.f32 %v3343_v34, %v11671_v7  ;;  %v13702_v55 = vld [vmem:[#allocation106_spill] sm:$0xff]  ;;  %v13703_v7 = vld [vmem:[#allocation40_spill] sm:$0xff] }
 0x9c4   :  { %v3570_v20 = vmul.f32 %v13697_v41, %v3506_v58  ;;  %v4128_v12 = vsel %vm883_vm7, %v11677_v39, %v13701_v29  ;;  %3209 = vrot.lane.b32.xlu1 %v13702_v55, %s7803_s25  ;;  %v4152_v49 = vsel %vm883_vm7, %v13701_v29, %v11720_v32  ;;  %v3464_v10 = vsel %vm643_vm4, %v3414_v45, %v11580_v47  ;;  %v13704_v34 = vld [vmem:[#allocation26_spill] sm:$0xff]  ;;  %v13705_v21 = vld [vmem:[#allocation56_spill] sm:$0xff]  ;;  %v2778_v63 = vpop.permute.xlu0 %2777  ;;  %v13707_v29 = vld [vmem:[#allocation3_spill] sm:$0xff] }
 0x9c5   :  { %v3504_v24 = vmul.f32 %v3472_v33, %v13703_v7  ;;  %v2840_v58 = vmul.f32 %v2802_v62, %v13704_v34  ;;  %v11823_v3 = vmul.f32 %v4351_v52, %v13705_v21  ;;  %v11826_v13 = vmul.f32 %v4375_v17, %v13706_v1  ;;  %v13709_v62 = vld [vmem:[#allocation76_spill] sm:$0xff]  ;;  %v13718_v7 = vld [vmem:[#allocation134_spill] sm:$0xff] }
 0x9c6   :  { %v3378_v43 = vadd.f32 %v3346_v23, %v3154_v30  ;;  %v2841_v2 = vmul.f32 %v2794_v38, %v13625_v27  ;;  %v3638_v46 = vpop.permute.xlu1 %3637  ;;  %v3153_v16 = vadd.f32 %v3121_v19, %v13707_v29  ;;  %v11830_v59 = vadd.f32 %v3567_v25, %v3375_v35  ;;  %v13708_v23 = vld [vmem:[#allocation41_spill] sm:$0xff]  ;;  %v13710_v25 = vld [vmem:[#allocation94_spill] sm:$0xff]  ;;  %v13712_v35 = vld [vmem:[#allocation28_spill] sm:$0xff] }
 0x9c7   :  { %v3344_v47 = vmul.f32 %v13694_v51, %v3280_v57  ;;  %v3345_v45 = vmul.f32 %v13694_v51, %v3281_v18  ;;  %v11837_v52 = vmul.f32 %v4128_v12, %v13686_v11  ;;  %v11840_v17 = vmul.f32 %v4152_v49, %v13691_v56  ;;  %v13717_v11 = vld [vmem:[#allocation133_spill] sm:$0xff] }
 0x9c8   :  { %v11834_v33 = vadd.f32 %v3570_v20, %v3378_v43  ;;  %v3505_v38 = vmul.f32 %v3464_v10, %v13708_v23  ;;  %3401 = vrot.lane.b32.xlu1 %v13709_v62, %s7802_s24  ;;  %v3568_v19 = vmul.f32 %v13697_v41, %v3504_v24  ;;  %v2904_v30 = vmul.f32 %v13710_v25, %v2840_v58  ;;  %v13711_v43 = vld [vmem:[#allocation115_spill] sm:$0xff]  ;;  %v2970_v24 = vpop.permute.xlu0 %2969 }
 0x9c9   :  { %v2786_v18 = vsel %vm404_vm1, %v13699_v22, %v2778_v63  ;;  %v2810_v51 = vsel %vm404_vm1, %v2778_v63, %v13700_v4  ;;  %v2905_v49 = vmul.f32 %v13710_v25, %v2841_v2  ;;  %v3696_v57 = vsel %vm723_vm5, %v13711_v43, %v3638_v46  ;;  %v13713_v22 = vld [vmem:[#allocation119_spill] sm:$0xff]  ;;  %v13714_v63 = vld [vmem:[#allocation9_spill] sm:$0xff] }
 0x9ca   :  { %v2839_v20 = vmul.f32 %v2810_v51, %v13712_v35  ;;  %v2842_v12 = vmul.f32 %v2786_v18, %v13642_v36  ;;  %v3670_v10 = vpop.permute.xlu1 %3669  ;;  %v3376_v58 = vadd.f32 %v3344_v47, %v11666_v8  ;;  %v3377_v29 = vadd.f32 %v3345_v45, %v3153_v16  ;;  %v13715_v47 = vld [vmem:[#allocation38_spill] sm:$0xff] }
 0x9cb   :  { %v3018_v56 = vsel %vm483_vm2, %v2970_v24, %v13713_v22  ;;  %v3026_v2 = vsel %vm483_vm2, %v13714_v63, %v2970_v24  ;;  %v3569_v4 = vmul.f32 %v13697_v41, %v3505_v38  ;;  %v3688_v51 = vsel %vm723_vm5, %v3638_v46, %v11613_v0  ;;  %v13716_v24 = vld [vmem:[#allocation32_spill] sm:$0xff] }
 0x9cc   :  { %v3680_v18 = vsel %vm723_vm5, %v11613_v0, %v3670_v10  ;;  %v3704_v16 = vsel %vm723_vm5, %v3670_v10, %v13711_v43  ;;  %3625 = vrot.lane.b32.xlu1 %v13709_v62, %s7805_s27  ;;  %v3600_v8 = vadd.f32 %v3568_v19, %v3376_v58  ;;  %v3727_v45 = vmul.f32 %v3696_v57, %v13715_v47  ;;  %v3002_v43 = vpop.permute.xlu0 %3001  ;;  %v13719_v19 = vld [vmem:[#allocation19_spill] sm:$0xff]  ;;  %v13725_v47 = vld [vmem:[#allocation48_spill] sm:$0xff] }
 0x9cd   :  { %v3064_v41 = vmul.f32 %v3026_v2, %v13716_v24  ;;  %v3065_v38 = vmul.f32 %v3018_v56, %v13647_v15  ;;  %v2936_v46 = vadd.f32 %v2904_v30, %v13717_v11  ;;  %v2937_v23 = vadd.f32 %v2905_v49, %v13718_v7  ;;  %v13720_v2 = vld [vmem:[#allocation78_spill] sm:$0xff]  ;;  %v13721_v11 = vld [vmem:[#allocation61_spill] sm:$0xff]  ;;  %v13722_v49 = vld [vmem:[#allocation39_spill] sm:$0xff] }
 0x9ce   :  { %v2903_v0 = vmul.f32 %v13710_v25, %v2839_v20  ;;  %v2906_v36 = vmul.f32 %v13710_v25, %v2842_v12  ;;  %v3862_v35 = vpop.permute.xlu1 %3861  ;;  %v3729_v10 = vmul.f32 %v3680_v18, %v13674_v31  ;;  %v3730_v62 = vmul.f32 %v3704_v16, %v13675_v28  ;;  %v13723_v12 = vld [vmem:[#allocation95_spill] sm:$0xff] }
 0x9cf   :  { %v3128_v57 = vmul.f32 %v13719_v19, %v3064_v41  ;;  %v3129_v58 = vmul.f32 %v13719_v19, %v3065_v38  ;;  %v3912_v56 = vsel %vm803_vm6, %v3862_v35, %v13720_v2  ;;  %v3920_v7 = vsel %vm803_vm6, %v13721_v11, %v3862_v35  ;;  %v13724_v35 = vld [vmem:[#allocation72_spill] sm:$0xff] }
 0x9d0   :  { %v3010_v25 = vsel %vm483_vm2, %v13713_v22, %v3002_v43  ;;  %v3034_v30 = vsel %vm483_vm2, %v3002_v43, %v13714_v63  ;;  %3881 = vrot.lane.b32.xlu1 %v13702_v55, %s7804_s26  ;;  %v3728_v20 = vmul.f32 %v3688_v51, %v13722_v49  ;;  %v3791_v18 = vmul.f32 %v13723_v12, %v3727_v45  ;;  %v13726_v22 = vld [vmem:[#allocation36_spill] sm:$0xff]  ;;  %v11913_v43 = vpop.permute.xlu0 %3193  ;;  %v13727_v55 = vld [vmem:[#allocation91_spill] sm:$0xff]  ;;  %v13728_v51 = vld [vmem:[#allocation49_spill] sm:$0xff] }
 0x9d1   :  { %v11905_v16 = vadd.f32 %v3128_v57, %v2936_v46  ;;  %v11907_v41 = vadd.f32 %v3129_v58, %v2937_v23  ;;  %v2935_v38 = vadd.f32 %v2903_v0, %v13724_v35  ;;  %v3951_v28 = vmul.f32 %v3920_v7, %v13725_v47 }
 0x9d2   :  { %v3063_v31 = vmul.f32 %v3034_v30, %v13726_v22  ;;  %v3066_v15 = vmul.f32 %v3010_v25, %v13654_v37  ;;  %v3894_v63 = vpop.permute.xlu1 %3893  ;;  %v2938_v24 = vadd.f32 %v2906_v36, %v13727_v55  ;;  %v3952_v49 = vmul.f32 %v3912_v56, %v13728_v51  ;;  %v13729_v36 = vld [vmem:[#allocation129_spill] sm:$0xff] }
 0x9d3   :  { %v3904_v23 = vsel %vm803_vm6, %v13720_v2, %v3894_v63  ;;  %v3928_v45 = vsel %vm803_vm6, %v3894_v63, %v13721_v11  ;;  %v3793_v46 = vmul.f32 %v13723_v12, %v3729_v10  ;;  %v3794_v0 = vmul.f32 %v13723_v12, %v3730_v62  ;;  %v13730_v30 = vld [vmem:[#allocation97_spill] sm:$0xff] }
 0x9d4   :  { %v3127_v57 = vmul.f32 %v13719_v19, %v3063_v31  ;;  %v3130_v58 = vmul.f32 %v13719_v19, %v3066_v15  ;;  %3225 = vrot.lane.b32.xlu1 %v13729_v36, %s7803_s25  ;;  %v3601_v56 = vadd.f32 %v3569_v4, %v3377_v29  ;;  %v3792_v7 = vmul.f32 %v13723_v12, %v3728_v20  ;;  %v11938_v15 = vpop.permute.xlu0 %3449  ;;  %v13731_v12 = vld [vmem:[#allocation47_spill] sm:$0xff]  ;;  %s12031_s25 = sld [smem:[%s12629_s0 + %s7828_s22]]  }
 0x9d5   :  { %v3953_v2 = vmul.f32 %v3904_v23, %v13676_v14  ;;  %v3954_v25 = vmul.f32 %v3928_v45, %v13679_v9  ;;  %v3823_v11 = vadd.f32 %v3791_v18, %v11830_v59  ;;  %v4015_v10 = vmul.f32 %v13730_v30, %v3951_v28 }
 0x9d6   :  { %v11934_v35 = vadd.f32 %v3127_v57, %v2935_v38  ;;  %v11936_v62 = vadd.f32 %v3130_v58, %v2938_v24  ;;  %v4086_v31 = vpop.permute.xlu1 %4085  ;;  %v4016_v19 = vmul.f32 %v13730_v30, %v3952_v49  ;;  %v3825_v59 = vadd.f32 %v3793_v46, %v3601_v56  ;;  %v13732_v38 = vld [vmem:[#allocation79_spill] sm:$0xff] }
 0x9d7   :  { %v4017_v29 = vmul.f32 %v13730_v30, %v3953_v2  ;;  %v4018_v4 = vmul.f32 %v13730_v30, %v3954_v25  ;;  %v4136_v20 = vsel %vm883_vm7, %v4086_v31, %v11677_v39  ;;  %v3826_v28 = vadd.f32 %v3794_v0, %v11834_v33  ;;  %v13733_v39 = vld [vmem:[#allocation46_spill] sm:$0xff]  ;;  %v13734_v0 = vld [vmem:[#allocation100_spill] sm:$0xff]  ;;  %v13735_v25 = vld [vmem:[#allocation69_spill] sm:$0xff] }
 0x9d8   :  { %v4144_v24 = vsel %vm883_vm7, %v11720_v32, %v4086_v31  ;;  %v4176_v18 = vmul.f32 %v4136_v20, %v13731_v12  ;;  %3417 = vrot.lane.b32.xlu1 %v13732_v38, %s7802_s24  ;;  %v4461_v49 = vmul.f32 %v13695_v40, %v11823_v3  ;;  %v4462_v63 = vmul.f32 %v13695_v40, %v11826_v13  ;;  %v11959_v58 = vpop.permute.xlu0 %3641  ;;  %v13736_v30 = vld [vmem:[#allocation71_spill] sm:$0xff]  ;;  %s7836_s24 = smov 30  }
 0x9d9   :  { %v3824_v55 = vadd.f32 %v3792_v7, %v3600_v8  ;;  %v4175_v23 = vmul.f32 %v4144_v24, %v13733_v39  ;;  %v4047_v45 = vadd.f32 %v4015_v10, %v3823_v11  ;;  %v4049_v33 = vadd.f32 %v4017_v29, %v3825_v59 }
 0x9da   :  { %v4050_v46 = vadd.f32 %v4018_v4, %v3826_v28  ;;  %v4240_v57 = vmul.f32 %v13734_v0, %v4176_v18  ;;  %v4342_v32 = vpop.permute.xlu1 %4341  ;;  %v4241_v40 = vmul.f32 %v13734_v0, %v11837_v52  ;;  %v4242_v8 = vmul.f32 %v13734_v0, %v11840_v17 }
 0x9db   :  { %v4048_v56 = vadd.f32 %v4016_v19, %v3824_v55  ;;  %v4239_v2 = vmul.f32 %v13734_v0, %v4175_v23  ;;  %v4352_v3 = vsel %vm963_vm8, %v13735_v25, %v4342_v32  ;;  %v4376_v13 = vsel %vm963_vm8, %v4342_v32, %v13736_v30  ;;  %v4589_v0 = vld [vmem:[%s11250_s15 + $0x10] sm:$0xff]  ;;  %v4590_v32 = vld [vmem:[%s11250_s15 + $0x18] sm:$0xff]  ;;  %v4592_v25 = vld [vmem:[%s11250_s15 + $0x28] sm:$0xff] }
 0x9dc   :  { %v4401_v7 = vmul.f32 %v4352_v3, %v13705_v21  ;;  %v4402_v11 = vmul.f32 %v4376_v13, %v13706_v1  ;;  %3673 = vrot.lane.b32.xlu1 %v13729_v36, %s7805_s27  ;;  %v4270_v19 = vadd.f32 %v11763_v6, %v11757_v5  ;;  %v4269_v29 = vadd.f32 %v11760_v42, %v11750_v53  ;;  %v13737_v5 = vld [vmem:[#allocation128_spill] sm:$0xff]  ;;  %v11990_v18 = vpop.permute.xlu0 %4297  ;;  %s12554_s27 = sld [smem:[%s12629_s0 + %s7836_s24]]  }
 0x9dd   :  { %v4272_v10 = vadd.f32 %v4240_v57, %v4048_v56  ;;  %v4271_v31 = vadd.f32 %v4239_v2, %v4047_v45  ;;  %v4274_v20 = vadd.f32 %v4242_v8, %v4050_v46  ;;  %v4273_v59 = vadd.f32 %v4241_v40, %v4049_v33  ;;  %v5045_v1 = vld [vmem:[%s11289_s1 + $0x30] sm:$0xff] }
 0x9de   :  { %v4465_v52 = vmul.f32 %v13677_v44, %v4401_v7  ;;  %v4466_v4 = vmul.f32 %v13677_v44, %v4402_v11  ;;  %v11982_v17 = vpop.permute.xlu1 %2727  ;;  %v4492_v28 = vadd.f32 %v11780_v50, %v11690_v48  ;;  %v4491_v24 = vadd.f32 %v11777_v61, %v11748_v26  ;;  %v13738_v26 = vld [vmem:[#allocation11_spill] sm:$0xff] }
 0x9df   :  { %v4496_v36 = vadd.f32 %v11682_v54, %v4272_v10  ;;  %v4495_v6 = vadd.f32 %v13737_v5, %v4271_v31  ;;  %v4494_v44 = vadd.f32 %v4462_v63, %v4270_v19  ;;  %v4493_v42 = vadd.f32 %v4461_v49, %v4269_v29  ;;  %v13739_v49 = vld [vmem:[#allocation104_spill] sm:$0xff]  ;;  %v4587_v63 = vld [vmem:[%s11250_s15] sm:$0xff]  ;;  %v13741_v10 = vld [vmem:[#allocation7_spill] sm:$0xff] }
 0x9e0   :  { %3865 = vrot.lane.b32.xlu1 %v13732_v38, %s7804_s26  ;;  %v4498_v53 = vadd.f32 %v4466_v4, %v4274_v20  ;;  %v4497_v55 = vadd.f32 %v4465_v52, %v4273_v59  ;;  %v11998_v61 = vpop.permute.xlu0 %3897  ;;  %v13742_v19 = vld [vmem:[#allocation118_spill] sm:$0xff]  ;;  %v5014_v20 = vld [vmem:[%s12031_s25 + $0x8] sm:$0xff]  ;;  %v5015_v59 = vld [vmem:[%s12031_s25 + $0x10] sm:$0xff]  ;;  %s7829_s26 = smov 22  }
 0x9e1   :  { %v4580_v23 = vpack.c.bf16 %v4496_v36, %v4492_v28  ;;  %v4579_v45 = vpack.c.bf16 %v4495_v6, %v4491_v24  ;;  %v5013_v4 = vld [vmem:[%s12031_s25] sm:$0xff]  ;;  %v5016_v36 = vld [vmem:[%s12031_s25 + $0x18] sm:$0xff]  ;;  %s6493_s29 = sld [smem:[%s12629_s0 + %s7829_s26]]  }
 0x9e2   :  { %v11994_v48 = vpop.permute.xlu1 %2759  ;;  %v4582_v54 = vpack.c.bf16 %v4498_v53, %v4494_v44  ;;  %v4581_v50 = vpack.c.bf16 %v4497_v55, %v4493_v42  ;;  %v7243_v28 = vpack.c.bf16 %v5014_v20, %v5013_v4  ;;  %v4594_v24 = vld [vmem:[%s11250_s15 + $0x38] sm:$0xff]  ;;  %v7247_v5 = vpack.c.bf16 %v5016_v36, %v5015_v59  ;;  %v5017_v6 = vld [vmem:[%s12031_s25 + $0x20] sm:$0xff]  ;;  %v5018_v44 = vld [vmem:[%s12031_s25 + $0x28] sm:$0xff]  ;;  %s6476_s15 = sld [smem:[%s12629_s0 + %s7838_s12]]  }
 0x9e3   :  { %4875 = vmatprep.mubr.bf16.mxu0 %v4580_v23  ;;  %v5039_v53 = vld [vmem:[%s11289_s1] sm:$0xff]  ;;  %v5022_v4 = vld [vmem:[%s12031_s25 + $0x48] sm:$0xff]  ;;  %v13745_v59 = vld [vmem:[#allocation148_spill] sm:$0xff] }
 0x9e4   :  { %4876 = vmatmul.mubr.bf16.gmra.mrb[52].mxu0 %v4579_v45  ;;  %4295 = vrot.lane.b32.xlu1 %v13738_v26, %s7806_s28  ;;  %v12007_v46 = vpop.permute.xlu0 %4089  ;;  %v7251_v45 = vpack.c.bf16 %v5018_v44, %v5017_v6  ;;  %v13749_v44 = vld [vmem:[#allocation29_spill] sm:$0xff] }
 0x9e5   :  { %4940 = vmatprep.mubr.bf16.mxu1 %v4582_v54  ;;  %7244 = vmatprep.subr.bf16.mxu0 %v7243_v28  ;;  %v5019_v54 = vld [vmem:[%s12031_s25 + $0x30] sm:$0xff] }
 0x9e6   :  { %4941 = vmatmul.mubr.bf16.gmra.mrb[52].mxu1 %v4581_v50  ;;  %v12000_v38 = vpop.permute.xlu1 %2951  ;;  %7246 = vmatpush3.bf16.msra.mxu0 %v7243_v28  ;;  %v5020_v50 = vld [vmem:[%s12031_s25 + $0x38] sm:$0xff]  ;;  %v5043_v28 = vld [vmem:[%s11289_s1 + $0x20] sm:$0xff] }
 0x9e7   :  { %7248 = vmatprep.subr.bf16.mxu0 %v7247_v5 }
 0x9e8   :  { %4343 = vrot.lane.b32.xlu1 %v13739_v49, %s7806_s28  ;;  %v12013_v56 = vpop.permute.xlu0 %4121  ;;  %s7837_s28 = smov 6  }
 0x9e9   :  { %s6477_s11 = sld [smem:[%s12629_s0 + %s7837_s28]]  }
 0x9ea   :  { %v12005_v33 = vpop.permute.xlu1 %2983  ;;  %7250 = vmatpush3.bf16.msra.mxu0 %v7247_v5  ;;  %v13748_v5 = vld [vmem:[#allocation28_spill] sm:$0xff] }
 0x9eb   :  { %7252 = vmatprep.subr.bf16.mxu0 %v7251_v45 }
 0x9ec   :  { %4597 = vperm.xlu1 %7405, %v4587_v63   ;;  %v12020_v30 = vpop.permute.xlu0 %4313  ;;  %v5041_v63 = vld [vmem:[%s11289_s1 + $0x10] sm:$0xff] }
 0x9ee   :  { %v12010_v57 = vpop.permute.xlu1 %3175  ;;  %7254 = vmatpush3.bf16.msra.mxu0 %v7251_v45 }
 0x9f0   :  { %4607 = vperm.xlu1 %7405, %v4589_v0   ;;  %v12024_v40 = vpop.permute.xlu0 %4345 }
 0x9f1   :  { %13740 = vst [vmem:[#allocation10_spill] sm:$0xff] %v12024_v40 }
 0x9f2   :  { %v12015_v2 = vpop.permute.xlu1 %3431 }
 0x9f4   :  { %4612 = vperm.xlu1 %7405, %v4590_v32  }
 0x9f6   :  { %v12018_v3 = vpop.permute.xlu1 %3655 }
 0x9f8   :  { %4622 = vperm.xlu1 %7405, %v4592_v25  }
 0x9fa   :  { %v12022_v13 = vpop.permute.xlu1 %3847 }
 0x9fc   :  { %4632 = vperm.xlu1 %7405, %v4594_v24   ;;  %v13747_v24 = vld [vmem:[#allocation93_spill] sm:$0xff] }
 0x9fe   :  { %v12026_v8 = vpop.permute.xlu1 %4103 }
 0xa00   :  { %5240 = vperm.xlu1 %7405, %v5039_v53  }
 0xa01   :  { %v4603_v11 = vpop.permute.xlu0 %4602 }
 0xa02   :  { %v12033_v7 = vpop.permute.xlu1 %4071  ;;  %v4865_v31 = vadd.f32 %v13741_v10, %v4603_v11 }
 0xa04   :  { %v12037_v29 = vadd.f32 %v13742_v19, %v4865_v31  ;;  %v7255_v31 = vpack.c.bf16 %v5020_v50, %v5019_v54  ;;  %5250 = vperm.xlu1 %7405, %v5041_v63   ;;  %v5021_v19 = vld [vmem:[%s12031_s25 + $0x40] sm:$0xff] }
 0xa05   :  { %v7259_v63 = vpack.c.bf16 %v5022_v4, %v5021_v19  ;;  %v13755_v4 = vld [vmem:[#allocation33_spill] sm:$0xff] }
 0xa06   :  { %13743 = vst [vmem:[#allocation109_spill] sm:$0xff] %v12037_v29  ;;  %v12039_v52 = vpop.permute.xlu1 %4327  ;;  %7256 = vmatprep.subr.bf16.mxu0 %v7255_v31 }
 0xa07   :  { %7258 = vmatpush3.bf16.msra.mxu0 %v7255_v31 }
 0xa08   :  { %5260 = vperm.xlu1 %7405, %v5043_v28   ;;  %7260 = vmatprep.subr.bf16.mxu0 %v7259_v63 }
 0xa0a   :  { %v2744_v42 = vpop.permute.xlu1 %2743 }
 0xa0b   :  { %v2793_v55 = vsel %vm404_vm1, %v2744_v42, %v11994_v48  ;;  %v2801_v23 = vsel %vm404_vm1, %v11982_v17, %v2744_v42  ;;  %7262 = vmatpush3.bf16.msra.mxu0 %v7259_v63 }
 0xa0c   :  { %v2836_v0 = vmul.f32 %v2801_v23, %v13704_v34  ;;  %v2837_v25 = vmul.f32 %v2793_v55, %v13625_v27  ;;  %v13744_v34 = vld [vmem:[#allocation92_spill] sm:$0xff]  ;;  %5270 = vperm.xlu1 %7405, %v5045_v1  }
 0xa0d   :  { %v2707_v20 = vmul.f32 %v13744_v34, %v13738_v26  ;;  %v2709_v27 = vmul.f32 %v13744_v34, %v13745_v59  ;;  %v5023_v55 = vld [vmem:[%s12031_s25 + $0x50] sm:$0xff]  ;;  %v5024_v26 = vld [vmem:[%s12031_s25 + $0x58] sm:$0xff]  ;;  %v2710_v45 = vmul.f32 %v13744_v34, %v13739_v49 }
 0xa0e   :  { %v2776_v32 = vpop.permute.xlu1 %2775  ;;  %v2901_v23 = vmul.f32 %v13747_v24, %v2837_v25  ;;  %v7263_v29 = vpack.c.bf16 %v5024_v26, %v5023_v55 }
 0xa0f   :  { %v2785_v11 = vsel %vm404_vm1, %v11994_v48, %v2776_v32  ;;  %v2809_v10 = vsel %vm404_vm1, %v2776_v32, %v11982_v17  ;;  %v13746_v48 = vld [vmem:[#allocation123_spill] sm:$0xff]  ;;  %v2900_v17 = vmul.f32 %v13747_v24, %v2836_v0  ;;  %v13750_v0 = vld [vmem:[#allocation136_spill] sm:$0xff]  ;;  %vm6198_vm1 = vcmask 785408  }
 0xa10   :  { %v3257_v36 = vsel %vm563_vm3, %v13746_v48, %v12010_v57  ;;  %v2835_v6 = vmul.f32 %v2809_v10, %v13748_v5  ;;  %v2838_v53 = vmul.f32 %v2785_v11, %v13749_v44  ;;  %v2708_v32 = vmul.f32 %v13744_v34, %v13750_v0  ;;  %v13751_v11 = vld [vmem:[#allocation8_spill] sm:$0xff]  ;;  %v13753_v5 = vld [vmem:[#allocation34_spill] sm:$0xff]  ;;  %7264 = vmatprep.subr.bf16.mxu0 %v7263_v29 }
 0xa11   :  { %v3233_v25 = vsel %vm563_vm3, %v13751_v11, %v13746_v48  ;;  %v13752_v10 = vld [vmem:[#allocation32_spill] sm:$0xff]  ;;  %v3283_v44 = vmul.f32 %v3257_v36, %v13753_v5  ;;  %v2933_v36 = vadd.f32 %v2901_v23, %v2709_v27  ;;  %v5025_v27 = vld [vmem:[%s12031_s25 + $0x60] sm:$0xff]  ;;  %v5026_v23 = vld [vmem:[%s12031_s25 + $0x68] sm:$0xff]  ;;  %7266 = vmatpush3.bf16.msra.mxu0 %v7263_v29 }
 0xa12   :  { %v2968_v42 = vpop.permute.xlu1 %2967  ;;  %v2932_v49 = vadd.f32 %v2900_v17, %v2708_v32  ;;  %v2899_v34 = vmul.f32 %v13747_v24, %v2835_v6  ;;  %v2902_v48 = vmul.f32 %v13747_v24, %v2838_v53  ;;  %v13757_v6 = vld [vmem:[#allocation35_spill] sm:$0xff]  ;;  %v13759_v32 = vld [vmem:[#allocation98_spill] sm:$0xff] }
 0xa13   :  { %v3017_v54 = vsel %vm483_vm2, %v2968_v42, %v12005_v33  ;;  %v3025_v50 = vsel %vm483_vm2, %v12000_v38, %v2968_v42  ;;  %v13754_v42 = vld [vmem:[#allocation122_spill] sm:$0xff]  ;;  %v3286_v26 = vmul.f32 %v3233_v25, %v13757_v6 }
 0xa14   :  { %v3060_v59 = vmul.f32 %v3025_v50, %v13752_v10  ;;  %v3465_v19 = vsel %vm643_vm4, %v13754_v42, %v12015_v2  ;;  %v3061_v0 = vmul.f32 %v3017_v54, %v13755_v4  ;;  %v13756_v50 = vld [vmem:[#allocation96_spill] sm:$0xff]  ;;  %v13758_v54 = vld [vmem:[#allocation138_spill] sm:$0xff]  ;;  %v13760_v4 = vld [vmem:[#allocation41_spill] sm:$0xff]  ;;  %v2931_v25 = vadd.f32 %v2899_v34, %v2707_v20 }
 0xa15   :  { %v13762_v34 = vld [vmem:[#allocation30_spill] sm:$0xff] }
 0xa16   :  { %v3124_v28 = vmul.f32 %v13756_v50, %v3060_v59  ;;  %v3000_v10 = vpop.permute.xlu1 %2999  ;;  %v3125_v21 = vmul.f32 %v13756_v50, %v3061_v0  ;;  %v3347_v59 = vmul.f32 %v13759_v32, %v3283_v44  ;;  %v13770_v29 = vld [vmem:[#allocation146_spill] sm:$0xff] }
 0xa17   :  { %v3009_v55 = vsel %vm483_vm2, %v12005_v33, %v3000_v10  ;;  %v3033_v17 = vsel %vm483_vm2, %v3000_v10, %v12000_v38  ;;  %v3473_v33 = vsel %vm643_vm4, %v13758_v54, %v13754_v42  ;;  %v3509_v38 = vmul.f32 %v3465_v19, %v13760_v4  ;;  %v5605_v10 = vld [vmem:[%s11378_s5] sm:$0xff] }
 0xa18   :  { %v3156_v24 = vadd.f32 %v3124_v28, %v2932_v49  ;;  %v3059_v53 = vmul.f32 %v3033_v17, %v13726_v22  ;;  %v3062_v31 = vmul.f32 %v3009_v55, %v13654_v37  ;;  %v3157_v0 = vadd.f32 %v3125_v21, %v2933_v36  ;;  %v13761_v28 = vld [vmem:[#allocation89_spill] sm:$0xff]  ;;  %5610 = vperm.xlu1 %7405, %v5605_v10   ;;  %v5027_v36 = vld [vmem:[%s12031_s25 + $0x70] sm:$0xff] }
 0xa19   :  { %v2934_v49 = vadd.f32 %v2902_v48, %v2710_v45  ;;  %v3681_v44 = vsel %vm723_vm5, %v12018_v3, %v13761_v28  ;;  %v7267_v45 = vpack.c.bf16 %v5026_v23, %v5025_v27  ;;  %v13763_v48 = vld [vmem:[#allocation31_spill] sm:$0xff]  ;;  %v5028_v55 = vld [vmem:[%s12031_s25 + $0x78] sm:$0xff]  ;;  %v3350_v17 = vmul.f32 %v13759_v32, %v3286_v26 }
 0xa1a   :  { %v3123_v37 = vmul.f32 %v13756_v50, %v3059_v53  ;;  %v3126_v1 = vmul.f32 %v13756_v50, %v3062_v31  ;;  %v3192_v22 = vpop.permute.xlu1 %3191  ;;  %v13764_v53 = vld [vmem:[#allocation40_spill] sm:$0xff]  ;;  %v13766_v27 = vld [vmem:[#allocation101_spill] sm:$0xff] }
 0xa1b   :  { %v3241_v21 = vsel %vm563_vm3, %v3192_v22, %v13751_v11  ;;  %v3249_v20 = vsel %vm563_vm3, %v12010_v57, %v3192_v22  ;;  %v3508_v31 = vmul.f32 %v3473_v33, %v13764_v53  ;;  %v13765_v11 = vld [vmem:[#allocation131_spill] sm:$0xff]  ;;  %v5607_v22 = vld [vmem:[%s11378_s5 + $0x10] sm:$0xff]  ;;  %v3573_v23 = vmul.f32 %v13766_v27, %v3509_v38  ;;  %7268 = vmatprep.subr.bf16.mxu0 %v7267_v45 }
 0xa1c   :  { %v3155_v42 = vadd.f32 %v3123_v37, %v2931_v25  ;;  %v3158_v19 = vadd.f32 %v3126_v1, %v2934_v49  ;;  %v3284_v63 = vmul.f32 %v3249_v20, %v13762_v34  ;;  %v3285_v50 = vmul.f32 %v3241_v21, %v13763_v48  ;;  %v13767_v1 = vld [vmem:[#allocation42_spill] sm:$0xff]  ;;  %5620 = vperm.xlu1 %7405, %v5607_v22  }
 0xa1d   :  { %v3705_v57 = vsel %vm723_vm5, %v13761_v28, %v13765_v11  ;;  %v3733_v26 = vmul.f32 %v3681_v44, %v13767_v1  ;;  %v7271_v38 = vpack.c.bf16 %v5028_v55, %v5027_v36  ;;  %v5890_v44 = vld [vmem:[%s11437_s9 + $0x8] sm:$0xff]  ;;  %7270 = vmatpush3.bf16.msra.mxu0 %v7267_v45 }
 0xa1e   :  { %v3348_v25 = vmul.f32 %v13759_v32, %v3284_v63  ;;  %v3349_v49 = vmul.f32 %v13759_v32, %v3285_v50  ;;  %v3448_v10 = vpop.permute.xlu1 %3447  ;;  %v3379_v37 = vadd.f32 %v3347_v59, %v3155_v42  ;;  %v13768_v63 = vld [vmem:[#allocation44_spill] sm:$0xff]  ;;  %v13769_v32 = vld [vmem:[#allocation45_spill] sm:$0xff]  ;;  %v3921_v59 = vsel %vm803_vm6, %v12022_v13, %v13770_v29  ;;  %v13772_v55 = vld [vmem:[#allocation103_spill] sm:$0xff] }
 0xa1f   :  { %v3457_v33 = vsel %vm643_vm4, %v12015_v2, %v3448_v10  ;;  %v3481_v28 = vsel %vm643_vm4, %v3448_v10, %v13758_v54  ;;  %v3382_v42 = vadd.f32 %v3350_v17, %v3158_v19  ;;  %7272 = vmatprep.subr.bf16.mxu0 %v7271_v38  ;;  %v13773_v17 = vld [vmem:[#allocation38_spill] sm:$0xff]  ;;  %v13774_v10 = vld [vmem:[#allocation39_spill] sm:$0xff] }
 0xa20   :  { %v3380_v21 = vadd.f32 %v3348_v25, %v3156_v24  ;;  %v3381_v20 = vadd.f32 %v3349_v49, %v3157_v0  ;;  %v3507_v40 = vmul.f32 %v3481_v28, %v13768_v63  ;;  %v3510_v50 = vmul.f32 %v3457_v33, %v13769_v32  ;;  %v13771_v0 = vld [vmem:[#allocation43_spill] sm:$0xff]  ;;  %5908 = vperm.xlu1 %7405, %v5890_v44   ;;  %v5892_v28 = vld [vmem:[%s11437_s9 + $0x18] sm:$0xff] }
 0xa21   :  { %v3734_v36 = vmul.f32 %v3705_v57, %v13771_v0  ;;  %v3797_v25 = vmul.f32 %v13772_v55, %v3733_v26  ;;  %v13775_v57 = vld [vmem:[#allocation81_spill] sm:$0xff]  ;;  %7274 = vmatpush3.bf16.msra.mxu0 %v7271_v38 }
 0xa22   :  { %v3605_v2 = vadd.f32 %v3573_v23, %v3381_v20  ;;  %v3571_v1 = vmul.f32 %v13766_v27, %v3507_v40  ;;  %v3574_v54 = vmul.f32 %v13766_v27, %v3510_v50  ;;  %v3640_v24 = vpop.permute.xlu1 %3639  ;;  %v3572_v40 = vmul.f32 %v13766_v27, %v3508_v31 }
 0xa23   :  { %v3689_v22 = vsel %vm723_vm5, %v3640_v24, %v12018_v3  ;;  %v3697_v23 = vsel %vm723_vm5, %v13765_v11, %v3640_v24  ;;  %v3913_v26 = vsel %vm803_vm6, %v13770_v29, %v13775_v57  ;;  %v3955_v3 = vmul.f32 %v3921_v59, %v13725_v47 }
 0xa24   :  { %v3606_v19 = vadd.f32 %v3574_v54, %v3382_v42  ;;  %v3731_v49 = vmul.f32 %v3697_v23, %v13773_v17  ;;  %v3732_v45 = vmul.f32 %v3689_v22, %v13774_v10  ;;  %v3829_v33 = vadd.f32 %v3797_v25, %v3605_v2  ;;  %5918 = vperm.xlu1 %7405, %v5892_v28  }
 0xa25   :  { %v3603_v20 = vadd.f32 %v3571_v1, %v3379_v37  ;;  %v3604_v11 = vadd.f32 %v3572_v40, %v3380_v21  ;;  %v3798_v44 = vmul.f32 %v13772_v55, %v3734_v36  ;;  %v3956_v1 = vmul.f32 %v3913_v26, %v13728_v51  ;;  %v13776_v36 = vld [vmem:[#allocation60_spill] sm:$0xff] }
 0xa26   :  { %v3795_v50 = vmul.f32 %v13772_v55, %v3731_v49  ;;  %v3796_v31 = vmul.f32 %v13772_v55, %v3732_v45  ;;  %v3896_v27 = vpop.permute.xlu1 %3895  ;;  %v6882_v42 = vpop.f32.mrb[48].mxu1  ;;  %v4019_v55 = vmul.f32 %v13776_v36, %v3955_v3  ;;  %v5894_v49 = vld [vmem:[%s11437_s9 + $0x28] sm:$0xff] }
 0xa27   :  { %v3905_v29 = vsel %vm803_vm6, %v13775_v57, %v3896_v27  ;;  %v3929_v59 = vsel %vm803_vm6, %v3896_v27, %v12022_v13  ;;  %v6883_v37 = vpop.f32.mrb[49].mxu1  ;;  %v6842_v24 = vpop.f32.mrb[48].mxu0  ;;  %v3830_v25 = vadd.f32 %v3798_v44, %v3606_v19 }
 0xa28   :  { %v3827_v21 = vadd.f32 %v3795_v50, %v3603_v20  ;;  %v3828_v2 = vadd.f32 %v3796_v31, %v3604_v11  ;;  %v3958_v54 = vmul.f32 %v3929_v59, %v13679_v9  ;;  %v6885_v38 = vpop.f32.mrb[50].mxu1  ;;  %v12198_v22 = vadd.f32 %v6883_v37, %v6882_v42  ;;  %v6843_v23 = vpop.f32.mrb[49].mxu0  ;;  %5928 = vperm.xlu1 %7405, %v5894_v49   ;;  %v5896_v59 = vld [vmem:[%s11437_s9 + $0x38] sm:$0xff]  ;;  %v13782_v49 = vld [vmem:[#allocation51_spill] sm:$0xff] }
 0xa29   :  { %v6886_v40 = vpop.f32.mrb[51].mxu1  ;;  %v3957_v13 = vmul.f32 %v3905_v29, %v13676_v14  ;;  %v12203_v57 = vadd.f32 %v6843_v23, %v6842_v24  ;;  %v6845_v11 = vpop.f32.mrb[50].mxu0  ;;  %v4020_v31 = vmul.f32 %v13776_v36, %v3956_v1 }
 0xa2a   :  { %13777 = vst [vmem:[#allocation113_spill] sm:$0xff] %v12198_v22  ;;  %v4022_v45 = vmul.f32 %v13776_v36, %v3958_v54  ;;  %v12205_v26 = vadd.f32 %v6886_v40, %v6885_v38  ;;  %v4088_v20 = vpop.permute.xlu1 %4087  ;;  %v4051_v28 = vadd.f32 %v4019_v55, %v3827_v21  ;;  %v6846_v50 = vpop.f32.mrb[51].mxu0  ;;  %v13780_v54 = vld [vmem:[#allocation107_spill] sm:$0xff]  ;;  %v13790_v22 = vld [vmem:[#allocation4_spill] sm:$0xff] }
 0xa2b   :  { %v4137_v19 = vsel %vm883_vm7, %v4088_v20, %v12026_v8  ;;  %v4145_v3 = vsel %vm883_vm7, %v12033_v7, %v4088_v20  ;;  %v12216_v29 = vadd.f32 %v6846_v50, %v6845_v11  ;;  %v4021_v37 = vmul.f32 %v13776_v36, %v3957_v13  ;;  %v13781_v36 = vld [vmem:[#allocation50_spill] sm:$0xff] }
 0xa2c   :  { %13778 = vst [vmem:[#allocation142_spill] sm:$0xff] %v12205_v26  ;;  %v4054_v27 = vadd.f32 %v4022_v45, %v3830_v25  ;;  %v4179_v42 = vmul.f32 %v4145_v3, %v13733_v39  ;;  %v4180_v44 = vmul.f32 %v4137_v19, %v13731_v12  ;;  %v4052_v21 = vadd.f32 %v4020_v31, %v3828_v2  ;;  %v5898_v45 = vld [vmem:[%s11437_s9 + $0x48] sm:$0xff] }
 0xa2d   :  { %13779 = vst [vmem:[#allocation82_spill] sm:$0xff] %v12216_v29  ;;  %5938 = vperm.xlu1 %7405, %v5896_v59   ;;  %v4053_v20 = vadd.f32 %v4021_v37, %v3829_v33  ;;  %v13784_v37 = vld [vmem:[#allocation6_spill] sm:$0xff] }
 0xa2e   :  { %v4243_v24 = vmul.f32 %v13780_v54, %v4179_v42  ;;  %v4244_v38 = vmul.f32 %v13780_v54, %v4180_v44  ;;  %v4120_v55 = vpop.permute.xlu1 %4119  ;;  %v13783_v42 = vld [vmem:[#allocation125_spill] sm:$0xff] }
 0xa2f   :  { %v4129_v1 = vsel %vm883_vm7, %v12026_v8, %v4120_v55  ;;  %v4153_v25 = vsel %vm883_vm7, %v4120_v55, %v12033_v7  ;;  %v3250_v33 = vsel %vm563_vm3, %v13783_v42, %v11913_v43  ;;  %v13787_v55 = vld [vmem:[#allocation112_spill] sm:$0xff] }
 0xa30   :  { %v12228_v23 = vadd.f32 %v4243_v24, %v4051_v28  ;;  %v12230_v40 = vadd.f32 %v4244_v38, %v4052_v21  ;;  %v4181_v2 = vmul.f32 %v4129_v1, %v13781_v36  ;;  %v4182_v13 = vmul.f32 %v4153_v25, %v13782_v49  ;;  %v5900_v28 = vld [vmem:[%s11437_s9 + $0x58] sm:$0xff]  ;;  %v13786_v24 = vld [vmem:[#allocation87_spill] sm:$0xff] }
 0xa31   :  { %5948 = vperm.xlu1 %7405, %v5898_v45   ;;  %v3288_v59 = vmul.f32 %v3250_v33, %v13762_v34  ;;  %v3458_v21 = vsel %vm643_vm4, %v13784_v37, %v11938_v15  ;;  %v3930_v38 = vsel %vm803_vm6, %v11998_v61, %v13786_v24  ;;  %v4146_v34 = vsel %vm883_vm7, %v13787_v55, %v12007_v46 }
 0xa32   :  { %v4245_v11 = vmul.f32 %v13780_v54, %v4181_v2  ;;  %v4246_v19 = vmul.f32 %v13780_v54, %v4182_v13  ;;  %v12237_v8 = vpop.permute.xlu1 %4311  ;;  %v13788_v2 = vld [vmem:[#allocation20_spill] sm:$0xff]  ;;  %v3514_v45 = vmul.f32 %v3458_v21, %v13769_v32  ;;  %v4183_v33 = vmul.f32 %v4146_v34, %v13733_v39 }
 0xa33   :  { %v3352_v13 = vmul.f32 %v13788_v2, %v3288_v59 }
 0xa34   :  { %v12239_v3 = vadd.f32 %v4245_v11, %v4053_v20  ;;  %v12241_v7 = vadd.f32 %v4246_v19, %v4054_v27  ;;  %v13785_v27 = vld [vmem:[#allocation120_spill] sm:$0xff]  ;;  %v13789_v20 = vld [vmem:[#allocation66_spill] sm:$0xff]  ;;  %v3578_v32 = vmul.f32 %v13790_v22, %v3514_v45 }
 0xa35   :  { %5958 = vperm.xlu1 %7405, %v5900_v28   ;;  %v3690_v54 = vsel %vm723_vm5, %v11959_v58, %v13785_v27  ;;  %v4138_v11 = vsel %vm883_vm7, %v12007_v46, %v13789_v20  ;;  %v3962_v28 = vmul.f32 %v3930_v38, %v13679_v9  ;;  %v3384_v59 = vadd.f32 %v3352_v13, %v11905_v16  ;;  %v13793_v38 = vld [vmem:[#allocation64_spill] sm:$0xff] }
 0xa36   :  { %v3210_v50 = vpop.permute.xlu1 %3209  ;;  %v3736_v19 = vmul.f32 %v3690_v54, %v13774_v10  ;;  %v4130_v9 = vsel %vm883_vm7, %v13789_v20, %v12013_v56  ;;  %v12300_v34 = vmul.f32 %v13793_v38, %v4183_v33 }
 0xa37   :  { %v3242_v1 = vsel %vm563_vm3, %v11913_v43, %v3210_v50  ;;  %v4184_v43 = vmul.f32 %v4138_v11, %v13731_v12  ;;  %v4185_v13 = vmul.f32 %v4130_v9, %v13781_v36  ;;  %v4361_v36 = vsel %vm963_vm8, %v12237_v8, %v12039_v52 }
 0xa38   :  { %v3289_v26 = vmul.f32 %v3242_v1, %v13763_v48  ;;  %v13791_v48 = vld [vmem:[#allocation25_spill] sm:$0xff] }
 0xa39   :  { %v3800_v10 = vmul.f32 %v13791_v48, %v3736_v19 }
 0xa3a   :  { %v3402_v31 = vpop.permute.xlu1 %3401 }
 0xa3b   :  { %v3482_v12 = vsel %vm643_vm4, %v11938_v15, %v3402_v31  ;;  %v4154_v15 = vsel %vm883_vm7, %v12013_v56, %v13787_v55 }
 0xa3c   :  { %v3511_v45 = vmul.f32 %v3482_v12, %v13768_v63  ;;  %v4370_v63 = vsel %vm963_vm8, %v11990_v18, %v12020_v30  ;;  %v4186_v12 = vmul.f32 %v4154_v15, %v13782_v49 }
 0xa3e   :  { %v3626_v44 = vpop.permute.xlu1 %3625 }
 0xa3f   :  { %v3698_v56 = vsel %vm723_vm5, %v3626_v44, %v11959_v58 }
 0xa42   :  { %v12268_v25 = vpop.permute.xlu1 %3881 }
 0xa46   :  { %v3226_v29 = vpop.permute.xlu1 %3225 }
 0xa47   :  { %v3234_v21 = vsel %vm563_vm3, %v3210_v50, %v3226_v29  ;;  %v3258_v46 = vsel %vm563_vm3, %v3226_v29, %v13783_v42  ;;  %v13792_v50 = vld [vmem:[#allocation105_spill] sm:$0xff]  ;;  %v3353_v29 = vmul.f32 %v13788_v2, %v3289_v26  ;;  %v12304_v42 = vmul.f32 %v13793_v38, %v4184_v43 }
 0xa48   :  { %v3287_v16 = vmul.f32 %v3258_v46, %v13753_v5  ;;  %v3290_v39 = vmul.f32 %v3234_v21, %v13757_v6  ;;  %v4026_v54 = vmul.f32 %v13792_v50, %v3962_v28  ;;  %v13794_v28 = vld [vmem:[#allocation147_spill] sm:$0xff]  ;;  %v13795_v46 = vld [vmem:[#allocation42_spill] sm:$0xff] }
 0xa49   :  { %v4362_v33 = vsel %vm963_vm8, %v12020_v30, %v13794_v28 }
 0xa4a   :  { %v3351_v5 = vmul.f32 %v13788_v2, %v3287_v16  ;;  %v3354_v6 = vmul.f32 %v13788_v2, %v3290_v39  ;;  %v3418_v1 = vpop.permute.xlu1 %3417  ;;  %v13796_v16 = vld [vmem:[#allocation54_spill] sm:$0xff]  ;;  %v13797_v39 = vld [vmem:[#allocation55_spill] sm:$0xff] }
 0xa4b   :  { %v3466_v26 = vsel %vm643_vm4, %v3418_v1, %v13784_v37  ;;  %v3474_v20 = vsel %vm643_vm4, %v3402_v31, %v3418_v1  ;;  %v3385_v31 = vadd.f32 %v3353_v29, %v11907_v41  ;;  %v3735_v41 = vmul.f32 %v3698_v56, %v13773_v17 }
 0xa4c   :  { %v3386_v55 = vadd.f32 %v3354_v6, %v11936_v62  ;;  %v3512_v2 = vmul.f32 %v3474_v20, %v13764_v53  ;;  %v3513_v11 = vmul.f32 %v3466_v26, %v13760_v4  ;;  %v3906_v62 = vsel %vm803_vm6, %v12268_v25, %v11998_v61  ;;  %v13798_v20 = vld [vmem:[#allocation10_spill] sm:$0xff] }
 0xa4d   :  { %v3383_v58 = vadd.f32 %v3351_v5, %v11934_v35  ;;  %v3575_v61 = vmul.f32 %v13790_v22, %v3511_v45  ;;  %v4407_v30 = vmul.f32 %v4370_v63, %v13796_v16  ;;  %v4404_v17 = vmul.f32 %v4361_v36, %v13797_v39 }
 0xa4e   :  { %v3576_v4 = vmul.f32 %v13790_v22, %v3512_v2  ;;  %v3577_v53 = vmul.f32 %v13790_v22, %v3513_v11  ;;  %v3674_v37 = vpop.permute.xlu1 %3673  ;;  %v3610_v19 = vadd.f32 %v3578_v32, %v3386_v55  ;;  %v3961_v29 = vmul.f32 %v3906_v62, %v13676_v14 }
 0xa4f   :  { %v3682_v43 = vsel %vm723_vm5, %v13785_v27, %v3674_v37  ;;  %v3706_v35 = vsel %vm723_vm5, %v3674_v37, %v3626_v44  ;;  %v3607_v5 = vadd.f32 %v3575_v61, %v3383_v58  ;;  %v4408_v1 = vmul.f32 %v4362_v33, %v13797_v39 }
 0xa50   :  { %v3609_v21 = vadd.f32 %v3577_v53, %v3385_v31  ;;  %v3737_v9 = vmul.f32 %v3682_v43, %v13795_v46  ;;  %v3738_v32 = vmul.f32 %v3706_v35, %v13771_v0  ;;  %v3608_v27 = vadd.f32 %v3576_v4, %v3384_v59 }
 0xa51   :  { %v3799_v45 = vmul.f32 %v13791_v48, %v3735_v41  ;;  %v4354_v56 = vsel %vm963_vm8, %v13794_v28, %v13798_v20  ;;  %v4249_v36 = vmul.f32 %v13793_v38, %v4185_v13  ;;  %v13802_v41 = vld [vmem:[#allocation57_spill] sm:$0xff] }
 0xa52   :  { %v3801_v6 = vmul.f32 %v13791_v48, %v3737_v9  ;;  %v3802_v44 = vmul.f32 %v13791_v48, %v3738_v32  ;;  %v3866_v22 = vpop.permute.xlu1 %3865  ;;  %v13799_v48 = vld [vmem:[#allocation68_spill] sm:$0xff]  ;;  %v3832_v11 = vadd.f32 %v3800_v10, %v3608_v27  ;;  %v13800_v10 = vld [vmem:[#allocation110_spill] sm:$0xff] }
 0xa53   :  { %v3914_v0 = vsel %vm803_vm6, %v3866_v22, %v12268_v25  ;;  %v3922_v49 = vsel %vm803_vm6, %v13786_v24, %v3866_v22  ;;  %v4378_v25 = vsel %vm963_vm8, %v13798_v20, %v11990_v18  ;;  %v4468_v55 = vmul.f32 %v13799_v48, %v4404_v17  ;;  %v13807_v20 = vld [vmem:[#allocation113_spill] sm:$0xff] }
 0xa54   :  { %v3833_v14 = vadd.f32 %v3801_v6, %v3609_v21  ;;  %v3834_v15 = vadd.f32 %v3802_v44, %v3610_v19  ;;  %v3959_v59 = vmul.f32 %v3922_v49, %v13725_v47  ;;  %v3960_v26 = vmul.f32 %v3914_v0, %v13728_v51  ;;  %v13805_v49 = vld [vmem:[#allocation143_spill] sm:$0xff] }
 0xa55   :  { %v4025_v24 = vmul.f32 %v13792_v50, %v3961_v29  ;;  %v3831_v2 = vadd.f32 %v3799_v45, %v3607_v5  ;;  %v4250_v18 = vmul.f32 %v13793_v38, %v4186_v12  ;;  %v4471_v19 = vmul.f32 %v13800_v10, %v4407_v30 }
 0xa56   :  { %v4023_v47 = vmul.f32 %v13792_v50, %v3959_v59  ;;  %v4024_v51 = vmul.f32 %v13792_v50, %v3960_v26  ;;  %v4296_v63 = vpop.permute.xlu1 %4295  ;;  %v4058_v62 = vadd.f32 %v4026_v54, %v3834_v15  ;;  %v4472_v28 = vmul.f32 %v13800_v10, %v4408_v1  ;;  %v13801_v50 = vld [vmem:[#allocation56_spill] sm:$0xff]  ;;  %v13804_v1 = vld [vmem:[#allocation109_spill] sm:$0xff]  ;;  %v13806_v15 = vld [vmem:[#allocation62_spill] sm:$0xff] }
 0xa57   :  { %v4057_v31 = vadd.f32 %v4025_v24, %v3833_v14  ;;  %v4369_v58 = vsel %vm963_vm8, %v4296_v63, %v12237_v8  ;;  %v4409_v33 = vmul.f32 %v4354_v56, %v13801_v50  ;;  %v4410_v13 = vmul.f32 %v4378_v25, %v13802_v41 }
 0xa58   :  { %v4055_v4 = vadd.f32 %v4023_v47, %v3831_v2  ;;  %v4056_v53 = vadd.f32 %v4024_v51, %v3832_v11  ;;  %v4403_v37 = vmul.f32 %v4369_v58, %v13796_v16  ;;  %v4500_v8 = vadd.f32 %v4468_v55, %v12230_v40  ;;  %v13808_v55 = vld [vmem:[#allocation82_spill] sm:$0xff] }
 0xa59   :  { %v4282_v46 = vadd.f32 %v4250_v18, %v4058_v62  ;;  %v4281_v9 = vadd.f32 %v4249_v36, %v4057_v31  ;;  %v4473_v40 = vmul.f32 %v13800_v10, %v4409_v33  ;;  %v13803_v22 = vmov 0.0   ;;  %v13809_v2 = vld [vmem:[#allocation142_spill] sm:$0xff] }
 0xa5a   :  { %v4467_v54 = vmul.f32 %v13799_v48, %v4403_v37  ;;  %v4344_v43 = vpop.permute.xlu1 %4343  ;;  %v4280_v35 = vadd.f32 %v12304_v42, %v4056_v53  ;;  %v4279_v38 = vadd.f32 %v12300_v34, %v4055_v4  ;;  %v4474_v34 = vmul.f32 %v13800_v10, %v4410_v13 }
 0xa5b   :  { %v4353_v61 = vsel %vm963_vm8, %v12039_v52, %v4344_v43  ;;  %v4377_v21 = vsel %vm963_vm8, %v4344_v43, %v4296_v63  ;;  %v4505_v6 = vadd.f32 %v4473_v40, %v4281_v9  ;;  %v6653_v45 = vmul.f32 -1.442695, %v13804_v1 }
 0xa5c   :  { %v4405_v32 = vmul.f32 %v4353_v61, %v13801_v50  ;;  %v4406_v12 = vmul.f32 %v4377_v21, %v13802_v41  ;;  %v4504_v16 = vadd.f32 %v4472_v28, %v4280_v35  ;;  %v4499_v42 = vadd.f32 %v4467_v54, %v12228_v23  ;;  %v4618_v41 = vpop.permute.xlu0 %4617 }
 0xa5d   :  { %v4503_v30 = vadd.f32 %v4471_v19, %v4279_v38  ;;  %v4506_v5 = vadd.f32 %v4474_v34, %v4282_v46  ;;  %7671 = vpow2.f32 %v6653_v45 }
 0xa5e   :  { %v4469_v39 = vmul.f32 %v13799_v48, %v4405_v32  ;;  %v4470_v52 = vmul.f32 %v13799_v48, %v4406_v12  ;;  %v4584_v60 = vpack.c.bf16 %v4504_v16, %v4500_v8 }
 0xa5f   :  { %v4583_v17 = vpack.c.bf16 %v4503_v30, %v4499_v42 }
 0xa60   :  { %4883 = vmatprep.mubr.bf16.mxu0 %v4584_v60  ;;  %v4502_v29 = vadd.f32 %v4470_v52, %v12241_v7  ;;  %v4501_v27 = vadd.f32 %v4469_v39, %v12239_v3 }
 0xa61   :  { %4884 = vmatmul.mubr.bf16.gmra.mrb[56].mxu0 %v4583_v17 }
 0xa62   :  { %v4586_v23 = vpack.c.bf16 %v4506_v5, %v4502_v29  ;;  %v4585_v44 = vpack.c.bf16 %v4505_v6, %v4501_v27 }
 0xa64   :  { %4948 = vmatprep.mubr.bf16.mxu1 %v4586_v23 }
 0xa65   :  { %4949 = vmatmul.mubr.bf16.gmra.mrb[56].mxu1 %v4585_v44 }
 0xa66   :  { %7063 = vmatprep.mubr.msk.f32.mxu1 %vm7813_vm9, %v13803_v22 }
 0xa67   :  { %v7672_v47 = vpop.eup %7671 }
 0xa68   :  { %v4982_v63 = vadd.f32 1.0, %v7672_v47 }
 0xa6b   :  { %v4598_v0 = vpop.permute.xlu1 %4597 }
 0xa6c   :  { %v4862_v14 = vadd.f32 %v13805_v49, %v4598_v0 }
 0xa6e   :  { %v4927_v7 = vadd.f32 %v13806_v15, %v4862_v14 }
 0xa6f   :  { %v4608_v59 = vpop.permute.xlu1 %4607 }
 0xa70   :  { %v6652_v26 = vmul.f32 -1.442695, %v4927_v7  ;;  %v4870_v3 = vadd.f32 %v12203_v57, %v4608_v59  ;;  %v4628_v59 = vpop.permute.xlu0 %4627 }
 0xa72   :  { %7673 = vpow2.f32 %v6652_v26  ;;  %v4935_v56 = vadd.f32 %v13807_v20, %v4870_v3 }
 0xa73   :  { %v4613_v25 = vpop.permute.xlu1 %4612 }
 0xa74   :  { %v6654_v48 = vmul.f32 -1.442695, %v4935_v56  ;;  %v4873_v24 = vadd.f32 %v13808_v55, %v4613_v25 }
 0xa76   :  { %7675 = vpow2.f32 %v6654_v48  ;;  %v4938_v11 = vadd.f32 %v13809_v2, %v4873_v24 }
 0xa77   :  { %v4623_v43 = vpop.permute.xlu1 %4622 }
 0xa78   :  { %v6655_v51 = vmul.f32 -1.442695, %v4938_v11 }
 0xa7a   :  { %7677 = vpow2.f32 %v6655_v51 }
 0xa7b   :  { %7679 = vrcp.f32 %v4982_v63  ;;  %v4633_v25 = vpop.permute.xlu1 %4632 }
 0xa7c   :  { %v7674_v36 = vpop.eup %7673 }
 0xa7d   :  { %v4981_v31 = vadd.f32 1.0, %v7674_v36 }
 0xa7f   :  { %7681 = vrcp.f32 %v4981_v31 }
 0xa80   :  { %v7676_v62 = vpop.eup %7675 }
 0xa81   :  { %v4983_v57 = vadd.f32 1.0, %v7676_v62 }
 0xa83   :  { %7683 = vrcp.f32 %v4983_v57 }
 0xa84   :  { %v7678_v58 = vpop.eup %7677 }
 0xa85   :  { %v4984_v18 = vadd.f32 1.0, %v7678_v58  ;;  %v7680_v4 = vpop.eup %7679 }
 0xa86   :  { %v12422_v10 = vmul.f32 %v7680_v4, %v13804_v1 }
 0xa87   :  { %7685 = vrcp.f32 %v4984_v18 }
 0xa89   :  { %v7682_v53 = vpop.eup %7681 }
 0xa8a   :  { %v12419_v37 = vmul.f32 %v7682_v53, %v4927_v7 }
 0xa8c   :  { %7035 = vmatprep.mubr.f32.mxu0 %v12419_v37 }
 0xa8d   :  { %v7684_v19 = vpop.eup %7683  ;;  %7036 = vmatmul.mubr.f32.vlgmr.msra.gmra.mrb[26].mxu0 %v12422_v10 }
 0xa8e   :  { %v12426_v28 = vmul.f32 %v7684_v19, %v4935_v56 }
 0xa90   :  { %7038 = vmatprep.mubr.f32.mxu0 %v12426_v28 }
 0xa91   :  { %v7686_v50 = vpop.eup %7685 }
 0xa92   :  { %v12429_v33 = vmul.f32 %v7686_v50, %v4938_v11 }
 0xa94   :  { %7039 = vmatmul.mubr.f32.gmra.mrb[60].mxu0 %v12429_v33 }
 0xab7   :  { %v6848_v13 = vpop.f32.mrb[52].mxu0 }
 0xab8   :  { %v6849_v54 = vpop.f32.mrb[53].mxu0 }
 0xab9   :  { %v6850_v35 = vadd.f32 %v6849_v54, %v6848_v13  ;;  %v6851_v8 = vpop.f32.mrb[54].mxu0  ;;  %v6888_v38 = vpop.f32.mrb[52].mxu1 }
 0xaba   :  { %v6852_v61 = vpop.f32.mrb[55].mxu0  ;;  %v6889_v21 = vpop.f32.mrb[53].mxu1 }
 0xabb   :  { %v4878_v46 = vadd.f32 %v6850_v35, %v4618_v41  ;;  %v6853_v9 = vadd.f32 %v6852_v61, %v6851_v8  ;;  %v6890_v32 = vadd.f32 %v6889_v21, %v6888_v38  ;;  %v6891_v12 = vpop.f32.mrb[54].mxu1  ;;  %v13810_v41 = vmov 0.0|0.0  }
 0xabc   :  { %v6892_v16 = vpop.f32.mrb[55].mxu1 }
 0xabd   :  { %v4943_v42 = vadd.f32 %v6890_v32, %v4878_v46  ;;  %v4881_v40 = vadd.f32 %v6853_v9, %v4623_v43  ;;  %v6893_v30 = vadd.f32 %v6892_v16, %v6891_v12  ;;  %v5029_v9 = vld [vmem:[%s6493_s29] sm:$0xf]  ;;  %v5155_v12 = vpop.permute.xlu0 %5154 }
 0xabe   :  { %v5031_v32 = vld [vmem:[%s6495_s13] sm:$0xff] }
 0xabf   :  { %v6656_v34 = vmul.f32 -1.442695, %v4943_v42  ;;  %v4946_v39 = vadd.f32 %v6893_v30, %v4881_v40 }
 0xac1   :  { %7687 = vpow2.f32 %v6656_v34  ;;  %v6657_v52 = vmul.f32 -1.442695, %v4946_v39 }
 0xac3   :  { %7689 = vpow2.f32 %v6657_v52 }
 0xacb   :  { %v7688_v60 = vpop.eup %7687 }
 0xacc   :  { %v4985_v17 = vadd.f32 1.0, %v7688_v60 }
 0xacd   :  { %v7690_v29 = vpop.eup %7689 }
 0xace   :  { %7691 = vrcp.f32 %v4985_v17  ;;  %v4986_v5 = vadd.f32 1.0, %v7690_v29  ;;  %v5032_v17 = vld [vmem:[%s6495_s13 + $0x8] sm:$0xff]  ;;  %v5033_v29 = vld [vmem:[%s6495_s13 + $0x10] sm:$0xff] }
 0xad0   :  { %7693 = vrcp.f32 %v4986_v5  ;;  %v5034_v5 = vld [vmem:[%s6495_s13 + $0x18] sm:$0xff] }
 0xad8   :  { %v7692_v27 = vpop.eup %7691 }
 0xad9   :  { %v12432_v6 = vmul.f32 %v7692_v27, %v4943_v42  ;;  %v5035_v27 = vld [vmem:[%s6495_s13 + $0x20] sm:$0xff] }
 0xada   :  { %v7694_v23 = vpop.eup %7693 }
 0xadb   :  { %7041 = vmatprep.mubr.f32.mxu0 %v12432_v6  ;;  %v12435_v44 = vmul.f32 %v7694_v23, %v4946_v39  ;;  %v5036_v23 = vld [vmem:[%s6495_s13 + $0x28] sm:$0xff] }
 0xadd   :  { %7042 = vmatmul.mubr.f32.gmra.mrb[62].mxu0 %v12435_v44 }
 0xb34   :  { %v6854_v1 = vpop.f32.mrb[56].mxu0 }
 0xb35   :  { %v6855_v45 = vpop.f32.mrb[57].mxu0 }
 0xb36   :  { %v6856_v0 = vadd.f32 %v6855_v45, %v6854_v1  ;;  %v6857_v49 = vpop.f32.mrb[58].mxu0  ;;  %v5037_v1 = vld [vmem:[%s6495_s13 + $0x30] sm:$0xff]  ;;  %v5038_v45 = vld [vmem:[%s6495_s13 + $0x38] sm:$0xff] }
 0xb37   :  { %v6858_v14 = vpop.f32.mrb[59].mxu0 }
 0xb38   :  { %v6859_v15 = vadd.f32 %v6858_v14, %v6857_v49  ;;  %v6894_v7 = vpop.f32.mrb[56].mxu1  ;;  %v4886_v3 = vadd.f32 %v6856_v0, %v4628_v59  ;;  %v12467_v0 = vld [vmem:[%s6506_s18] sm:$0x3]  ;;  %v5246_v49 = vpop.permute.xlu0 %5245 }
 0xb39   :  { %v6895_v26 = vpop.f32.mrb[57].mxu1  ;;  %7080 = vmatprep.subr.msk.mxu0 %vm1542_vm13, %v12467_v0  ;;  %v5241_v14 = vpop.permute.xlu1 %5240 }
 0xb3a   :  { %v6896_v20 = vadd.f32 %v6895_v26, %v6894_v7  ;;  %v6897_v56 = vpop.f32.mrb[58].mxu1  ;;  %v4889_v55 = vadd.f32 %v6859_v15, %v4633_v25  ;;  %7081 = vmatpush3.msk.msra.mxu0 %vm1542_vm13, %v12467_v0 }
 0xb3b   :  { %v6898_v48 = vpop.f32.mrb[59].mxu1  ;;  %7117 = vmatprep.subr.mxu0 %v13803_v22 }
 0xb3c   :  { %v4951_v24 = vadd.f32 %v6896_v20, %v4886_v3  ;;  %v6899_v2 = vadd.f32 %v6898_v48, %v6897_v56  ;;  %v5256_v15 = vpop.permute.xlu0 %5255 }
 0xb3d   :  { %v5251_v59 = vpop.permute.xlu1 %5250 }
 0xb3e   :  { %v6658_v11 = vmul.f32 -1.442695, %v4951_v24  ;;  %v4954_v47 = vadd.f32 %v6899_v2, %v4889_v55 }
 0xb40   :  { %7695 = vpow2.f32 %v6658_v11  ;;  %v6659_v51 = vmul.f32 -1.442695, %v4954_v47  ;;  %v5266_v2 = vpop.permute.xlu0 %5265 }
 0xb42   :  { %7697 = vpow2.f32 %v6659_v51 }
 0xb4a   :  { %v7696_v63 = vpop.eup %7695 }
 0xb4b   :  { %v4987_v36 = vadd.f32 1.0, %v7696_v63 }
 0xb4c   :  { %v7698_v31 = vpop.eup %7697 }
 0xb4d   :  { %7699 = vrcp.f32 %v4987_v36  ;;  %v4988_v62 = vadd.f32 1.0, %v7698_v31 }
 0xb4f   :  { %7701 = vrcp.f32 %v4988_v62 }
 0xb57   :  { %v7700_v57 = vpop.eup %7699 }
 0xb58   :  { %v12438_v58 = vmul.f32 %v7700_v57, %v4951_v24 }
 0xb59   :  { %v7702_v18 = vpop.eup %7701 }
 0xb5a   :  { %7044 = vmatprep.mubr.f32.mxu0 %v12438_v58  ;;  %v12441_v4 = vmul.f32 %v7702_v18, %v4954_v47  ;;  %v5261_v47 = vpop.permute.xlu1 %5260 }
 0xb5c   :  { %7045 = vmatmul.mubr.f32.gmra.mrb[64].mxu0 %v12441_v4 }
 0xb60   :  { %v7037_v53 = vpop.f32.mrb[26].mxu0 }
 0xb61   :  { %v5113_v19 = vpop.f32.mrb[27].mxu0 }
 0xb62   :  { %v7276_v50 = vpack.c.bf16 %v7037_v53, %v5113_v19  ;;  %v5276_v53 = vpop.permute.xlu0 %5275 }
 0xb64   :  { %7277 = vmatpush3.bf16.msra.mxu1 %v7276_v50 }
 0xb65   :  { %7278 = vmatprep.subr.bf16.mxu1 %v13810_v41 }
 0xb67   :  { %v7040_v13 = vpop.f32.mrb[60].mxu0 }
 0xb68   :  { %v5123_v54 = vpop.f32.mrb[61].mxu0 }
 0xb69   :  { %v7279_v43 = vpack.c.bf16 %v7040_v13, %v5123_v54 }
 0xb6b   :  { %7280 = vmatpush3.bf16.msra.mxu1 %v7279_v43 }
 0xb6c   :  { %7281 = vmatprep.subr.bf16.mxu1 %v13810_v41 }
 0xbb0   :  { %v7043_v35 = vpop.f32.mrb[62].mxu0 }
 0xbb1   :  { %v5133_v8 = vpop.f32.mrb[63].mxu0 }
 0xbb2   :  { %v7282_v38 = vpack.c.bf16 %v7043_v35, %v5133_v8 }
 0xbb4   :  { %7283 = vmatpush3.bf16.msra.mxu1 %v7282_v38 }
 0xbb5   :  { %7284 = vmatprep.subr.bf16.mxu1 %v13810_v41  ;;  %v5271_v41 = vpop.permute.xlu1 %5270 }
 0xc2f   :  { %v7046_v61 = vpop.f32.mrb[64].mxu0 }
 0xc30   :  { %v5143_v21 = vpop.f32.mrb[65].mxu0 }
 0xc31   :  { %v7285_v46 = vpack.c.bf16 %v7046_v61, %v5143_v21 }
 0xc33   :  { %7286 = vmatpush3.bf16.msra.mxu1 %v7285_v46 }
 0xc36   :  { %7064 = vmatmul.mubr.msk.f32.vlgmr.msra.gmra.mrb[26].mxu1 %vm5157_vm15, %v5029_v9 }
 0xc37   :  { %7068 = vmatprep.mubr.msk.f32.mxu1 %vm1419_vm11, %v5031_v32 }
 0xd09   :  { %v5227_v16 = vpop.f32.mrb[26].mxu1 }
 0xd0a   :  { %v5228_v42 = vadd.f32 %v5227_v16, %v5155_v12  ;;  %v7065_v40 = vpop.f32.mrb[27].mxu1 }
 0xd0c   :  { %v6661_v30 = vmul.f32 -1.442695, %v5228_v42 }
 0xd0e   :  { %7703 = vpow2.f32 %v6661_v30 }
 0xd18   :  { %v7704_v34 = vpop.eup %7703 }
 0xd19   :  { %v5234_v39 = vadd.f32 1.0, %v7704_v34 }
 0xd1b   :  { %7705 = vrcp.f32 %v5234_v39 }
 0xd25   :  { %v7706_v52 = vpop.eup %7705 }
 0xd26   :  { %v5237_v60 = vmul.f32 %v7706_v52, %v5228_v42 }
 0xd28   :  { %7066 = vmatprep.subr.msk.mxu1 %vm1426_vm12, %v5237_v60 }
 0xd29   :  { %7067 = vmatpush3.msk.msra.mxu1 %vm1426_vm12, %v5237_v60 }
 0xd2a   :  { %7069 = vmatmul.mubr.msk.f32.vlgmr.msra.gmra.mrb[60].mxu1 %vm1419_vm11, %v5032_v17 }
 0xd2b   :  { %7071 = vmatprep.mubr.msk.f32.mxu1 %vm1419_vm11, %v5033_v29 }
 0xd2e   :  { %7072 = vmatmul.mubr.msk.f32.gmra.mrb[62].mxu1 %vm1419_vm11, %v5034_v5 }
 0xd2f   :  { %7074 = vmatprep.mubr.msk.f32.mxu1 %vm1419_vm11, %v5035_v27 }
 0xd32   :  { %7075 = vmatmul.mubr.msk.f32.gmra.mrb[64].mxu1 %vm1419_vm11, %v5036_v23 }
 0xd33   :  { %7077 = vmatprep.mubr.msk.f32.mxu1 %vm1419_vm11, %v5037_v1 }
 0xd36   :  { %7078 = vmatmul.mubr.msk.f32.gmra.mrb[66].mxu1 %vm1419_vm11, %v5038_v45 }
 0xdfd   :  { %v7070_v7 = vpop.f32.mrb[60].mxu1 }
 0xdfe   :  { %v5377_v26 = vadd.f32 %v7070_v7, %v5246_v49  ;;  %v5371_v3 = vpop.f32.mrb[61].mxu1  ;;  %v5780_v7 = vld [vmem:[%s6475_s3] sm:$0xff] }
 0xdff   :  { %v5372_v20 = vadd.f32 %v5371_v3, %v5241_v14 }
 0xe00   :  { %v6672_v56 = vmul.f32 -1.442695, %v5377_v26  ;;  %v5782_v26 = vld [vmem:[%s6475_s3 + $0x10] sm:$0xff] }
 0xe01   :  { %v6671_v25 = vmul.f32 -1.442695, %v5372_v20  ;;  %v7073_v48 = vpop.f32.mrb[62].mxu1 }
 0xe02   :  { %7707 = vpow2.f32 %v6672_v56  ;;  %v5387_v55 = vadd.f32 %v7073_v48, %v5256_v15  ;;  %v5381_v24 = vpop.f32.mrb[63].mxu1  ;;  %v7457_v15 = vld [vmem:[%s12489_s21] sm:$0xff]  }
 0xe03   :  { %7709 = vpow2.f32 %v6671_v25  ;;  %v5382_v11 = vadd.f32 %v5381_v24, %v5251_v59  ;;  %7102 = vmatprep.mubr.msk.bf16.mxu1 %vm5157_vm15, %v7457_v15  ;;  %v5781_v59 = vld [vmem:[%s6475_s3 + $0x8] sm:$0xff]  ;;  %v7463_v15 = vld [vmem:[%s12531_s23 + $0x20] sm:$0xff]  }
 0xe04   :  { %v6674_v51 = vmul.f32 -1.442695, %v5387_v55 }
 0xe05   :  { %v6673_v63 = vmul.f32 -1.442695, %v5382_v11  ;;  %v7076_v36 = vpop.f32.mrb[64].mxu1 }
 0xe06   :  { %7711 = vpow2.f32 %v6674_v51  ;;  %v5397_v31 = vadd.f32 %v7076_v36, %v5266_v2  ;;  %v5391_v62 = vpop.f32.mrb[65].mxu1 }
 0xe07   :  { %7713 = vpow2.f32 %v6673_v63  ;;  %v5392_v57 = vadd.f32 %v5391_v62, %v5261_v47 }
 0xe08   :  { %v6676_v18 = vmul.f32 -1.442695, %v5397_v31 }
 0xe09   :  { %v6675_v19 = vmul.f32 -1.442695, %v5392_v57  ;;  %v7079_v50 = vpop.f32.mrb[66].mxu1 }
 0xe0a   :  { %7715 = vpow2.f32 %v6676_v18  ;;  %v5407_v13 = vadd.f32 %v7079_v50, %v5276_v53  ;;  %v5401_v54 = vpop.f32.mrb[67].mxu1  ;;  %v7458_v18 = vld [vmem:[%s12489_s21 + $0x8] ss:$0 sps:$4 sm:$0xff]  }
 0xe0b   :  { %7717 = vpow2.f32 %v6675_v19  ;;  %v5402_v43 = vadd.f32 %v5401_v54, %v5271_v41  ;;  %v7459_v54 = vld [vmem:[%s12531_s23] sm:$0xff]  }
 0xe0c   :  { %v7708_v35 = vpop.eup %7707  ;;  %v6678_v8 = vmul.f32 -1.442695, %v5407_v13 }
 0xe0d   :  { %v7710_v38 = vpop.eup %7709  ;;  %v5435_v61 = vadd.f32 1.0, %v7708_v35  ;;  %v6677_v21 = vmul.f32 -1.442695, %v5402_v43 }
 0xe0e   :  { %v5434_v46 = vadd.f32 1.0, %v7710_v38  ;;  %7719 = vpow2.f32 %v6678_v8  ;;  %v5611_v38 = vpop.permute.xlu1 %5610 }
 0xe0f   :  { %7721 = vrcp.f32 %v5435_v61 }
 0xe10   :  { %v7712_v9 = vpop.eup %7711  ;;  %7723 = vrcp.f32 %v5434_v46 }
 0xe11   :  { %v7714_v32 = vpop.eup %7713  ;;  %v5437_v12 = vadd.f32 1.0, %v7712_v9  ;;  %7725 = vpow2.f32 %v6677_v21 }
 0xe12   :  { %v5436_v16 = vadd.f32 1.0, %v7714_v32  ;;  %v5616_v32 = vpop.permute.xlu0 %5615 }
 0xe14   :  { %v7716_v42 = vpop.eup %7715  ;;  %7727 = vrcp.f32 %v5436_v16 }
 0xe15   :  { %v7718_v40 = vpop.eup %7717  ;;  %7729 = vrcp.f32 %v5437_v12  ;;  %v5439_v30 = vadd.f32 1.0, %v7716_v42 }
 0xe16   :  { %v5438_v34 = vadd.f32 1.0, %v7718_v40 }
 0xe18   :  { %v7720_v39 = vpop.eup %7719  ;;  %7731 = vrcp.f32 %v5438_v34  ;;  %v5621_v34 = vpop.permute.xlu1 %5620 }
 0xe19   :  { %v7722_v52 = vpop.eup %7721  ;;  %7733 = vrcp.f32 %v5439_v30  ;;  %v5441_v29 = vadd.f32 1.0, %v7720_v39 }
 0xe1a   :  { %v7724_v60 = vpop.eup %7723 }
 0xe1b   :  { %v7726_v17 = vpop.eup %7725  ;;  %7082 = vmatprep.mubr.msk.f32.mxu0 %vm1535_vm14, %v7724_v60 }
 0xe1c   :  { %v5440_v5 = vadd.f32 1.0, %v7726_v17  ;;  %7083 = vmatmul.mubr.msk.f32.vlgmr.msra.gmra.mrb[66].mxu0 %vm1535_vm14, %v7722_v52 }
 0xe1d   :  { %7118 = vmatpush3.msk.msra.mxu0 %vm1542_vm13, %v12467_v0 }
 0xe1e   :  { %v7728_v27 = vpop.eup %7727  ;;  %7735 = vrcp.f32 %v5440_v5 }
 0xe1f   :  { %v7730_v23 = vpop.eup %7729  ;;  %7737 = vrcp.f32 %v5441_v29  ;;  %7085 = vmatprep.mubr.msk.f32.mxu0 %vm1535_vm14, %v7728_v27 }
 0xe20   :  { %7086 = vmatmul.mubr.msk.f32.gmra.mrb[68].mxu0 %vm1535_vm14, %v7730_v23 }
 0xe22   :  { %v7732_v1 = vpop.eup %7731 }
 0xe23   :  { %v7734_v45 = vpop.eup %7733  ;;  %7088 = vmatprep.mubr.msk.f32.mxu0 %vm1535_vm14, %v7732_v1 }
 0xe24   :  { %7089 = vmatmul.mubr.msk.f32.gmra.mrb[70].mxu0 %vm1535_vm14, %v7734_v45  ;;  %v7460_v45 = vld [vmem:[%s12531_s23 + $0x8] sm:$0xff]  }
 0xe28   :  { %v7736_v49 = vpop.eup %7735 }
 0xe29   :  { %v7738_v14 = vpop.eup %7737  ;;  %7091 = vmatprep.mubr.msk.f32.mxu0 %vm1535_vm14, %v7736_v49  ;;  %v7461_v49 = vld [vmem:[%s12531_s23 + $0x10] sm:$0xff]  }
 0xe2a   :  { %7092 = vmatmul.mubr.msk.f32.gmra.mrb[72].mxu0 %vm1535_vm14, %v7738_v14  ;;  %v7462_v14 = vld [vmem:[%s12531_s23 + $0x18] sm:$0xff]  }
 0xe2b   :  { %7119 = vmatprep.mubr.msk.f32.mxu0 %vm7813_vm9, %v13803_v22 }
 0xe2e   :  { %7120 = vmatmul.mubr.msk.f32.vlgmr.msra.gmra.mrb[74].mxu0 %vm1535_vm14, %v5780_v7  ;;  %v7464_v7 = vld [vmem:[%s12531_s23 + $0x28] sm:$0xff]  }
 0xe2f   :  { %7122 = vmatprep.mubr.msk.f32.mxu0 %vm7813_vm9, %v13803_v22 }
 0xe32   :  { %7123 = vmatmul.mubr.msk.f32.gmra.mrb[76].mxu0 %vm1535_vm14, %v5781_v59  ;;  %v7465_v59 = vld [vmem:[%s12554_s27] sm:$0xff]  }
 0xe33   :  { %7125 = vmatprep.mubr.msk.f32.mxu0 %vm7813_vm9, %v13803_v22 }
 0xe36   :  { %7126 = vmatmul.mubr.msk.f32.gmra.mrb[78].mxu0 %vm1535_vm14, %v5782_v26  ;;  %v6359_v26 = vld [vmem:[%s6477_s11] sm:$0xff] }
 0xe37   :  { %7156 = vmatprep.mubr.msk.bf16.mxu0 %vm6198_vm1, %v7465_v59 }
 0xeef   :  { %v7084_v3 = vpop.f32.mrb[66].mxu0 }
 0xef0   :  { %v5591_v20 = vmul.f32 %v7084_v3, %v12422_v10  ;;  %v5551_v56 = vpop.f32.mrb[67].mxu0  ;;  %v6360_v3 = vld [vmem:[%s6477_s11 + $0x8] sm:$0xff] }
 0xef1   :  { %v5590_v25 = vmul.f32 %v5551_v56, %v12419_v37  ;;  %v6362_v56 = vld [vmem:[%s6477_s11 + $0x18] sm:$0xff] }
 0xef3   :  { %v5601_v48 = vpack.c.bf16 %v5591_v20, %v5590_v25  ;;  %v7087_v55 = vpop.f32.mrb[68].mxu0  ;;  %v6361_v20 = vld [vmem:[%s6477_s11 + $0x10] sm:$0xff]  ;;  %v5904_v25 = vpop.permute.xlu0 %5903 }
 0xef4   :  { %v5593_v24 = vmul.f32 %v7087_v55, %v12429_v33  ;;  %v5561_v2 = vpop.f32.mrb[69].mxu0 }
 0xef5   :  { %v5592_v11 = vmul.f32 %v5561_v2, %v12426_v28  ;;  %7094 = vmatprep.subr.bf16.mxu1 %v5601_v48 }
 0xef6   :  { %7095 = vmatpush3.bf16.msra.mxu1 %v5601_v48  ;;  %v5909_v48 = vpop.permute.xlu1 %5908 }
 0xef7   :  { %v5602_v47 = vpack.c.bf16 %v5593_v24, %v5592_v11  ;;  %v7090_v51 = vpop.f32.mrb[70].mxu0  ;;  %v5914_v55 = vpop.permute.xlu0 %5913 }
 0xef8   :  { %v5595_v63 = vmul.f32 %v7090_v51, %v12435_v44  ;;  %v5571_v36 = vpop.f32.mrb[71].mxu0  ;;  %v5686_v44 = vld [vmem:[%s6474_s7 + $0x8] sm:$0xff] }
 0xef9   :  { %v5594_v10 = vmul.f32 %v5571_v36, %v12432_v6  ;;  %7096 = vmatprep.subr.bf16.mxu1 %v5602_v47  ;;  %v5685_v6 = vld [vmem:[%s6474_s7] sm:$0xff] }
 0xefa   :  { %7097 = vmatpush3.bf16.msra.mxu1 %v5602_v47  ;;  %v5919_v24 = vpop.permute.xlu1 %5918 }
 0xefb   :  { %v5603_v37 = vpack.c.bf16 %v5595_v63, %v5594_v10  ;;  %v5924_v2 = vpop.permute.xlu0 %5923 }
 0xefd   :  { %v7093_v31 = vpop.f32.mrb[72].mxu0  ;;  %7098 = vmatprep.subr.bf16.mxu1 %v5603_v37 }
 0xefe   :  { %v5597_v33 = vmul.f32 %v7093_v31, %v12441_v4  ;;  %v5581_v62 = vpop.f32.mrb[73].mxu0  ;;  %7099 = vmatpush3.bf16.msra.mxu1 %v5603_v37  ;;  %v5929_v11 = vpop.permute.xlu1 %5928 }
 0xeff   :  { %v5596_v28 = vmul.f32 %v5581_v62, %v12438_v58  ;;  %v5687_v58 = vld [vmem:[%s6474_s7 + $0x10] sm:$0xff]  ;;  %v5934_v62 = vpop.permute.xlu0 %5933 }
 0xf01   :  { %v5604_v57 = vpack.c.bf16 %v5597_v33, %v5596_v28  ;;  %v5858_v4 = vpop.f32.mrb[74].mxu0 }
 0xf02   :  { %v7121_v53 = vpop.f32.mrb[75].mxu0 }
 0xf03   :  { %7100 = vmatprep.subr.bf16.mxu1 %v5604_v57 }
 0xf04   :  { %7101 = vmatpush3.bf16.msra.mxu1 %v5604_v57 }
 0xf05   :  { %7106 = vmatprep.subr.mxu1 %v13803_v22  ;;  %v5863_v19 = vpop.f32.mrb[76].mxu0 }
 0xf06   :  { %v7124_v50 = vpop.f32.mrb[77].mxu0 }
 0xf07   :  { %7103 = vmatmul.mubr.msk.bf16.vlgmr.msra.gmra.mrb[68].mxu1 %vm5157_vm15, %v7458_v18 }
 0xf08   :  { %7107 = vmatpush3.msk.msra.mxu1 %vm1542_vm13, %v12467_v0  ;;  %7108 = vmatprep.mubr.msk.f32.mxu1 %vm7813_vm9, %v13803_v22 }
 0xf09   :  { %v5868_v41 = vpop.f32.mrb[78].mxu0 }
 0xf0a   :  { %v7127_v13 = vpop.f32.mrb[79].mxu0 }
 0xf0f   :  { %7109 = vmatmul.mubr.msk.f32.vlgmr.msra.gmra.mrb[72].mxu1 %vm1535_vm14, %v5685_v6  ;;  %v5939_v6 = vpop.permute.xlu1 %5938 }
 0xf10   :  { %7111 = vmatprep.mubr.msk.f32.mxu1 %vm7813_vm9, %v13803_v22 }
 0xf13   :  { %7112 = vmatmul.mubr.msk.f32.gmra.mrb[74].mxu1 %vm1535_vm14, %v5686_v44 }
 0xf14   :  { %7114 = vmatprep.mubr.msk.f32.mxu1 %vm7813_vm9, %v13803_v22 }
 0xf17   :  { %7115 = vmatmul.mubr.msk.f32.gmra.mrb[76].mxu1 %vm1535_vm14, %v5687_v58 }
 0xf18   :  { %7132 = vmatprep.mubr.msk.bf16.mxu1 %vm5991_vm0, %v7459_v54 }
 0xfda   :  { %v7104_v22 = vpop.f32.mrb[68].mxu1 }
 0xfdb   :  { %v5671_v43 = vpop.f32.mrb[69].mxu1  ;;  %v5680_v39 = vadd.f32 %v7104_v22, %v5621_v34 }
 0xfdc   :  { %v7105_v35 = vpop.f32.mrb[70].mxu1  ;;  %v5672_v61 = vadd.f32 %v5671_v43, %v5611_v38  ;;  %v5949_v43 = vpop.permute.xlu1 %5948 }
 0xfdd   :  { %v5674_v8 = vpop.f32.mrb[71].mxu1 }
 0xfde   :  { %v5675_v12 = vadd.f32 %v5674_v8, %v5616_v32 }
 0xfe2   :  { %v5763_v21 = vpop.f32.mrb[72].mxu1 }
 0xfe3   :  { %v5777_v46 = vmul.f32 %v5763_v21, %v5672_v61  ;;  %v7110_v9 = vpop.f32.mrb[73].mxu1 }
 0xfe5   :  { %v5872_v16 = vadd.f32 %v5858_v4, %v5777_v46 }
 0xfe6   :  { %v5768_v42 = vpop.f32.mrb[74].mxu1 }
 0xfe7   :  { %v5778_v40 = vmul.f32 %v5768_v42, %v5675_v12  ;;  %v7113_v30 = vpop.f32.mrb[75].mxu1 }
 0xfe9   :  { %v5873_v52 = vadd.f32 %v5863_v19, %v5778_v40  ;;  %v5944_v19 = vpop.permute.xlu0 %5943 }
 0xfea   :  { %v5773_v60 = vpop.f32.mrb[76].mxu1 }
 0xfeb   :  { %v5887_v17 = vpack.c.bf16 %v5873_v52, %v5872_v16  ;;  %v5779_v29 = vmul.f32 %v5773_v60, %v5680_v39  ;;  %v7116_v5 = vpop.f32.mrb[77].mxu1  ;;  %v5959_v39 = vpop.permute.xlu1 %5958 }
 0xfed   :  { %v5874_v27 = vadd.f32 %v5868_v41, %v5779_v29  ;;  %7128 = vmatprep.subr.bf16.mxu1 %v5887_v17  ;;  %v5954_v9 = vpop.permute.xlu0 %5953 }
 0xfee   :  { %7129 = vmatpush3.bf16.msra.mxu1 %v5887_v17 }
 0xfef   :  { %v5888_v23 = vpack.c.bf16 %v5874_v27, %v5874_v27 }
 0xff1   :  { %v6011_v1 = vsel %vm1426_vm12, %v5888_v23, 0  ;;  %7287 = vmatprep.subr.msk.bf16.mxu1 %vm1426_vm12, %v5888_v23 }
 0xff2   :  { %7131 = vmatpush3.bf16.msra.mxu1 %v6011_v1 }
 0xff3   :  { %7168 = vmatprep.subr.msk.mxu1 %vm1542_vm13, %v12467_v0 }
 0xff5   :  { %7133 = vmatmul.mubr.msk.bf16.vlgmr.msra.gmra.mrb[80].mxu1 %vm5991_vm0, %v7460_v45 }
 0xff6   :  { %7136 = vmatprep.mubr.msk.bf16.mxu1 %vm5991_vm0, %v7461_v49  ;;  %7169 = vmatpush3.msk.msra.mxu1 %vm1542_vm13, %v12467_v0 }
 0xffd   :  { %7137 = vmatmul.mubr.msk.bf16.gmra.mrb[84].mxu1 %vm5991_vm0, %v7462_v14 }
 0xffe   :  { %7140 = vmatprep.mubr.msk.bf16.mxu1 %vm5991_vm0, %v7463_v15 }
0x1005   :  { %7141 = vmatmul.mubr.msk.bf16.gmra.mrb[88].mxu1 %vm5991_vm0, %v7464_v7 }
0x1006   :  { %7170 = vmatprep.mubr.msk.f32.mxu1 %vm1535_vm14, %v6359_v26 }
0x100d   :  { %7171 = vmatmul.mubr.msk.f32.vlgmr.msra.gmra.mrb[78].mxu1 %vm1535_vm14, %v6360_v3 }
0x100e   :  { %7173 = vmatprep.mubr.msk.f32.mxu1 %vm1535_vm14, %v6361_v20 }
0x1011   :  { %7174 = vmatmul.mubr.msk.f32.gmra.mrb[92].mxu1 %vm1535_vm14, %v6362_v56 }
0x10c8   :  { %v7134_v47 = vpop.f32.mrb[80].mxu1 }
0x10c9   :  { %v12565_v51 = vadd.f32 %v7134_v47, %v5914_v55  ;;  %v6047_v63 = vpop.f32.mrb[81].mxu1 }
0x10ca   :  { %v12567_v36 = vadd.f32 %v6047_v63, %v5904_v25  ;;  %v7135_v10 = vpop.f32.mrb[82].mxu1 }
0x10cb   :  { %v6714_v37 = vmul.f32 -1.442695, %v12565_v51  ;;  %v12570_v31 = vadd.f32 %v7135_v10, %v5919_v24  ;;  %v6050_v33 = vpop.f32.mrb[83].mxu1 }
0x10cc   :  { %v6712_v28 = vmul.f32 -1.442695, %v12567_v36  ;;  %v12573_v57 = vadd.f32 %v6050_v33, %v5909_v48 }
0x10cd   :  { %7739 = vpow2.f32 %v6714_v37  ;;  %v6715_v18 = vmul.f32 -1.442695, %v12570_v31 }
0x10ce   :  { %7741 = vpow2.f32 %v6712_v28  ;;  %v6713_v44 = vmul.f32 -1.442695, %v12573_v57 }
0x10cf   :  { %7743 = vpow2.f32 %v6715_v18 }
0x10d0   :  { %7745 = vpow2.f32 %v6713_v44  ;;  %v7138_v58 = vpop.f32.mrb[84].mxu1 }
0x10d1   :  { %v12577_v4 = vadd.f32 %v7138_v58, %v5934_v62  ;;  %v6063_v53 = vpop.f32.mrb[85].mxu1 }
0x10d2   :  { %v12579_v50 = vadd.f32 %v6063_v53, %v5924_v2  ;;  %v7139_v41 = vpop.f32.mrb[86].mxu1 }
0x10d3   :  { %v6718_v13 = vmul.f32 -1.442695, %v12577_v4  ;;  %v12582_v54 = vadd.f32 %v7139_v41, %v5939_v6  ;;  %v6066_v22 = vpop.f32.mrb[87].mxu1 }
0x10d4   :  { %v6716_v35 = vmul.f32 -1.442695, %v12579_v50  ;;  %v12585_v8 = vadd.f32 %v6066_v22, %v5929_v11 }
0x10d5   :  { %7747 = vpow2.f32 %v6718_v13  ;;  %v6719_v38 = vmul.f32 -1.442695, %v12582_v54 }
0x10d6   :  { %7749 = vpow2.f32 %v6716_v35  ;;  %v6717_v61 = vmul.f32 -1.442695, %v12585_v8 }
0x10d7   :  { %v7740_v21 = vpop.eup %7739  ;;  %7751 = vpow2.f32 %v6719_v38 }
0x10d8   :  { %v7742_v46 = vpop.eup %7741  ;;  %v6132_v32 = vadd.f32 1.0, %v7740_v21  ;;  %7753 = vpow2.f32 %v6717_v61  ;;  %v7142_v12 = vpop.f32.mrb[88].mxu1 }
0x10d9   :  { %v7744_v16 = vpop.eup %7743  ;;  %v6130_v42 = vadd.f32 1.0, %v7742_v46  ;;  %v12589_v40 = vadd.f32 %v7142_v12, %v5954_v9  ;;  %v6079_v30 = vpop.f32.mrb[89].mxu1 }
0x10da   :  { %v7746_v34 = vpop.eup %7745  ;;  %7755 = vrcp.f32 %v6132_v32  ;;  %v6133_v52 = vadd.f32 1.0, %v7744_v16  ;;  %v12591_v60 = vadd.f32 %v6079_v30, %v5944_v19  ;;  %v7143_v17 = vpop.f32.mrb[90].mxu1  ;;  %v7466_v16 = vld [vmem:[%s12554_s27 + $0x8] sm:$0xff]   ;;  %v6256_v30 = vld [vmem:[%s6476_s15 + $0x10] sm:$0xff] }
0x10db   :  { %7757 = vrcp.f32 %v6130_v42  ;;  %v6131_v29 = vadd.f32 1.0, %v7746_v34  ;;  %v6722_v5 = vmul.f32 -1.442695, %v12589_v40  ;;  %v12594_v27 = vadd.f32 %v7143_v17, %v5959_v39  ;;  %v6082_v23 = vpop.f32.mrb[91].mxu1  ;;  %v6254_v42 = vld [vmem:[%s6476_s15] sm:$0xff]  ;;  %v6257_v34 = vld [vmem:[%s6476_s15 + $0x18] sm:$0xff] }
0x10dc   :  { %7759 = vrcp.f32 %v6133_v52  ;;  %v6720_v1 = vmul.f32 -1.442695, %v12591_v60  ;;  %v12597_v45 = vadd.f32 %v6082_v23, %v5949_v43 }
0x10dd   :  { %7761 = vrcp.f32 %v6131_v29  ;;  %v6723_v49 = vmul.f32 -1.442695, %v12594_v27 }
0x10de   :  { %7763 = vpow2.f32 %v6722_v5  ;;  %v6721_v14 = vmul.f32 -1.442695, %v12597_v45 }
0x10df   :  { %v7748_v15 = vpop.eup %7747  ;;  %7765 = vpow2.f32 %v6720_v1 }
0x10e0   :  { %v7750_v7 = vpop.eup %7749  ;;  %v6136_v59 = vadd.f32 1.0, %v7748_v15  ;;  %7767 = vpow2.f32 %v6723_v49  ;;  %v7172_v39 = vpop.f32.mrb[78].mxu1 }
0x10e1   :  { %v7752_v26 = vpop.eup %7751  ;;  %v6134_v3 = vadd.f32 1.0, %v7750_v7  ;;  %7769 = vpow2.f32 %v6721_v14  ;;  %v6441_v52 = vpop.f32.mrb[79].mxu1 }
0x10e2   :  { %v7754_v20 = vpop.eup %7753  ;;  %7771 = vrcp.f32 %v6136_v59  ;;  %v6137_v56 = vadd.f32 1.0, %v7752_v26 }
0x10e3   :  { %7773 = vrcp.f32 %v6134_v3  ;;  %v6135_v25 = vadd.f32 1.0, %v7754_v20 }
0x10e4   :  { %v7756_v48 = vpop.eup %7755  ;;  %7775 = vrcp.f32 %v6137_v56 }
0x10e5   :  { %v7758_v55 = vpop.eup %7757  ;;  %7777 = vrcp.f32 %v6135_v25  ;;  %v6168_v11 = vmul.f32 %v7756_v48, %v12565_v51 }
0x10e6   :  { %v7760_v24 = vpop.eup %7759  ;;  %v6166_v10 = vmul.f32 %v7758_v55, %v12567_v36 }
0x10e7   :  { %v7762_v2 = vpop.eup %7761  ;;  %v6169_v47 = vmul.f32 %v7760_v24, %v12570_v31 }
0x10e8   :  { %v7764_v63 = vpop.eup %7763  ;;  %v6167_v37 = vmul.f32 %v7762_v2, %v12573_v57 }
0x10e9   :  { %v7766_v33 = vpop.eup %7765  ;;  %v6140_v62 = vadd.f32 1.0, %v7764_v63  ;;  %v6183_v28 = vpack.c.bf16 %v6169_v47, %v6168_v11 }
0x10ea   :  { %v7768_v18 = vpop.eup %7767  ;;  %v6138_v6 = vadd.f32 1.0, %v7766_v33  ;;  %v6182_v44 = vpack.c.bf16 %v6167_v37, %v6166_v10 }
0x10eb   :  { %v7770_v58 = vpop.eup %7769  ;;  %7779 = vrcp.f32 %v6140_v62  ;;  %v6141_v53 = vadd.f32 1.0, %v7768_v18 }
0x10ec   :  { %v7772_v19 = vpop.eup %7771  ;;  %7781 = vrcp.f32 %v6138_v6  ;;  %v6139_v41 = vadd.f32 1.0, %v7770_v58  ;;  %7144 = vmatprep.subr.bf16.mxu0 %v6182_v44 }
0x10ed   :  { %v7774_v51 = vpop.eup %7773  ;;  %7783 = vrcp.f32 %v6141_v53  ;;  %7145 = vmatpush3.bf16.msra.mxu0 %v6182_v44  ;;  %v6172_v57 = vmul.f32 %v7772_v19, %v12577_v4 }
0x10ee   :  { %v7776_v31 = vpop.eup %7775  ;;  %7785 = vrcp.f32 %v6139_v41  ;;  %7146 = vmatprep.subr.bf16.mxu0 %v6183_v28  ;;  %v6170_v22 = vmul.f32 %v7774_v51, %v12579_v50 }
0x10ef   :  { %v7778_v36 = vpop.eup %7777  ;;  %v6173_v13 = vmul.f32 %v7776_v31, %v12582_v54 }
0x10f0   :  { %v6171_v43 = vmul.f32 %v7778_v36, %v12585_v8 }
0x10f1   :  { %7147 = vmatpush3.bf16.msra.mxu0 %v6183_v28  ;;  %v6185_v35 = vpack.c.bf16 %v6173_v13, %v6172_v57 }
0x10f2   :  { %v6184_v38 = vpack.c.bf16 %v6171_v43, %v6170_v22 }
0x10f4   :  { %7148 = vmatprep.subr.bf16.mxu0 %v6184_v38 }
0x10f5   :  { %v7780_v61 = vpop.eup %7779  ;;  %7149 = vmatpush3.bf16.msra.mxu0 %v6184_v38 }
0x10f6   :  { %v7782_v21 = vpop.eup %7781  ;;  %7150 = vmatprep.subr.bf16.mxu0 %v6185_v35  ;;  %v6176_v32 = vmul.f32 %v7780_v61, %v12589_v40  ;;  %v6255_v40 = vld [vmem:[%s6476_s15 + $0x8] sm:$0xff] }
0x10f7   :  { %v7784_v46 = vpop.eup %7783  ;;  %v6174_v54 = vmul.f32 %v7782_v21, %v12591_v60  ;;  %v7175_v60 = vpop.f32.mrb[92].mxu1 }
0x10f8   :  { %v7786_v9 = vpop.eup %7785  ;;  %v6177_v4 = vmul.f32 %v7784_v46, %v12594_v27  ;;  %v6451_v17 = vpop.f32.mrb[93].mxu1 }
0x10f9   :  { %v6175_v50 = vmul.f32 %v7786_v9, %v12597_v45  ;;  %7151 = vmatpush3.bf16.msra.mxu0 %v6185_v35 }
0x10fa   :  { %v6187_v8 = vpack.c.bf16 %v6177_v4, %v6176_v32 }
0x10fb   :  { %v6186_v12 = vpack.c.bf16 %v6175_v50, %v6174_v54 }
0x10fd   :  { %7152 = vmatprep.subr.bf16.mxu0 %v6186_v12 }
0x10fe   :  { %7153 = vmatpush3.bf16.msra.mxu0 %v6186_v12 }
0x10ff   :  { %7154 = vmatprep.subr.bf16.mxu0 %v6187_v8 }
0x1102   :  { %7155 = vmatpush3.bf16.msra.mxu0 %v6187_v8 }
0x1103   :  { %7160 = vmatprep.subr.msk.mxu0 %vm1542_vm13, %v12467_v0 }
0x1105   :  { %7157 = vmatmul.mubr.msk.bf16.vlgmr.msra.gmra.mrb[80].mxu0 %vm6198_vm1, %v7466_v16 }
0x1106   :  { %7161 = vmatpush3.msk.msra.mxu0 %vm1542_vm13, %v12467_v0  ;;  %7162 = vmatprep.mubr.msk.f32.mxu0 %vm1535_vm14, %v6254_v42 }
0x110d   :  { %7163 = vmatmul.mubr.msk.f32.vlgmr.msra.gmra.mrb[84].mxu0 %vm1535_vm14, %v6255_v40 }
0x110e   :  { %7165 = vmatprep.mubr.msk.f32.mxu0 %vm1535_vm14, %v6256_v30 }
0x1111   :  { %7166 = vmatmul.mubr.msk.f32.gmra.mrb[86].mxu0 %vm1535_vm14, %v6257_v34 }
0x11d8   :  { %v7158_v29 = vpop.f32.mrb[80].mxu0 }
0x11d9   :  { %v6239_v5 = vpop.f32.mrb[81].mxu0 }
0x11da   :  { %v7159_v27 = vpop.f32.mrb[82].mxu0 }
0x11db   :  { %v6242_v23 = vpop.f32.mrb[83].mxu0 }
0x11e0   :  { %v7164_v0 = vpop.f32.mrb[84].mxu0 }
0x11e1   :  { %v6356_v1 = vmul.f32 %v7164_v0, %v6242_v23  ;;  %v6336_v45 = vpop.f32.mrb[85].mxu0 }
0x11e2   :  { %v6355_v49 = vmul.f32 %v6336_v45, %v6239_v5 }
0x11e3   :  { %v6461_v14 = vadd.f32 %v7172_v39, %v6356_v1 }
0x11e4   :  { %v6460_v15 = vadd.f32 %v6441_v52, %v6355_v49  ;;  %v7167_v7 = vpop.f32.mrb[86].mxu0 }
0x11e5   :  { %6465 = vst [vmem:[%s6507_s17 + $0x8] sm:$0xff] %v6461_v14  ;;  %v6358_v59 = vmul.f32 %v7167_v7, %v7159_v27  ;;  %v6346_v26 = vpop.f32.mrb[87].mxu0 }
0x11e6   :  { %6464 = vst [vmem:[%s6507_s17] sm:$0xff] %v6460_v15  ;;  %v6357_v3 = vmul.f32 %v7158_v29, %v6346_v26 }
0x11e7   :  { %v6463_v20 = vadd.f32 %v7175_v60, %v6358_v59 }
0x11e8   :  { %v6462_v56 = vadd.f32 %v6451_v17, %v6357_v3 }
0x11e9   :  { %6467 = vst [vmem:[%s6507_s17 + $0x18] sm:$0xff] %v6463_v20 }
0x11ea   :  { %6466 = vst [vmem:[%s6507_s17 + $0x10] sm:$0xff] %v6462_v56 }

</bundles_post_ra>
